<compile_context>
chip_gen: v7x
topology: tpu7x:2x2x1
jax: 0.10.0
libtpu: 0.0.40
codegen_flags: <defaults>
</compile_context>

<pallas_src>
import functools
import math

import jax
import jax.numpy as jnp
from jax.experimental import pallas as pl
from jax.experimental.pallas import tpu as pltpu

# bf16 MXU operands (f32 accumulate). Use jnp.float32 for bit-closer-to-PyTorch numerics.
_MXU_DTYPE = jnp.bfloat16

# (Cin, anchors_k) for [conv4, conv7, conv8, conv9, conv10, conv11] (matches DetectionLayer)
DET_CFG = [(512, 4), (1024, 6), (512, 6), (256, 6), (256, 4), (256, 4)]


def _round_up(x, m):
    return (x + m - 1) // m * m


# ----------------------------------------------------------------------------
# Pallas kernel: L2 channel-norm rescale of conv4
#   factor = sqrt(sum(conv4^2, channel));  conv4 = conv4 * rescale / factor
# Implemented on the flattened (N*H*W, C) layout (one aligned tile, one grid step),
# with rsqrt (EUP) instead of sqrt + divide.
# ----------------------------------------------------------------------------
def l2_rescale(x2d, scale):
    """x2d: (M, C) f32, scale: (C,) f32 -> (M, C) f32."""
    M, C = x2d.shape
    scale2 = scale.reshape(1, C)

    def kernel(x_ref, s_ref, o_ref):
        xv = x_ref[...]                                            # (M, C)
        # NOTE: matches PyTorch (no epsilon); an all-zero channel vector yields inf/nan there too.
        inv = jax.lax.rsqrt(jnp.sum(xv * xv, axis=-1, keepdims=True))
        o_ref[...] = xv * s_ref[...] * inv

    return pl.pallas_call(
        kernel,
        out_shape=jax.ShapeDtypeStruct((M, C), jnp.float32),
        grid=(1,),
        in_specs=[
            pl.BlockSpec((M, C), lambda i: (0, 0)),
            pl.BlockSpec((1, C), lambda i: (0, 0)),
        ],
        out_specs=pl.BlockSpec((M, C), lambda i: (0, 0)),
        compiler_params=pltpu.CompilerParams(dimension_semantics=("arbitrary",)),
    )(x2d, scale2)


# ----------------------------------------------------------------------------
# Pallas kernel: fused detection heads as a single im2col matmul per feature map.
#   out[g, m_tile] = x_cols[g, m_tile] @ w[g] + b[g]
# x_cols: (G, M_pad, 9*Cin) bf16, w: (G, 9*Cin, Cout_pad) bf16, b: (G, 1, Cout_pad) f32.
# Cout_pad is a multiple of 128 -> lane-dense stores; M_pad is a multiple of 8.
# ----------------------------------------------------------------------------
def _head_kernel(x_ref, w_ref, b_ref, o_ref):
    acc = jnp.dot(x_ref[0], w_ref[0], preferred_element_type=jnp.float32)
    o_ref[0] = acc + b_ref[0]


def fused_heads_matmul(x_cols, w, b, tile_m):
    G, M_pad, K = x_cols.shape
    Cp = w.shape[-1]
    n_mt = M_pad // tile_m
    return pl.pallas_call(
        _head_kernel,
        out_shape=jax.ShapeDtypeStruct((G, M_pad, Cp), jnp.float32),
        grid=(G, n_mt),
        in_specs=[
            pl.BlockSpec((1, tile_m, K), lambda g, m: (g, m, 0)),
            pl.BlockSpec((1, K, Cp), lambda g, m: (g, 0, 0)),
            pl.BlockSpec((1, 1, Cp), lambda g, m: (g, 0, 0)),
        ],
        out_specs=pl.BlockSpec((1, tile_m, Cp), lambda g, m: (g, m, 0)),
        compiler_params=pltpu.CompilerParams(
            dimension_semantics=("parallel", "parallel")),
    )(x_cols, w, b)


# ----------------------------------------------------------------------------
# im2col for 3x3 / stride 1 / pad 1 (plain JAX glue, done once in the wrapper).
# Column order (dy, dx, cin) matches the (3,3,Cin,Cout) -> (9*Cin, Cout) weight reshape.
# ----------------------------------------------------------------------------
def _im2col_3x3(x):
    N, H, W, C = x.shape
    xp = jnp.pad(x, ((0, 0), (1, 1), (1, 1), (0, 0)))
    cols = jnp.concatenate(
        [xp[:, dy:dy + H, dx:dx + W, :] for dy in range(3) for dx in range(3)],
        axis=-1)                                                    # (N, H, W, 9C)
    return cols.reshape(N * H * W, 9 * C)


# ----------------------------------------------------------------------------
# Detection heads (loc + conf fused): build im2col columns, group pallas_calls,
# then split loc/conf channels and reshape exactly like the PyTorch permute+view.
# ----------------------------------------------------------------------------
# Groups: conv4 | conv7 | conv8 | (conv9, conv10, conv11 stacked: same Cin -> same K)
_HEAD_GROUPS = [[0], [1], [2], [3, 4, 5]]


def detection_heads(heads, feats, num_classes):
    cols, metas = [], []
    for (w, b), f in zip(heads, feats):
        N, H, W, _ = f.shape
        M = N * H * W
        c = _im2col_3x3(f).astype(_MXU_DTYPE)                       # (M, 9*Cin)
        Mp = _round_up(M, 8)
        if Mp != M:
            c = jnp.pad(c, ((0, Mp - M), (0, 0)))
        cols.append(c)
        metas.append((N, H, W, M))

    outs = [None] * len(heads)
    for grp in _HEAD_GROUPS:
        xs = [cols[i] for i in grp]
        Mg = max(c.shape[0] for c in xs)
        xs = [c if c.shape[0] == Mg else jnp.pad(c, ((0, Mg - c.shape[0]), (0, 0)))
              for c in xs]
        x_st = jnp.stack(xs)                                        # (G, Mg, K)
        w_st = jnp.stack([heads[i][0] for i in grp])                # (G, K, Cp)
        b_st = jnp.stack([heads[i][1] for i in grp])                # (G, 1, Cp)
        tile_m = 64 if (Mg > 64 and Mg % 64 == 0) else Mg
        y = fused_heads_matmul(x_st, w_st, b_st, tile_m)            # (G, Mg, Cp) f32
        for j, i in enumerate(grp):
            outs[i] = y[j]

    locs, confs = [], []
    for i, (N, H, W, M) in enumerate(metas):
        k = DET_CFG[i][1]
        cf = k * (4 + num_classes)
        y = outs[i][:M, :cf]                                        # strip M / Cout padding
        locs.append(y[:, :k * 4].reshape(N, H * W * k, 4))
        confs.append(y[:, k * 4:].reshape(N, H * W * k, num_classes))
    return jnp.concatenate(locs, axis=1), jnp.concatenate(confs, axis=1)


# ----------------------------------------------------------------------------
# Parameter initialization (mirrors Conv2d shapes + xavier_uniform_)
# ----------------------------------------------------------------------------
def _xavier_conv(key, cout, cin, kh=3, kw=3):
    fan_in, fan_out = cin * kh * kw, cout * kh * kw
    bound = math.sqrt(6.0 / (fan_in + fan_out))
    w_oihw = jax.random.uniform(key, (cout, cin, kh, kw), jnp.float32, -bound, bound)
    return jnp.transpose(w_oihw, (2, 3, 1, 0))                      # OIHW -> HWIO


def init_detection_params(key, class_no):
    params = []
    for i, (cin, k) in enumerate(DET_CFG):
        kw_, kb_ = jax.random.split(jax.random.fold_in(key, i))
        cout = k * class_no
        w = _xavier_conv(kw_, cout, cin)
        bb = 1.0 / math.sqrt(cin * 9)                               # PyTorch Conv2d default bias init
        b = jax.random.uniform(kb_, (cout,), jnp.float32, -bb, bb)
        params.append((w, b))
    return params


def init_ssd_params(key, num_classes):
    k_loc, k_conf, k_bb = jax.random.split(key, 3)
    # stub backbone / extension projection matrices (plain-JAX glue)
    proj_specs = {"conv4": (3, 512), "conv7": (3, 1024),
                  "conv8": (1024, 512), "conv9": (1024, 256),
                  "conv10": (1024, 256), "conv11": (1024, 256)}
    proj = {name: 0.1 * jax.random.normal(jax.random.fold_in(k_bb, i), (ci, co), jnp.float32)
            for i, (name, (ci, co)) in enumerate(proj_specs.items())}
    return {
        "loc": init_detection_params(k_loc, 4),
        "conf": init_detection_params(k_conf, num_classes),
        "rescale": jnp.full((512,), 20.0, jnp.float32),
        "proj": proj,
    }


def prepare_fused_heads(loc_params, conf_params, num_classes):
    """Fuse loc+conf per map, flatten HWIO -> (9*Cin, Cout), pad Cout to a 128 multiple."""
    cout_max = max(k * (4 + num_classes) for _, k in DET_CFG)
    Cp = _round_up(cout_max, 128)
    heads = []
    for (wl, bl), (wc, bc), (cin, k) in zip(loc_params, conf_params, DET_CFG):
        w = jnp.concatenate([wl, wc], axis=-1)                      # (3, 3, Cin, k*(4+nc))
        b = jnp.concatenate([bl, bc], axis=-1)
        cf = k * (4 + num_classes)
        w = w.reshape(9 * cin, cf)
        w = jnp.pad(w, ((0, 0), (0, Cp - cf))).astype(_MXU_DTYPE)   # (9*Cin, Cp)
        b = jnp.pad(b, ((0, Cp - cf),)).reshape(1, Cp).astype(jnp.float32)
        heads.append((w, b))
    return heads


# ----------------------------------------------------------------------------
# Stub backbone / extension (plain JAX): average-pool to target spatial size
# then 1x1 channel projection.  Stands in for VGG16 / SSDExtension.
# ----------------------------------------------------------------------------
def _pool_project(x_nhwc, proj, out_hw):
    N, H, W, C = x_nhwc.shape
    fh, fw = H // out_hw, W // out_hw
    pooled = x_nhwc.reshape(N, out_hw, fh, out_hw, fw, C).mean(axis=(2, 4))
    return jnp.einsum("nhwc,cd->nhwd", pooled, proj)


# ----------------------------------------------------------------------------
# SSD forward
# ----------------------------------------------------------------------------
def ssd_forward(params, heads, x_nchw, *, num_classes):
    x = jnp.transpose(x_nchw, (0, 2, 3, 1))                         # NCHW -> NHWC
    p = params["proj"]

    # stub VGG16 backbone
    conv4 = _pool_project(x, p["conv4"], 8)                         # (N, 8, 8, 512)
    conv7 = _pool_project(x, p["conv7"], 4)                         # (N, 4, 4, 1024)

    # L2-norm rescale of conv4 (Pallas kernel, batch+spatial folded into one aligned tile)
    N, H4, W4, C4 = conv4.shape
    conv4 = l2_rescale(conv4.reshape(N * H4 * W4, C4),
                       params["rescale"]).reshape(N, H4, W4, C4)

    # stub SSDExtension
    conv8 = _pool_project(conv7, p["conv8"], 2)                     # (N, 2, 2, 512)
    conv9 = _pool_project(conv7, p["conv9"], 2)                     # (N, 2, 2, 256)
    conv10 = _pool_project(conv7, p["conv10"], 1)                   # (N, 1, 1, 256)
    conv11 = _pool_project(conv7, p["conv11"], 1)                   # (N, 1, 1, 256)

    feats = [conv4, conv7, conv8, conv9, conv10, conv11]
    locations, scores = detection_heads(heads, feats, num_classes)  # (N, A, 4), (N, A, nc)
    return locations, scores


if __name__ == "__main__":
    num_classes = 3
    key = jax.random.PRNGKey(0)
    k_x, k_p = jax.random.split(key)

    x = jax.random.normal(k_x, (2, 3, 32, 32), jnp.float32)         # NCHW, like PyTorch input
    params = init_ssd_params(k_p, num_classes)
    heads = prepare_fused_heads(params["loc"], params["conf"], num_classes)

    fwd = jax.jit(functools.partial(ssd_forward, num_classes=num_classes))
    locations, scores = fwd(params, heads, x)
    jax.block_until_ready((locations, scores))

    # anchors: 8*8*4 + 4*4*6 + 2*2*6 + 2*2*6 + 1*1*4 + 1*1*4 = 408
    assert locations.shape == (2, 408, 4), locations.shape
    assert scores.shape == (2, 408, num_classes), scores.shape
    assert jnp.all(jnp.isfinite(locations)) and jnp.all(jnp.isfinite(scores))
    print("KERNEL_OK")
</pallas_src>

<mosaic_0001>
module attributes {stable_mosaic.version = 11 : i64} {
  func.func @kernel(%arg0: i32, %arg1: memref<128x512xf32, #tpu.memory_space<vmem>>, %arg2: memref<1x512xf32, #tpu.memory_space<vmem>>, %arg3: memref<128x512xf32, #tpu.memory_space<vmem>>) attributes {dimension_semantics = [#tpu.dimension_semantics<arbitrary>], iteration_bounds = array<i64: 1>, scalar_prefetch = 0 : i64, scratch_operands = 0 : i64, tpu.core_type = #tpu.core_type<tc>, window_params = [{pipeline_mode = #tpu.pipeline_mode<synchronous>, transform_indices = @transform_0, window_bounds = array<i64: 128, 512>}, {pipeline_mode = #tpu.pipeline_mode<synchronous>, transform_indices = @transform_1, window_bounds = array<i64: 1, 512>}, {pipeline_mode = #tpu.pipeline_mode<synchronous>, transform_indices = @transform_2, window_bounds = array<i64: 128, 512>}]} {
    %c0 = arith.constant 0 : index
    %c0_0 = arith.constant 0 : index
    %0 = vector.load %arg1[%c0, %c0_0] : memref<128x512xf32, #tpu.memory_space<vmem>>, vector<128x512xf32>
    %1 = arith.mulf %0, %0 : vector<128x512xf32>
    %cst = arith.constant dense<0.000000e+00> : vector<128xf32>
    %2 = vector.multi_reduction <add>, %1, %cst [1] : vector<128x512xf32> to vector<128xf32>
    %3 = vector.shape_cast %2 : vector<128xf32> to vector<128x1xf32>
    %4 = math.rsqrt %3 : vector<128x1xf32>
    %c0_1 = arith.constant 0 : index
    %c0_2 = arith.constant 0 : index
    %5 = vector.load %arg2[%c0_1, %c0_2] : memref<1x512xf32, #tpu.memory_space<vmem>>, vector<1x512xf32>
    %6 = vector.broadcast %5 : vector<1x512xf32> to vector<128x512xf32>
    %7 = arith.mulf %0, %6 : vector<128x512xf32>
    %8 = vector.broadcast %4 : vector<128x1xf32> to vector<128x512xf32>
    %9 = arith.mulf %7, %8 : vector<128x512xf32>
    %c0_3 = arith.constant 0 : index
    %c0_4 = arith.constant 0 : index
    %10 = vector.load %arg3[%c0_3, %c0_4] : memref<128x512xf32, #tpu.memory_space<vmem>>, vector<128x512xf32>
    tpu.vector_store %arg3[%c0_3, %c0_4], %9 {strides = array<i32>} : memref<128x512xf32, #tpu.memory_space<vmem>>, vector<128x512xf32>,
    return
  }
  func.func @transform_0(%arg0: i32) -> (i32, i32) {
    %c0_i32 = arith.constant 0 : i32
    %c0_i32_0 = arith.constant 0 : i32
    %c0_i32_1 = arith.constant 0 : i32
    return %c0_i32, %c0_i32_0 : i32, i32
  }
  func.func @transform_1(%arg0: i32) -> (i32, i32) {
    %c0_i32 = arith.constant 0 : i32
    %c0_i32_0 = arith.constant 0 : i32
    %c0_i32_1 = arith.constant 0 : i32
    return %c0_i32, %c0_i32_0 : i32, i32
  }
  func.func @transform_2(%arg0: i32) -> (i32, i32) {
    %c0_i32 = arith.constant 0 : i32
    %c0_i32_0 = arith.constant 0 : i32
    %c0_i32_1 = arith.constant 0 : i32
    return %c0_i32, %c0_i32_0 : i32, i32
  }
}

module attributes {stable_mosaic.version = 11 : i64} {
  func.func @_head_kernel(%arg0: i32, %arg1: i32, %arg2: memref<1x64x4608xbf16, #tpu.memory_space<vmem>>, %arg3: memref<1x4608x128xbf16, #tpu.memory_space<vmem>>, %arg4: memref<1x1x128xf32, #tpu.memory_space<vmem>>, %arg5: memref<1x64x128xf32, #tpu.memory_space<vmem>>) attributes {dimension_semantics = [#tpu.dimension_semantics<parallel>, #tpu.dimension_semantics<parallel>], iteration_bounds = array<i64: 1, 2>, scalar_prefetch = 0 : i64, scratch_operands = 0 : i64, tpu.core_type = #tpu.core_type<tc>, window_params = [{transform_indices = @transform_0, window_bounds = array<i64: 1, 64, 4608>}, {transform_indices = @transform_1, window_bounds = array<i64: 1, 4608, 128>}, {transform_indices = @transform_2, window_bounds = array<i64: 1, 1, 128>}, {transform_indices = @transform_3, window_bounds = array<i64: 1, 64, 128>}]} {
    %c0 = arith.constant 0 : index
    %c0_0 = arith.constant 0 : index
    %c0_1 = arith.constant 0 : index
    %0 = vector.load %arg2[%c0, %c0_0, %c0_1] : memref<1x64x4608xbf16, #tpu.memory_space<vmem>>, vector<1x64x4608xbf16>
    %1 = vector.shape_cast %0 : vector<1x64x4608xbf16> to vector<64x4608xbf16>
    %c0_2 = arith.constant 0 : index
    %c0_3 = arith.constant 0 : index
    %c0_4 = arith.constant 0 : index
    %2 = vector.load %arg3[%c0_2, %c0_3, %c0_4] : memref<1x4608x128xbf16, #tpu.memory_space<vmem>>, vector<1x4608x128xbf16>
    %3 = vector.shape_cast %2 : vector<1x4608x128xbf16> to vector<4608x128xbf16>
    %cst = arith.constant dense<0.000000e+00> : vector<64x128xf32>
    %4 = tpu.matmul %1, %3, %cst {dimension_numbers = #tpu.dot_dimension_numbers<[1], [0], [0], [1], [0, 0, 1, 1], [], []>} : vector<64x4608xbf16>, vector<4608x128xbf16>, vector<64x128xf32> -> vector<64x128xf32>
    %c0_5 = arith.constant 0 : index
    %c0_6 = arith.constant 0 : index
    %c0_7 = arith.constant 0 : index
    %5 = vector.load %arg4[%c0_5, %c0_6, %c0_7] : memref<1x1x128xf32, #tpu.memory_space<vmem>>, vector<1x1x128xf32>
    %6 = vector.shape_cast %5 : vector<1x1x128xf32> to vector<1x128xf32>
    %7 = vector.broadcast %6 : vector<1x128xf32> to vector<64x128xf32>
    %8 = arith.addf %4, %7 : vector<64x128xf32>
    %c0_8 = arith.constant 0 : index
    %c0_9 = arith.constant 0 : index
    %c0_10 = arith.constant 0 : index
    %9 = vector.load %arg5[%c0_8, %c0_9, %c0_10] : memref<1x64x128xf32, #tpu.memory_space<vmem>>, vector<1x64x128xf32>
    %10 = vector.shape_cast %9 : vector<1x64x128xf32> to vector<64x128xf32>
    %11 = vector.shape_cast %8 : vector<64x128xf32> to vector<1x64x128xf32>
    tpu.vector_store %arg5[%c0_8, %c0_9, %c0_10], %11 {strides = array<i32>} : memref<1x64x128xf32, #tpu.memory_space<vmem>>, vector<1x64x128xf32>,
    return
  }
  func.func @transform_0(%arg0: i32, %arg1: i32) -> (i32, i32, i32) {
    %c0_i32 = arith.constant 0 : i32
    %c0_i32_0 = arith.constant 0 : i32
    return %arg0, %arg1, %c0_i32 : i32, i32, i32
  }
  func.func @transform_1(%arg0: i32, %arg1: i32) -> (i32, i32, i32) {
    %c0_i32 = arith.constant 0 : i32
    %c0_i32_0 = arith.constant 0 : i32
    %c0_i32_1 = arith.constant 0 : i32
    return %arg0, %c0_i32, %c0_i32_0 : i32, i32, i32
  }
  func.func @transform_2(%arg0: i32, %arg1: i32) -> (i32, i32, i32) {
    %c0_i32 = arith.constant 0 : i32
    %c0_i32_0 = arith.constant 0 : i32
    %c0_i32_1 = arith.constant 0 : i32
    return %arg0, %c0_i32, %c0_i32_0 : i32, i32, i32
  }
  func.func @transform_3(%arg0: i32, %arg1: i32) -> (i32, i32, i32) {
    %c0_i32 = arith.constant 0 : i32
    %c0_i32_0 = arith.constant 0 : i32
    return %arg0, %arg1, %c0_i32 : i32, i32, i32
  }
}

module attributes {stable_mosaic.version = 11 : i64} {
  func.func @_head_kernel(%arg0: i32, %arg1: i32, %arg2: memref<1x32x9216xbf16, #tpu.memory_space<vmem>>, %arg3: memref<1x9216x128xbf16, #tpu.memory_space<vmem>>, %arg4: memref<1x1x128xf32, #tpu.memory_space<vmem>>, %arg5: memref<1x32x128xf32, #tpu.memory_space<vmem>>) attributes {dimension_semantics = [#tpu.dimension_semantics<parallel>, #tpu.dimension_semantics<parallel>], iteration_bounds = array<i64: 1, 1>, scalar_prefetch = 0 : i64, scratch_operands = 0 : i64, tpu.core_type = #tpu.core_type<tc>, window_params = [{transform_indices = @transform_0, window_bounds = array<i64: 1, 32, 9216>}, {transform_indices = @transform_1, window_bounds = array<i64: 1, 9216, 128>}, {transform_indices = @transform_2, window_bounds = array<i64: 1, 1, 128>}, {transform_indices = @transform_3, window_bounds = array<i64: 1, 32, 128>}]} {
    %c0 = arith.constant 0 : index
    %c0_0 = arith.constant 0 : index
    %c0_1 = arith.constant 0 : index
    %0 = vector.load %arg2[%c0, %c0_0, %c0_1] : memref<1x32x9216xbf16, #tpu.memory_space<vmem>>, vector<1x32x9216xbf16>
    %1 = vector.shape_cast %0 : vector<1x32x9216xbf16> to vector<32x9216xbf16>
    %c0_2 = arith.constant 0 : index
    %c0_3 = arith.constant 0 : index
    %c0_4 = arith.constant 0 : index
    %2 = vector.load %arg3[%c0_2, %c0_3, %c0_4] : memref<1x9216x128xbf16, #tpu.memory_space<vmem>>, vector<1x9216x128xbf16>
    %3 = vector.shape_cast %2 : vector<1x9216x128xbf16> to vector<9216x128xbf16>
    %cst = arith.constant dense<0.000000e+00> : vector<32x128xf32>
    %4 = tpu.matmul %1, %3, %cst {dimension_numbers = #tpu.dot_dimension_numbers<[1], [0], [0], [1], [0, 0, 1, 1], [], []>} : vector<32x9216xbf16>, vector<9216x128xbf16>, vector<32x128xf32> -> vector<32x128xf32>
    %c0_5 = arith.constant 0 : index
    %c0_6 = arith.constant 0 : index
    %c0_7 = arith.constant 0 : index
    %5 = vector.load %arg4[%c0_5, %c0_6, %c0_7] : memref<1x1x128xf32, #tpu.memory_space<vmem>>, vector<1x1x128xf32>
    %6 = vector.shape_cast %5 : vector<1x1x128xf32> to vector<1x128xf32>
    %7 = vector.broadcast %6 : vector<1x128xf32> to vector<32x128xf32>
    %8 = arith.addf %4, %7 : vector<32x128xf32>
    %c0_8 = arith.constant 0 : index
    %c0_9 = arith.constant 0 : index
    %c0_10 = arith.constant 0 : index
    %9 = vector.load %arg5[%c0_8, %c0_9, %c0_10] : memref<1x32x128xf32, #tpu.memory_space<vmem>>, vector<1x32x128xf32>
    %10 = vector.shape_cast %9 : vector<1x32x128xf32> to vector<32x128xf32>
    %11 = vector.shape_cast %8 : vector<32x128xf32> to vector<1x32x128xf32>
    tpu.vector_store %arg5[%c0_8, %c0_9, %c0_10], %11 {strides = array<i32>} : memref<1x32x128xf32, #tpu.memory_space<vmem>>, vector<1x32x128xf32>,
    return
  }
  func.func @transform_0(%arg0: i32, %arg1: i32) -> (i32, i32, i32) {
    %c0_i32 = arith.constant 0 : i32
    %c0_i32_0 = arith.constant 0 : i32
    return %arg0, %arg1, %c0_i32 : i32, i32, i32
  }
  func.func @transform_1(%arg0: i32, %arg1: i32) -> (i32, i32, i32) {
    %c0_i32 = arith.constant 0 : i32
    %c0_i32_0 = arith.constant 0 : i32
    %c0_i32_1 = arith.constant 0 : i32
    return %arg0, %c0_i32, %c0_i32_0 : i32, i32, i32
  }
  func.func @transform_2(%arg0: i32, %arg1: i32) -> (i32, i32, i32) {
    %c0_i32 = arith.constant 0 : i32
    %c0_i32_0 = arith.constant 0 : i32
    %c0_i32_1 = arith.constant 0 : i32
    return %arg0, %c0_i32, %c0_i32_0 : i32, i32, i32
  }
  func.func @transform_3(%arg0: i32, %arg1: i32) -> (i32, i32, i32) {
    %c0_i32 = arith.constant 0 : i32
    %c0_i32_0 = arith.constant 0 : i32
    return %arg0, %arg1, %c0_i32 : i32, i32, i32
  }
}

module attributes {stable_mosaic.version = 11 : i64} {
  func.func @_head_kernel(%arg0: i32, %arg1: i32, %arg2: memref<1x8x4608xbf16, #tpu.memory_space<vmem>>, %arg3: memref<1x4608x128xbf16, #tpu.memory_space<vmem>>, %arg4: memref<1x1x128xf32, #tpu.memory_space<vmem>>, %arg5: memref<1x8x128xf32, #tpu.memory_space<vmem>>) attributes {dimension_semantics = [#tpu.dimension_semantics<parallel>, #tpu.dimension_semantics<parallel>], iteration_bounds = array<i64: 1, 1>, scalar_prefetch = 0 : i64, scratch_operands = 0 : i64, tpu.core_type = #tpu.core_type<tc>, window_params = [{transform_indices = @transform_0, window_bounds = array<i64: 1, 8, 4608>}, {transform_indices = @transform_1, window_bounds = array<i64: 1, 4608, 128>}, {transform_indices = @transform_2, window_bounds = array<i64: 1, 1, 128>}, {transform_indices = @transform_3, window_bounds = array<i64: 1, 8, 128>}]} {
    %c0 = arith.constant 0 : index
    %c0_0 = arith.constant 0 : index
    %c0_1 = arith.constant 0 : index
    %0 = vector.load %arg2[%c0, %c0_0, %c0_1] : memref<1x8x4608xbf16, #tpu.memory_space<vmem>>, vector<1x8x4608xbf16>
    %1 = vector.shape_cast %0 : vector<1x8x4608xbf16> to vector<8x4608xbf16>
    %c0_2 = arith.constant 0 : index
    %c0_3 = arith.constant 0 : index
    %c0_4 = arith.constant 0 : index
    %2 = vector.load %arg3[%c0_2, %c0_3, %c0_4] : memref<1x4608x128xbf16, #tpu.memory_space<vmem>>, vector<1x4608x128xbf16>
    %3 = vector.shape_cast %2 : vector<1x4608x128xbf16> to vector<4608x128xbf16>
    %cst = arith.constant dense<0.000000e+00> : vector<8x128xf32>
    %4 = tpu.matmul %1, %3, %cst {dimension_numbers = #tpu.dot_dimension_numbers<[1], [0], [0], [1], [0, 0, 1, 1], [], []>} : vector<8x4608xbf16>, vector<4608x128xbf16>, vector<8x128xf32> -> vector<8x128xf32>
    %c0_5 = arith.constant 0 : index
    %c0_6 = arith.constant 0 : index
    %c0_7 = arith.constant 0 : index
    %5 = vector.load %arg4[%c0_5, %c0_6, %c0_7] : memref<1x1x128xf32, #tpu.memory_space<vmem>>, vector<1x1x128xf32>
    %6 = vector.shape_cast %5 : vector<1x1x128xf32> to vector<1x128xf32>
    %7 = vector.broadcast %6 : vector<1x128xf32> to vector<8x128xf32>
    %8 = arith.addf %4, %7 : vector<8x128xf32>
    %c0_8 = arith.constant 0 : index
    %c0_9 = arith.constant 0 : index
    %c0_10 = arith.constant 0 : index
    %9 = vector.load %arg5[%c0_8, %c0_9, %c0_10] : memref<1x8x128xf32, #tpu.memory_space<vmem>>, vector<1x8x128xf32>
    %10 = vector.shape_cast %9 : vector<1x8x128xf32> to vector<8x128xf32>
    %11 = vector.shape_cast %8 : vector<8x128xf32> to vector<1x8x128xf32>
    tpu.vector_store %arg5[%c0_8, %c0_9, %c0_10], %11 {strides = array<i32>} : memref<1x8x128xf32, #tpu.memory_space<vmem>>, vector<1x8x128xf32>,
    return
  }
  func.func @transform_0(%arg0: i32, %arg1: i32) -> (i32, i32, i32) {
    %c0_i32 = arith.constant 0 : i32
    %c0_i32_0 = arith.constant 0 : i32
    return %arg0, %arg1, %c0_i32 : i32, i32, i32
  }
  func.func @transform_1(%arg0: i32, %arg1: i32) -> (i32, i32, i32) {
    %c0_i32 = arith.constant 0 : i32
    %c0_i32_0 = arith.constant 0 : i32
    %c0_i32_1 = arith.constant 0 : i32
    return %arg0, %c0_i32, %c0_i32_0 : i32, i32, i32
  }
  func.func @transform_2(%arg0: i32, %arg1: i32) -> (i32, i32, i32) {
    %c0_i32 = arith.constant 0 : i32
    %c0_i32_0 = arith.constant 0 : i32
    %c0_i32_1 = arith.constant 0 : i32
    return %arg0, %c0_i32, %c0_i32_0 : i32, i32, i32
  }
  func.func @transform_3(%arg0: i32, %arg1: i32) -> (i32, i32, i32) {
    %c0_i32 = arith.constant 0 : i32
    %c0_i32_0 = arith.constant 0 : i32
    return %arg0, %arg1, %c0_i32 : i32, i32, i32
  }
}

module attributes {stable_mosaic.version = 11 : i64} {
  func.func @_head_kernel(%arg0: i32, %arg1: i32, %arg2: memref<1x8x2304xbf16, #tpu.memory_space<vmem>>, %arg3: memref<1x2304x128xbf16, #tpu.memory_space<vmem>>, %arg4: memref<1x1x128xf32, #tpu.memory_space<vmem>>, %arg5: memref<1x8x128xf32, #tpu.memory_space<vmem>>) attributes {dimension_semantics = [#tpu.dimension_semantics<parallel>, #tpu.dimension_semantics<parallel>], iteration_bounds = array<i64: 3, 1>, scalar_prefetch = 0 : i64, scratch_operands = 0 : i64, tpu.core_type = #tpu.core_type<tc>, window_params = [{transform_indices = @transform_0, window_bounds = array<i64: 1, 8, 2304>}, {transform_indices = @transform_1, window_bounds = array<i64: 1, 2304, 128>}, {transform_indices = @transform_2, window_bounds = array<i64: 1, 1, 128>}, {transform_indices = @transform_3, window_bounds = array<i64: 1, 8, 128>}]} {
    %c0 = arith.constant 0 : index
    %c0_0 = arith.constant 0 : index
    %c0_1 = arith.constant 0 : index
    %0 = vector.load %arg2[%c0, %c0_0, %c0_1] : memref<1x8x2304xbf16, #tpu.memory_space<vmem>>, vector<1x8x2304xbf16>
    %1 = vector.shape_cast %0 : vector<1x8x2304xbf16> to vector<8x2304xbf16>
    %c0_2 = arith.constant 0 : index
    %c0_3 = arith.constant 0 : index
    %c0_4 = arith.constant 0 : index
    %2 = vector.load %arg3[%c0_2, %c0_3, %c0_4] : memref<1x2304x128xbf16, #tpu.memory_space<vmem>>, vector<1x2304x128xbf16>
    %3 = vector.shape_cast %2 : vector<1x2304x128xbf16> to vector<2304x128xbf16>
    %cst = arith.constant dense<0.000000e+00> : vector<8x128xf32>
    %4 = tpu.matmul %1, %3, %cst {dimension_numbers = #tpu.dot_dimension_numbers<[1], [0], [0], [1], [0, 0, 1, 1], [], []>} : vector<8x2304xbf16>, vector<2304x128xbf16>, vector<8x128xf32> -> vector<8x128xf32>
    %c0_5 = arith.constant 0 : index
    %c0_6 = arith.constant 0 : index
    %c0_7 = arith.constant 0 : index
    %5 = vector.load %arg4[%c0_5, %c0_6, %c0_7] : memref<1x1x128xf32, #tpu.memory_space<vmem>>, vector<1x1x128xf32>
    %6 = vector.shape_cast %5 : vector<1x1x128xf32> to vector<1x128xf32>
    %7 = vector.broadcast %6 : vector<1x128xf32> to vector<8x128xf32>
    %8 = arith.addf %4, %7 : vector<8x128xf32>
    %c0_8 = arith.constant 0 : index
    %c0_9 = arith.constant 0 : index
    %c0_10 = arith.constant 0 : index
    %9 = vector.load %arg5[%c0_8, %c0_9, %c0_10] : memref<1x8x128xf32, #tpu.memory_space<vmem>>, vector<1x8x128xf32>
    %10 = vector.shape_cast %9 : vector<1x8x128xf32> to vector<8x128xf32>
    %11 = vector.shape_cast %8 : vector<8x128xf32> to vector<1x8x128xf32>
    tpu.vector_store %arg5[%c0_8, %c0_9, %c0_10], %11 {strides = array<i32>} : memref<1x8x128xf32, #tpu.memory_space<vmem>>, vector<1x8x128xf32>,
    return
  }
  func.func @transform_0(%arg0: i32, %arg1: i32) -> (i32, i32, i32) {
    %c0_i32 = arith.constant 0 : i32
    %c0_i32_0 = arith.constant 0 : i32
    return %arg0, %arg1, %c0_i32 : i32, i32, i32
  }
  func.func @transform_1(%arg0: i32, %arg1: i32) -> (i32, i32, i32) {
    %c0_i32 = arith.constant 0 : i32
    %c0_i32_0 = arith.constant 0 : i32
    %c0_i32_1 = arith.constant 0 : i32
    return %arg0, %c0_i32, %c0_i32_0 : i32, i32, i32
  }
  func.func @transform_2(%arg0: i32, %arg1: i32) -> (i32, i32, i32) {
    %c0_i32 = arith.constant 0 : i32
    %c0_i32_0 = arith.constant 0 : i32
    %c0_i32_1 = arith.constant 0 : i32
    return %arg0, %c0_i32, %c0_i32_0 : i32, i32, i32
  }
  func.func @transform_3(%arg0: i32, %arg1: i32) -> (i32, i32, i32) {
    %c0_i32 = arith.constant 0 : i32
    %c0_i32_0 = arith.constant 0 : i32
    return %arg0, %arg1, %c0_i32 : i32, i32, i32
  }
}

</mosaic_0001>

<bundles_post_ra>
// kernel: ssd_forward.5
= control target key start
LH: loop header
LB: loop body
LE: loop exit
PB: predicated region body
PF: predicated region fallthrough
CT: control target
= control target key end

     0   :  { %s1279_s0 = inlined_call_operand.vmem [shape: f32[128,512], index: 0, kind: input, shape index: {}]   ;;  %s1280_s1 = inlined_call_operand.vmem [shape: f32[1,512], index: 1, kind: input, shape index: {}]   ;;  %s1281_s2 = inlined_call_operand.vmem [shape: f32[128,512], index: 2, kind: output, shape index: {}]  }
   0x1   :  { %v503_v0 = vld [vmem:[%s1279_s0 + $0x40] sm:$0xff]  ;;  %v508_v1 = vld [vmem:[%s1279_s0 + $0x48] sm:$0xff]  ;;  %v513_v2 = vld [vmem:[%s1279_s0 + $0x50] sm:$0xff] }
   0x2   :  { %v518_v3 = vld [vmem:[%s1279_s0 + $0x58] sm:$0xff]  ;;  %v83_v4 = vmul.f32 %v503_v0, %v503_v0  ;;  %v84_v5 = vmul.f32 %v508_v1, %v508_v1  ;;  %v85_v6 = vmul.f32 %v513_v2, %v513_v2  ;;  %v529_v7 = vld [vmem:[%s1279_s0] sm:$0xff]  ;;  %v534_v8 = vld [vmem:[%s1279_s0 + $0x8] sm:$0xff] }
   0x3   :  { %v539_v9 = vld [vmem:[%s1279_s0 + $0x10] sm:$0xff]  ;;  %v75_v10 = vmul.f32 %v529_v7, %v529_v7  ;;  %v86_v11 = vmul.f32 %v518_v3, %v518_v3  ;;  %v548_v13 = vld [vmem:[%s1279_s0 + $0x18] sm:$0xff]  ;;  %v553_v14 = vld [vmem:[%s1279_s0 + $0x60] sm:$0xff]  ;;  %v76_v16 = vmul.f32 %v534_v8, %v534_v8 }
   0x4   :  { %v149_v12 = vadd.f32 %v84_v5, %v83_v4  ;;  %v558_v15 = vld [vmem:[%s1279_s0 + $0x68] sm:$0xff]  ;;  %v77_v17 = vmul.f32 %v539_v9, %v539_v9  ;;  %v78_v19 = vmul.f32 %v548_v13, %v548_v13  ;;  %v569_v21 = vld [vmem:[%s1279_s0 + $0x70] sm:$0xff]  ;;  %v87_v22 = vmul.f32 %v553_v14, %v553_v14  ;;  %v578_v25 = vld [vmem:[%s1279_s0 + $0x78] sm:$0xff] }
   0x5   :  { %v139_v20 = vadd.f32 %v76_v16, %v75_v10  ;;  %v88_v23 = vmul.f32 %v558_v15, %v558_v15  ;;  %v583_v27 = vld [vmem:[%s1279_s0 + $0x20] sm:$0xff]  ;;  %v588_v28 = vld [vmem:[%s1279_s0 + $0x28] sm:$0xff]  ;;  %v89_v29 = vmul.f32 %v569_v21, %v569_v21  ;;  %v595_v30 = vld [vmem:[%s1279_s0 + $0x30] sm:$0xff]  ;;  %v90_v32 = vmul.f32 %v578_v25, %v578_v25 }
   0x6   :  { %v150_v18 = vadd.f32 %v149_v12, %v85_v6  ;;  %v602_v34 = vld [vmem:[%s1279_s0 + $0x38] sm:$0xff]  ;;  %v79_v35 = vmul.f32 %v583_v27, %v583_v27  ;;  %v80_v36 = vmul.f32 %v588_v28, %v588_v28  ;;  %v611_v37 = vld [vmem:[%s1279_s0 + $0xa0] sm:$0xff]  ;;  %v616_v38 = vld [vmem:[%s1279_s0 + $0xa8] sm:$0xff]  ;;  %v81_v41 = vmul.f32 %v595_v30, %v595_v30 }
   0x7   :  { %v140_v26 = vadd.f32 %v139_v20, %v77_v17  ;;  %v154_v33 = vadd.f32 %v88_v23, %v87_v22  ;;  %v621_v39 = vld [vmem:[%s1279_s0 + $0xb0] sm:$0xff]  ;;  %v82_v42 = vmul.f32 %v602_v34, %v602_v34  ;;  %v630_v44 = vld [vmem:[%s1279_s0 + $0xb8] sm:$0xff]  ;;  %v635_v45 = vld [vmem:[%s1279_s0 + $0x80] sm:$0xff]  ;;  %v95_v47 = vmul.f32 %v611_v37, %v611_v37 }
   0x8   :  { %v151_v24 = vadd.f32 %v150_v18, %v86_v11  ;;  %v144_v43 = vadd.f32 %v80_v36, %v79_v35  ;;  %v96_v48 = vmul.f32 %v616_v38, %v616_v38  ;;  %v97_v49 = vmul.f32 %v621_v39, %v621_v39  ;;  %v646_v50 = vld [vmem:[%s1279_s0 + $0x88] sm:$0xff]  ;;  %v651_v51 = vld [vmem:[%s1279_s0 + $0x90] sm:$0xff]  ;;  %v658_v55 = vld [vmem:[%s1279_s0 + $0x98] sm:$0xff] }
   0x9   :  { %v141_v31 = vadd.f32 %v140_v26, %v78_v19  ;;  %v155_v40 = vadd.f32 %v154_v33, %v89_v29  ;;  %v98_v53 = vmul.f32 %v630_v44, %v630_v44  ;;  %v91_v56 = vmul.f32 %v635_v45, %v635_v45  ;;  %v665_v57 = vld [vmem:[%s1279_s0 + $0xe0] sm:$0xff]  ;;  %v670_v58 = vld [vmem:[%s1279_s0 + $0xe8] sm:$0xff]  ;;  %v679_v62 = vld [vmem:[%s1279_s0 + $0xf0] sm:$0xff] }
   0xa   :  { %152 = vadd.xlane.f32.xlu1 %v151_v24  ;;  %v145_v52 = vadd.f32 %v144_v43, %v81_v41  ;;  %v164_v54 = vadd.f32 %v96_v48, %v95_v47  ;;  %v92_v60 = vmul.f32 %v646_v50, %v646_v50  ;;  %v93_v61 = vmul.f32 %v651_v51, %v651_v51  ;;  %v684_v4 = vld [vmem:[%s1279_s0 + $0xf8] sm:$0xff]  ;;  %v695_v12 = vld [vmem:[%s1279_s0 + $0xc0] sm:$0xff]  ;;  %v700_v16 = vld [vmem:[%s1279_s0 + $0xc8] sm:$0xff] }
   0xb   :  { %142 = vadd.xlane.f32.xlu0 %v141_v31  ;;  %v156_v46 = vadd.f32 %v155_v40, %v90_v32  ;;  %v94_v5 = vmul.f32 %v658_v55, %v658_v55  ;;  %v103_v10 = vmul.f32 %v665_v57, %v665_v57  ;;  %v104_v11 = vmul.f32 %v670_v58, %v670_v58  ;;  %v705_v17 = vld [vmem:[%s1279_s0 + $0xd0] sm:$0xff]  ;;  %v714_v24 = vld [vmem:[%s1279_s0 + $0xd8] sm:$0xff]  ;;  %v725_v32 = vld [vmem:[%s1279_s0 + $0x120] sm:$0xff] }
   0xc   :  { %v146_v59 = vadd.f32 %v145_v52, %v82_v42  ;;  %v165_v63 = vadd.f32 %v164_v54, %v97_v49  ;;  %v159_v6 = vadd.f32 %v92_v60, %v91_v56  ;;  %v105_v19 = vmul.f32 %v679_v62, %v679_v62  ;;  %v730_v33 = vld [vmem:[%s1279_s0 + $0x128] sm:$0xff]  ;;  %v735_v35 = vld [vmem:[%s1279_s0 + $0x130] sm:$0xff]  ;;  %v742_v43 = vld [vmem:[%s1279_s0 + $0x138] sm:$0xff] }
   0xd   :  { %v106_v22 = vmul.f32 %v684_v4, %v684_v4  ;;  %v174_v23 = vadd.f32 %v104_v11, %v103_v10  ;;  %v99_v26 = vmul.f32 %v695_v12, %v695_v12  ;;  %v100_v29 = vmul.f32 %v700_v16, %v700_v16  ;;  %v763_v54 = vld [vmem:[%s1279_s0 + $0x110] sm:$0xff] }
   0xe   :  { %157 = vadd.xlane.f32.xlu1 %v156_v46  ;;  %v166_v18 = vadd.f32 %v165_v63, %v98_v53  ;;  %v160_v20 = vadd.f32 %v159_v6, %v93_v61  ;;  %v101_v31 = vmul.f32 %v705_v17, %v705_v17  ;;  %v102_v41 = vmul.f32 %v714_v24, %v714_v24  ;;  %v747_v46 = vld [vmem:[%s1279_s0 + $0x100] sm:$0xff]  ;;  %v758_v53 = vld [vmem:[%s1279_s0 + $0x108] sm:$0xff]  ;;  %v770_v61 = vld [vmem:[%s1279_s0 + $0x118] sm:$0xff] }
   0xf   :  { %147 = vadd.xlane.f32.xlu0 %v146_v59  ;;  %v175_v40 = vadd.f32 %v174_v23, %v105_v19  ;;  %v169_v42 = vadd.f32 %v100_v29, %v99_v26  ;;  %v111_v48 = vmul.f32 %v725_v32, %v725_v32  ;;  %v112_v49 = vmul.f32 %v730_v33, %v730_v33  ;;  %v782_v6 = vld [vmem:[%s1279_s0 + $0x168] sm:$0xff]  ;;  %v791_v19 = vld [vmem:[%s1279_s0 + $0x170] sm:$0xff] }
  0x10   :  { %v161_v36 = vadd.f32 %v160_v20, %v94_v5  ;;  %v113_v52 = vmul.f32 %v735_v35, %v735_v35  ;;  %v114_v59 = vmul.f32 %v742_v43, %v742_v43  ;;  %v107_v63 = vmul.f32 %v747_v46, %v747_v46  ;;  %v777_v5 = vld [vmem:[%s1279_s0 + $0x160] sm:$0xff] }
  0x11   :  { %v176_v47 = vadd.f32 %v175_v40, %v106_v22  ;;  %v170_v56 = vadd.f32 %v169_v42, %v101_v31  ;;  %v184_v60 = vadd.f32 %v112_v49, %v111_v48  ;;  %v108_v11 = vmul.f32 %v758_v53, %v758_v53  ;;  %v796_v22 = vld [vmem:[%s1279_s0 + $0x178] sm:$0xff]  ;;  %v812_v40 = vld [vmem:[%s1279_s0 + $0x148] sm:$0xff] }
  0x12   :  { %167 = vadd.xlane.f32.xlu1 %v166_v18  ;;  %v109_v18 = vmul.f32 %v763_v54, %v763_v54  ;;  %1302 = vst [vmem:[#allocation2_spill] sm:$0xff] %v796_v22  ;;  %v110_v23 = vmul.f32 %v770_v61, %v770_v61  ;;  %v119_v29 = vmul.f32 %v777_v5, %v777_v5  ;;  %1304 = vst [vmem:[#allocation4_spill] sm:$0xff] %v812_v40 }
  0x13   :  { %162 = vadd.xlane.f32.xlu0 %v161_v36  ;;  %v171_v10 = vadd.f32 %v170_v56, %v102_v41  ;;  %v185_v20 = vadd.f32 %v184_v60, %v113_v52  ;;  %v179_v26 = vadd.f32 %v108_v11, %v107_v63  ;;  %v120_v31 = vmul.f32 %v782_v6, %v782_v6  ;;  %v807_v36 = vld [vmem:[%s1279_s0 + $0x140] sm:$0xff]  ;;  %v817_v41 = vld [vmem:[%s1279_s0 + $0x150] sm:$0xff]  ;;  %v826_v56 = vld [vmem:[%s1279_s0 + $0x158] sm:$0xff] }
  0x14   :  { %1303 = vst [vmem:[#allocation3_spill] sm:$0xff] %v807_v36  ;;  %1305 = vst [vmem:[#allocation5_spill] sm:$0xff] %v817_v41  ;;  %v122_v49 = vmul.f32 %v796_v22, %v796_v22  ;;  %v115_v60 = vmul.f32 %v807_v36, %v807_v36  ;;  %v117_v63 = vmul.f32 %v817_v41, %v817_v41  ;;  %v842_v11 = vld [vmem:[%s1279_s0 + $0x1a8] sm:$0xff]  ;;  %v859_v41 = vld [vmem:[%s1279_s0 + $0x180] sm:$0xff]  ;;  %v237_v36 = vlaneseq }
  0x15   :  { %v186_v42 = vadd.f32 %v185_v20, %v114_v59  ;;  %v180_v48 = vadd.f32 %v179_v26, %v109_v18  ;;  %v194_v52 = vadd.f32 %v120_v31, %v119_v29  ;;  %1306 = vst [vmem:[#allocation6_spill] sm:$0xff] %v826_v56  ;;  %v116_v59 = vmul.f32 %v812_v40, %v812_v40  ;;  %v847_v18 = vld [vmem:[%s1279_s0 + $0x1b0] sm:$0xff] }
  0x16   :  { %177 = vadd.xlane.f32.xlu1 %v176_v47  ;;  %v121_v47 = vmul.f32 %v791_v19, %v791_v19  ;;  %1308 = vst [vmem:[#allocation8_spill] sm:$0xff] %v842_v11  ;;  %1309 = vst [vmem:[#allocation9_spill] sm:$0xff] %v847_v18  ;;  %v118_v29 = vmul.f32 %v826_v56, %v826_v56 }
  0x17   :  { %172 = vadd.xlane.f32.xlu0 %v171_v10  ;;  %v837_v10 = vld [vmem:[%s1279_s0 + $0x1a0] sm:$0xff]  ;;  %v181_v20 = vadd.f32 %v180_v48, %v110_v23  ;;  %v189_v31 = vadd.f32 %v116_v59, %v115_v60  ;;  %1311 = vst [vmem:[#allocation11_spill] sm:$0xff] %v859_v41  ;;  %v129_v48 = vmul.f32 %v847_v18, %v847_v18  ;;  %v875_v60 = vld [vmem:[%s1279_s0 + $0x190] sm:$0xff] }
  0x18   :  { %1307 = vst [vmem:[#allocation7_spill] sm:$0xff] %v837_v10  ;;  %v195_v26 = vadd.f32 %v194_v52, %v121_v47  ;;  %v127_v23 = vmul.f32 %v837_v10, %v837_v10  ;;  %v128_v47 = vmul.f32 %v842_v11, %v842_v11  ;;  %v870_v52 = vld [vmem:[%s1279_s0 + $0x188] sm:$0xff]  ;;  %1313 = vst [vmem:[#allocation13_spill] sm:$0xff] %v875_v60  ;;  %v889_v11 = vld [vmem:[%s1279_s0 + $0x1e0] sm:$0xff] }
  0x19   :  { %1312 = vst [vmem:[#allocation12_spill] sm:$0xff] %v870_v52  ;;  %v123_v18 = vmul.f32 %v859_v41, %v859_v41  ;;  %1315 = vst [vmem:[#allocation15_spill] sm:$0xff] %v889_v11  ;;  %v938_v10 = vld [vmem:[%s1279_s0 + $0x1d8] sm:$0xff] }
  0x1a   :  { %187 = vadd.xlane.f32.xlu1 %v186_v42  ;;  %v854_v42 = vld [vmem:[%s1279_s0 + $0x1b8] sm:$0xff]  ;;  %v196_v40 = vadd.f32 %v195_v26, %v122_v49  ;;  %v190_v49 = vadd.f32 %v189_v31, %v117_v63  ;;  %v124_v31 = vmul.f32 %v870_v52, %v870_v52  ;;  %v135_v52 = vmul.f32 %v889_v11, %v889_v11 }
  0x1b   :  { %1310 = vst [vmem:[#allocation10_spill] sm:$0xff] %v854_v42  ;;  %182 = vadd.xlane.f32.xlu0 %v181_v20  ;;  %v130_v59 = vmul.f32 %v854_v42, %v854_v42  ;;  %v204_v20 = vadd.f32 %v128_v47, %v127_v23  ;;  %v882_v26 = vld [vmem:[%s1279_s0 + $0x198] sm:$0xff]  ;;  %v125_v23 = vmul.f32 %v875_v60, %v875_v60  ;;  %v903_v47 = vld [vmem:[%s1279_s0 + $0x1f0] sm:$0xff] }
  0x1c   :  { %1314 = vst [vmem:[#allocation14_spill] sm:$0xff] %v882_v26  ;;  %v191_v63 = vadd.f32 %v190_v49, %v118_v29  ;;  %1317 = vst [vmem:[#allocation17_spill] sm:$0xff] %v903_v47  ;;  %v908_v42 = vld [vmem:[%s1279_s0 + $0x1f8] sm:$0xff]  ;;  %v126_v29 = vmul.f32 %v882_v26, %v882_v26  ;;  %v199_v49 = vadd.f32 %v124_v31, %v123_v18  ;;  %v929_v18 = vld [vmem:[%s1279_s0 + $0x1d0] sm:$0xff] }
  0x1d   :  { %v205_v41 = vadd.f32 %v204_v20, %v129_v48  ;;  %1318 = vst [vmem:[#allocation18_spill] sm:$0xff] %v908_v42  ;;  %v919_v48 = vld [vmem:[%s1279_s0 + $0x1c0] sm:$0xff]  ;;  %v924_v20 = vld [vmem:[%s1279_s0 + $0x1c8] sm:$0xff]  ;;  %1321 = vst [vmem:[#allocation21_spill] sm:$0xff] %v929_v18  ;;  %v137_v31 = vmul.f32 %v903_v47, %v903_v47  ;;  %v138_v11 = vmul.f32 %v908_v42, %v908_v42 }
  0x1e   :  { %197 = vadd.xlane.f32.xlu1 %v196_v40  ;;  %v894_v40 = vld [vmem:[%s1279_s0 + $0x1e8] sm:$0xff]  ;;  %1319 = vst [vmem:[#allocation19_spill] sm:$0xff] %v919_v48  ;;  %1320 = vst [vmem:[#allocation20_spill] sm:$0xff] %v924_v20  ;;  %v131_v56 = vmul.f32 %v919_v48, %v919_v48  ;;  %v238_v48 = vshrl.u32 %v237_v36, 7 }
  0x1f   :  { %1316 = vst [vmem:[#allocation16_spill] sm:$0xff] %v894_v40  ;;  %192 = vadd.xlane.f32.xlu0 %v191_v63  ;;  %v136_v60 = vmul.f32 %v894_v40, %v894_v40  ;;  %v206_v63 = vadd.f32 %v205_v41, %v130_v59  ;;  %v200_v40 = vadd.f32 %v199_v49, %v125_v23 }
  0x20   :  { %v132_v41 = vmul.f32 %v924_v20, %v924_v20  ;;  %v133_v59 = vmul.f32 %v929_v18, %v929_v18  ;;  %v239_v22 = vsub.s32 0, %v238_v48  ;;  %v235_v20 = vld [vmem:[%s1280_s1] sm:$0xf]  ;;  %v243_v18 = vsub.s32 1, %v238_v48 }
  0x21   :  { %v214_v26 = vadd.f32 %v136_v60, %v135_v52  ;;  %v201_v23 = vadd.f32 %v200_v40, %v126_v29  ;;  %v134_v52 = vmul.f32 %v938_v10, %v938_v10  ;;  %v247_v40 = vsub.s32 2, %v238_v48 }
  0x22   :  { %207 = vadd.xlane.f32.xlu1 %v206_v63  ;;  %v209_v60 = vadd.f32 %v132_v41, %v131_v56 }
  0x23   :  { %v215_v49 = vadd.f32 %v214_v26, %v137_v31  ;;  %202 = vadd.xlane.f32.xlu0 %v201_v23  ;;  %v251_v26 = vsub.s32 3, %v238_v48  ;;  %v951_v31 = vrot.slane %v235_v20, %v239_v22 }
  0x24   :  { %v210_v47 = vadd.f32 %v209_v60, %v133_v59 }
  0x25   :  { %v216_v42 = vadd.f32 %v215_v49, %v138_v11  ;;  %v953_v11 = vrot.slane %v235_v20, %v243_v18  ;;  %v265_v36 = vmul.f32 %v951_v31, %v503_v0  ;;  %v257_v18 = vmul.f32 %v951_v31, %v529_v7 }
  0x26   :  { %v211_v63 = vadd.f32 %v210_v47, %v134_v52  ;;  %v957_v47 = vrot.slane %v235_v20, %v251_v26 }
  0x27   :  { %217 = vadd.xlane.f32.xlu1 %v216_v42  ;;  %v955_v42 = vrot.slane %v235_v20, %v247_v40  ;;  %v266_v59 = vmul.f32 %v953_v11, %v508_v1  ;;  %v258_v49 = vmul.f32 %v953_v11, %v534_v8  ;;  %v270_v26 = vmul.f32 %v953_v11, %v558_v15 }
  0x28   :  { %212 = vadd.xlane.f32.xlu0 %v211_v63  ;;  %v268_v22 = vmul.f32 %v957_v47, %v518_v3  ;;  %v260_v1 = vmul.f32 %v957_v47, %v548_v13  ;;  %v269_v63 = vmul.f32 %v951_v31, %v553_v14 }
  0x29   :  { %v267_v48 = vmul.f32 %v955_v42, %v513_v2  ;;  %v259_v0 = vmul.f32 %v955_v42, %v539_v9  ;;  %v271_v8 = vmul.f32 %v955_v42, %v569_v21  ;;  %v272_v9 = vmul.f32 %v957_v47, %v578_v25 }
  0x97   :  { %v153_v29 = vpop.xlane.xlu1 %152 }
  0x98   :  { %453 = vrsqrt.f32 %v153_v29  ;;  %v143_v56 = vpop.xlane.xlu0 %142 }
  0x99   :  { %455 = vrsqrt.f32 %v143_v56  ;;  %v261_v56 = vmul.f32 %v951_v31, %v583_v27  ;;  %v278_v27 = vmul.f32 %v953_v11, %v616_v38 }
  0x9b   :  { %v158_v41 = vpop.xlane.xlu1 %157 }
  0x9c   :  { %457 = vrsqrt.f32 %v158_v41  ;;  %v148_v20 = vpop.xlane.xlu0 %147  ;;  %v263_v41 = vmul.f32 %v955_v42, %v595_v30  ;;  %v280_v30 = vmul.f32 %v957_v47, %v630_v44 }
  0x9d   :  { %459 = vrsqrt.f32 %v148_v20 }
  0x9f   :  { %v168_v7 = vpop.xlane.xlu1 %167 }
  0xa0   :  { %461 = vrsqrt.f32 %v168_v7  ;;  %v163_v25 = vpop.xlane.xlu0 %162 }
  0xa1   :  { %463 = vrsqrt.f32 %v163_v25  ;;  %v282_v25 = vmul.f32 %v953_v11, %v700_v16 }
  0xa2   :  { %v454_v23 = vpop.eup %453 }
  0xa3   :  { %v329_v2 = vmul.f32 %v454_v23, %v265_v36  ;;  %v330_v52 = vmul.f32 %v454_v23, %v266_v59  ;;  %v331_v60 = vmul.f32 %v454_v23, %v267_v48  ;;  %v332_v3 = vmul.f32 %v454_v23, %v268_v22  ;;  %v456_v40 = vpop.eup %455  ;;  %v178_v48 = vpop.xlane.xlu1 %177 }
  0xa4   :  { %v321_v13 = vmul.f32 %v456_v40, %v257_v18  ;;  %v322_v14 = vmul.f32 %v456_v40, %v258_v49  ;;  %v323_v15 = vmul.f32 %v456_v40, %v259_v0  ;;  %v324_v21 = vmul.f32 %v456_v40, %v260_v1 }
  0xa5   :  { %393 = vst [vmem:[%s1281_s2 + $0x40] sm:$0xff] %v329_v2  ;;  %394 = vst [vmem:[%s1281_s2 + $0x48] sm:$0xff] %v330_v52  ;;  %v262_v36 = vmul.f32 %v953_v11, %v588_v28  ;;  %v264_v59 = vmul.f32 %v957_v47, %v602_v34  ;;  %465 = vrsqrt.f32 %v178_v48  ;;  %v277_v0 = vmul.f32 %v951_v31, %v611_v37  ;;  %v173_v34 = vpop.xlane.xlu0 %172 }
  0xa6   :  { %395 = vst [vmem:[%s1281_s2 + $0x50] sm:$0xff] %v331_v60  ;;  %396 = vst [vmem:[%s1281_s2 + $0x58] sm:$0xff] %v332_v3  ;;  %v458_v29 = vpop.eup %457  ;;  %v279_v28 = vmul.f32 %v955_v42, %v621_v39  ;;  %467 = vrsqrt.f32 %v173_v34  ;;  %v273_v2 = vmul.f32 %v951_v31, %v635_v45  ;;  %v274_v52 = vmul.f32 %v953_v11, %v646_v50 }
  0xa7   :  { %385 = vst [vmem:[%s1281_s2] sm:$0xff] %v321_v13  ;;  %386 = vst [vmem:[%s1281_s2 + $0x8] sm:$0xff] %v322_v14  ;;  %v333_v22 = vmul.f32 %v458_v29, %v269_v63  ;;  %v334_v18 = vmul.f32 %v458_v29, %v270_v26  ;;  %v335_v20 = vmul.f32 %v458_v29, %v271_v8  ;;  %v460_v49 = vpop.eup %459  ;;  %v188_v45 = vpop.xlane.xlu1 %187 }
  0xa8   :  { %387 = vst [vmem:[%s1281_s2 + $0x10] sm:$0xff] %v323_v15  ;;  %388 = vst [vmem:[%s1281_s2 + $0x18] sm:$0xff] %v324_v21  ;;  %v336_v23 = vmul.f32 %v458_v29, %v272_v9  ;;  %v325_v37 = vmul.f32 %v460_v49, %v261_v56  ;;  %v326_v38 = vmul.f32 %v460_v49, %v262_v36  ;;  %469 = vrsqrt.f32 %v188_v45 }
  0xa9   :  { %397 = vst [vmem:[%s1281_s2 + $0x60] sm:$0xff] %v333_v22  ;;  %398 = vst [vmem:[%s1281_s2 + $0x68] sm:$0xff] %v334_v18  ;;  %v327_v39 = vmul.f32 %v460_v49, %v263_v41  ;;  %v328_v44 = vmul.f32 %v460_v49, %v264_v59  ;;  %v275_v60 = vmul.f32 %v955_v42, %v651_v51 }
  0xaa   :  { %399 = vst [vmem:[%s1281_s2 + $0x70] sm:$0xff] %v335_v20  ;;  %400 = vst [vmem:[%s1281_s2 + $0x78] sm:$0xff] %v336_v23  ;;  %v462_v1 = vpop.eup %461  ;;  %v276_v3 = vmul.f32 %v957_v47, %v658_v55  ;;  %v285_v40 = vmul.f32 %v951_v31, %v665_v57  ;;  %v286_v26 = vmul.f32 %v953_v11, %v670_v58  ;;  %v183_v57 = vpop.xlane.xlu0 %182 }
  0xab   :  { %389 = vst [vmem:[%s1281_s2 + $0x20] sm:$0xff] %v325_v37  ;;  %390 = vst [vmem:[%s1281_s2 + $0x28] sm:$0xff] %v326_v38  ;;  %v341_v50 = vmul.f32 %v462_v1, %v277_v0  ;;  %v342_v51 = vmul.f32 %v462_v1, %v278_v27  ;;  %v343_v55 = vmul.f32 %v462_v1, %v279_v28  ;;  %v464_v7 = vpop.eup %463  ;;  %471 = vrsqrt.f32 %v183_v57  ;;  %v198_v15 = vpop.xlane.xlu1 %197  ;;  %v1322_v37 = vld [vmem:[#allocation2_spill] sm:$0xff] }
  0xac   :  { %391 = vst [vmem:[%s1281_s2 + $0x30] sm:$0xff] %v327_v39  ;;  %392 = vst [vmem:[%s1281_s2 + $0x38] sm:$0xff] %v328_v44  ;;  %v344_v63 = vmul.f32 %v462_v1, %v280_v30  ;;  %v287_v8 = vmul.f32 %v955_v42, %v679_v62  ;;  %v288_v9 = vmul.f32 %v957_v47, %v684_v4  ;;  %473 = vrsqrt.f32 %v198_v15  ;;  %v1324_v1 = vld [vmem:[#allocation4_spill] sm:$0xff]  ;;  %v1329_v15 = vld [vmem:[#allocation9_spill] sm:$0xff] }
  0xad   :  { %405 = vst [vmem:[%s1281_s2 + $0xa0] sm:$0xff] %v341_v50  ;;  %406 = vst [vmem:[%s1281_s2 + $0xa8] sm:$0xff] %v342_v51  ;;  %v337_v58 = vmul.f32 %v464_v7, %v273_v2  ;;  %v338_v62 = vmul.f32 %v464_v7, %v274_v52  ;;  %v339_v4 = vmul.f32 %v464_v7, %v275_v60  ;;  %v1325_v52 = vld [vmem:[#allocation5_spill] sm:$0xff] }
  0xae   :  { %407 = vst [vmem:[%s1281_s2 + $0xb0] sm:$0xff] %v343_v55  ;;  %408 = vst [vmem:[%s1281_s2 + $0xb8] sm:$0xff] %v344_v63  ;;  %v340_v13 = vmul.f32 %v464_v7, %v276_v3  ;;  %v281_v14 = vmul.f32 %v951_v31, %v695_v12  ;;  %v283_v29 = vmul.f32 %v955_v42, %v705_v17  ;;  %v193_v59 = vpop.xlane.xlu0 %192  ;;  %v1326_v3 = vld [vmem:[#allocation6_spill] sm:$0xff] }
  0xaf   :  { %v466_v21 = vpop.eup %465  ;;  %v284_v56 = vmul.f32 %v957_v47, %v714_v24  ;;  %401 = vst [vmem:[%s1281_s2 + $0x80] sm:$0xff] %v337_v58  ;;  %402 = vst [vmem:[%s1281_s2 + $0x88] sm:$0xff] %v338_v62  ;;  %v293_v36 = vmul.f32 %v951_v31, %v725_v32  ;;  %v294_v41 = vmul.f32 %v953_v11, %v730_v33  ;;  %475 = vrsqrt.f32 %v193_v59  ;;  %v208_v27 = vpop.xlane.xlu1 %207  ;;  %v1327_v62 = vld [vmem:[#allocation7_spill] sm:$0xff] }
  0xb0   :  { %403 = vst [vmem:[%s1281_s2 + $0x90] sm:$0xff] %v339_v4  ;;  %404 = vst [vmem:[%s1281_s2 + $0x98] sm:$0xff] %v340_v13  ;;  %v349_v12 = vmul.f32 %v466_v21, %v285_v40  ;;  %v350_v16 = vmul.f32 %v466_v21, %v286_v26  ;;  %v351_v17 = vmul.f32 %v466_v21, %v287_v8  ;;  %v468_v48 = vpop.eup %467  ;;  %477 = vrsqrt.f32 %v208_v27  ;;  %v1328_v13 = vld [vmem:[#allocation8_spill] sm:$0xff] }
  0xb1   :  { %v352_v24 = vmul.f32 %v466_v21, %v288_v9  ;;  %v295_v22 = vmul.f32 %v955_v42, %v735_v35  ;;  %v296_v18 = vmul.f32 %v957_v47, %v742_v43  ;;  %v289_v20 = vmul.f32 %v951_v31, %v747_v46 }
  0xb2   :  { %413 = vst [vmem:[%s1281_s2 + $0xe0] sm:$0xff] %v349_v12  ;;  %414 = vst [vmem:[%s1281_s2 + $0xe8] sm:$0xff] %v350_v16  ;;  %v345_v32 = vmul.f32 %v468_v48, %v281_v14  ;;  %v346_v33 = vmul.f32 %v468_v48, %v282_v25  ;;  %v347_v35 = vmul.f32 %v468_v48, %v283_v29  ;;  %v470_v28 = vpop.eup %469  ;;  %v203_v39 = vpop.xlane.xlu0 %202  ;;  %v1330_v25 = vld [vmem:[#allocation10_spill] sm:$0xff] }
  0xb3   :  { %415 = vst [vmem:[%s1281_s2 + $0xf0] sm:$0xff] %v351_v17  ;;  %416 = vst [vmem:[%s1281_s2 + $0xf8] sm:$0xff] %v352_v24  ;;  %v348_v43 = vmul.f32 %v468_v48, %v284_v56  ;;  %v290_v46 = vmul.f32 %v953_v11, %v758_v53  ;;  %v291_v23 = vmul.f32 %v955_v42, %v763_v54  ;;  %479 = vrsqrt.f32 %v203_v39  ;;  %v1332_v48 = vld [vmem:[#allocation12_spill] sm:$0xff]  ;;  %v1339_v39 = vld [vmem:[#allocation19_spill] sm:$0xff] }
  0xb4   :  { %v292_v49 = vmul.f32 %v957_v47, %v770_v61  ;;  %v301_v0 = vmul.f32 %v951_v31, %v777_v5  ;;  %v302_v30 = vmul.f32 %v953_v11, %v782_v6  ;;  %v303_v34 = vmul.f32 %v955_v42, %v791_v19  ;;  %409 = vst [vmem:[%s1281_s2 + $0xc0] sm:$0xff] %v345_v32  ;;  %v1323_v19 = vld [vmem:[#allocation3_spill] sm:$0xff]  ;;  %v218_v40 = vpop.xlane.xlu1 %217  ;;  %v1334_v32 = vld [vmem:[#allocation14_spill] sm:$0xff] }
  0xb5   :  { %v304_v53 = vmul.f32 %v957_v47, %v1322_v37  ;;  %410 = vst [vmem:[%s1281_s2 + $0xc8] sm:$0xff] %v346_v33  ;;  %411 = vst [vmem:[%s1281_s2 + $0xd0] sm:$0xff] %v347_v35  ;;  %v357_v54 = vmul.f32 %v470_v28, %v293_v36  ;;  %v358_v61 = vmul.f32 %v470_v28, %v294_v41  ;;  %v472_v44 = vpop.eup %471  ;;  %481 = vrsqrt.f32 %v218_v40  ;;  %v1331_v41 = vld [vmem:[#allocation11_spill] sm:$0xff] }
  0xb6   :  { %412 = vst [vmem:[%s1281_s2 + $0xd8] sm:$0xff] %v348_v43  ;;  %v359_v5 = vmul.f32 %v470_v28, %v295_v22  ;;  %v360_v6 = vmul.f32 %v470_v28, %v296_v18  ;;  %v297_v38 = vmul.f32 %v951_v31, %v1323_v19  ;;  %v298_v2 = vmul.f32 %v953_v11, %v1324_v1  ;;  %v474_v50 = vpop.eup %473  ;;  %v213_v56 = vpop.xlane.xlu0 %212  ;;  %v1333_v18 = vld [vmem:[#allocation13_spill] sm:$0xff]  ;;  %v1336_v28 = vld [vmem:[#allocation16_spill] sm:$0xff] }
  0xb7   :  { %v299_v60 = vmul.f32 %v955_v42, %v1325_v52  ;;  %v300_v45 = vmul.f32 %v957_v47, %v1326_v3  ;;  %421 = vst [vmem:[%s1281_s2 + $0x120] sm:$0xff] %v357_v54  ;;  %422 = vst [vmem:[%s1281_s2 + $0x128] sm:$0xff] %v358_v61  ;;  %v353_v51 = vmul.f32 %v472_v44, %v289_v20  ;;  %483 = vrsqrt.f32 %v213_v56  ;;  %v1340_v1 = vld [vmem:[#allocation20_spill] sm:$0xff]  ;;  %v1341_v52 = vld [vmem:[#allocation21_spill] sm:$0xff] }
  0xb8   :  { %423 = vst [vmem:[%s1281_s2 + $0x130] sm:$0xff] %v359_v5  ;;  %424 = vst [vmem:[%s1281_s2 + $0x138] sm:$0xff] %v360_v6  ;;  %v354_v55 = vmul.f32 %v472_v44, %v290_v46  ;;  %v355_v63 = vmul.f32 %v472_v44, %v291_v23  ;;  %v356_v7 = vmul.f32 %v472_v44, %v292_v49 }
  0xb9   :  { %v365_v26 = vmul.f32 %v474_v50, %v301_v0  ;;  %v366_v8 = vmul.f32 %v474_v50, %v302_v30  ;;  %v367_v9 = vmul.f32 %v474_v50, %v303_v34  ;;  %v368_v57 = vmul.f32 %v474_v50, %v304_v53  ;;  %417 = vst [vmem:[%s1281_s2 + $0x100] sm:$0xff] %v353_v51  ;;  %v476_v58 = vpop.eup %475  ;;  %v1335_v0 = vld [vmem:[#allocation15_spill] sm:$0xff]  ;;  %v1337_v34 = vld [vmem:[#allocation17_spill] sm:$0xff]  ;;  %v1338_v53 = vld [vmem:[#allocation18_spill] sm:$0xff] }
  0xba   :  { %418 = vst [vmem:[%s1281_s2 + $0x108] sm:$0xff] %v354_v55  ;;  %419 = vst [vmem:[%s1281_s2 + $0x110] sm:$0xff] %v355_v63  ;;  %v309_v4 = vmul.f32 %v951_v31, %v1327_v62  ;;  %v310_v14 = vmul.f32 %v953_v11, %v1328_v13  ;;  %v311_v21 = vmul.f32 %v955_v42, %v1329_v15  ;;  %v478_v36 = vpop.eup %477 }
  0xbb   :  { %420 = vst [vmem:[%s1281_s2 + $0x118] sm:$0xff] %v356_v7  ;;  %v312_v29 = vmul.f32 %v957_v47, %v1330_v25  ;;  %429 = vst [vmem:[%s1281_s2 + $0x160] sm:$0xff] %v365_v26  ;;  %v361_v12 = vmul.f32 %v476_v58, %v297_v38  ;;  %v362_v16 = vmul.f32 %v476_v58, %v298_v2 }
  0xbc   :  { %430 = vst [vmem:[%s1281_s2 + $0x168] sm:$0xff] %v366_v8  ;;  %431 = vst [vmem:[%s1281_s2 + $0x170] sm:$0xff] %v367_v9  ;;  %v363_v17 = vmul.f32 %v476_v58, %v299_v60  ;;  %v364_v24 = vmul.f32 %v476_v58, %v300_v45  ;;  %v305_v59 = vmul.f32 %v951_v31, %v1331_v41 }
  0xbd   :  { %432 = vst [vmem:[%s1281_s2 + $0x178] sm:$0xff] %v368_v57  ;;  %v306_v22 = vmul.f32 %v953_v11, %v1332_v48  ;;  %v307_v20 = vmul.f32 %v955_v42, %v1333_v18  ;;  %v308_v33 = vmul.f32 %v957_v47, %v1334_v32  ;;  %425 = vst [vmem:[%s1281_s2 + $0x140] sm:$0xff] %v361_v12  ;;  %v480_v49 = vpop.eup %479 }
  0xbe   :  { %426 = vst [vmem:[%s1281_s2 + $0x148] sm:$0xff] %v362_v16  ;;  %427 = vst [vmem:[%s1281_s2 + $0x150] sm:$0xff] %v363_v17  ;;  %v373_v35 = vmul.f32 %v478_v36, %v309_v4  ;;  %v374_v43 = vmul.f32 %v478_v36, %v310_v14  ;;  %v375_v46 = vmul.f32 %v478_v36, %v311_v21 }
  0xbf   :  { %428 = vst [vmem:[%s1281_s2 + $0x158] sm:$0xff] %v364_v24  ;;  %v376_v23 = vmul.f32 %v478_v36, %v312_v29  ;;  %v317_v27 = vmul.f32 %v951_v31, %v1335_v0  ;;  %v318_v30 = vmul.f32 %v953_v11, %v1336_v28  ;;  %v319_v37 = vmul.f32 %v955_v42, %v1337_v34  ;;  %v482_v38 = vpop.eup %481 }
  0xc0   :  { %v320_v54 = vmul.f32 %v957_v47, %v1338_v53  ;;  %437 = vst [vmem:[%s1281_s2 + $0x1a0] sm:$0xff] %v373_v35  ;;  %438 = vst [vmem:[%s1281_s2 + $0x1a8] sm:$0xff] %v374_v43  ;;  %v369_v61 = vmul.f32 %v480_v49, %v305_v59  ;;  %v370_v5 = vmul.f32 %v480_v49, %v306_v22 }
  0xc1   :  { %439 = vst [vmem:[%s1281_s2 + $0x1b0] sm:$0xff] %v375_v46  ;;  %440 = vst [vmem:[%s1281_s2 + $0x1b8] sm:$0xff] %v376_v23  ;;  %v371_v6 = vmul.f32 %v480_v49, %v307_v20  ;;  %v372_v19 = vmul.f32 %v480_v49, %v308_v33  ;;  %v313_v44 = vmul.f32 %v951_v31, %v1339_v39 }
  0xc2   :  { %v314_v2 = vmul.f32 %v953_v11, %v1340_v1  ;;  %v315_v60 = vmul.f32 %v955_v42, %v1341_v52  ;;  %v316_v3 = vmul.f32 %v957_v47, %v938_v10  ;;  %433 = vst [vmem:[%s1281_s2 + $0x180] sm:$0xff] %v369_v61  ;;  %434 = vst [vmem:[%s1281_s2 + $0x188] sm:$0xff] %v370_v5  ;;  %v484_v47 = vpop.eup %483 }
  0xc3   :  { %435 = vst [vmem:[%s1281_s2 + $0x190] sm:$0xff] %v371_v6  ;;  %436 = vst [vmem:[%s1281_s2 + $0x198] sm:$0xff] %v372_v19  ;;  %v381_v31 = vmul.f32 %v482_v38, %v317_v27  ;;  %v382_v11 = vmul.f32 %v482_v38, %v318_v30  ;;  %v383_v42 = vmul.f32 %v482_v38, %v319_v37 }
  0xc4   :  { %v384_v10 = vmul.f32 %v482_v38, %v320_v54  ;;  %v377_v45 = vmul.f32 %v484_v47, %v313_v44  ;;  %v378_v50 = vmul.f32 %v484_v47, %v314_v2  ;;  %v379_v51 = vmul.f32 %v484_v47, %v315_v60 }
  0xc5   :  { %445 = vst [vmem:[%s1281_s2 + $0x1e0] sm:$0xff] %v381_v31  ;;  %446 = vst [vmem:[%s1281_s2 + $0x1e8] sm:$0xff] %v382_v11  ;;  %v380_v55 = vmul.f32 %v484_v47, %v316_v3 }
  0xc6   :  { %447 = vst [vmem:[%s1281_s2 + $0x1f0] sm:$0xff] %v383_v42  ;;  %448 = vst [vmem:[%s1281_s2 + $0x1f8] sm:$0xff] %v384_v10 }
  0xc7   :  { %441 = vst [vmem:[%s1281_s2 + $0x1c0] sm:$0xff] %v377_v45  ;;  %442 = vst [vmem:[%s1281_s2 + $0x1c8] sm:$0xff] %v378_v50 }
  0xc8   :  { %443 = vst [vmem:[%s1281_s2 + $0x1d0] sm:$0xff] %v379_v51  ;;  %444 = vst [vmem:[%s1281_s2 + $0x1d8] sm:$0xff] %v380_v55 }

// kernel: ssd_forward.6
= control target key start
LH: loop header
LB: loop body
LE: loop exit
PB: predicated region body
PF: predicated region fallthrough
CT: control target
= control target key end

     0   :  { %s6457_s12 = smov 0   ;;  %s6459_s13 = smov 0   ;;  %s7709_s0 = inlined_call_operand.vmem [shape: bf16[1,128,4608], index: 0, kind: input, shape index: {}]   ;;  %s7710_s1 = inlined_call_operand.vmem [shape: bf16[1,4608,128], index: 1, kind: input, shape index: {}]   ;;  %s7711_s2 = inlined_call_operand.vmem [shape: f32[1,1,128], index: 2, kind: input, shape index: {}]   ;;  %s7712_s3 = inlined_call_operand.vmem [shape: f32[1,128,128], index: 3, kind: output, shape index: {}]  }
   0x1   :  { %s6461_s14 = smov 0  }
   0x2 LB: > { %s22_s15 = sadd.s32 1, %s6431_s13  ;;  %p4724_p0 = scmp.ge.s32.totalorder %s6435_s14, 1  ;;  %s6435_s14 = sphi %s6461_s14, %s13_s14   ;;  %s6431_s13 = sphi %s6459_s13, %s7714_s13   ;;  %s6427_s12 = sphi %s6457_s12, %s7713_s12  }
   0x3   : > { %p23_p1 = scmp.ge.s32.totalorder %s22_s15, 2  ;;  %p177_p2 = scmp.lt.s32.totalorder %s6435_s14, 3 }
   0x5   : > { %s7716_s15 = smov (%p23_p1, %s22_s15), 0  ;;  %p178_p3 = pnand %p4724_p0, %p177_p2 }
   0x6   : > { %v5909_v0 = vld [vmem:[%s7710_s1 + $0x40] sm:$0xff] (!%p178_p3)   ;;  %v5913_v4 = vld [vmem:[%s7710_s1 + $0x48] sm:$0xff] (!%p178_p3)   ;;  %v5917_v8 = vld [vmem:[%s7710_s1 + $0x50] sm:$0xff] (!%p178_p3)   ;;  %s4725_s23 = sshll.u32 (!%p178_p3), %s6427_s12, 3 }
   0x7   : > { %181 = sbr.rel (%p178_p3) target bundleno = 591 (0x24f), region = 32  ;;  %v5910_v1 = vld [vmem:[%s7710_s1 + $0xc0] sm:$0xff] (!%p178_p3)   ;;  %5164 = vmatprep.subr.bf16.mxu0 (!%p178_p3), %v5909_v0  ;;  %v5914_v5 = vld [vmem:[%s7710_s1 + $0xc8] sm:$0xff] (!%p178_p3)   ;;  %v5918_v9 = vld [vmem:[%s7710_s1 + $0xd0] sm:$0xff] (!%p178_p3)   ;;  %p221_p4 = scmp.lt.s32.totalorder (!%p178_p3), %s4725_s23, 15 }
   0x8   : > { %v5911_v2 = vld [vmem:[%s7710_s1] sm:$0xff] (!%p178_p3)   ;;  %5204 = vmatprep.subr.bf16.mxu1 (!%p178_p3), %v5910_v1  ;;  %v5915_v6 = vld [vmem:[%s7710_s1 + $0x8] sm:$0xff] (!%p178_p3)   ;;  %v5919_v10 = vld [vmem:[%s7710_s1 + $0x10] sm:$0xff] (!%p178_p3)  }
   0x9   : > { %v5912_v3 = vld [vmem:[%s7710_s1 + $0x80] sm:$0xff] (!%p178_p3)   ;;  %5165 = vmatpush3.bf16.msra.mxu0 (!%p178_p3), %v5911_v2  ;;  %v5916_v7 = vld [vmem:[%s7710_s1 + $0x88] sm:$0xff] (!%p178_p3)   ;;  %v5920_v11 = vld [vmem:[%s7710_s1 + $0x90] sm:$0xff] (!%p178_p3)  }
   0xa   : > { %5205 = vmatpush3.bf16.msra.mxu1 (!%p178_p3), %v5912_v3  ;;  %5166 = vmatprep.subr.bf16.mxu0 (!%p178_p3), %v5913_v4  ;;  %v5921_v12 = vld [vmem:[%s7710_s1 + $0x58] sm:$0xff] (!%p178_p3)   ;;  %v5925_v16 = vld [vmem:[%s7710_s1 + $0x60] sm:$0xff] (!%p178_p3)   ;;  %v5929_v20 = vld [vmem:[%s7710_s1 + $0x68] sm:$0xff] (!%p178_p3)  }
   0xb   : > { %5206 = vmatprep.subr.bf16.mxu1 (!%p178_p3), %v5914_v5  ;;  %v5922_v13 = vld [vmem:[%s7710_s1 + $0xd8] sm:$0xff] (!%p178_p3)   ;;  %v5926_v17 = vld [vmem:[%s7710_s1 + $0xe0] sm:$0xff] (!%p178_p3)   ;;  %v5930_v21 = vld [vmem:[%s7710_s1 + $0xe8] sm:$0xff] (!%p178_p3)  }
   0xc   : > { %v5923_v14 = vld [vmem:[%s7710_s1 + $0x18] sm:$0xff] (!%p178_p3)   ;;  %v5927_v18 = vld [vmem:[%s7710_s1 + $0x20] sm:$0xff] (!%p178_p3)   ;;  %v5931_v22 = vld [vmem:[%s7710_s1 + $0x28] sm:$0xff] (!%p178_p3)  }
   0xd   : > { %5167 = vmatpush3.bf16.msra.mxu0 (!%p178_p3), %v5915_v6  ;;  %v5924_v15 = vld [vmem:[%s7710_s1 + $0x98] sm:$0xff] (!%p178_p3)   ;;  %v5928_v19 = vld [vmem:[%s7710_s1 + $0xa0] sm:$0xff] (!%p178_p3)   ;;  %v5932_v23 = vld [vmem:[%s7710_s1 + $0xa8] sm:$0xff] (!%p178_p3)  }
   0xe   : > { %5207 = vmatpush3.bf16.msra.mxu1 %v5916_v7  ;;  %5168 = vmatprep.subr.bf16.mxu0 %v5917_v8  ;;  %s7718_s23 = smov (!%p221_p4, %s4725_s23), 15  ;;  %v5933_v24 = vld [vmem:[%s7710_s1 + $0x70] sm:$0xff]   ;;  %v5937_v28 = vld [vmem:[%s7710_s1 + $0x78] sm:$0xff]   ;;  %v5947_v36 = vld [vmem:[%s7710_s1 + $0x140] sm:$0xff]  }
   0xf   : > { %5208 = vmatprep.subr.bf16.mxu1 %v5918_v9  ;;  %v5934_v25 = vld [vmem:[%s7710_s1 + $0xf0] sm:$0xff]   ;;  %s5884_s22 = smul.u32 144, %s7718_s23  ;;  %v5938_v29 = vld [vmem:[%s7710_s1 + $0xf8] sm:$0xff]   ;;  %v5948_v37 = vld [vmem:[%s7710_s1 + $0x1c0] sm:$0xff]  }
  0x10   : > { %v5935_v26 = vld [vmem:[%s7710_s1 + $0x30] sm:$0xff]   ;;  %v5939_v30 = vld [vmem:[%s7710_s1 + $0x38] sm:$0xff]   ;;  %v5949_v38 = vld [vmem:[%s7710_s1 + $0x100] sm:$0xff]  }
  0x11   : > { %5169 = vmatpush3.bf16.msra.mxu0 %v5919_v10  ;;  %v5936_v27 = vld [vmem:[%s7710_s1 + $0xb0] sm:$0xff]   ;;  %s6574_s6 = scalar_lea.vmem %s7709_s0, %s5884_s22  ;;  %v5940_v31 = vld [vmem:[%s7710_s1 + $0xb8] sm:$0xff]   ;;  %v5950_v39 = vld [vmem:[%s7710_s1 + $0x180] sm:$0xff]  }
  0x12   : > { %5209 = vmatpush3.bf16.msra.mxu1 %v5920_v11  ;;  %5170 = vmatprep.subr.bf16.mxu0 %v5921_v12  ;;  %v5941_v32 = vld [vmem:[%s6574_s6] ss:$144 sps:$4 sm:$0xff]   ;;  %v5943_v33 = vld [vmem:[%s6574_s6 + $0x4] ss:$144 sps:$4 sm:$0xff]   ;;  %v5944_v34 = vld [vmem:[%s6574_s6 + $0x8] ss:$144 sps:$4 sm:$0xff]  }
  0x13   : > { %5210 = vmatprep.subr.bf16.mxu1 %v5922_v13  ;;  %v5946_v35 = vld [vmem:[%s6574_s6 + $0xc] ss:$144 sps:$4 sm:$0xff]   ;;  %3455 = vmatprep.mubr.bf16.mxu0 %v5943_v33  ;;  %v5955_v44 = vld [vmem:[%s6574_s6 + $0x124] ss:$144 sps:$4 sm:$0xff]   ;;  %v5959_v46 = vld [vmem:[%s6574_s6 + $0x120] ss:$144 sps:$4 sm:$0xff]  }
  0x14   : > { %3520 = vmatprep.mubr.bf16.mxu1 %v5946_v35  ;;  %v5951_v40 = vld [vmem:[%s7710_s1 + $0x148] sm:$0xff]   ;;  %v5961_v48 = vld [vmem:[%s7710_s1 + $0x150] sm:$0xff]   ;;  %v5965_v52 = vld [vmem:[%s7710_s1 + $0x158] sm:$0xff]  }
  0x15   : > { %5171 = vmatpush3.bf16.msra.mxu0 %v5923_v14  ;;  %v5952_v41 = vld [vmem:[%s7710_s1 + $0x1c8] sm:$0xff]   ;;  %v5962_v49 = vld [vmem:[%s7710_s1 + $0x1d0] sm:$0xff]   ;;  %v5966_v53 = vld [vmem:[%s7710_s1 + $0x1d8] sm:$0xff]  }
  0x16   : > { %5211 = vmatpush3.bf16.msra.mxu1 %v5924_v15  ;;  %5172 = vmatprep.subr.bf16.mxu0 %v5925_v16  ;;  %v5953_v42 = vld [vmem:[%s7710_s1 + $0x108] sm:$0xff]   ;;  %v5963_v50 = vld [vmem:[%s7710_s1 + $0x110] sm:$0xff]   ;;  %v5967_v54 = vld [vmem:[%s7710_s1 + $0x118] sm:$0xff]  }
  0x17   : > { %5212 = vmatprep.subr.bf16.mxu1 %v5926_v17  ;;  %v5954_v43 = vld [vmem:[%s7710_s1 + $0x188] sm:$0xff]   ;;  %v5964_v51 = vld [vmem:[%s7710_s1 + $0x190] sm:$0xff]   ;;  %v5968_v55 = vld [vmem:[%s7710_s1 + $0x198] sm:$0xff]  }
  0x18   : > { %v5957_v45 = vld [vmem:[%s6574_s6 + $0x12c] ss:$144 sps:$4 sm:$0xff]   ;;  %v5960_v47 = vld [vmem:[%s6574_s6 + $0x128] ss:$144 sps:$4 sm:$0xff]   ;;  %v5969_v56 = vld [vmem:[%s6574_s6 + $0x244] ss:$144 sps:$4 sm:$0xff]  }
  0x19   : > { %5173 = vmatpush3.bf16.msra.mxu0 %v5927_v18  ;;  %v5971_v57 = vld [vmem:[%s6574_s6 + $0x24c] ss:$144 sps:$4 sm:$0xff]   ;;  %v5973_v58 = vld [vmem:[%s6574_s6 + $0x240] ss:$144 sps:$4 sm:$0xff]   ;;  %v5974_v59 = vld [vmem:[%s6574_s6 + $0x248] ss:$144 sps:$4 sm:$0xff]  }
  0x1a   : > { %5213 = vmatpush3.bf16.msra.mxu1 %v5928_v19  ;;  %5174 = vmatprep.subr.bf16.mxu0 %v5929_v20  ;;  %v5975_v60 = vld [vmem:[%s7710_s1 + $0x160] sm:$0xff]   ;;  %v5979_v0 = vld [vmem:[%s7710_s1 + $0x168] sm:$0xff]   ;;  %v5989_v8 = vld [vmem:[%s7710_s1 + $0x170] sm:$0xff]  }
  0x1b   : > { %5214 = vmatprep.subr.bf16.mxu1 %v5930_v21  ;;  %v5976_v61 = vld [vmem:[%s7710_s1 + $0x1e0] sm:$0xff]   ;;  %v5980_v1 = vld [vmem:[%s7710_s1 + $0x1e8] sm:$0xff]   ;;  %v5990_v9 = vld [vmem:[%s7710_s1 + $0x1f0] sm:$0xff]  }
  0x1c   : > { %v5977_v62 = vld [vmem:[%s7710_s1 + $0x120] sm:$0xff]   ;;  %v5981_v2 = vld [vmem:[%s7710_s1 + $0x128] sm:$0xff]   ;;  %v5991_v10 = vld [vmem:[%s7710_s1 + $0x130] sm:$0xff]  }
  0x1d   : > { %5175 = vmatpush3.bf16.msra.mxu0 %v5931_v22  ;;  %v5978_v63 = vld [vmem:[%s7710_s1 + $0x1a0] sm:$0xff]   ;;  %v5982_v3 = vld [vmem:[%s7710_s1 + $0x1a8] sm:$0xff]   ;;  %v5992_v11 = vld [vmem:[%s7710_s1 + $0x1b0] sm:$0xff]  }
  0x1e   : > { %5215 = vmatpush3.bf16.msra.mxu1 %v5932_v23  ;;  %5176 = vmatprep.subr.bf16.mxu0 %v5933_v24  ;;  %v5983_v4 = vld [vmem:[%s6574_s6 + $0x364] ss:$144 sps:$4 sm:$0xff]   ;;  %v5985_v5 = vld [vmem:[%s6574_s6 + $0x36c] ss:$144 sps:$4 sm:$0xff]   ;;  %v5987_v6 = vld [vmem:[%s6574_s6 + $0x360] ss:$144 sps:$4 sm:$0xff]  }
  0x1f   : > { %5216 = vmatprep.subr.bf16.mxu1 %v5934_v25  ;;  %v5988_v7 = vld [vmem:[%s6574_s6 + $0x368] ss:$144 sps:$4 sm:$0xff]   ;;  %v5997_v16 = vld [vmem:[%s6574_s6 + $0x10] ss:$144 sps:$4 sm:$0xff]   ;;  %v5999_v17 = vld [vmem:[%s6574_s6 + $0x14] ss:$144 sps:$4 sm:$0xff]  }
  0x20   : > { %v5993_v12 = vld [vmem:[%s7710_s1 + $0x178] sm:$0xff]   ;;  %v6003_v20 = vld [vmem:[%s7710_s1 + $0x240] sm:$0xff]   ;;  %v6007_v24 = vld [vmem:[%s7710_s1 + $0x248] sm:$0xff]  }
  0x21   : > { %5177 = vmatpush3.bf16.msra.mxu0 %v5935_v26  ;;  %v5994_v13 = vld [vmem:[%s7710_s1 + $0x1f8] sm:$0xff]   ;;  %v6004_v21 = vld [vmem:[%s7710_s1 + $0x2c0] sm:$0xff]   ;;  %v6008_v25 = vld [vmem:[%s7710_s1 + $0x2c8] sm:$0xff]  }
  0x22   : > { %5217 = vmatpush3.bf16.msra.mxu1 %v5936_v27  ;;  %5178 = vmatprep.subr.bf16.mxu0 %v5937_v28  ;;  %v5995_v14 = vld [vmem:[%s7710_s1 + $0x138] sm:$0xff]   ;;  %v6005_v22 = vld [vmem:[%s7710_s1 + $0x200] sm:$0xff]   ;;  %v6009_v26 = vld [vmem:[%s7710_s1 + $0x208] sm:$0xff]  }
  0x23   : > { %5218 = vmatprep.subr.bf16.mxu1 %v5938_v29  ;;  %v5996_v15 = vld [vmem:[%s7710_s1 + $0x1b8] sm:$0xff]   ;;  %v6006_v23 = vld [vmem:[%s7710_s1 + $0x280] sm:$0xff]   ;;  %v6010_v27 = vld [vmem:[%s7710_s1 + $0x288] sm:$0xff]  }
  0x24   : > { %v6000_v18 = vld [vmem:[%s6574_s6 + $0x18] ss:$144 sps:$4 sm:$0xff]   ;;  %v6002_v19 = vld [vmem:[%s6574_s6 + $0x1c] ss:$144 sps:$4 sm:$0xff]   ;;  %v6011_v28 = vld [vmem:[%s6574_s6 + $0x134] ss:$144 sps:$4 sm:$0xff]  }
  0x25   : > { %5179 = vmatpush3.bf16.msra.mxu0 %v5939_v30  ;;  %v6013_v29 = vld [vmem:[%s6574_s6 + $0x13c] ss:$144 sps:$4 sm:$0xff]   ;;  %v6015_v30 = vld [vmem:[%s6574_s6 + $0x130] ss:$144 sps:$4 sm:$0xff]  }
  0x26   : > { %5219 = vmatpush3.bf16.msra.mxu1 %v5940_v31  ;;  %5244 = vmatprep.subr.bf16.mxu0 %v5947_v36  ;;  %v6016_v31 = vld [vmem:[%s6574_s6 + $0x138] ss:$144 sps:$4 sm:$0xff]   ;;  %v6018_v33 = vld [vmem:[%s7710_s1 + $0x2d0] sm:$0xff]  }
  0x27   : > { %5284 = vmatprep.subr.bf16.mxu1 %v5948_v37  ;;  %v6020_v35 = vld [vmem:[%s7710_s1 + $0x290] sm:$0xff]   ;;  %v6021_v36 = vld [vmem:[%s7710_s1 + $0x258] sm:$0xff]  }
  0x28   : > { %3456 = vmatmul.mubr.bf16.vlgmr.msra.gmra.mrb[0].mxu0 %v5941_v32  ;;  %v6017_v32 = vld [vmem:[%s7710_s1 + $0x250] sm:$0xff]   ;;  %v6022_v37 = vld [vmem:[%s7710_s1 + $0x2d8] sm:$0xff]  }
  0x29   : > { %3521 = vmatmul.mubr.bf16.vlgmr.msra.gmra.mrb[0].mxu1 %v5944_v34  ;;  %5245 = vmatpush3.bf16.msra.mxu0 %v5949_v38  ;;  %v6019_v34 = vld [vmem:[%s7710_s1 + $0x210] sm:$0xff]   ;;  %v6023_v38 = vld [vmem:[%s7710_s1 + $0x218] sm:$0xff]  }
  0x2a   : > { %5285 = vmatpush3.bf16.msra.mxu1 %v5950_v39  ;;  %5246 = vmatprep.subr.bf16.mxu0 %v5951_v40  ;;  %v6024_v39 = vld [vmem:[%s7710_s1 + $0x298] sm:$0xff]   ;;  %v6025_v40 = vld [vmem:[%s6574_s6 + $0x254] ss:$144 sps:$4 sm:$0xff]  }
  0x2b   : > { %5286 = vmatprep.subr.bf16.mxu1 %v5952_v41  ;;  %3463 = vmatprep.mubr.bf16.mxu0 %v5955_v44  ;;  %v6027_v41 = vld [vmem:[%s6574_s6 + $0x25c] ss:$144 sps:$4 sm:$0xff]   ;;  %v6031_v44 = vld [vmem:[%s7710_s1 + $0x260] sm:$0xff]  }
  0x2c   : > { %3528 = vmatprep.mubr.bf16.mxu1 %v5957_v45  ;;  %v6032_v45 = vld [vmem:[%s7710_s1 + $0x2e0] sm:$0xff]  }
  0x2d   : > { %5247 = vmatpush3.bf16.msra.mxu0 %v5953_v42  ;;  %v6029_v42 = vld [vmem:[%s6574_s6 + $0x250] ss:$144 sps:$4 sm:$0xff]  }
  0x2e   : > { %5287 = vmatpush3.bf16.msra.mxu1 %v5954_v43  ;;  %5248 = vmatprep.subr.bf16.mxu0 %v5961_v48  ;;  %v6030_v43 = vld [vmem:[%s6574_s6 + $0x258] ss:$144 sps:$4 sm:$0xff]  }
  0x2f   : > { %5288 = vmatprep.subr.bf16.mxu1 %v5962_v49  ;;  %v6035_v48 = vld [vmem:[%s7710_s1 + $0x268] sm:$0xff]  }
  0x30   : > { %3464 = vmatmul.mubr.bf16.gmra.mrb[4].mxu0 %v5959_v46  ;;  %v6033_v46 = vld [vmem:[%s7710_s1 + $0x220] sm:$0xff]   ;;  %v6036_v49 = vld [vmem:[%s7710_s1 + $0x2e8] sm:$0xff]  }
  0x31   : > { %3529 = vmatmul.mubr.bf16.gmra.mrb[4].mxu1 %v5960_v47  ;;  %5249 = vmatpush3.bf16.msra.mxu0 %v5963_v50  ;;  %v6034_v47 = vld [vmem:[%s7710_s1 + $0x2a0] sm:$0xff]   ;;  %v6037_v50 = vld [vmem:[%s7710_s1 + $0x228] sm:$0xff]  }
  0x32   : > { %5289 = vmatpush3.bf16.msra.mxu1 %v5964_v51  ;;  %5250 = vmatprep.subr.bf16.mxu0 %v5965_v52  ;;  %v6038_v51 = vld [vmem:[%s7710_s1 + $0x2a8] sm:$0xff]   ;;  %v6039_v52 = vld [vmem:[%s6574_s6 + $0x374] ss:$144 sps:$4 sm:$0xff]  }
  0x33   : > { %5290 = vmatprep.subr.bf16.mxu1 %v5966_v53  ;;  %3471 = vmatprep.mubr.bf16.mxu0 %v5969_v56  ;;  %v6041_v53 = vld [vmem:[%s6574_s6 + $0x37c] ss:$144 sps:$4 sm:$0xff]   ;;  %v6045_v56 = vld [vmem:[%s7710_s1 + $0x270] sm:$0xff]  }
  0x34   : > { %3536 = vmatprep.mubr.bf16.mxu1 %v5971_v57  ;;  %v6046_v57 = vld [vmem:[%s7710_s1 + $0x2f0] sm:$0xff]  }
  0x35   : > { %5251 = vmatpush3.bf16.msra.mxu0 %v5967_v54  ;;  %v6043_v54 = vld [vmem:[%s6574_s6 + $0x370] ss:$144 sps:$4 sm:$0xff]  }
  0x36   : > { %5291 = vmatpush3.bf16.msra.mxu1 %v5968_v55  ;;  %5252 = vmatprep.subr.bf16.mxu0 %v5975_v60  ;;  %v6044_v55 = vld [vmem:[%s6574_s6 + $0x378] ss:$144 sps:$4 sm:$0xff]  }
  0x37   : > { %5292 = vmatprep.subr.bf16.mxu1 %v5976_v61  ;;  %v6049_v60 = vld [vmem:[%s7710_s1 + $0x278] sm:$0xff]  }
  0x38   : > { %3472 = vmatmul.mubr.bf16.gmra.mrb[8].mxu0 %v5973_v58  ;;  %v6047_v58 = vld [vmem:[%s7710_s1 + $0x230] sm:$0xff]   ;;  %v6050_v61 = vld [vmem:[%s7710_s1 + $0x2f8] sm:$0xff]  }
  0x39   : > { %3537 = vmatmul.mubr.bf16.gmra.mrb[8].mxu1 %v5974_v59  ;;  %5253 = vmatpush3.bf16.msra.mxu0 %v5977_v62  ;;  %v6048_v59 = vld [vmem:[%s7710_s1 + $0x2b0] sm:$0xff]   ;;  %v6051_v62 = vld [vmem:[%s7710_s1 + $0x238] sm:$0xff]  }
  0x3a   : > { %5293 = vmatpush3.bf16.msra.mxu1 %v5978_v63  ;;  %5254 = vmatprep.subr.bf16.mxu0 %v5979_v0  ;;  %v6052_v63 = vld [vmem:[%s7710_s1 + $0x2b8] sm:$0xff]   ;;  %v6053_v0 = vld [vmem:[%s6574_s6 + $0x20] ss:$144 sps:$4 sm:$0xff]  }
  0x3b   : > { %5294 = vmatprep.subr.bf16.mxu1 %v5980_v1  ;;  %3479 = vmatprep.mubr.bf16.mxu0 %v5983_v4  ;;  %v6055_v1 = vld [vmem:[%s6574_s6 + $0x24] ss:$144 sps:$4 sm:$0xff]  }
  0x3c   : > { %3544 = vmatprep.mubr.bf16.mxu1 %v5985_v5  ;;  %v6059_v4 = vld [vmem:[%s7710_s1 + $0x340] sm:$0xff]  }
  0x3d   : > { %5255 = vmatpush3.bf16.msra.mxu0 %v5981_v2  ;;  %v6056_v2 = vld [vmem:[%s6574_s6 + $0x28] ss:$144 sps:$4 sm:$0xff]   ;;  %v6060_v5 = vld [vmem:[%s7710_s1 + $0x3c0] sm:$0xff]  }
  0x3e   : > { %5295 = vmatpush3.bf16.msra.mxu1 %v5982_v3  ;;  %5256 = vmatprep.subr.bf16.mxu0 %v5989_v8  ;;  %v6058_v3 = vld [vmem:[%s6574_s6 + $0x2c] ss:$144 sps:$4 sm:$0xff]  }
  0x3f   : > { %5296 = vmatprep.subr.bf16.mxu1 %v5990_v9  ;;  %v6063_v8 = vld [vmem:[%s7710_s1 + $0x348] sm:$0xff]  }
  0x40   : > { %3480 = vmatmul.mubr.bf16.gmra.mrb[12].mxu0 %v5987_v6  ;;  %v6061_v6 = vld [vmem:[%s7710_s1 + $0x300] sm:$0xff]   ;;  %v6064_v9 = vld [vmem:[%s7710_s1 + $0x3c8] sm:$0xff]  }
  0x41   : > { %3545 = vmatmul.mubr.bf16.gmra.mrb[12].mxu1 %v5988_v7  ;;  %5257 = vmatpush3.bf16.msra.mxu0 %v5991_v10  ;;  %v6062_v7 = vld [vmem:[%s7710_s1 + $0x380] sm:$0xff]   ;;  %v6065_v10 = vld [vmem:[%s7710_s1 + $0x308] sm:$0xff]  }
  0x42   : > { %5297 = vmatpush3.bf16.msra.mxu1 %v5992_v11  ;;  %5258 = vmatprep.subr.bf16.mxu0 %v5993_v12  ;;  %v6066_v11 = vld [vmem:[%s7710_s1 + $0x388] sm:$0xff]   ;;  %v6067_v12 = vld [vmem:[%s6574_s6 + $0x144] ss:$144 sps:$4 sm:$0xff]  }
  0x43   : > { %5298 = vmatprep.subr.bf16.mxu1 %v5994_v13  ;;  %3585 = vmatprep.mubr.bf16.mxu0 %v5999_v17  ;;  %v6069_v13 = vld [vmem:[%s6574_s6 + $0x14c] ss:$144 sps:$4 sm:$0xff]   ;;  %v6074_v17 = vld [vmem:[%s7710_s1 + $0x3d0] sm:$0xff]  }
  0x44   : > { %3650 = vmatprep.mubr.bf16.mxu1 %v6002_v19  ;;  %v6076_v19 = vld [vmem:[%s7710_s1 + $0x390] sm:$0xff]  }
  0x45   : > { %5259 = vmatpush3.bf16.msra.mxu0 %v5995_v14  ;;  %v6071_v14 = vld [vmem:[%s6574_s6 + $0x140] ss:$144 sps:$4 sm:$0xff]  }
  0x46   : > { %5299 = vmatpush3.bf16.msra.mxu1 %v5996_v15  ;;  %5324 = vmatprep.subr.bf16.mxu0 %v6003_v20  ;;  %v6072_v15 = vld [vmem:[%s6574_s6 + $0x148] ss:$144 sps:$4 sm:$0xff]  }
  0x47   : > { %5364 = vmatprep.subr.bf16.mxu1 %v6004_v21  ;;  %v6077_v20 = vld [vmem:[%s7710_s1 + $0x358] sm:$0xff]  }
  0x48   : > { %3586 = vmatmul.mubr.bf16.vlgmr.msra.gmra.mrb[16].mxu0 %v5997_v16  ;;  %v6073_v16 = vld [vmem:[%s7710_s1 + $0x350] sm:$0xff]   ;;  %v6078_v21 = vld [vmem:[%s7710_s1 + $0x3d8] sm:$0xff]  }
  0x49   : > { %3651 = vmatmul.mubr.bf16.vlgmr.msra.gmra.mrb[16].mxu1 %v6000_v18  ;;  %5325 = vmatpush3.bf16.msra.mxu0 %v6005_v22  ;;  %v6075_v18 = vld [vmem:[%s7710_s1 + $0x310] sm:$0xff]   ;;  %v6079_v22 = vld [vmem:[%s7710_s1 + $0x318] sm:$0xff]  }
  0x4a   : > { %5365 = vmatpush3.bf16.msra.mxu1 %v6006_v23  ;;  %5326 = vmatprep.subr.bf16.mxu0 %v6007_v24  ;;  %v6080_v23 = vld [vmem:[%s7710_s1 + $0x398] sm:$0xff]   ;;  %v6081_v24 = vld [vmem:[%s6574_s6 + $0x264] ss:$144 sps:$4 sm:$0xff]  }
  0x4b   : > { %5366 = vmatprep.subr.bf16.mxu1 %v6008_v25  ;;  %3593 = vmatprep.mubr.bf16.mxu0 %v6011_v28  ;;  %v6083_v25 = vld [vmem:[%s6574_s6 + $0x26c] ss:$144 sps:$4 sm:$0xff]   ;;  %v6087_v28 = vld [vmem:[%s7710_s1 + $0x360] sm:$0xff]  }
  0x4c   : > { %3658 = vmatprep.mubr.bf16.mxu1 %v6013_v29  ;;  %v6088_v29 = vld [vmem:[%s7710_s1 + $0x3e0] sm:$0xff]  }
  0x4d   : > { %5327 = vmatpush3.bf16.msra.mxu0 %v6009_v26  ;;  %v6085_v26 = vld [vmem:[%s6574_s6 + $0x260] ss:$144 sps:$4 sm:$0xff]  }
  0x4e   : > { %5367 = vmatpush3.bf16.msra.mxu1 %v6010_v27  ;;  %5328 = vmatprep.subr.bf16.mxu0 %v6017_v32  ;;  %v6086_v27 = vld [vmem:[%s6574_s6 + $0x268] ss:$144 sps:$4 sm:$0xff]  }
  0x4f   : > { %5368 = vmatprep.subr.bf16.mxu1 %v6018_v33  ;;  %v6091_v32 = vld [vmem:[%s7710_s1 + $0x368] sm:$0xff]  }
  0x50   : > { %3594 = vmatmul.mubr.bf16.gmra.mrb[20].mxu0 %v6015_v30  ;;  %v6089_v30 = vld [vmem:[%s7710_s1 + $0x320] sm:$0xff]   ;;  %v6092_v33 = vld [vmem:[%s7710_s1 + $0x3e8] sm:$0xff]  }
  0x51   : > { %3659 = vmatmul.mubr.bf16.gmra.mrb[20].mxu1 %v6016_v31  ;;  %5329 = vmatpush3.bf16.msra.mxu0 %v6019_v34  ;;  %v6090_v31 = vld [vmem:[%s7710_s1 + $0x3a0] sm:$0xff]   ;;  %v6093_v34 = vld [vmem:[%s7710_s1 + $0x328] sm:$0xff]  }
  0x52   : > { %5369 = vmatpush3.bf16.msra.mxu1 %v6020_v35  ;;  %5330 = vmatprep.subr.bf16.mxu0 %v6021_v36  ;;  %v6094_v35 = vld [vmem:[%s7710_s1 + $0x3a8] sm:$0xff]   ;;  %v6095_v36 = vld [vmem:[%s6574_s6 + $0x384] ss:$144 sps:$4 sm:$0xff]  }
  0x53   : > { %5370 = vmatprep.subr.bf16.mxu1 %v6022_v37  ;;  %3601 = vmatprep.mubr.bf16.mxu0 %v6025_v40  ;;  %v6097_v37 = vld [vmem:[%s6574_s6 + $0x38c] ss:$144 sps:$4 sm:$0xff]   ;;  %v6101_v40 = vld [vmem:[%s7710_s1 + $0x370] sm:$0xff]  }
  0x54   : > { %3666 = vmatprep.mubr.bf16.mxu1 %v6027_v41  ;;  %v6102_v41 = vld [vmem:[%s7710_s1 + $0x3f0] sm:$0xff]  }
  0x55   : > { %5331 = vmatpush3.bf16.msra.mxu0 %v6023_v38  ;;  %v6099_v38 = vld [vmem:[%s6574_s6 + $0x380] ss:$144 sps:$4 sm:$0xff]  }
  0x56   : > { %5371 = vmatpush3.bf16.msra.mxu1 %v6024_v39  ;;  %5332 = vmatprep.subr.bf16.mxu0 %v6031_v44  ;;  %v6100_v39 = vld [vmem:[%s6574_s6 + $0x388] ss:$144 sps:$4 sm:$0xff]  }
  0x57   : > { %5372 = vmatprep.subr.bf16.mxu1 %v6032_v45  ;;  %v6105_v44 = vld [vmem:[%s7710_s1 + $0x378] sm:$0xff]  }
  0x58   : > { %3602 = vmatmul.mubr.bf16.gmra.mrb[24].mxu0 %v6029_v42  ;;  %v6103_v42 = vld [vmem:[%s7710_s1 + $0x330] sm:$0xff]   ;;  %v6106_v45 = vld [vmem:[%s7710_s1 + $0x3f8] sm:$0xff]  }
  0x59   : > { %3667 = vmatmul.mubr.bf16.gmra.mrb[24].mxu1 %v6030_v43  ;;  %5333 = vmatpush3.bf16.msra.mxu0 %v6033_v46  ;;  %v6104_v43 = vld [vmem:[%s7710_s1 + $0x3b0] sm:$0xff]   ;;  %v6107_v46 = vld [vmem:[%s7710_s1 + $0x338] sm:$0xff]  }
  0x5a   : > { %5373 = vmatpush3.bf16.msra.mxu1 %v6034_v47  ;;  %5334 = vmatprep.subr.bf16.mxu0 %v6035_v48  ;;  %v6108_v47 = vld [vmem:[%s7710_s1 + $0x3b8] sm:$0xff]   ;;  %v6109_v48 = vld [vmem:[%s6574_s6 + $0x30] ss:$144 sps:$4 sm:$0xff]  }
  0x5b   : > { %5374 = vmatprep.subr.bf16.mxu1 %v6036_v49  ;;  %3609 = vmatprep.mubr.bf16.mxu0 %v6039_v52  ;;  %v6111_v49 = vld [vmem:[%s6574_s6 + $0x34] ss:$144 sps:$4 sm:$0xff]  }
  0x5c   : > { %3674 = vmatprep.mubr.bf16.mxu1 %v6041_v53  ;;  %v6115_v52 = vld [vmem:[%s7710_s1 + $0x440] sm:$0xff]  }
  0x5d   : > { %5335 = vmatpush3.bf16.msra.mxu0 %v6037_v50  ;;  %v6112_v50 = vld [vmem:[%s6574_s6 + $0x38] ss:$144 sps:$4 sm:$0xff]   ;;  %v6116_v53 = vld [vmem:[%s7710_s1 + $0x4c0] sm:$0xff]  }
  0x5e   : > { %5375 = vmatpush3.bf16.msra.mxu1 %v6038_v51  ;;  %5336 = vmatprep.subr.bf16.mxu0 %v6045_v56  ;;  %v6114_v51 = vld [vmem:[%s6574_s6 + $0x3c] ss:$144 sps:$4 sm:$0xff]  }
  0x5f   : > { %5376 = vmatprep.subr.bf16.mxu1 %v6046_v57  ;;  %v6119_v56 = vld [vmem:[%s7710_s1 + $0x448] sm:$0xff]  }
  0x60   : > { %3610 = vmatmul.mubr.bf16.gmra.mrb[28].mxu0 %v6043_v54  ;;  %v6117_v54 = vld [vmem:[%s7710_s1 + $0x400] sm:$0xff]   ;;  %v6120_v57 = vld [vmem:[%s7710_s1 + $0x4c8] sm:$0xff]  }
  0x61   : > { %3675 = vmatmul.mubr.bf16.gmra.mrb[28].mxu1 %v6044_v55  ;;  %5337 = vmatpush3.bf16.msra.mxu0 %v6047_v58  ;;  %v6118_v55 = vld [vmem:[%s7710_s1 + $0x480] sm:$0xff]   ;;  %v6121_v58 = vld [vmem:[%s7710_s1 + $0x408] sm:$0xff]  }
  0x62   : > { %5377 = vmatpush3.bf16.msra.mxu1 %v6048_v59  ;;  %5338 = vmatprep.subr.bf16.mxu0 %v6049_v60  ;;  %v6122_v59 = vld [vmem:[%s7710_s1 + $0x488] sm:$0xff]   ;;  %v6123_v60 = vld [vmem:[%s6574_s6 + $0x154] ss:$144 sps:$4 sm:$0xff]  }
  0x63   : > { %5378 = vmatprep.subr.bf16.mxu1 %v6050_v61  ;;  %3715 = vmatprep.mubr.bf16.mxu0 %v6055_v1  ;;  %v6125_v61 = vld [vmem:[%s6574_s6 + $0x15c] ss:$144 sps:$4 sm:$0xff]   ;;  %v6130_v1 = vld [vmem:[%s7710_s1 + $0x4d0] sm:$0xff]  }
  0x64   : > { %3780 = vmatprep.mubr.bf16.mxu1 %v6058_v3  ;;  %v6132_v3 = vld [vmem:[%s7710_s1 + $0x490] sm:$0xff]  }
  0x65   : > { %5339 = vmatpush3.bf16.msra.mxu0 %v6051_v62  ;;  %v6127_v62 = vld [vmem:[%s6574_s6 + $0x150] ss:$144 sps:$4 sm:$0xff]  }
  0x66   : > { %5379 = vmatpush3.bf16.msra.mxu1 %v6052_v63  ;;  %5404 = vmatprep.subr.bf16.mxu0 %v6059_v4  ;;  %v6128_v63 = vld [vmem:[%s6574_s6 + $0x158] ss:$144 sps:$4 sm:$0xff]  }
  0x67   : > { %5444 = vmatprep.subr.bf16.mxu1 %v6060_v5  ;;  %v6133_v4 = vld [vmem:[%s7710_s1 + $0x458] sm:$0xff]  }
  0x68   : > { %3716 = vmatmul.mubr.bf16.vlgmr.msra.gmra.mrb[32].mxu0 %v6053_v0  ;;  %v6129_v0 = vld [vmem:[%s7710_s1 + $0x450] sm:$0xff]   ;;  %v6134_v5 = vld [vmem:[%s7710_s1 + $0x4d8] sm:$0xff]  }
  0x69   : > { %3781 = vmatmul.mubr.bf16.vlgmr.msra.gmra.mrb[32].mxu1 %v6056_v2  ;;  %5405 = vmatpush3.bf16.msra.mxu0 %v6061_v6  ;;  %v6131_v2 = vld [vmem:[%s7710_s1 + $0x410] sm:$0xff]   ;;  %v6135_v6 = vld [vmem:[%s7710_s1 + $0x418] sm:$0xff]  }
  0x6a   : > { %5445 = vmatpush3.bf16.msra.mxu1 %v6062_v7  ;;  %5406 = vmatprep.subr.bf16.mxu0 %v6063_v8  ;;  %v6136_v7 = vld [vmem:[%s7710_s1 + $0x498] sm:$0xff]   ;;  %v6137_v8 = vld [vmem:[%s6574_s6 + $0x274] ss:$144 sps:$4 sm:$0xff]  }
  0x6b   : > { %5446 = vmatprep.subr.bf16.mxu1 %v6064_v9  ;;  %3723 = vmatprep.mubr.bf16.mxu0 %v6067_v12  ;;  %v6139_v9 = vld [vmem:[%s6574_s6 + $0x27c] ss:$144 sps:$4 sm:$0xff]   ;;  %v6143_v12 = vld [vmem:[%s7710_s1 + $0x460] sm:$0xff]  }
  0x6c   : > { %3788 = vmatprep.mubr.bf16.mxu1 %v6069_v13  ;;  %v6144_v13 = vld [vmem:[%s7710_s1 + $0x4e0] sm:$0xff]  }
  0x6d   : > { %5407 = vmatpush3.bf16.msra.mxu0 %v6065_v10  ;;  %v6141_v10 = vld [vmem:[%s6574_s6 + $0x270] ss:$144 sps:$4 sm:$0xff]  }
  0x6e   : > { %5447 = vmatpush3.bf16.msra.mxu1 %v6066_v11  ;;  %5408 = vmatprep.subr.bf16.mxu0 %v6073_v16  ;;  %v6142_v11 = vld [vmem:[%s6574_s6 + $0x278] ss:$144 sps:$4 sm:$0xff]  }
  0x6f   : > { %5448 = vmatprep.subr.bf16.mxu1 %v6074_v17  ;;  %v6147_v16 = vld [vmem:[%s7710_s1 + $0x468] sm:$0xff]  }
  0x70   : > { %3724 = vmatmul.mubr.bf16.gmra.mrb[36].mxu0 %v6071_v14  ;;  %v6145_v14 = vld [vmem:[%s7710_s1 + $0x420] sm:$0xff]   ;;  %v6148_v17 = vld [vmem:[%s7710_s1 + $0x4e8] sm:$0xff]  }
  0x71   : > { %3789 = vmatmul.mubr.bf16.gmra.mrb[36].mxu1 %v6072_v15  ;;  %5409 = vmatpush3.bf16.msra.mxu0 %v6075_v18  ;;  %v6146_v15 = vld [vmem:[%s7710_s1 + $0x4a0] sm:$0xff]   ;;  %v6149_v18 = vld [vmem:[%s7710_s1 + $0x428] sm:$0xff]  }
  0x72   : > { %5449 = vmatpush3.bf16.msra.mxu1 %v6076_v19  ;;  %5410 = vmatprep.subr.bf16.mxu0 %v6077_v20  ;;  %v6150_v19 = vld [vmem:[%s7710_s1 + $0x4a8] sm:$0xff]   ;;  %v6151_v20 = vld [vmem:[%s6574_s6 + $0x394] ss:$144 sps:$4 sm:$0xff]  }
  0x73   : > { %5450 = vmatprep.subr.bf16.mxu1 %v6078_v21  ;;  %3731 = vmatprep.mubr.bf16.mxu0 %v6081_v24  ;;  %v6153_v21 = vld [vmem:[%s6574_s6 + $0x39c] ss:$144 sps:$4 sm:$0xff]   ;;  %v6157_v24 = vld [vmem:[%s7710_s1 + $0x470] sm:$0xff]  }
  0x74   : > { %3796 = vmatprep.mubr.bf16.mxu1 %v6083_v25  ;;  %v6158_v25 = vld [vmem:[%s7710_s1 + $0x4f0] sm:$0xff]  }
  0x75   : > { %5411 = vmatpush3.bf16.msra.mxu0 %v6079_v22  ;;  %v6155_v22 = vld [vmem:[%s6574_s6 + $0x390] ss:$144 sps:$4 sm:$0xff]  }
  0x76   : > { %5451 = vmatpush3.bf16.msra.mxu1 %v6080_v23  ;;  %5412 = vmatprep.subr.bf16.mxu0 %v6087_v28  ;;  %v6156_v23 = vld [vmem:[%s6574_s6 + $0x398] ss:$144 sps:$4 sm:$0xff]  }
  0x77   : > { %5452 = vmatprep.subr.bf16.mxu1 %v6088_v29  ;;  %v6161_v28 = vld [vmem:[%s7710_s1 + $0x478] sm:$0xff]  }
  0x78   : > { %3732 = vmatmul.mubr.bf16.gmra.mrb[40].mxu0 %v6085_v26  ;;  %v6159_v26 = vld [vmem:[%s7710_s1 + $0x430] sm:$0xff]   ;;  %v6162_v29 = vld [vmem:[%s7710_s1 + $0x4f8] sm:$0xff]  }
  0x79   : > { %3797 = vmatmul.mubr.bf16.gmra.mrb[40].mxu1 %v6086_v27  ;;  %5413 = vmatpush3.bf16.msra.mxu0 %v6089_v30  ;;  %v6160_v27 = vld [vmem:[%s7710_s1 + $0x4b0] sm:$0xff]   ;;  %v6163_v30 = vld [vmem:[%s7710_s1 + $0x438] sm:$0xff]  }
  0x7a   : > { %5453 = vmatpush3.bf16.msra.mxu1 %v6090_v31  ;;  %5414 = vmatprep.subr.bf16.mxu0 %v6091_v32  ;;  %v6164_v31 = vld [vmem:[%s7710_s1 + $0x4b8] sm:$0xff]   ;;  %v6165_v32 = vld [vmem:[%s6574_s6 + $0x40] ss:$144 sps:$4 sm:$0xff]  }
  0x7b   : > { %5454 = vmatprep.subr.bf16.mxu1 %v6092_v33  ;;  %3739 = vmatprep.mubr.bf16.mxu0 %v6095_v36  ;;  %v6167_v33 = vld [vmem:[%s6574_s6 + $0x44] ss:$144 sps:$4 sm:$0xff]  }
  0x7c   : > { %3804 = vmatprep.mubr.bf16.mxu1 %v6097_v37  ;;  %v6171_v36 = vld [vmem:[%s7710_s1 + $0x540] sm:$0xff]  }
  0x7d   : > { %5415 = vmatpush3.bf16.msra.mxu0 %v6093_v34  ;;  %v6168_v34 = vld [vmem:[%s6574_s6 + $0x48] ss:$144 sps:$4 sm:$0xff]   ;;  %v6172_v37 = vld [vmem:[%s7710_s1 + $0x5c0] sm:$0xff]  }
  0x7e   : > { %5455 = vmatpush3.bf16.msra.mxu1 %v6094_v35  ;;  %5416 = vmatprep.subr.bf16.mxu0 %v6101_v40  ;;  %v6170_v35 = vld [vmem:[%s6574_s6 + $0x4c] ss:$144 sps:$4 sm:$0xff]  }
  0x7f   : > { %5456 = vmatprep.subr.bf16.mxu1 %v6102_v41  ;;  %v6175_v40 = vld [vmem:[%s7710_s1 + $0x548] sm:$0xff]  }
  0x80   : > { %3740 = vmatmul.mubr.bf16.gmra.mrb[44].mxu0 %v6099_v38  ;;  %v6173_v38 = vld [vmem:[%s7710_s1 + $0x500] sm:$0xff]   ;;  %v6176_v41 = vld [vmem:[%s7710_s1 + $0x5c8] sm:$0xff]  }
  0x81   : > { %3805 = vmatmul.mubr.bf16.gmra.mrb[44].mxu1 %v6100_v39  ;;  %5417 = vmatpush3.bf16.msra.mxu0 %v6103_v42  ;;  %v6174_v39 = vld [vmem:[%s7710_s1 + $0x580] sm:$0xff]   ;;  %v6177_v42 = vld [vmem:[%s7710_s1 + $0x508] sm:$0xff]  }
  0x82   : > { %5457 = vmatpush3.bf16.msra.mxu1 %v6104_v43  ;;  %5418 = vmatprep.subr.bf16.mxu0 %v6105_v44  ;;  %v6178_v43 = vld [vmem:[%s7710_s1 + $0x588] sm:$0xff]   ;;  %v6179_v44 = vld [vmem:[%s6574_s6 + $0x164] ss:$144 sps:$4 sm:$0xff]  }
  0x83   : > { %5458 = vmatprep.subr.bf16.mxu1 %v6106_v45  ;;  %3845 = vmatprep.mubr.bf16.mxu0 %v6111_v49  ;;  %v6181_v45 = vld [vmem:[%s6574_s6 + $0x16c] ss:$144 sps:$4 sm:$0xff]   ;;  %v6186_v49 = vld [vmem:[%s7710_s1 + $0x5d0] sm:$0xff]  }
  0x84   : > { %3910 = vmatprep.mubr.bf16.mxu1 %v6114_v51  ;;  %v6188_v51 = vld [vmem:[%s7710_s1 + $0x590] sm:$0xff]  }
  0x85   : > { %5419 = vmatpush3.bf16.msra.mxu0 %v6107_v46  ;;  %v6183_v46 = vld [vmem:[%s6574_s6 + $0x160] ss:$144 sps:$4 sm:$0xff]  }
  0x86   : > { %5459 = vmatpush3.bf16.msra.mxu1 %v6108_v47  ;;  %5484 = vmatprep.subr.bf16.mxu0 %v6115_v52  ;;  %v6184_v47 = vld [vmem:[%s6574_s6 + $0x168] ss:$144 sps:$4 sm:$0xff]  }
  0x87   : > { %5524 = vmatprep.subr.bf16.mxu1 %v6116_v53  ;;  %v6189_v52 = vld [vmem:[%s7710_s1 + $0x558] sm:$0xff]  }
  0x88   : > { %3846 = vmatmul.mubr.bf16.vlgmr.msra.gmra.mrb[48].mxu0 %v6109_v48  ;;  %v6185_v48 = vld [vmem:[%s7710_s1 + $0x550] sm:$0xff]   ;;  %v6190_v53 = vld [vmem:[%s7710_s1 + $0x5d8] sm:$0xff]  }
  0x89   : > { %3911 = vmatmul.mubr.bf16.vlgmr.msra.gmra.mrb[48].mxu1 %v6112_v50  ;;  %5485 = vmatpush3.bf16.msra.mxu0 %v6117_v54  ;;  %v6187_v50 = vld [vmem:[%s7710_s1 + $0x510] sm:$0xff]   ;;  %v6191_v54 = vld [vmem:[%s7710_s1 + $0x518] sm:$0xff]  }
  0x8a   : > { %5525 = vmatpush3.bf16.msra.mxu1 %v6118_v55  ;;  %5486 = vmatprep.subr.bf16.mxu0 %v6119_v56  ;;  %v6192_v55 = vld [vmem:[%s7710_s1 + $0x598] sm:$0xff]   ;;  %v6193_v56 = vld [vmem:[%s6574_s6 + $0x284] ss:$144 sps:$4 sm:$0xff]  }
  0x8b   : > { %5526 = vmatprep.subr.bf16.mxu1 %v6120_v57  ;;  %3853 = vmatprep.mubr.bf16.mxu0 %v6123_v60  ;;  %v6195_v57 = vld [vmem:[%s6574_s6 + $0x28c] ss:$144 sps:$4 sm:$0xff]   ;;  %v6199_v60 = vld [vmem:[%s7710_s1 + $0x560] sm:$0xff]  }
  0x8c   : > { %3918 = vmatprep.mubr.bf16.mxu1 %v6125_v61  ;;  %v6200_v61 = vld [vmem:[%s7710_s1 + $0x5e0] sm:$0xff]  }
  0x8d   : > { %5487 = vmatpush3.bf16.msra.mxu0 %v6121_v58  ;;  %v6197_v58 = vld [vmem:[%s6574_s6 + $0x280] ss:$144 sps:$4 sm:$0xff]  }
  0x8e   : > { %5527 = vmatpush3.bf16.msra.mxu1 %v6122_v59  ;;  %5488 = vmatprep.subr.bf16.mxu0 %v6129_v0  ;;  %v6198_v59 = vld [vmem:[%s6574_s6 + $0x288] ss:$144 sps:$4 sm:$0xff]  }
  0x8f   : > { %5528 = vmatprep.subr.bf16.mxu1 %v6130_v1  ;;  %v6203_v0 = vld [vmem:[%s7710_s1 + $0x568] sm:$0xff]  }
  0x90   : > { %3854 = vmatmul.mubr.bf16.gmra.mrb[52].mxu0 %v6127_v62  ;;  %v6201_v62 = vld [vmem:[%s7710_s1 + $0x520] sm:$0xff]   ;;  %v6204_v1 = vld [vmem:[%s7710_s1 + $0x5e8] sm:$0xff]  }
  0x91   : > { %3919 = vmatmul.mubr.bf16.gmra.mrb[52].mxu1 %v6128_v63  ;;  %5489 = vmatpush3.bf16.msra.mxu0 %v6131_v2  ;;  %v6202_v63 = vld [vmem:[%s7710_s1 + $0x5a0] sm:$0xff]   ;;  %v6205_v2 = vld [vmem:[%s7710_s1 + $0x528] sm:$0xff]  }
  0x92   : > { %5529 = vmatpush3.bf16.msra.mxu1 %v6132_v3  ;;  %5490 = vmatprep.subr.bf16.mxu0 %v6133_v4  ;;  %v6206_v3 = vld [vmem:[%s7710_s1 + $0x5a8] sm:$0xff]   ;;  %v6207_v4 = vld [vmem:[%s6574_s6 + $0x3a4] ss:$144 sps:$4 sm:$0xff]  }
  0x93   : > { %5530 = vmatprep.subr.bf16.mxu1 %v6134_v5  ;;  %3861 = vmatprep.mubr.bf16.mxu0 %v6137_v8  ;;  %v6209_v5 = vld [vmem:[%s6574_s6 + $0x3ac] ss:$144 sps:$4 sm:$0xff]   ;;  %v6213_v8 = vld [vmem:[%s7710_s1 + $0x570] sm:$0xff]  }
  0x94   : > { %3926 = vmatprep.mubr.bf16.mxu1 %v6139_v9  ;;  %v6214_v9 = vld [vmem:[%s7710_s1 + $0x5f0] sm:$0xff]  }
  0x95   : > { %5491 = vmatpush3.bf16.msra.mxu0 %v6135_v6  ;;  %v6211_v6 = vld [vmem:[%s6574_s6 + $0x3a0] ss:$144 sps:$4 sm:$0xff]  }
  0x96   : > { %5531 = vmatpush3.bf16.msra.mxu1 %v6136_v7  ;;  %5492 = vmatprep.subr.bf16.mxu0 %v6143_v12  ;;  %v6212_v7 = vld [vmem:[%s6574_s6 + $0x3a8] ss:$144 sps:$4 sm:$0xff]  }
  0x97   : > { %5532 = vmatprep.subr.bf16.mxu1 %v6144_v13  ;;  %v6217_v12 = vld [vmem:[%s7710_s1 + $0x578] sm:$0xff]  }
  0x98   : > { %3862 = vmatmul.mubr.bf16.gmra.mrb[56].mxu0 %v6141_v10  ;;  %v6215_v10 = vld [vmem:[%s7710_s1 + $0x530] sm:$0xff]   ;;  %v6218_v13 = vld [vmem:[%s7710_s1 + $0x5f8] sm:$0xff]  }
  0x99   : > { %3927 = vmatmul.mubr.bf16.gmra.mrb[56].mxu1 %v6142_v11  ;;  %5493 = vmatpush3.bf16.msra.mxu0 %v6145_v14  ;;  %v6216_v11 = vld [vmem:[%s7710_s1 + $0x5b0] sm:$0xff]   ;;  %v6219_v14 = vld [vmem:[%s7710_s1 + $0x538] sm:$0xff]  }
  0x9a   : > { %5533 = vmatpush3.bf16.msra.mxu1 %v6146_v15  ;;  %5494 = vmatprep.subr.bf16.mxu0 %v6147_v16  ;;  %v6220_v15 = vld [vmem:[%s7710_s1 + $0x5b8] sm:$0xff]   ;;  %v6221_v16 = vld [vmem:[%s6574_s6 + $0x50] ss:$144 sps:$4 sm:$0xff]  }
  0x9b   : > { %5534 = vmatprep.subr.bf16.mxu1 %v6148_v17  ;;  %3869 = vmatprep.mubr.bf16.mxu0 %v6151_v20  ;;  %v6223_v17 = vld [vmem:[%s6574_s6 + $0x54] ss:$144 sps:$4 sm:$0xff]  }
  0x9c   : > { %3934 = vmatprep.mubr.bf16.mxu1 %v6153_v21  ;;  %v6227_v21 = vld [vmem:[%s7710_s1 + $0x640] sm:$0xff]  }
  0x9d   : > { %5495 = vmatpush3.bf16.msra.mxu0 %v6149_v18  ;;  %v6224_v18 = vld [vmem:[%s6574_s6 + $0x58] ss:$144 sps:$4 sm:$0xff]  }
  0x9e   : > { %5535 = vmatpush3.bf16.msra.mxu1 %v6150_v19  ;;  %5496 = vmatprep.subr.bf16.mxu0 %v6157_v24  ;;  %v6226_v19 = vld [vmem:[%s6574_s6 + $0x5c] ss:$144 sps:$4 sm:$0xff]  }
  0x9f   : > { %5536 = vmatprep.subr.bf16.mxu1 %v6158_v25  ;;  %v6229_v25 = vld [vmem:[%s7710_s1 + $0x600] sm:$0xff]  }
  0xa0   : > { %3870 = vmatmul.mubr.bf16.gmra.mrb[60].mxu0 %v6155_v22 }
  0xa1   : > { %3935 = vmatmul.mubr.bf16.gmra.mrb[60].mxu1 %v6156_v23  ;;  %5497 = vmatpush3.bf16.msra.mxu0 %v6159_v26  ;;  %v6228_v23 = vld [vmem:[%s7710_s1 + $0x6c0] sm:$0xff]  }
  0xa2   : > { %5537 = vmatpush3.bf16.msra.mxu1 %v6160_v27  ;;  %5498 = vmatprep.subr.bf16.mxu0 %v6161_v28  ;;  %v6230_v28 = vld [vmem:[%s7710_s1 + $0x680] sm:$0xff]  }
  0xa3   : > { %5538 = vmatprep.subr.bf16.mxu1 %v6162_v29  ;;  %3975 = vmatprep.mubr.bf16.mxu0 %v6167_v33  ;;  %v6232_v33 = vld [vmem:[%s7710_s1 + $0x6c8] sm:$0xff]  }
  0xa4   : > { %4040 = vmatprep.mubr.bf16.mxu1 %v6170_v35  ;;  %v6233_v35 = vld [vmem:[%s7710_s1 + $0x608] sm:$0xff]  }
  0xa5   : > { %5499 = vmatpush3.bf16.msra.mxu0 %v6163_v30 }
  0xa6   : > { %5539 = vmatpush3.bf16.msra.mxu1 %v6164_v31  ;;  %5564 = vmatprep.subr.bf16.mxu0 %v6171_v36  ;;  %v6231_v31 = vld [vmem:[%s7710_s1 + $0x648] sm:$0xff]  }
  0xa7   : > { %5604 = vmatprep.subr.bf16.mxu1 %v6172_v37 }
  0xa8   : > { %3976 = vmatmul.mubr.bf16.vlgmr.msra.gmra.mrb[64].mxu0 %v6165_v32 }
  0xa9   : > { %4041 = vmatmul.mubr.bf16.vlgmr.msra.gmra.mrb[64].mxu1 %v6168_v34  ;;  %5565 = vmatpush3.bf16.msra.mxu0 %v6173_v38  ;;  %v6234_v38 = vld [vmem:[%s7710_s1 + $0x688] sm:$0xff]  }
  0xaa   : > { %5605 = vmatpush3.bf16.msra.mxu1 %v6174_v39  ;;  %5566 = vmatprep.subr.bf16.mxu0 %v6175_v40  ;;  %v6235_v40 = vld [vmem:[%s6574_s6 + $0x174] ss:$144 sps:$4 sm:$0xff]  }
  0xab   : > { %5606 = vmatprep.subr.bf16.mxu1 %v6176_v41  ;;  %3983 = vmatprep.mubr.bf16.mxu0 %v6179_v44  ;;  %v6237_v41 = vld [vmem:[%s6574_s6 + $0x17c] ss:$144 sps:$4 sm:$0xff]   ;;  %v6240_v44 = vld [vmem:[%s6574_s6 + $0x178] ss:$144 sps:$4 sm:$0xff]  }
  0xac   : > { %4048 = vmatprep.mubr.bf16.mxu1 %v6181_v45  ;;  %v6241_v45 = vld [vmem:[%s7710_s1 + $0x650] sm:$0xff]  }
  0xad   : > { %5567 = vmatpush3.bf16.msra.mxu0 %v6177_v42 }
  0xae   : > { %5607 = vmatpush3.bf16.msra.mxu1 %v6178_v43  ;;  %5568 = vmatprep.subr.bf16.mxu0 %v6185_v48  ;;  %v6239_v43 = vld [vmem:[%s6574_s6 + $0x170] ss:$144 sps:$4 sm:$0xff]  }
  0xaf   : > { %5608 = vmatprep.subr.bf16.mxu1 %v6186_v49  ;;  %v6243_v49 = vld [vmem:[%s7710_s1 + $0x610] sm:$0xff]  }
  0xb0   : > { %3984 = vmatmul.mubr.bf16.gmra.mrb[68].mxu0 %v6183_v46 }
  0xb1   : > { %4049 = vmatmul.mubr.bf16.gmra.mrb[68].mxu1 %v6184_v47  ;;  %5569 = vmatpush3.bf16.msra.mxu0 %v6187_v50  ;;  %v6242_v47 = vld [vmem:[%s7710_s1 + $0x6d0] sm:$0xff]  }
  0xb2   : > { %5609 = vmatpush3.bf16.msra.mxu1 %v6188_v51  ;;  %5570 = vmatprep.subr.bf16.mxu0 %v6189_v52  ;;  %v6244_v52 = vld [vmem:[%s7710_s1 + $0x690] sm:$0xff]  }
  0xb3   : > { %5610 = vmatprep.subr.bf16.mxu1 %v6190_v53  ;;  %3991 = vmatprep.mubr.bf16.mxu0 %v6193_v56 }
  0xb4   : > { %4056 = vmatprep.mubr.bf16.mxu1 %v6195_v57  ;;  %v6246_v57 = vld [vmem:[%s7710_s1 + $0x6d8] sm:$0xff]  }
  0xb5   : > { %5571 = vmatpush3.bf16.msra.mxu0 %v6191_v54 }
  0xb6   : > { %5611 = vmatpush3.bf16.msra.mxu1 %v6192_v55  ;;  %5572 = vmatprep.subr.bf16.mxu0 %v6199_v60  ;;  %v6245_v55 = vld [vmem:[%s7710_s1 + $0x658] sm:$0xff]  }
  0xb7   : > { %5612 = vmatprep.subr.bf16.mxu1 %v6200_v61 }
  0xb8   : > { %3992 = vmatmul.mubr.bf16.gmra.mrb[72].mxu0 %v6197_v58 }
  0xb9   : > { %4057 = vmatmul.mubr.bf16.gmra.mrb[72].mxu1 %v6198_v59  ;;  %5573 = vmatpush3.bf16.msra.mxu0 %v6201_v62  ;;  %v6247_v59 = vld [vmem:[%s7710_s1 + $0x618] sm:$0xff]  }
  0xba   : > { %5613 = vmatpush3.bf16.msra.mxu1 %v6202_v63  ;;  %5574 = vmatprep.subr.bf16.mxu0 %v6203_v0  ;;  %v6248_v62 = vld [vmem:[%s7710_s1 + $0x698] sm:$0xff]   ;;  %v6249_v0 = vld [vmem:[%s6574_s6 + $0x294] ss:$144 sps:$4 sm:$0xff]  }
  0xbb   : > { %5614 = vmatprep.subr.bf16.mxu1 %v6204_v1  ;;  %3999 = vmatprep.mubr.bf16.mxu0 %v6207_v4  ;;  %v6251_v1 = vld [vmem:[%s6574_s6 + $0x29c] ss:$144 sps:$4 sm:$0xff]   ;;  %v6254_v4 = vld [vmem:[%s6574_s6 + $0x298] ss:$144 sps:$4 sm:$0xff]  }
  0xbc   : > { %4064 = vmatprep.mubr.bf16.mxu1 %v6209_v5  ;;  %v6255_v5 = vld [vmem:[%s7710_s1 + $0x660] sm:$0xff]  }
  0xbd   : > { %5575 = vmatpush3.bf16.msra.mxu0 %v6205_v2  ;;  %v6253_v2 = vld [vmem:[%s6574_s6 + $0x290] ss:$144 sps:$4 sm:$0xff]  }
  0xbe   : > { %5615 = vmatpush3.bf16.msra.mxu1 %v6206_v3  ;;  %5576 = vmatprep.subr.bf16.mxu0 %v6213_v8 }
  0xbf   : > { %5616 = vmatprep.subr.bf16.mxu1 %v6214_v9  ;;  %v6257_v9 = vld [vmem:[%s7710_s1 + $0x620] sm:$0xff]  }
  0xc0   : > { %4000 = vmatmul.mubr.bf16.gmra.mrb[76].mxu0 %v6211_v6 }
  0xc1   : > { %4065 = vmatmul.mubr.bf16.gmra.mrb[76].mxu1 %v6212_v7  ;;  %5577 = vmatpush3.bf16.msra.mxu0 %v6215_v10  ;;  %v6256_v7 = vld [vmem:[%s7710_s1 + $0x6e0] sm:$0xff]  }
  0xc2   : > { %5617 = vmatpush3.bf16.msra.mxu1 %v6216_v11  ;;  %5578 = vmatprep.subr.bf16.mxu0 %v6217_v12  ;;  %v6258_v12 = vld [vmem:[%s7710_s1 + $0x6a0] sm:$0xff]  }
  0xc3   : > { %5618 = vmatprep.subr.bf16.mxu1 %v6218_v13  ;;  %4105 = vmatprep.mubr.bf16.mxu0 %v6223_v17  ;;  %v6260_v17 = vld [vmem:[%s7710_s1 + $0x6e8] sm:$0xff]  }
  0xc4   : > { %4170 = vmatprep.mubr.bf16.mxu1 %v6226_v19  ;;  %v6261_v19 = vld [vmem:[%s7710_s1 + $0x628] sm:$0xff]  }
  0xc5   : > { %5579 = vmatpush3.bf16.msra.mxu0 %v6219_v14 }
  0xc6   : > { %5619 = vmatpush3.bf16.msra.mxu1 %v6220_v15  ;;  %5644 = vmatprep.subr.bf16.mxu0 %v6227_v21  ;;  %v6259_v15 = vld [vmem:[%s7710_s1 + $0x668] sm:$0xff]  }
  0xc7   : > { %5684 = vmatprep.subr.bf16.mxu1 %v6228_v23 }
  0xc8   : > { %4106 = vmatmul.mubr.bf16.vlgmr.msra.gmra.mrb[80].mxu0 %v6221_v16 }
  0xc9   : > { %4171 = vmatmul.mubr.bf16.vlgmr.msra.gmra.mrb[80].mxu1 %v6224_v18  ;;  %5645 = vmatpush3.bf16.msra.mxu0 %v6229_v25  ;;  %v6265_v25 = vld [vmem:[%s6574_s6 + $0x3bc] ss:$144 sps:$4 sm:$0xff]  }
  0xca   : > { %5685 = vmatpush3.bf16.msra.mxu1 %v6230_v28  ;;  %5646 = vmatprep.subr.bf16.mxu0 %v6231_v31  ;;  %v6268_v28 = vld [vmem:[%s6574_s6 + $0x3b8] ss:$144 sps:$4 sm:$0xff]  }
  0xcb   : > { %5686 = vmatprep.subr.bf16.mxu1 %v6232_v33  ;;  %4113 = vmatprep.mubr.bf16.mxu0 %v6235_v40 }
  0xcc   : > { %4178 = vmatprep.mubr.bf16.mxu1 %v6237_v41  ;;  %v6273_v41 = vld [vmem:[%s7710_s1 + $0x678] sm:$0xff]  }
  0xcd   : > { %5647 = vmatpush3.bf16.msra.mxu0 %v6233_v35 }
  0xce   : > { %5687 = vmatpush3.bf16.msra.mxu1 %v6234_v38  ;;  %5648 = vmatprep.subr.bf16.mxu0 %v6241_v45 }
  0xcf   : > { %5688 = vmatprep.subr.bf16.mxu1 %v6242_v47 }
  0xd0   : > { %4114 = vmatmul.mubr.bf16.gmra.mrb[84].mxu0 %v6239_v43 }
  0xd1   : > { %4179 = vmatmul.mubr.bf16.gmra.mrb[84].mxu1 %v6240_v44  ;;  %5649 = vmatpush3.bf16.msra.mxu0 %v6243_v49  ;;  %v6274_v44 = vld [vmem:[%s7710_s1 + $0x6f8] sm:$0xff]  }
  0xd2   : > { %5689 = vmatpush3.bf16.msra.mxu1 %v6244_v52  ;;  %5650 = vmatprep.subr.bf16.mxu0 %v6245_v55  ;;  %v6277_v52 = vld [vmem:[%s6574_s6 + $0x60] ss:$144 sps:$4 sm:$0xff]   ;;  %v6279_v55 = vld [vmem:[%s6574_s6 + $0x64] ss:$144 sps:$4 sm:$0xff]  }
  0xd3   : > { %5690 = vmatprep.subr.bf16.mxu1 %v6246_v57  ;;  %4121 = vmatprep.mubr.bf16.mxu0 %v6249_v0  ;;  %v6280_v57 = vld [vmem:[%s6574_s6 + $0x68] ss:$144 sps:$4 sm:$0xff]  }
  0xd4   : > { %4186 = vmatprep.mubr.bf16.mxu1 %v6251_v1  ;;  %v6285_v1 = vld [vmem:[%s7710_s1 + $0x700] sm:$0xff]  }
  0xd5   : > { %5651 = vmatpush3.bf16.msra.mxu0 %v6247_v59  ;;  %v6283_v59 = vld [vmem:[%s7710_s1 + $0x740] sm:$0xff]  }
  0xd6   : > { %5691 = vmatpush3.bf16.msra.mxu1 %v6248_v62  ;;  %5652 = vmatprep.subr.bf16.mxu0 %v6255_v5  ;;  %v6284_v62 = vld [vmem:[%s7710_s1 + $0x7c0] sm:$0xff]  }
  0xd7   : > { %5692 = vmatprep.subr.bf16.mxu1 %v6256_v7  ;;  %v6287_v7 = vld [vmem:[%s7710_s1 + $0x748] sm:$0xff]  }
  0xd8   : > { %4122 = vmatmul.mubr.bf16.gmra.mrb[88].mxu0 %v6253_v2 }
  0xd9   : > { %4187 = vmatmul.mubr.bf16.gmra.mrb[88].mxu1 %v6254_v4  ;;  %5653 = vmatpush3.bf16.msra.mxu0 %v6257_v9  ;;  %v6286_v4 = vld [vmem:[%s7710_s1 + $0x780] sm:$0xff]   ;;  %v6288_v9 = vld [vmem:[%s7710_s1 + $0x7c8] sm:$0xff]  }
  0xda   : > { %5693 = vmatpush3.bf16.msra.mxu1 %v6258_v12  ;;  %5654 = vmatprep.subr.bf16.mxu0 %v6259_v15  ;;  %v6289_v12 = vld [vmem:[%s7710_s1 + $0x708] sm:$0xff]  }
  0xdb   : > { %5694 = vmatprep.subr.bf16.mxu1 %v6260_v17  ;;  %4194 = vmatprep.mubr.bf16.mxu1 %v6265_v25  ;;  %v6297_v25 = vld [vmem:[%s7710_s1 + $0x750] sm:$0xff]  }
  0xdd   : > { %5655 = vmatpush3.bf16.msra.mxu0 %v6261_v19  ;;  %v6293_v19 = vld [vmem:[%s6574_s6 + $0x18c] ss:$144 sps:$4 sm:$0xff]  }
  0xe1   : > { %4195 = vmatmul.mubr.bf16.gmra.mrb[92].mxu1 %v6268_v28  ;;  %v6298_v28 = vld [vmem:[%s7710_s1 + $0x7d0] sm:$0xff]  }
  0xfb   : > { %v5180_v20 = vpop.f32.mrb[0].mxu0 }
  0xfc   : > { %v5220_v22 = vpop.f32.mrb[0].mxu1  ;;  %v5181_v24 = vpop.f32.mrb[1].mxu0 }
  0xfd   : > { %v7155_v26 = vadd.f32 %v5181_v24, %v5180_v20  ;;  %v5221_v27 = vpop.f32.mrb[1].mxu1  ;;  %v5183_v30 = vpop.f32.mrb[2].mxu0  ;;  %v6263_v24 = vld [vmem:[%s6574_s6 + $0x3b4] ss:$144 sps:$4 sm:$0xff]  }
  0xfe   : > { %v7160_v29 = vadd.f32 %v5221_v27, %v5220_v22  ;;  %v5223_v32 = vpop.f32.mrb[2].mxu1  ;;  %v5184_v34 = vpop.f32.mrb[3].mxu0  ;;  %v6262_v22 = vld [vmem:[%s7710_s1 + $0x6a8] sm:$0xff]   ;;  %v6267_v27 = vld [vmem:[%s6574_s6 + $0x3b0] ss:$144 sps:$4 sm:$0xff]   ;;  %4129 = vmatprep.mubr.bf16.mxu0 %v6263_v24 }
  0xff   : > { %v7171_v36 = vadd.f32 %v5184_v34, %v5183_v30  ;;  %v5224_v37 = vpop.f32.mrb[3].mxu1  ;;  %5695 = vmatpush3.bf16.msra.mxu1 %v6262_v22  ;;  %v6269_v30 = vld [vmem:[%s7710_s1 + $0x670] sm:$0xff]   ;;  %4130 = vmatmul.mubr.bf16.gmra.mrb[92].mxu0 %v6267_v27  ;;  %v6296_v24 = vld [vmem:[%s6574_s6 + $0x188] ss:$144 sps:$4 sm:$0xff]  }
 0x100   : > { %v7176_v39 = vadd.f32 %v5224_v37, %v5223_v32  ;;  %v6270_v32 = vld [vmem:[%s7710_s1 + $0x6f0] sm:$0xff]   ;;  %5656 = vmatprep.subr.bf16.mxu0 %v6269_v30  ;;  %4235 = vmatprep.mubr.bf16.mxu0 %v6279_v55  ;;  %v6307_v55 = vld [vmem:[%s6574_s6 + $0x2ac] ss:$144 sps:$4 sm:$0xff]  }
 0x101   : > { %v6271_v34 = vld [vmem:[%s7710_s1 + $0x630] sm:$0xff]   ;;  %5696 = vmatprep.subr.bf16.mxu1 %v6270_v32 }
 0x102   : > { %v6272_v37 = vld [vmem:[%s7710_s1 + $0x6b0] sm:$0xff]   ;;  %5657 = vmatpush3.bf16.msra.mxu0 %v6271_v34 }
 0x103   : > { %v5186_v42 = vpop.f32.mrb[4].mxu0  ;;  %5697 = vmatpush3.bf16.msra.mxu1 %v6272_v37  ;;  %5658 = vmatprep.subr.bf16.mxu0 %v6273_v41  ;;  %v6300_v34 = vld [vmem:[%s7710_s1 + $0x790] sm:$0xff]  }
 0x104   : > { %v5226_v46 = vpop.f32.mrb[4].mxu1  ;;  %v5187_v48 = vpop.f32.mrb[5].mxu0  ;;  %5698 = vmatprep.subr.bf16.mxu1 %v6274_v44 }
 0x105   : > { %v7191_v50 = vadd.f32 %v5187_v48, %v5186_v42  ;;  %v5227_v51 = vpop.f32.mrb[5].mxu1  ;;  %v5189_v54 = vpop.f32.mrb[6].mxu0  ;;  %v6276_v48 = vld [vmem:[%s7710_s1 + $0x6b8] sm:$0xff]  }
 0x106   : > { %v7196_v53 = vadd.f32 %v5227_v51, %v5226_v46  ;;  %v5229_v56 = vpop.f32.mrb[6].mxu1  ;;  %v5190_v58 = vpop.f32.mrb[7].mxu0  ;;  %v6275_v46 = vld [vmem:[%s7710_s1 + $0x638] sm:$0xff]  }
 0x107   : > { %v7207_v60 = vadd.f32 %v5190_v58, %v5189_v54  ;;  %v5230_v61 = vpop.f32.mrb[7].mxu1  ;;  %5659 = vmatpush3.bf16.msra.mxu0 %v6275_v46  ;;  %5699 = vmatpush3.bf16.msra.mxu1 %v6276_v48  ;;  %v6282_v58 = vld [vmem:[%s6574_s6 + $0x6c] ss:$144 sps:$4 sm:$0xff]  }
 0x108   : > { %v7212_v63 = vadd.f32 %v5230_v61, %v5229_v56  ;;  %4300 = vmatprep.mubr.bf16.mxu1 %v6282_v58  ;;  %5724 = vmatprep.subr.bf16.mxu0 %v6283_v59  ;;  %v6304_v48 = vld [vmem:[%s7710_s1 + $0x798] sm:$0xff]   ;;  %v6311_v58 = vld [vmem:[%s7710_s1 + $0x760] sm:$0xff]  }
 0x109   : > { %5764 = vmatprep.subr.bf16.mxu1 %v6284_v62 }
 0x10a   : > { %4236 = vmatmul.mubr.bf16.vlgmr.msra.gmra.mrb[96].mxu0 %v6277_v52  ;;  %4301 = vmatmul.mubr.bf16.vlgmr.msra.gmra.mrb[96].mxu1 %v6280_v57  ;;  %v6305_v52 = vld [vmem:[%s6574_s6 + $0x2a4] ss:$144 sps:$4 sm:$0xff]   ;;  %v6310_v57 = vld [vmem:[%s6574_s6 + $0x2a8] ss:$144 sps:$4 sm:$0xff]  }
 0x10b   : > { %v5192_v3 = vpop.f32.mrb[8].mxu0  ;;  %5725 = vmatpush3.bf16.msra.mxu0 %v6285_v1  ;;  %5765 = vmatpush3.bf16.msra.mxu1 %v6286_v4 }
 0x10c   : > { %v5232_v6 = vpop.f32.mrb[8].mxu1  ;;  %v5193_v8 = vpop.f32.mrb[9].mxu0  ;;  %5726 = vmatprep.subr.bf16.mxu0 %v6287_v7  ;;  %5766 = vmatprep.subr.bf16.mxu1 %v6288_v9  ;;  %v4729_v7 = vld [vmem:[%s7711_s2] ss:$0 sm:$0xff] }
 0x10d   : > { %v7227_v10 = vadd.f32 %v5193_v8, %v5192_v3  ;;  %v5233_v11 = vpop.f32.mrb[9].mxu1  ;;  %v5195_v14 = vpop.f32.mrb[10].mxu0  ;;  %4308 = vmatprep.mubr.bf16.mxu1 %v6293_v19  ;;  %v3458_v9 = vadd.f32 %v7155_v26, %v4729_v7  ;;  %v6316_v19 = vld [vmem:[%s7710_s1 + $0x7e8] sm:$0xff]  }
 0x10e   : > { %v7232_v13 = vadd.f32 %v5233_v11, %v5232_v6  ;;  %v5235_v16 = vpop.f32.mrb[10].mxu1  ;;  %v5196_v18 = vpop.f32.mrb[11].mxu0 }
 0x10f   : > { %v7243_v20 = vadd.f32 %v5196_v18, %v5195_v14  ;;  %v5236_v21 = vpop.f32.mrb[11].mxu1  ;;  %5727 = vmatpush3.bf16.msra.mxu0 %v6289_v12  ;;  %v6291_v18 = vld [vmem:[%s6574_s6 + $0x184] ss:$144 sps:$4 sm:$0xff]   ;;  %v3461_v12 = vadd.f32 %v7171_v36, %v4729_v7  ;;  %v3523_v36 = vadd.f32 %v7160_v29, %v3458_v9  ;;  %v6333_v9 = vld [vmem:[%s6574_s6 + $0x70] ss:$144 sps:$4 sm:$0xff]  }
 0x110   : > { %v7248_v23 = vadd.f32 %v5236_v21, %v5235_v16  ;;  %v6290_v16 = vld [vmem:[%s7710_s1 + $0x788] sm:$0xff]   ;;  %v6295_v21 = vld [vmem:[%s6574_s6 + $0x180] ss:$144 sps:$4 sm:$0xff]   ;;  %4243 = vmatprep.mubr.bf16.mxu0 %v6291_v18  ;;  %5728 = vmatprep.subr.bf16.mxu0 %v6297_v25 }
 0x111   : > { %5767 = vmatpush3.bf16.msra.mxu1 %v6290_v16  ;;  %v3469_v16 = vadd.f32 %v7207_v60, %v4729_v7  ;;  %v3526_v60 = vadd.f32 %v7176_v39, %v3461_v12  ;;  %v6335_v12 = vld [vmem:[%s6574_s6 + $0x74] ss:$144 sps:$4 sm:$0xff]  }
 0x112   : > { %4244 = vmatmul.mubr.bf16.gmra.mrb[100].mxu0 %v6295_v21  ;;  %4309 = vmatmul.mubr.bf16.gmra.mrb[100].mxu1 %v6296_v24  ;;  %v3474_v21 = vadd.f32 %v7227_v10, %v4729_v7 }
 0x113   : > { %v5198_v31 = vpop.f32.mrb[12].mxu0  ;;  %5768 = vmatprep.subr.bf16.mxu1 %v6298_v28  ;;  %4251 = vmatprep.mubr.bf16.mxu0 %v6305_v52  ;;  %v3534_v10 = vadd.f32 %v7212_v63, %v3469_v16  ;;  %v6319_v63 = vld [vmem:[%s6574_s6 + $0x3c4] ss:$144 sps:$4 sm:$0xff]   ;;  %v6336_v16 = vld [vmem:[%s6574_s6 + $0x78] ss:$144 sps:$4 sm:$0xff]  }
 0x114   : > { %v5238_v33 = vpop.f32.mrb[12].mxu1  ;;  %v5199_v35 = vpop.f32.mrb[13].mxu0  ;;  %4316 = vmatprep.mubr.bf16.mxu1 %v6307_v55  ;;  %v3539_v29 = vadd.f32 %v7232_v13, %v3474_v21  ;;  %v6323_v13 = vld [vmem:[%s6574_s6 + $0x3c0] ss:$144 sps:$4 sm:$0xff]  }
 0x115   : > { %v7266_v38 = vadd.f32 %v5199_v35, %v5198_v31  ;;  %v5239_v40 = vpop.f32.mrb[13].mxu1  ;;  %v5201_v43 = vpop.f32.mrb[14].mxu0  ;;  %v6299_v31 = vld [vmem:[%s7710_s1 + $0x710] sm:$0xff]   ;;  %5769 = vmatpush3.bf16.msra.mxu1 %v6300_v34  ;;  %v6339_v21 = vld [vmem:[%s7710_s1 + $0x840] sm:$0xff]  }
 0x116   : > { %v7271_v42 = vadd.f32 %v5239_v40, %v5238_v33  ;;  %v5241_v45 = vpop.f32.mrb[14].mxu1  ;;  %v5202_v47 = vpop.f32.mrb[15].mxu0  ;;  %5729 = vmatpush3.bf16.msra.mxu0 %v6299_v31  ;;  %v6301_v40 = vld [vmem:[%s7710_s1 + $0x758] sm:$0xff]   ;;  %v6328_v52 = vld [vmem:[%s7710_s1 + $0x7b0] sm:$0xff]  }
 0x117   : > { %v7282_v49 = vadd.f32 %v5202_v47, %v5201_v43  ;;  %v5242_v51 = vpop.f32.mrb[15].mxu1  ;;  %v6302_v43 = vld [vmem:[%s7710_s1 + $0x7d8] sm:$0xff]   ;;  %5730 = vmatprep.subr.bf16.mxu0 %v6301_v40  ;;  %v3482_v26 = vadd.f32 %v7266_v38, %v4729_v7  ;;  %v6318_v38 = vld [vmem:[%s7710_s1 + $0x7a8] sm:$0xff]  }
 0x118   : > { %v7285_v54 = vadd.f32 %v5242_v51, %v5241_v45  ;;  %v6303_v45 = vld [vmem:[%s7710_s1 + $0x718] sm:$0xff]   ;;  %5770 = vmatprep.subr.bf16.mxu1 %v6302_v43 }
 0x119   : > { %5771 = vmatpush3.bf16.msra.mxu1 %v6304_v48  ;;  %v3485_v24 = vadd.f32 %v7282_v49, %v4729_v7  ;;  %v3547_v28 = vadd.f32 %v7271_v42, %v3482_v26  ;;  %v6321_v40 = vld [vmem:[%s6574_s6 + $0x3cc] ss:$144 sps:$4 sm:$0xff]   ;;  %v6340_v26 = vld [vmem:[%s7710_s1 + $0x8c0] sm:$0xff]  }
 0x11a   : > { %5731 = vmatpush3.bf16.msra.mxu0 %v6303_v45  ;;  %4317 = vmatmul.mubr.bf16.gmra.mrb[104].mxu1 %v6310_v57 }
 0x11b   : > { %v5260_v56 = vpop.f32.mrb[16].mxu0  ;;  %5732 = vmatprep.subr.bf16.mxu0 %v6311_v58  ;;  %v3550_v39 = vadd.f32 %v7285_v54, %v3485_v24  ;;  %v6325_v54 = vld [vmem:[%s7710_s1 + $0x770] sm:$0xff]   ;;  %4324 = vmatprep.mubr.bf16.mxu1 %v6321_v40  ;;  %v6329_v58 = vld [vmem:[%s7710_s1 + $0x778] sm:$0xff]  }
 0x11c   : > { %v5300_v61 = vpop.f32.mrb[16].mxu1  ;;  %v5261_v0 = vpop.f32.mrb[17].mxu0  ;;  %v6349_v40 = vld [vmem:[%s6574_s6 + $0x19c] ss:$144 sps:$4 sm:$0xff]  }
 0x11d   : > { %v7299_v2 = vadd.f32 %v5261_v0, %v5260_v56  ;;  %v5301_v3 = vpop.f32.mrb[17].mxu1  ;;  %v5263_v6 = vpop.f32.mrb[18].mxu0  ;;  %v6309_v56 = vld [vmem:[%s6574_s6 + $0x2a0] ss:$144 sps:$4 sm:$0xff]  }
 0x11e   : > { %v7304_v5 = vadd.f32 %v5301_v3, %v5300_v61  ;;  %v5303_v8 = vpop.f32.mrb[18].mxu1  ;;  %v5264_v11 = vpop.f32.mrb[19].mxu0  ;;  %4252 = vmatmul.mubr.bf16.gmra.mrb[104].mxu0 %v6309_v56  ;;  %v6312_v61 = vld [vmem:[%s7710_s1 + $0x7e0] sm:$0xff]  }
 0x11f   : > { %v7315_v14 = vadd.f32 %v5264_v11, %v5263_v6  ;;  %v5304_v15 = vpop.f32.mrb[19].mxu1  ;;  %v6313_v0 = vld [vmem:[%s7710_s1 + $0x720] sm:$0xff]   ;;  %5772 = vmatprep.subr.bf16.mxu1 %v6312_v61  ;;  %v6315_v11 = vld [vmem:[%s7710_s1 + $0x768] sm:$0xff]   ;;  %4259 = vmatprep.mubr.bf16.mxu0 %v6319_v63 }
 0x120   : > { %v7320_v17 = vadd.f32 %v5304_v15, %v5303_v8  ;;  %v6314_v3 = vld [vmem:[%s7710_s1 + $0x7a0] sm:$0xff]   ;;  %5733 = vmatpush3.bf16.msra.mxu0 %v6313_v0  ;;  %v3466_v15 = vadd.f32 %v7191_v50, %v4729_v7  ;;  %v6317_v50 = vld [vmem:[%s7710_s1 + $0x728] sm:$0xff]  }
 0x121   : > { %5773 = vmatpush3.bf16.msra.mxu1 %v6314_v3  ;;  %5734 = vmatprep.subr.bf16.mxu0 %v6315_v11  ;;  %v3591_v31 = vadd.f32 %v7315_v14, %v3526_v60  ;;  %v6342_v60 = vld [vmem:[%s7710_s1 + $0x880] sm:$0xff]  }
 0x122   : > { %5774 = vmatprep.subr.bf16.mxu1 %v6316_v19 }
 0x123   : > { %v5266_v22 = vpop.f32.mrb[20].mxu0  ;;  %v7417_v14 = vadd.f32 %v7320_v17, %v3591_v31  ;;  %v6327_v17 = vld [vmem:[%s7710_s1 + $0x730] sm:$0xff]   ;;  %v6346_v31 = vld [vmem:[%s7710_s1 + $0x888] sm:$0xff]  }
 0x124   : > { %v5306_v27 = vpop.f32.mrb[20].mxu1  ;;  %v5267_v30 = vpop.f32.mrb[21].mxu0  ;;  %5735 = vmatpush3.bf16.msra.mxu0 %v6317_v50 }
 0x125   : > { %v7335_v32 = vadd.f32 %v5267_v30, %v5266_v22  ;;  %v5307_v33 = vpop.f32.mrb[21].mxu1  ;;  %v5269_v37 = vpop.f32.mrb[22].mxu0  ;;  %v3477_v22 = vadd.f32 %v7243_v20, %v4729_v7  ;;  %v3588_v30 = vadd.f32 %v7299_v2, %v3523_v36  ;;  %5775 = vmatpush3.bf16.msra.mxu1 %v6318_v38  ;;  %5736 = vmatprep.subr.bf16.mxu0 %v6325_v54  ;;  %v6332_v7 = vld [vmem:[%s7710_s1 + $0x7b8] sm:$0xff]  }
 0x126   : > { %v7340_v35 = vadd.f32 %v5307_v33, %v5306_v27  ;;  %v5309_v41 = vpop.f32.mrb[22].mxu1  ;;  %v5270_v44 = vpop.f32.mrb[23].mxu0  ;;  %v3531_v27 = vadd.f32 %v7196_v53, %v3466_v15  ;;  %4260 = vmatmul.mubr.bf16.gmra.mrb[108].mxu0 %v6323_v13  ;;  %v6351_v13 = vld [vmem:[%s6574_s6 + $0x190] ss:$144 sps:$4 sm:$0xff]  }
 0x127   : > { %v5271_v46 = vadd.f32 %v5270_v44, %v5269_v37  ;;  %v5310_v47 = vpop.f32.mrb[23].mxu1  ;;  %v3542_v49 = vadd.f32 %v7248_v23, %v3477_v22  ;;  %v7414_v2 = vadd.f32 %v7304_v5, %v3588_v30  ;;  %4365 = vmatprep.mubr.bf16.mxu0 %v6335_v12  ;;  %v6367_v12 = vld [vmem:[%s7710_s1 + $0x860] sm:$0xff]  }
 0x128   : > { %v7354_v51 = vadd.f32 %v5310_v47, %v5309_v41  ;;  %v3596_v33 = vadd.f32 %v7335_v32, %v3531_v27  ;;  %v6324_v41 = vld [vmem:[%s6574_s6 + $0x3c8] ss:$144 sps:$4 sm:$0xff]   ;;  %5737 = vmatpush3.bf16.msra.mxu0 %v6327_v17 }
 0x129   : > { %v3599_v34 = vadd.f32 %v5271_v46, %v3534_v10  ;;  %v6326_v46 = vld [vmem:[%s7710_s1 + $0x7f0] sm:$0xff]   ;;  %4325 = vmatmul.mubr.bf16.gmra.mrb[108].mxu1 %v6324_v41  ;;  %5738 = vmatprep.subr.bf16.mxu0 %v6329_v58 }
 0x12a   : > { %v7420_v32 = vadd.f32 %v7340_v35, %v3596_v33  ;;  %5776 = vmatprep.subr.bf16.mxu1 %v6326_v46 }
 0x12b   : > { %v5272_v59 = vpop.f32.mrb[24].mxu0  ;;  %v7423_v44 = vadd.f32 %v7354_v51, %v3599_v34  ;;  %5777 = vmatpush3.bf16.msra.mxu1 %v6328_v52  ;;  %v6347_v34 = vld [vmem:[%s6574_s6 + $0x194] ss:$144 sps:$4 sm:$0xff]  }
 0x12c   : > { %v5312_v62 = vpop.f32.mrb[24].mxu1  ;;  %v5273_v1 = vpop.f32.mrb[25].mxu0 }
 0x12d   : > { %v5274_v4 = vadd.f32 %v5273_v1, %v5272_v59  ;;  %v5313_v6 = vpop.f32.mrb[25].mxu1  ;;  %v5275_v18 = vpop.f32.mrb[26].mxu0  ;;  %v6331_v1 = vld [vmem:[%s7710_s1 + $0x738] sm:$0xff]  }
 0x12e   : > { %v5314_v8 = vadd.f32 %v5313_v6, %v5312_v62  ;;  %v5315_v25 = vpop.f32.mrb[26].mxu1  ;;  %v5276_v20 = vpop.f32.mrb[27].mxu0  ;;  %v6330_v62 = vld [vmem:[%s7710_s1 + $0x7f8] sm:$0xff]   ;;  %5739 = vmatpush3.bf16.msra.mxu0 %v6331_v1 }
 0x12f   : > { %v5316_v53 = vpop.f32.mrb[27].mxu1  ;;  %v3604_v23 = vadd.f32 %v5274_v4, %v3539_v29  ;;  %v5277_v43 = vadd.f32 %v5276_v20, %v5275_v18  ;;  %5778 = vmatprep.subr.bf16.mxu1 %v6330_v62  ;;  %v6338_v18 = vld [vmem:[%s6574_s6 + $0x7c] ss:$144 sps:$4 sm:$0xff]   ;;  %5804 = vmatprep.subr.bf16.mxu0 %v6339_v21  ;;  %v6369_v21 = vld [vmem:[%s7710_s1 + $0x820] sm:$0xff]  }
 0x130   : > { %v5317_v42 = vadd.f32 %v5316_v53, %v5315_v25  ;;  %5779 = vmatpush3.bf16.msra.mxu1 %v6332_v7  ;;  %4430 = vmatprep.mubr.bf16.mxu1 %v6338_v18  ;;  %v6341_v25 = vld [vmem:[%s7710_s1 + $0x800] sm:$0xff]   ;;  %v6343_v20 = vld [vmem:[%s7710_s1 + $0x848] sm:$0xff]  }
 0x131   : > { %v7428_v47 = vadd.f32 %v5314_v8, %v3604_v23  ;;  %v3607_v5 = vadd.f32 %v5277_v43, %v3542_v49  ;;  %4366 = vmatmul.mubr.bf16.vlgmr.msra.gmra.mrb[112].mxu0 %v6333_v9  ;;  %5844 = vmatprep.subr.bf16.mxu1 %v6340_v26  ;;  %v6344_v49 = vld [vmem:[%s7710_s1 + $0x8c8] sm:$0xff]   ;;  %v6365_v9 = vld [vmem:[%s6574_s6 + $0x2b0] ss:$144 sps:$4 sm:$0xff]  }
 0x132   : > { %5805 = vmatpush3.bf16.msra.mxu0 %v6341_v25  ;;  %4373 = vmatprep.mubr.bf16.mxu0 %v6347_v34  ;;  %v6352_v23 = vld [vmem:[%s6574_s6 + $0x198] ss:$144 sps:$4 sm:$0xff]   ;;  %v6368_v18 = vld [vmem:[%s7710_s1 + $0x8e0] sm:$0xff]  }
 0x133   : > { %v5278_v37 = vpop.f32.mrb[28].mxu0  ;;  %v7436_v55 = vadd.f32 %v5317_v42, %v3607_v5  ;;  %4431 = vmatmul.mubr.bf16.vlgmr.msra.gmra.mrb[112].mxu1 %v6336_v16  ;;  %5806 = vmatprep.subr.bf16.mxu0 %v6343_v20  ;;  %v6353_v42 = vld [vmem:[%s7710_s1 + $0x850] sm:$0xff]  }
 0x134   : > { %v5318_v45 = vpop.f32.mrb[28].mxu1  ;;  %v5279_v48 = vpop.f32.mrb[29].mxu0  ;;  %5845 = vmatpush3.bf16.msra.mxu1 %v6342_v60  ;;  %4438 = vmatprep.mubr.bf16.mxu1 %v6349_v40  ;;  %v6379_v34 = vld [vmem:[%s6574_s6 + $0x3d0] ss:$144 sps:$4 sm:$0xff]  }
 0x135   : > { %v5280_v35 = vadd.f32 %v5279_v48, %v5278_v37  ;;  %v5319_v51 = vpop.f32.mrb[29].mxu1  ;;  %v5281_v57 = vpop.f32.mrb[30].mxu0  ;;  %5846 = vmatprep.subr.bf16.mxu1 %v6344_v49  ;;  %v6356_v48 = vld [vmem:[%s7710_s1 + $0x890] sm:$0xff]  }
 0x136   : > { %v5320_v56 = vadd.f32 %v5319_v51, %v5318_v45  ;;  %v5321_v61 = vpop.f32.mrb[30].mxu1  ;;  %v5282_v0 = vpop.f32.mrb[31].mxu0  ;;  %v6355_v45 = vld [vmem:[%s7710_s1 + $0x810] sm:$0xff]   ;;  %v6357_v51 = vld [vmem:[%s7710_s1 + $0x858] sm:$0xff]  }
 0x137   : > { %v3612_v59 = vadd.f32 %v5280_v35, %v3547_v28  ;;  %v5283_v4 = vadd.f32 %v5282_v0, %v5281_v57  ;;  %v5322_v6 = vpop.f32.mrb[31].mxu1  ;;  %v6358_v57 = vld [vmem:[%s7710_s1 + $0x8d8] sm:$0xff]  }
 0x138   : > { %v5323_v8 = vadd.f32 %v5322_v6, %v5321_v61  ;;  %5847 = vmatpush3.bf16.msra.mxu1 %v6346_v31  ;;  %v6377_v31 = vld [vmem:[%s6574_s6 + $0x3dc] ss:$144 sps:$4 sm:$0xff]  }
 0x139   : > { %v7447_v3 = vadd.f32 %v5320_v56, %v3612_v59  ;;  %v3615_v11 = vadd.f32 %v5283_v4, %v3550_v39  ;;  %v6345_v39 = vld [vmem:[%s7710_s1 + $0x808] sm:$0xff]   ;;  %4374 = vmatmul.mubr.bf16.gmra.mrb[116].mxu0 %v6351_v13  ;;  %v6359_v59 = vld [vmem:[%s7710_s1 + $0x818] sm:$0xff]   ;;  %v6361_v4 = vld [vmem:[%s6574_s6 + $0x2b4] ss:$144 sps:$4 sm:$0xff]  }
 0x13a   : > { %5807 = vmatpush3.bf16.msra.mxu0 %v6345_v39  ;;  %4381 = vmatprep.mubr.bf16.mxu0 %v6361_v4  ;;  %v6381_v13 = vld [vmem:[%s7710_s1 + $0x870] sm:$0xff]  }
 0x13b   : > { %v5340_v15 = vpop.f32.mrb[32].mxu0  ;;  %v7456_v19 = vadd.f32 %v5323_v8, %v3615_v11  ;;  %4439 = vmatmul.mubr.bf16.gmra.mrb[116].mxu1 %v6352_v23  ;;  %5808 = vmatprep.subr.bf16.mxu0 %v6353_v42  ;;  %v6363_v8 = vld [vmem:[%s6574_s6 + $0x2bc] ss:$144 sps:$4 sm:$0xff]   ;;  %v6366_v11 = vld [vmem:[%s6574_s6 + $0x2b8] ss:$144 sps:$4 sm:$0xff]   ;;  %v6383_v42 = vld [vmem:[%s7710_s1 + $0x830] sm:$0xff]  }
 0x13c   : > { %v5380_v22 = vpop.f32.mrb[32].mxu1  ;;  %v5341_v24 = vpop.f32.mrb[33].mxu0  ;;  %4446 = vmatprep.mubr.bf16.mxu1 %v6363_v8 }
 0x13d   : > { %v5342_v36 = vadd.f32 %v5341_v24, %v5340_v15  ;;  %v5381_v50 = vpop.f32.mrb[33].mxu1  ;;  %v5343_v10 = vpop.f32.mrb[34].mxu0  ;;  %v6370_v24 = vld [vmem:[%s7710_s1 + $0x8a0] sm:$0xff]  }
 0x13e   : > { %v5382_v27 = vadd.f32 %v5381_v50, %v5380_v22  ;;  %v5383_v29 = vpop.f32.mrb[34].mxu1  ;;  %v5344_v28 = vpop.f32.mrb[35].mxu0  ;;  %5809 = vmatpush3.bf16.msra.mxu0 %v6355_v45  ;;  %v6371_v50 = vld [vmem:[%s7710_s1 + $0x868] sm:$0xff]  }
 0x13f   : > { %v3718_v38 = vadd.f32 %v5342_v36, %v7414_v2  ;;  %v5345_v63 = vadd.f32 %v5344_v28, %v5343_v10  ;;  %v5384_v30 = vpop.f32.mrb[35].mxu1  ;;  %v6354_v2 = vld [vmem:[%s7710_s1 + $0x8d0] sm:$0xff]   ;;  %5810 = vmatprep.subr.bf16.mxu0 %v6357_v51  ;;  %v6372_v10 = vld [vmem:[%s7710_s1 + $0x8e8] sm:$0xff]  }
 0x140   : > { %v5385_v33 = vadd.f32 %v5384_v30, %v5383_v29  ;;  %5848 = vmatprep.subr.bf16.mxu1 %v6354_v2 }
 0x141   : > { %v7480_v53 = vadd.f32 %v5382_v27, %v3718_v38  ;;  %v3721_v37 = vadd.f32 %v5345_v63, %v7417_v14  ;;  %5849 = vmatpush3.bf16.msra.mxu1 %v6356_v48  ;;  %4382 = vmatmul.mubr.bf16.gmra.mrb[120].mxu0 %v6365_v9  ;;  %v6373_v38 = vld [vmem:[%s7710_s1 + $0x828] sm:$0xff]   ;;  %v6375_v63 = vld [vmem:[%s6574_s6 + $0x3d4] ss:$144 sps:$4 sm:$0xff]  }
 0x142   : > { %5850 = vmatprep.subr.bf16.mxu1 %v6358_v57  ;;  %5811 = vmatpush3.bf16.msra.mxu0 %v6359_v59 }
 0x143   : > { %v5346_v41 = vpop.f32.mrb[36].mxu0  ;;  %v7490_v43 = vadd.f32 %v5385_v33, %v3721_v37  ;;  %4447 = vmatmul.mubr.bf16.gmra.mrb[120].mxu1 %v6366_v11  ;;  %5812 = vmatprep.subr.bf16.mxu0 %v6367_v12  ;;  %v6380_v37 = vld [vmem:[%s6574_s6 + $0x3d8] ss:$144 sps:$4 sm:$0xff]   ;;  %v6395_v11 = vld [vmem:[%s6574_s6 + $0x1a4] ss:$144 sps:$4 sm:$0xff]  }
 0x144   : > { %v5386_v54 = vpop.f32.mrb[36].mxu1  ;;  %v5347_v14 = vpop.f32.mrb[37].mxu0  ;;  %4389 = vmatprep.mubr.bf16.mxu0 %v6375_v63  ;;  %4454 = vmatprep.mubr.bf16.mxu1 %v6377_v31 }
 0x145   : > { %v5348_v46 = vadd.f32 %v5347_v14, %v5346_v41  ;;  %v5387_v5 = vpop.f32.mrb[37].mxu1  ;;  %v5349_v35 = vpop.f32.mrb[38].mxu0  ;;  %v6384_v14 = vld [vmem:[%s7710_s1 + $0x8b0] sm:$0xff]  }
 0x146   : > { %v5388_v17 = vadd.f32 %v5387_v5, %v5386_v54  ;;  %v5389_v56 = vpop.f32.mrb[38].mxu1  ;;  %v5350_v58 = vpop.f32.mrb[39].mxu0  ;;  %5813 = vmatpush3.bf16.msra.mxu0 %v6369_v21  ;;  %v6385_v5 = vld [vmem:[%s7710_s1 + $0x878] sm:$0xff]  }
 0x147   : > { %v3726_v52 = vadd.f32 %v5348_v46, %v7420_v32  ;;  %v5351_v62 = vadd.f32 %v5350_v58, %v5349_v35  ;;  %v5390_v0 = vpop.f32.mrb[39].mxu1  ;;  %v6360_v32 = vld [vmem:[%s7710_s1 + $0x898] sm:$0xff]   ;;  %5814 = vmatprep.subr.bf16.mxu0 %v6371_v50 }
 0x148   : > { %v5391_v1 = vadd.f32 %v5390_v0, %v5389_v56  ;;  %5851 = vmatpush3.bf16.msra.mxu1 %v6360_v32  ;;  %v6386_v35 = vld [vmem:[%s7710_s1 + $0x8f8] sm:$0xff]   ;;  %v6391_v0 = vld [vmem:[%s6574_s6 + $0x84] ss:$144 sps:$4 sm:$0xff]  }
 0x149   : > { %v7514_v61 = vadd.f32 %v5388_v17, %v3726_v52  ;;  %v3729_v6 = vadd.f32 %v5351_v62, %v7423_v44  ;;  %5852 = vmatprep.subr.bf16.mxu1 %v6368_v18  ;;  %4390 = vmatmul.mubr.bf16.gmra.mrb[124].mxu0 %v6379_v34  ;;  %v6387_v52 = vld [vmem:[%s7710_s1 + $0x838] sm:$0xff]   ;;  %v6389_v62 = vld [vmem:[%s6574_s6 + $0x80] ss:$144 sps:$4 sm:$0xff]  }
 0x14a   : > { %5815 = vmatpush3.bf16.msra.mxu0 %v6373_v38  ;;  %4495 = vmatprep.mubr.bf16.mxu0 %v6391_v0  ;;  %v6403_v38 = vld [vmem:[%s6574_s6 + $0x2cc] ss:$144 sps:$4 sm:$0xff]   ;;  %v6405_v34 = vld [vmem:[%s6574_s6 + $0x2c0] ss:$144 sps:$4 sm:$0xff]  }
 0x14b   : > { %v5352_v7 = vpop.f32.mrb[40].mxu0  ;;  %v7527_v15 = vadd.f32 %v5391_v1, %v3729_v6  ;;  %4455 = vmatmul.mubr.bf16.gmra.mrb[124].mxu1 %v6380_v37  ;;  %5816 = vmatprep.subr.bf16.mxu0 %v6381_v13  ;;  %v6392_v1 = vld [vmem:[%s6574_s6 + $0x88] ss:$144 sps:$4 sm:$0xff]   ;;  %v6394_v6 = vld [vmem:[%s6574_s6 + $0x8c] ss:$144 sps:$4 sm:$0xff]  }
 0x14c   : > { %v5392_v16 = vpop.f32.mrb[40].mxu1  ;;  %v5353_v44 = vpop.f32.mrb[41].mxu0  ;;  %5853 = vmatpush3.bf16.msra.mxu1 %v6370_v24  ;;  %4560 = vmatprep.mubr.bf16.mxu1 %v6394_v6 }
 0x14d   : > { %v5354_v22 = vadd.f32 %v5353_v44, %v5352_v7  ;;  %v5393_v26 = vpop.f32.mrb[41].mxu1  ;;  %v5355_v36 = vpop.f32.mrb[42].mxu0  ;;  %5854 = vmatprep.subr.bf16.mxu1 %v6372_v10  ;;  %v6397_v44 = vld [vmem:[%s6574_s6 + $0x1ac] ss:$144 sps:$4 sm:$0xff]  }
 0x14e   : > { %v5394_v25 = vadd.f32 %v5393_v26, %v5392_v16  ;;  %v5395_v27 = vpop.f32.mrb[42].mxu1  ;;  %v5356_v20 = vpop.f32.mrb[43].mxu0  ;;  %5817 = vmatpush3.bf16.msra.mxu0 %v6383_v42  ;;  %v6406_v42 = vld [vmem:[%s6574_s6 + $0x2c8] ss:$144 sps:$4 sm:$0xff]  }
 0x14f   : > { %v3734_v60 = vadd.f32 %v5354_v22, %v7428_v47  ;;  %v5357_v49 = vadd.f32 %v5356_v20, %v5355_v36  ;;  %v5396_v28 = vpop.f32.mrb[43].mxu1  ;;  %v6374_v47 = vld [vmem:[%s7710_s1 + $0x8a8] sm:$0xff]   ;;  %5818 = vmatprep.subr.bf16.mxu0 %v6385_v5  ;;  %v6399_v36 = vld [vmem:[%s6574_s6 + $0x1a0] ss:$144 sps:$4 sm:$0xff]  }
 0x150   : > { %v5397_v39 = vadd.f32 %v5396_v28, %v5395_v27  ;;  %5855 = vmatpush3.bf16.msra.mxu1 %v6374_v47  ;;  %v6401_v27 = vld [vmem:[%s6574_s6 + $0x2c4] ss:$144 sps:$4 sm:$0xff]   ;;  %v6400_v20 = vld [vmem:[%s6574_s6 + $0x1a8] ss:$144 sps:$4 sm:$0xff]   ;;  %v6411_v5 = vld [vmem:[%s6574_s6 + $0x3e0] ss:$144 sps:$4 sm:$0xff]  }
 0x151   : > { %v7548_v29 = vadd.f32 %v5394_v25, %v3734_v60  ;;  %v3737_v30 = vadd.f32 %v5357_v49, %v7436_v55  ;;  %v6382_v55 = vld [vmem:[%s7710_s1 + $0x8f0] sm:$0xff]  }
 0x152   : > { %5856 = vmatprep.subr.bf16.mxu1 %v6382_v55  ;;  %5819 = vmatpush3.bf16.msra.mxu0 %v6387_v52  ;;  %v6407_v55 = vld [vmem:[%s6574_s6 + $0x3e4] ss:$144 sps:$4 sm:$0xff]   ;;  %v6412_v52 = vld [vmem:[%s6574_s6 + $0x3e8] ss:$144 sps:$4 sm:$0xff]  }
 0x153   : > { %v5358_v33 = vpop.f32.mrb[44].mxu0  ;;  %v7558_v40 = vadd.f32 %v5397_v39, %v3737_v30 }
 0x154   : > { %v5398_v41 = vpop.f32.mrb[44].mxu1  ;;  %v5359_v23 = vpop.f32.mrb[45].mxu0  ;;  %5857 = vmatpush3.bf16.msra.mxu1 %v6384_v14  ;;  %v6409_v14 = vld [vmem:[%s6574_s6 + $0x3ec] ss:$144 sps:$4 sm:$0xff]   ;;  %s4728_s6 = sshll.u32 %s7718_s23, 3 }
 0x155   : > { %v5360_v54 = vadd.f32 %v5359_v23, %v5358_v33  ;;  %v5399_v2 = vpop.f32.mrb[45].mxu1  ;;  %v5361_v46 = vpop.f32.mrb[46].mxu0  ;;  %5858 = vmatprep.subr.bf16.mxu1 %v6386_v35  ;;  %4496 = vmatmul.mubr.bf16.vlgmr.msra.gmra.mrb[128].mxu0 %v6389_v62  ;;  %s7684_s26 = scalar_lea.vmem %s7712_s3, %s4728_s6 }
 0x156   : > { %v5400_v45 = vadd.f32 %v5399_v2, %v5398_v41  ;;  %v5401_v17 = vpop.f32.mrb[46].mxu1  ;;  %v5362_v51 = vpop.f32.mrb[47].mxu0  ;;  %4503 = vmatprep.mubr.bf16.mxu0 %v6395_v11 }
 0x157   : > { %v3742_v48 = vadd.f32 %v5360_v54, %v7447_v3  ;;  %v5363_v57 = vadd.f32 %v5362_v51, %v5361_v46  ;;  %v5402_v58 = vpop.f32.mrb[47].mxu1  ;;  %v6388_v3 = vld [vmem:[%s7710_s1 + $0x8b8] sm:$0xff]  }
 0x158   : > { %v5403_v59 = vadd.f32 %v5402_v58, %v5401_v17  ;;  %5859 = vmatpush3.bf16.msra.mxu1 %v6388_v3 }
 0x159   : > { %v7582_v56 = vadd.f32 %v5400_v45, %v3742_v48  ;;  %v3745_v32 = vadd.f32 %v5363_v57, %v7456_v19 }
 0x15b   : > { %v5420_v4 = vpop.f32.mrb[48].mxu0  ;;  %v7592_v7 = vadd.f32 %v5403_v59, %v3745_v32  ;;  %4561 = vmatmul.mubr.bf16.vlgmr.msra.gmra.mrb[128].mxu1 %v6392_v1 }
 0x15c   : > { %v5460_v8 = vpop.f32.mrb[48].mxu1  ;;  %v5421_v9 = vpop.f32.mrb[49].mxu0  ;;  %4568 = vmatprep.mubr.bf16.mxu1 %v6397_v44 }
 0x15d   : > { %v5422_v12 = vadd.f32 %v5421_v9, %v5420_v4  ;;  %v5461_v16 = vpop.f32.mrb[49].mxu1  ;;  %v5423_v18 = vpop.f32.mrb[50].mxu0  ;;  %4504 = vmatmul.mubr.bf16.gmra.mrb[132].mxu0 %v6399_v36 }
 0x15e   : > { %v5462_v19 = vadd.f32 %v5461_v16, %v5460_v8  ;;  %v5463_v22 = vpop.f32.mrb[50].mxu1  ;;  %v5424_v26 = vpop.f32.mrb[51].mxu0  ;;  %4511 = vmatprep.mubr.bf16.mxu0 %v6401_v27 }
 0x15f   : > { %v3848_v21 = vadd.f32 %v5422_v12, %v7480_v53  ;;  %v5425_v24 = vadd.f32 %v5424_v26, %v5423_v18  ;;  %v5464_v25 = vpop.f32.mrb[51].mxu1 }
 0x160   : > { %v5465_v60 = vadd.f32 %v5464_v25, %v5463_v22 }
 0x161   : > { %v7598_v50 = vadd.f32 %v5462_v19, %v3848_v21  ;;  %v3851_v10 = vadd.f32 %v5425_v24, %v7490_v43 }
 0x163   : > { %v7604_v49 = vadd.f32 %v5465_v60, %v3851_v10  ;;  %v5426_v28 = vpop.f32.mrb[52].mxu0  ;;  %4569 = vmatmul.mubr.bf16.gmra.mrb[132].mxu1 %v6400_v20 }
 0x164   : > { %v5466_v53 = vpop.f32.mrb[52].mxu1  ;;  %v5427_v47 = vpop.f32.mrb[53].mxu0  ;;  %4576 = vmatprep.mubr.bf16.mxu1 %v6403_v38 }
 0x165   : > { %v5428_v39 = vadd.f32 %v5427_v47, %v5426_v28  ;;  %v5467_v63 = vpop.f32.mrb[53].mxu1  ;;  %v5429_v30 = vpop.f32.mrb[54].mxu0  ;;  %4512 = vmatmul.mubr.bf16.gmra.mrb[136].mxu0 %v6405_v34 }
 0x166   : > { %v5468_v31 = vadd.f32 %v5467_v63, %v5466_v53  ;;  %v5469_v43 = vpop.f32.mrb[54].mxu1  ;;  %v5430_v33 = vpop.f32.mrb[55].mxu0  ;;  %4519 = vmatprep.mubr.bf16.mxu0 %v6407_v55 }
 0x167   : > { %v3856_v37 = vadd.f32 %v5428_v39, %v7514_v61  ;;  %v5431_v13 = vadd.f32 %v5430_v33, %v5429_v30  ;;  %v5470_v41 = vpop.f32.mrb[55].mxu1 }
 0x168   : > { %v5471_v23 = vadd.f32 %v5470_v41, %v5469_v43 }
 0x169   : > { %v7610_v54 = vadd.f32 %v5468_v31, %v3856_v37  ;;  %v3859_v2 = vadd.f32 %v5431_v13, %v7527_v15 }
 0x16b   : > { %v7614_v45 = vadd.f32 %v5471_v23, %v3859_v2  ;;  %4577 = vmatmul.mubr.bf16.gmra.mrb[136].mxu1 %v6406_v42  ;;  %v5432_v46 = vpop.f32.mrb[56].mxu0 }
 0x16c   : > { %4584 = vmatprep.mubr.bf16.mxu1 %v6409_v14  ;;  %v5472_v61 = vpop.f32.mrb[56].mxu1  ;;  %v5433_v48 = vpop.f32.mrb[57].mxu0 }
 0x16d   : > { %v5434_v17 = vadd.f32 %v5433_v48, %v5432_v46  ;;  %v5473_v35 = vpop.f32.mrb[57].mxu1  ;;  %v5435_v51 = vpop.f32.mrb[58].mxu0  ;;  %4520 = vmatmul.mubr.bf16.gmra.mrb[140].mxu0 %v6411_v5 }
 0x16e   : > { %v5474_v57 = vadd.f32 %v5473_v35, %v5472_v61  ;;  %v5475_v58 = vpop.f32.mrb[58].mxu1  ;;  %v5436_v3 = vpop.f32.mrb[59].mxu0 }
 0x16f   : > { %v3864_v15 = vadd.f32 %v5434_v17, %v7548_v29  ;;  %v5437_v59 = vadd.f32 %v5436_v3, %v5435_v51  ;;  %v5476_v62 = vpop.f32.mrb[59].mxu1 }
 0x170   : > { %v5477_v0 = vadd.f32 %v5476_v62, %v5475_v58 }
 0x171   : > { %v3929_v32 = vadd.f32 %v5474_v57, %v3864_v15  ;;  %v3867_v1 = vadd.f32 %v5437_v59, %v7558_v40 }
 0x173   : > { %4585 = vmatmul.mubr.bf16.gmra.mrb[140].mxu1 %v6412_v52  ;;  %v7620_v4 = vadd.f32 %v5477_v0, %v3867_v1  ;;  %v5438_v6 = vpop.f32.mrb[60].mxu0 }
 0x174   : > { %v5478_v8 = vpop.f32.mrb[60].mxu1  ;;  %v5439_v9 = vpop.f32.mrb[61].mxu0 }
 0x175   : > { %v5479_v11 = vpop.f32.mrb[61].mxu1  ;;  %v5440_v12 = vadd.f32 %v5439_v9, %v5438_v6  ;;  %v5441_v18 = vpop.f32.mrb[62].mxu0 }
 0x176   : > { %v5480_v16 = vadd.f32 %v5479_v11, %v5478_v8  ;;  %v5481_v44 = vpop.f32.mrb[62].mxu1  ;;  %v5442_v19 = vpop.f32.mrb[63].mxu0 }
 0x177   : > { %v5482_v29 = vpop.f32.mrb[63].mxu1  ;;  %v3872_v21 = vadd.f32 %v5440_v12, %v7582_v56  ;;  %v5443_v22 = vadd.f32 %v5442_v19, %v5441_v18 }
 0x178   : > { %v5483_v26 = vadd.f32 %v5482_v29, %v5481_v44 }
 0x179   : > { %v3937_v24 = vadd.f32 %v5480_v16, %v3872_v21  ;;  %v3875_v40 = vadd.f32 %v5443_v22, %v7592_v7 }
 0x17b   : > { %v7624_v25 = vadd.f32 %v5483_v26, %v3875_v40  ;;  %v5500_v36 = vpop.f32.mrb[64].mxu0 }
 0x17c   : > { %v5501_v60 = vpop.f32.mrb[65].mxu0  ;;  %v5540_v27 = vpop.f32.mrb[64].mxu1 }
 0x17d   : > { %v5502_v10 = vadd.f32 %v5501_v60, %v5500_v36  ;;  %v5503_v20 = vpop.f32.mrb[66].mxu0  ;;  %v5541_v38 = vpop.f32.mrb[65].mxu1 }
 0x17e   : > { %v5504_v28 = vpop.f32.mrb[67].mxu0  ;;  %v5542_v47 = vadd.f32 %v5541_v38, %v5540_v27  ;;  %v5543_v39 = vpop.f32.mrb[66].mxu1 }
 0x17f   : > { %v3978_v53 = vadd.f32 %v5502_v10, %v7598_v50  ;;  %v5505_v63 = vadd.f32 %v5504_v28, %v5503_v20  ;;  %v5544_v56 = vpop.f32.mrb[67].mxu1 }
 0x180   : > { %v5545_v43 = vadd.f32 %v5544_v56, %v5543_v39 }
 0x181   : > { %v4043_v30 = vadd.f32 %v5542_v47, %v3978_v53  ;;  %v3981_v31 = vadd.f32 %v5505_v63, %v7604_v49 }
 0x183   : > { %v7628_v7 = vadd.f32 %v5545_v43, %v3981_v31  ;;  %v5506_v33 = vpop.f32.mrb[68].mxu0 }
 0x184   : > { %v5546_v34 = vpop.f32.mrb[68].mxu1  ;;  %v5507_v37 = vpop.f32.mrb[69].mxu0 }
 0x185   : > { %v5508_v13 = vadd.f32 %v5507_v37, %v5506_v33  ;;  %v5547_v41 = vpop.f32.mrb[69].mxu1  ;;  %v5509_v55 = vpop.f32.mrb[70].mxu0 }
 0x186   : > { %v5548_v23 = vadd.f32 %v5547_v41, %v5546_v34  ;;  %v5549_v42 = vpop.f32.mrb[70].mxu1  ;;  %v5510_v2 = vpop.f32.mrb[71].mxu0 }
 0x187   : > { %v3986_v50 = vadd.f32 %v5508_v13, %v7610_v54  ;;  %v5511_v14 = vadd.f32 %v5510_v2, %v5509_v55  ;;  %v5550_v46 = vpop.f32.mrb[71].mxu1 }
 0x188   : > { %v5551_v5 = vadd.f32 %v5550_v46, %v5549_v42 }
 0x189   : > { %v4051_v61 = vadd.f32 %v5548_v23, %v3986_v50  ;;  %v3989_v49 = vadd.f32 %v5511_v14, %v7614_v45 }
 0x18b   : > { %v7632_v48 = vadd.f32 %v5551_v5, %v3989_v49  ;;  %v5512_v17 = vpop.f32.mrb[72].mxu0 }
 0x18c   : > { %v5552_v35 = vpop.f32.mrb[72].mxu1  ;;  %v5513_v51 = vpop.f32.mrb[73].mxu0 }
 0x18d   : > { %v5553_v52 = vpop.f32.mrb[73].mxu1  ;;  %v5514_v57 = vadd.f32 %v5513_v51, %v5512_v17  ;;  %v5515_v3 = vpop.f32.mrb[74].mxu0 }
 0x18e   : > { %v5554_v58 = vadd.f32 %v5553_v52, %v5552_v35  ;;  %v5555_v15 = vpop.f32.mrb[74].mxu1  ;;  %v5516_v59 = vpop.f32.mrb[75].mxu0 }
 0x18f   : > { %v5556_v62 = vpop.f32.mrb[75].mxu1  ;;  %v3994_v0 = vadd.f32 %v5514_v57, %v3929_v32  ;;  %v5517_v54 = vadd.f32 %v5516_v59, %v5515_v3 }
 0x190   : > { %v5557_v1 = vadd.f32 %v5556_v62, %v5555_v15 }
 0x191   : > { %v4059_v6 = vadd.f32 %v5554_v58, %v3994_v0  ;;  %v3997_v8 = vadd.f32 %v5517_v54, %v7620_v4 }
 0x193   : > { %v7635_v9 = vadd.f32 %v5557_v1, %v3997_v8  ;;  %v5518_v45 = vpop.f32.mrb[76].mxu0 }
 0x194   : > { %v5558_v11 = vpop.f32.mrb[76].mxu1  ;;  %v5519_v12 = vpop.f32.mrb[77].mxu0 }
 0x195   : > { %v5520_v16 = vadd.f32 %v5519_v12, %v5518_v45  ;;  %v5559_v18 = vpop.f32.mrb[77].mxu1  ;;  %v5521_v44 = vpop.f32.mrb[78].mxu0 }
 0x196   : > { %v5560_v19 = vadd.f32 %v5559_v18, %v5558_v11  ;;  %v5561_v29 = vpop.f32.mrb[78].mxu1  ;;  %v5522_v21 = vpop.f32.mrb[79].mxu0 }
 0x197   : > { %v4002_v22 = vadd.f32 %v5520_v16, %v3937_v24  ;;  %v5523_v26 = vadd.f32 %v5522_v21, %v5521_v44  ;;  %v5562_v40 = vpop.f32.mrb[79].mxu1 }
 0x198   : > { %v5563_v32 = vadd.f32 %v5562_v40, %v5561_v29 }
 0x199   : > { %v4067_v36 = vadd.f32 %v5560_v19, %v4002_v22  ;;  %v4005_v60 = vadd.f32 %v5523_v26, %v7624_v25 }
 0x19b   : > { %v7638_v27 = vadd.f32 %v5563_v32, %v4005_v60  ;;  %v5580_v4 = vpop.f32.mrb[80].mxu0 }
 0x19c   : > { %v5620_v10 = vpop.f32.mrb[80].mxu1  ;;  %v5581_v20 = vpop.f32.mrb[81].mxu0 }
 0x19d   : > { %v5582_v38 = vadd.f32 %v5581_v20, %v5580_v4  ;;  %v5621_v28 = vpop.f32.mrb[81].mxu1  ;;  %v5583_v53 = vpop.f32.mrb[82].mxu0 }
 0x19e   : > { %v5622_v47 = vadd.f32 %v5621_v28, %v5620_v10  ;;  %v5623_v39 = vpop.f32.mrb[82].mxu1  ;;  %v5584_v63 = vpop.f32.mrb[83].mxu0 }
 0x19f   : > { %v4108_v56 = vadd.f32 %v5582_v38, %v4043_v30  ;;  %v5585_v31 = vadd.f32 %v5584_v63, %v5583_v53  ;;  %v5624_v24 = vpop.f32.mrb[83].mxu1 }
 0x1a0   : > { %v5625_v43 = vadd.f32 %v5624_v24, %v5623_v39 }
 0x1a1   : > { %v4173_v33 = vadd.f32 %v5622_v47, %v4108_v56  ;;  %v4111_v34 = vadd.f32 %v5585_v31, %v7628_v7 }
 0x1a3   : > { %v7641_v37 = vadd.f32 %v5625_v43, %v4111_v34  ;;  %v5586_v25 = vpop.f32.mrb[84].mxu0 }
 0x1a4   : > { %v5626_v13 = vpop.f32.mrb[84].mxu1  ;;  %v5587_v41 = vpop.f32.mrb[85].mxu0 }
 0x1a5   : > { %v5627_v55 = vpop.f32.mrb[85].mxu1  ;;  %v5588_v23 = vadd.f32 %v5587_v41, %v5586_v25  ;;  %v5589_v2 = vpop.f32.mrb[86].mxu0 }
 0x1a6   : > { %v5628_v42 = vadd.f32 %v5627_v55, %v5626_v13  ;;  %v5629_v50 = vpop.f32.mrb[86].mxu1  ;;  %v5590_v14 = vpop.f32.mrb[87].mxu0 }
 0x1a7   : > { %v5630_v46 = vpop.f32.mrb[87].mxu1  ;;  %v4116_v5 = vadd.f32 %v5588_v23, %v4051_v61  ;;  %v5591_v30 = vadd.f32 %v5590_v14, %v5589_v2 }
 0x1a8   : > { %v5631_v49 = vadd.f32 %v5630_v46, %v5629_v50 }
 0x1a9   : > { %v4181_v17 = vadd.f32 %v5628_v42, %v4116_v5  ;;  %v4119_v35 = vadd.f32 %v5591_v30, %v7632_v48 }
 0x1ab   : > { %v7644_v51 = vadd.f32 %v5631_v49, %v4119_v35  ;;  %v5592_v7 = vpop.f32.mrb[88].mxu0 }
 0x1ac   : > { %v5632_v52 = vpop.f32.mrb[88].mxu1  ;;  %v5593_v57 = vpop.f32.mrb[89].mxu0 }
 0x1ad   : > { %v5594_v58 = vadd.f32 %v5593_v57, %v5592_v7  ;;  %v5633_v3 = vpop.f32.mrb[89].mxu1  ;;  %v5595_v15 = vpop.f32.mrb[90].mxu0 }
 0x1ae   : > { %v5634_v59 = vadd.f32 %v5633_v3, %v5632_v52  ;;  %v5635_v62 = vpop.f32.mrb[90].mxu1  ;;  %v5596_v0 = vpop.f32.mrb[91].mxu0 }
 0x1af   : > { %v4124_v54 = vadd.f32 %v5594_v58, %v4059_v6  ;;  %v5597_v1 = vadd.f32 %v5596_v0, %v5595_v15  ;;  %v5636_v8 = vpop.f32.mrb[91].mxu1 }
 0x1b0   : > { %v5637_v61 = vadd.f32 %v5636_v8, %v5635_v62 }
 0x1b1   : > { %v4189_v45 = vadd.f32 %v5634_v59, %v4124_v54  ;;  %v4127_v11 = vadd.f32 %v5597_v1, %v7635_v9 }
 0x1b3   : > { %v7647_v12 = vadd.f32 %v5637_v61, %v4127_v11 }
 0x1b4   : > { %v5638_v16 = vpop.f32.mrb[92].mxu1 }
 0x1b5   : > { %v5639_v19 = vpop.f32.mrb[93].mxu1 }
 0x1b6   : > { %v5640_v21 = vadd.f32 %v5639_v19, %v5638_v16  ;;  %v5641_v22 = vpop.f32.mrb[94].mxu1 }
 0x1b7   : > { %v5642_v6 = vpop.f32.mrb[95].mxu1 }
 0x1b8   : > { %v5643_v60 = vadd.f32 %v5642_v6, %v5641_v22 }
 0x1d2   : > { %v5598_v48 = vpop.f32.mrb[92].mxu0 }
 0x1d3   : > { %v5599_v18 = vpop.f32.mrb[93].mxu0 }
 0x1d4   : > { %v5600_v44 = vadd.f32 %v5599_v18, %v5598_v48  ;;  %v5601_v29 = vpop.f32.mrb[94].mxu0 }
 0x1d5   : > { %v5602_v26 = vpop.f32.mrb[95].mxu0 }
 0x1d6   : > { %v4132_v40 = vadd.f32 %v5600_v44, %v4067_v36  ;;  %v5603_v32 = vadd.f32 %v5602_v26, %v5601_v29 }
 0x1d8   : > { %v4197_v4 = vadd.f32 %v5640_v21, %v4132_v40  ;;  %v4135_v10 = vadd.f32 %v5603_v32, %v7638_v27 }
 0x1da   : > { %v7650_v20 = vadd.f32 %v5643_v60, %v4135_v10 }
 0x1dd   : > { %v5660_v9 = vpop.f32.mrb[96].mxu0  ;;  %v5700_v38 = vpop.f32.mrb[96].mxu1 }
 0x1de   : > { %v5661_v28 = vpop.f32.mrb[97].mxu0  ;;  %v5701_v47 = vpop.f32.mrb[97].mxu1 }
 0x1df   : > { %v5662_v53 = vadd.f32 %v5661_v28, %v5660_v9  ;;  %v5663_v39 = vpop.f32.mrb[98].mxu0  ;;  %v5702_v63 = vadd.f32 %v5701_v47, %v5700_v38  ;;  %v5703_v56 = vpop.f32.mrb[98].mxu1 }
 0x1e0   : > { %v5664_v31 = vpop.f32.mrb[99].mxu0  ;;  %v5704_v36 = vpop.f32.mrb[99].mxu1 }
 0x1e1   : > { %v4238_v24 = vadd.f32 %v5662_v53, %v4173_v33  ;;  %v5665_v43 = vadd.f32 %v5664_v31, %v5663_v39  ;;  %v5705_v34 = vadd.f32 %v5704_v36, %v5703_v56 }
 0x1e3   : > { %v4303_v25 = vadd.f32 %v5702_v63, %v4238_v24  ;;  %v4241_v13 = vadd.f32 %v5665_v43, %v7641_v37 }
 0x1e5   : > { %v7653_v41 = vadd.f32 %v5705_v34, %v4241_v13  ;;  %v5666_v27 = vpop.f32.mrb[100].mxu0  ;;  %v5706_v55 = vpop.f32.mrb[100].mxu1 }
 0x1e6   : > { %v5667_v23 = vpop.f32.mrb[101].mxu0  ;;  %v5707_v2 = vpop.f32.mrb[101].mxu1 }
 0x1e7   : > { %v5668_v42 = vadd.f32 %v5667_v23, %v5666_v27  ;;  %v5669_v50 = vpop.f32.mrb[102].mxu0  ;;  %v5708_v14 = vadd.f32 %v5707_v2, %v5706_v55  ;;  %v5709_v46 = vpop.f32.mrb[102].mxu1 }
 0x1e8   : > { %v5670_v5 = vpop.f32.mrb[103].mxu0  ;;  %v5710_v33 = vpop.f32.mrb[103].mxu1 }
 0x1e9   : > { %v4246_v30 = vadd.f32 %v5668_v42, %v4181_v17  ;;  %v5671_v49 = vadd.f32 %v5670_v5, %v5669_v50  ;;  %v5711_v35 = vadd.f32 %v5710_v33, %v5709_v46 }
 0x1eb   : > { %v4311_v7 = vadd.f32 %v5708_v14, %v4246_v30  ;;  %v4249_v52 = vadd.f32 %v5671_v49, %v7644_v51 }
 0x1ed   : > { %v7656_v57 = vadd.f32 %v5711_v35, %v4249_v52  ;;  %v5712_v58 = vpop.f32.mrb[104].mxu1 }
 0x1ee   : > { %v5713_v59 = vpop.f32.mrb[105].mxu1 }
 0x1ef   : > { %v5714_v0 = vadd.f32 %v5713_v59, %v5712_v58  ;;  %v5715_v54 = vpop.f32.mrb[106].mxu1 }
 0x1f0   : > { %v5716_v17 = vpop.f32.mrb[107].mxu1 }
 0x1f1   : > { %v5672_v37 = vpop.f32.mrb[104].mxu0  ;;  %v5717_v11 = vadd.f32 %v5716_v17, %v5715_v54 }
 0x1f2   : > { %v5673_v3 = vpop.f32.mrb[105].mxu0 }
 0x1f3   : > { %v5674_v15 = vadd.f32 %v5673_v3, %v5672_v37  ;;  %v5675_v62 = vpop.f32.mrb[106].mxu0 }
 0x1f4   : > { %v5676_v1 = vpop.f32.mrb[107].mxu0 }
 0x1f5   : > { %v4254_v8 = vadd.f32 %v5674_v15, %v4189_v45  ;;  %v5677_v61 = vadd.f32 %v5676_v1, %v5675_v62 }
 0x1f7   : > { %v4319_v48 = vadd.f32 %v5714_v0, %v4254_v8  ;;  %v4257_v16 = vadd.f32 %v5677_v61, %v7647_v12 }
 0x1f9   : > { %v7659_v18 = vadd.f32 %v5717_v11, %v4257_v16  ;;  %v5678_v51 = vpop.f32.mrb[108].mxu0 }
 0x1fa   : > { %v5679_v19 = vpop.f32.mrb[109].mxu0 }
 0x1fb   : > { %v5680_v29 = vadd.f32 %v5679_v19, %v5678_v51  ;;  %v5681_v22 = vpop.f32.mrb[110].mxu0 }
 0x1fc   : > { %v5718_v44 = vpop.f32.mrb[108].mxu1  ;;  %v5682_v32 = vpop.f32.mrb[111].mxu0 }
 0x1fd   : > { %v5719_v21 = vpop.f32.mrb[109].mxu1  ;;  %v4262_v6 = vadd.f32 %v5680_v29, %v4197_v4  ;;  %v5683_v60 = vadd.f32 %v5682_v32, %v5681_v22 }
 0x1fe   : > { %v5720_v26 = vadd.f32 %v5719_v21, %v5718_v44  ;;  %v5721_v40 = vpop.f32.mrb[110].mxu1 }
 0x1ff   : > { %v5722_v45 = vpop.f32.mrb[111].mxu1  ;;  %v4265_v38 = vadd.f32 %v5683_v60, %v7650_v20 }
 0x200   : > { %v5723_v10 = vadd.f32 %v5722_v45, %v5721_v40  ;;  %v4327_v9 = vadd.f32 %v5720_v26, %v4262_v6 }
 0x202   : > { %v7662_v28 = vadd.f32 %v5723_v10, %v4265_v38 }
 0x204   : > { %v5740_v12 = vpop.f32.mrb[112].mxu0 }
 0x205   : > { %v5741_v47 = vpop.f32.mrb[113].mxu0 }
 0x206   : > { %v5780_v53 = vpop.f32.mrb[112].mxu1  ;;  %v5742_v39 = vadd.f32 %v5741_v47, %v5740_v12  ;;  %v5743_v56 = vpop.f32.mrb[114].mxu0 }
 0x207   : > { %v5781_v63 = vpop.f32.mrb[113].mxu1  ;;  %v5744_v43 = vpop.f32.mrb[115].mxu0 }
 0x208   : > { %v5782_v31 = vadd.f32 %v5781_v63, %v5780_v53  ;;  %v5783_v24 = vpop.f32.mrb[114].mxu1  ;;  %v4368_v36 = vadd.f32 %v5742_v39, %v4303_v25  ;;  %v5745_v34 = vadd.f32 %v5744_v43, %v5743_v56 }
 0x209   : > { %v5784_v4 = vpop.f32.mrb[115].mxu1 }
 0x20a   : > { %v5785_v13 = vadd.f32 %v5784_v4, %v5783_v24  ;;  %v4433_v27 = vadd.f32 %v5782_v31, %v4368_v36  ;;  %v4371_v55 = vadd.f32 %v5745_v34, %v7653_v41 }
 0x20c   : > { %v7665_v23 = vadd.f32 %v5785_v13, %v4371_v55  ;;  %v5746_v20 = vpop.f32.mrb[116].mxu0 }
 0x20d   : > { %v5747_v2 = vpop.f32.mrb[117].mxu0 }
 0x20e   : > { %v5786_v42 = vpop.f32.mrb[116].mxu1  ;;  %v5748_v50 = vadd.f32 %v5747_v2, %v5746_v20  ;;  %v5749_v46 = vpop.f32.mrb[118].mxu0 }
 0x20f   : > { %v5787_v14 = vpop.f32.mrb[117].mxu1  ;;  %v5750_v49 = vpop.f32.mrb[119].mxu0 }
 0x210   : > { %v5788_v5 = vadd.f32 %v5787_v14, %v5786_v42  ;;  %v5789_v30 = vpop.f32.mrb[118].mxu1  ;;  %v4376_v33 = vadd.f32 %v5748_v50, %v4311_v7  ;;  %v5751_v35 = vadd.f32 %v5750_v49, %v5749_v46 }
 0x211   : > { %v5790_v25 = vpop.f32.mrb[119].mxu1 }
 0x212   : > { %v5791_v52 = vadd.f32 %v5790_v25, %v5789_v30  ;;  %v4441_v37 = vadd.f32 %v5788_v5, %v4376_v33  ;;  %v4379_v58 = vadd.f32 %v5751_v35, %v7656_v57 }
 0x214   : > { %v7668_v3 = vadd.f32 %v5791_v52, %v4379_v58  ;;  %v5752_v41 = vpop.f32.mrb[120].mxu0 }
 0x215   : > { %v5753_v59 = vpop.f32.mrb[121].mxu0 }
 0x216   : > { %v5792_v15 = vpop.f32.mrb[120].mxu1  ;;  %v5754_v62 = vadd.f32 %v5753_v59, %v5752_v41  ;;  %v5755_v54 = vpop.f32.mrb[122].mxu0 }
 0x217   : > { %v5793_v0 = vpop.f32.mrb[121].mxu1  ;;  %v5756_v61 = vpop.f32.mrb[123].mxu0 }
 0x218   : > { %v5794_v1 = vadd.f32 %v5793_v0, %v5792_v15  ;;  %v5795_v8 = vpop.f32.mrb[122].mxu1  ;;  %v4384_v17 = vadd.f32 %v5754_v62, %v4319_v48  ;;  %v5757_v11 = vadd.f32 %v5756_v61, %v5755_v54 }
 0x219   : > { %v5796_v7 = vpop.f32.mrb[123].mxu1 }
 0x21a   : > { %v5797_v16 = vadd.f32 %v5796_v7, %v5795_v8  ;;  %v7670_v51 = vadd.f32 %v5794_v1, %v4384_v17  ;;  %v4387_v44 = vadd.f32 %v5757_v11, %v7659_v18 }
 0x21c   : > { %v7673_v57 = vadd.f32 %v5797_v16, %v4387_v44  ;;  %v5758_v19 = vpop.f32.mrb[124].mxu0 }
 0x21d   : > { %v5759_v21 = vpop.f32.mrb[125].mxu0 }
 0x21e   : > { %v5798_v29 = vpop.f32.mrb[124].mxu1  ;;  %v5760_v26 = vadd.f32 %v5759_v21, %v5758_v19  ;;  %v5761_v32 = vpop.f32.mrb[126].mxu0 }
 0x21f   : > { %v5799_v22 = vpop.f32.mrb[125].mxu1  ;;  %v5762_v60 = vpop.f32.mrb[127].mxu0 }
 0x220   : > { %v5800_v40 = vadd.f32 %v5799_v22, %v5798_v29  ;;  %v5801_v6 = vpop.f32.mrb[126].mxu1  ;;  %v4392_v45 = vadd.f32 %v5760_v26, %v4327_v9  ;;  %v5763_v10 = vadd.f32 %v5762_v60, %v5761_v32 }
 0x221   : > { %v5802_v48 = vpop.f32.mrb[127].mxu1 }
 0x222   : > { %v5803_v38 = vadd.f32 %v5802_v48, %v5801_v6  ;;  %v7675_v12 = vadd.f32 %v5800_v40, %v4392_v45  ;;  %v4395_v18 = vadd.f32 %v5763_v10, %v7662_v28 }
 0x224   : > { %v7678_v53 = vadd.f32 %v5803_v38, %v4395_v18 }
 0x228   : > { %v5820_v47 = vpop.f32.mrb[128].mxu0 }
 0x229   : > { %v5821_v39 = vpop.f32.mrb[129].mxu0 }
 0x22a   : > { %v5822_v56 = vadd.f32 %v5821_v39, %v5820_v47  ;;  %v5823_v31 = vpop.f32.mrb[130].mxu0 }
 0x22b   : > { %v5824_v43 = vpop.f32.mrb[131].mxu0 }
 0x22c   : > { %v4498_v36 = vadd.f32 %v5822_v56, %v4433_v27  ;;  %v5825_v9 = vadd.f32 %v5824_v43, %v5823_v31 }
 0x22e   : > { %v5860_v63 = vpop.f32.mrb[128].mxu1  ;;  %v4501_v55 = vadd.f32 %v5825_v9, %v7665_v23 }
 0x22f   : > { %v5861_v24 = vpop.f32.mrb[129].mxu1 }
 0x230   : > { %v5862_v34 = vadd.f32 %v5861_v24, %v5860_v63  ;;  %v5863_v4 = vpop.f32.mrb[130].mxu1  ;;  %v5826_v2 = vpop.f32.mrb[132].mxu0 }
 0x231   : > { %v5864_v28 = vpop.f32.mrb[131].mxu1  ;;  %v5827_v27 = vpop.f32.mrb[133].mxu0 }
 0x232   : > { %v4563_v13 = vadd.f32 %v5862_v34, %v4498_v36  ;;  %v5865_v20 = vadd.f32 %v5864_v28, %v5863_v4  ;;  %v5828_v14 = vadd.f32 %v5827_v27, %v5826_v2  ;;  %v5829_v46 = vpop.f32.mrb[134].mxu0 }
 0x233   : > { %v5830_v30 = vpop.f32.mrb[135].mxu0 }
 0x234   : > { %4593 = vst [vmem:[%s7684_s26] sm:$0xff] %v4563_v13  ;;  %v4566_v42 = vadd.f32 %v5865_v20, %v4501_v55  ;;  %v4506_v49 = vadd.f32 %v5828_v14, %v4441_v37  ;;  %v5831_v25 = vadd.f32 %v5830_v30, %v5829_v46 }
 0x236   : > { %4594 = vst [vmem:[%s7684_s26 + $0x8] sm:$0xff] %v4566_v42  ;;  %v5866_v50 = vpop.f32.mrb[132].mxu1  ;;  %v4509_v23 = vadd.f32 %v5831_v25, %v7668_v3 }
 0x237   : > { %v5867_v5 = vpop.f32.mrb[133].mxu1 }
 0x238   : > { %v5868_v33 = vadd.f32 %v5867_v5, %v5866_v50  ;;  %v5869_v35 = vpop.f32.mrb[134].mxu1  ;;  %v5832_v59 = vpop.f32.mrb[136].mxu0 }
 0x239   : > { %v5870_v52 = vpop.f32.mrb[135].mxu1  ;;  %v5833_v62 = vpop.f32.mrb[137].mxu0 }
 0x23a   : > { %v4571_v58 = vadd.f32 %v5868_v33, %v4506_v49  ;;  %v5871_v41 = vadd.f32 %v5870_v52, %v5869_v35  ;;  %v5834_v54 = vadd.f32 %v5833_v62, %v5832_v59  ;;  %v5835_v1 = vpop.f32.mrb[138].mxu0 }
 0x23b   : > { %v5836_v37 = vpop.f32.mrb[139].mxu0 }
 0x23c   : > { %4595 = vst [vmem:[%s7684_s26 + $0x10] sm:$0xff] %v4571_v58  ;;  %v4574_v15 = vadd.f32 %v5871_v41, %v4509_v23  ;;  %v4514_v61 = vadd.f32 %v5834_v54, %v7670_v51  ;;  %v5837_v7 = vadd.f32 %v5836_v37, %v5835_v1 }
 0x23e   : > { %4596 = vst [vmem:[%s7684_s26 + $0x18] sm:$0xff] %v4574_v15  ;;  %v5872_v0 = vpop.f32.mrb[136].mxu1  ;;  %v4517_v44 = vadd.f32 %v5837_v7, %v7673_v57 }
 0x23f   : > { %v5873_v8 = vpop.f32.mrb[137].mxu1 }
 0x240   : > { %v5874_v17 = vadd.f32 %v5873_v8, %v5872_v0  ;;  %v5875_v11 = vpop.f32.mrb[138].mxu1  ;;  %v5838_v21 = vpop.f32.mrb[140].mxu0 }
 0x241   : > { %v5876_v16 = vpop.f32.mrb[139].mxu1  ;;  %v5839_v22 = vpop.f32.mrb[141].mxu0 }
 0x242   : > { %v4579_v3 = vadd.f32 %v5874_v17, %v4514_v61  ;;  %v5877_v19 = vadd.f32 %v5876_v16, %v5875_v11  ;;  %v5840_v40 = vadd.f32 %v5839_v22, %v5838_v21  ;;  %v5841_v32 = vpop.f32.mrb[142].mxu0 }
 0x243   : > { %v5842_v51 = vpop.f32.mrb[143].mxu0 }
 0x244   : > { %4597 = vst [vmem:[%s7684_s26 + $0x20] sm:$0xff] %v4579_v3  ;;  %v4582_v29 = vadd.f32 %v5877_v19, %v4517_v44  ;;  %v4522_v60 = vadd.f32 %v5840_v40, %v7675_v12  ;;  %v5843_v10 = vadd.f32 %v5842_v51, %v5841_v32 }
 0x246   : > { %4598 = vst [vmem:[%s7684_s26 + $0x28] sm:$0xff] %v4582_v29  ;;  %v5878_v26 = vpop.f32.mrb[140].mxu1  ;;  %v4525_v18 = vadd.f32 %v5843_v10, %v7678_v53 }
 0x247   : > { %v5879_v6 = vpop.f32.mrb[141].mxu1 }
 0x248   : > { %v5880_v48 = vadd.f32 %v5879_v6, %v5878_v26  ;;  %v5881_v45 = vpop.f32.mrb[142].mxu1 }
 0x249   : > { %v5882_v38 = vpop.f32.mrb[143].mxu1 }
 0x24a   : > { %v4587_v57 = vadd.f32 %v5880_v48, %v4522_v60  ;;  %v5883_v47 = vadd.f32 %v5882_v38, %v5881_v45 }
 0x24c   : > { %4599 = vst [vmem:[%s7684_s26 + $0x30] sm:$0xff] %v4587_v57  ;;  %v4590_v39 = vadd.f32 %v5883_v47, %v4525_v18 }
 0x24e   : > { %4600 = vst [vmem:[%s7684_s26 + $0x38] sm:$0xff] %v4590_v39 }
 0x24f PF: > { %s13_s14 = sadd.s32 1, %s6435_s14   ;;  %s7713_s12 = smov %s6431_s13 }
 0x250   : > { %p10_p5 = scmp.ge.s32.totalorder %s13_s14, 4   ;;  %s7714_s13 = smov %s7716_s15 }
 0x252   :  { %12 = sbr.rel (!%p10_p5) target bundleno = 2 (0x2), region = 68 }

// kernel: ssd_forward.7
= control target key start
LH: loop header
LB: loop body
LE: loop exit
PB: predicated region body
PF: predicated region fallthrough
CT: control target
= control target key end

     0   :  { %s11898_s1 = inlined_call_operand.vmem [shape: bf16[1,9216,128], index: 1, kind: input, shape index: {}]   ;;  %s11899_s0 = inlined_call_operand.vmem [shape: bf16[1,32,9216], index: 0, kind: input, shape index: {}]   ;;  %s11900_s2 = inlined_call_operand.vmem [shape: f32[1,1,128], index: 2, kind: input, shape index: {}]   ;;  %s11901_s3 = inlined_call_operand.vmem [shape: f32[1,32,128], index: 3, kind: output, shape index: {}]  }
   0x1   :  { %v8995_v0 = vld [vmem:[%s11898_s1 + $0x40] sm:$0xff]   ;;  %v8999_v4 = vld [vmem:[%s11898_s1 + $0x48] sm:$0xff]   ;;  %v9003_v8 = vld [vmem:[%s11898_s1 + $0x50] sm:$0xff]  }
   0x2   :  { %v8996_v1 = vld [vmem:[%s11898_s1 + $0xc0] sm:$0xff]   ;;  %7987 = vmatprep.subr.bf16.mxu0 %v8995_v0  ;;  %v9000_v5 = vld [vmem:[%s11898_s1 + $0xc8] sm:$0xff]   ;;  %v9004_v9 = vld [vmem:[%s11898_s1 + $0xd0] sm:$0xff]  }
   0x3   :  { %v8997_v2 = vld [vmem:[%s11898_s1] sm:$0xff]   ;;  %8015 = vmatprep.subr.bf16.mxu1 %v8996_v1  ;;  %v9001_v6 = vld [vmem:[%s11898_s1 + $0x8] sm:$0xff]   ;;  %v9005_v10 = vld [vmem:[%s11898_s1 + $0x10] sm:$0xff]  }
   0x4   :  { %v8998_v3 = vld [vmem:[%s11898_s1 + $0x80] sm:$0xff]   ;;  %7988 = vmatpush3.bf16.msra.mxu0 %v8997_v2  ;;  %v9002_v7 = vld [vmem:[%s11898_s1 + $0x88] sm:$0xff]   ;;  %v9006_v11 = vld [vmem:[%s11898_s1 + $0x90] sm:$0xff]  }
   0x5   :  { %8016 = vmatpush3.bf16.msra.mxu1 %v8998_v3  ;;  %7989 = vmatprep.subr.bf16.mxu0 %v8999_v4  ;;  %v9007_v12 = vld [vmem:[%s11898_s1 + $0x58] sm:$0xff]   ;;  %v9011_v16 = vld [vmem:[%s11898_s1 + $0x60] sm:$0xff]   ;;  %v9015_v20 = vld [vmem:[%s11898_s1 + $0x68] sm:$0xff]  }
   0x6   :  { %8017 = vmatprep.subr.bf16.mxu1 %v9000_v5  ;;  %v9008_v13 = vld [vmem:[%s11898_s1 + $0xd8] sm:$0xff]   ;;  %v9012_v17 = vld [vmem:[%s11898_s1 + $0xe0] sm:$0xff]   ;;  %v9016_v21 = vld [vmem:[%s11898_s1 + $0xe8] sm:$0xff]  }
   0x7   :  { %v9009_v14 = vld [vmem:[%s11898_s1 + $0x18] sm:$0xff]   ;;  %v9013_v18 = vld [vmem:[%s11898_s1 + $0x20] sm:$0xff]   ;;  %v9017_v22 = vld [vmem:[%s11898_s1 + $0x28] sm:$0xff]  }
   0x8   :  { %7990 = vmatpush3.bf16.msra.mxu0 %v9001_v6  ;;  %v9010_v15 = vld [vmem:[%s11898_s1 + $0x98] sm:$0xff]   ;;  %v9014_v19 = vld [vmem:[%s11898_s1 + $0xa0] sm:$0xff]   ;;  %v9018_v23 = vld [vmem:[%s11898_s1 + $0xa8] sm:$0xff]  }
   0x9   :  { %8018 = vmatpush3.bf16.msra.mxu1 %v9002_v7  ;;  %7991 = vmatprep.subr.bf16.mxu0 %v9003_v8  ;;  %v9019_v24 = vld [vmem:[%s11898_s1 + $0x70] sm:$0xff]   ;;  %v9023_v28 = vld [vmem:[%s11898_s1 + $0x78] sm:$0xff]   ;;  %v15_v32 = vld [vmem:[%s11899_s0] sm:$0xff] }
   0xa   :  { %8019 = vmatprep.subr.bf16.mxu1 %v9004_v9  ;;  %v9020_v25 = vld [vmem:[%s11898_s1 + $0xf0] sm:$0xff]   ;;  %v9024_v29 = vld [vmem:[%s11898_s1 + $0xf8] sm:$0xff]   ;;  %v51_v33 = vld [vmem:[%s11899_s0 + $0x120] sm:$0xff] }
   0xb   :  { %v9021_v26 = vld [vmem:[%s11898_s1 + $0x30] sm:$0xff]   ;;  %v9025_v30 = vld [vmem:[%s11898_s1 + $0x38] sm:$0xff]   ;;  %v16_v34 = vld [vmem:[%s11899_s0 + $0x8] sm:$0xff]  ;;  %v7267_v35 = vcombine.low %v15_v32, %v51_v33  ;;  %v7268_v36 = vcombine.high %v15_v32, %v51_v33 }
   0xc   :  { %7992 = vmatpush3.bf16.msra.mxu0 %v9005_v10  ;;  %v9022_v27 = vld [vmem:[%s11898_s1 + $0xb0] sm:$0xff]   ;;  %v9026_v31 = vld [vmem:[%s11898_s1 + $0xb8] sm:$0xff]   ;;  %v52_v37 = vld [vmem:[%s11899_s0 + $0x128] sm:$0xff] }
   0xd   :  { %8020 = vmatpush3.bf16.msra.mxu1 %v9006_v11  ;;  %7993 = vmatprep.subr.bf16.mxu0 %v9007_v12  ;;  %v7269_v38 = vcombine.low %v16_v34, %v52_v37  ;;  %v7270_v39 = vcombine.high %v16_v34, %v52_v37  ;;  %v9027_v40 = vld [vmem:[%s11898_s1 + $0x140] sm:$0xff]   ;;  %v9031_v44 = vld [vmem:[%s11898_s1 + $0x148] sm:$0xff]   ;;  %v9035_v48 = vld [vmem:[%s11898_s1 + $0x150] sm:$0xff]  }
   0xe   :  { %8021 = vmatprep.subr.bf16.mxu1 %v9008_v13  ;;  %5526 = vmatprep.mubr.bf16.mxu0 %v7268_v36  ;;  %v9028_v41 = vld [vmem:[%s11898_s1 + $0x1c0] sm:$0xff]   ;;  %v9032_v45 = vld [vmem:[%s11898_s1 + $0x1c8] sm:$0xff]   ;;  %v9036_v49 = vld [vmem:[%s11898_s1 + $0x1d0] sm:$0xff]  }
   0xf   :  { %5575 = vmatprep.mubr.bf16.mxu1 %v7270_v39  ;;  %v9029_v42 = vld [vmem:[%s11898_s1 + $0x100] sm:$0xff]   ;;  %v9033_v46 = vld [vmem:[%s11898_s1 + $0x108] sm:$0xff]   ;;  %v9037_v50 = vld [vmem:[%s11898_s1 + $0x110] sm:$0xff]  }
  0x10   :  { %7994 = vmatpush3.bf16.msra.mxu0 %v9009_v14  ;;  %v9030_v43 = vld [vmem:[%s11898_s1 + $0x180] sm:$0xff]   ;;  %v9034_v47 = vld [vmem:[%s11898_s1 + $0x188] sm:$0xff]   ;;  %v9038_v51 = vld [vmem:[%s11898_s1 + $0x190] sm:$0xff]  }
  0x11   :  { %8022 = vmatpush3.bf16.msra.mxu1 %v9010_v15  ;;  %7995 = vmatprep.subr.bf16.mxu0 %v9011_v16  ;;  %v9039_v52 = vld [vmem:[%s11898_s1 + $0x158] sm:$0xff]   ;;  %v9043_v56 = vld [vmem:[%s11898_s1 + $0x160] sm:$0xff]   ;;  %v9047_v60 = vld [vmem:[%s11898_s1 + $0x168] sm:$0xff]  }
  0x12   :  { %8023 = vmatprep.subr.bf16.mxu1 %v9012_v17  ;;  %v9040_v53 = vld [vmem:[%s11898_s1 + $0x1d8] sm:$0xff]   ;;  %v9044_v57 = vld [vmem:[%s11898_s1 + $0x1e0] sm:$0xff]   ;;  %v9048_v61 = vld [vmem:[%s11898_s1 + $0x1e8] sm:$0xff]  }
  0x13   :  { %v9041_v54 = vld [vmem:[%s11898_s1 + $0x118] sm:$0xff]   ;;  %v9045_v58 = vld [vmem:[%s11898_s1 + $0x120] sm:$0xff]   ;;  %v9049_v1 = vld [vmem:[%s11898_s1 + $0x128] sm:$0xff]  }
  0x14   :  { %7996 = vmatpush3.bf16.msra.mxu0 %v9013_v18  ;;  %v9042_v55 = vld [vmem:[%s11898_s1 + $0x198] sm:$0xff]   ;;  %v9046_v59 = vld [vmem:[%s11898_s1 + $0x1a0] sm:$0xff]   ;;  %v9050_v3 = vld [vmem:[%s11898_s1 + $0x1a8] sm:$0xff]  }
  0x15   :  { %8024 = vmatpush3.bf16.msra.mxu1 %v9014_v19  ;;  %7997 = vmatprep.subr.bf16.mxu0 %v9015_v20  ;;  %v87_v62 = vld [vmem:[%s11899_s0 + $0x240] sm:$0xff]  ;;  %v88_v4 = vld [vmem:[%s11899_s0 + $0x248] sm:$0xff]  ;;  %v9051_v8 = vld [vmem:[%s11898_s1 + $0x170] sm:$0xff]  }
  0x16   :  { %8025 = vmatprep.subr.bf16.mxu1 %v9016_v21  ;;  %v123_v63 = vld [vmem:[%s11899_s0 + $0x360] sm:$0xff]  ;;  %v124_v5 = vld [vmem:[%s11899_s0 + $0x368] sm:$0xff]  ;;  %v9052_v9 = vld [vmem:[%s11898_s1 + $0x1f0] sm:$0xff]  }
  0x17   :  { %v7340_v0 = vcombine.high %v87_v62, %v123_v63  ;;  %v7339_v2 = vcombine.low %v87_v62, %v123_v63  ;;  %v7342_v6 = vcombine.high %v88_v4, %v124_v5  ;;  %v7341_v7 = vcombine.low %v88_v4, %v124_v5  ;;  %v9053_v10 = vld [vmem:[%s11898_s1 + $0x130] sm:$0xff]   ;;  %v9055_v12 = vld [vmem:[%s11898_s1 + $0x178] sm:$0xff]   ;;  %v20_v4 = vld [vmem:[%s11899_s0 + $0x28] sm:$0xff] }
  0x18   :  { %7998 = vmatpush3.bf16.msra.mxu0 %v9017_v22  ;;  %v9054_v11 = vld [vmem:[%s11898_s1 + $0x1b0] sm:$0xff]   ;;  %v9056_v13 = vld [vmem:[%s11898_s1 + $0x1f8] sm:$0xff]   ;;  %v56_v5 = vld [vmem:[%s11899_s0 + $0x148] sm:$0xff] }
  0x19   :  { %8026 = vmatpush3.bf16.msra.mxu1 %v9018_v23  ;;  %7999 = vmatprep.subr.bf16.mxu0 %v9019_v24  ;;  %v9057_v14 = vld [vmem:[%s11898_s1 + $0x138] sm:$0xff]   ;;  %v17_v16 = vld [vmem:[%s11899_s0 + $0x10] sm:$0xff]  ;;  %v9059_v24 = vld [vmem:[%s11898_s1 + $0x240] sm:$0xff]  }
  0x1a   :  { %8027 = vmatprep.subr.bf16.mxu1 %v9020_v25  ;;  %v9058_v15 = vld [vmem:[%s11898_s1 + $0x1b8] sm:$0xff]   ;;  %v53_v17 = vld [vmem:[%s11899_s0 + $0x130] sm:$0xff]  ;;  %v9060_v25 = vld [vmem:[%s11898_s1 + $0x2c0] sm:$0xff]  }
  0x1b   :  { %v18_v18 = vld [vmem:[%s11899_s0 + $0x18] sm:$0xff]  ;;  %v7271_v20 = vcombine.low %v17_v16, %v53_v17  ;;  %v7272_v21 = vcombine.high %v17_v16, %v53_v17  ;;  %v89_v32 = vld [vmem:[%s11899_s0 + $0x250] sm:$0xff]  ;;  %v91_v16 = vld [vmem:[%s11899_s0 + $0x260] sm:$0xff] }
  0x1c   :  { %8000 = vmatpush3.bf16.msra.mxu0 %v9021_v26  ;;  %v54_v19 = vld [vmem:[%s11899_s0 + $0x138] sm:$0xff]  ;;  %v9061_v26 = vld [vmem:[%s11898_s1 + $0x200] sm:$0xff]   ;;  %v125_v33 = vld [vmem:[%s11899_s0 + $0x370] sm:$0xff] }
  0x1d   :  { %8028 = vmatpush3.bf16.msra.mxu1 %v9022_v27  ;;  %8001 = vmatprep.subr.bf16.mxu0 %v9023_v28  ;;  %v7273_v22 = vcombine.low %v18_v18, %v54_v19  ;;  %v7274_v23 = vcombine.high %v18_v18, %v54_v19  ;;  %v9062_v27 = vld [vmem:[%s11898_s1 + $0x280] sm:$0xff]   ;;  %v9063_v28 = vld [vmem:[%s11898_s1 + $0x248] sm:$0xff]   ;;  %v7344_v34 = vcombine.high %v89_v32, %v125_v33  ;;  %v9067_v36 = vld [vmem:[%s11898_s1 + $0x250] sm:$0xff]  }
  0x1e   :  { %8029 = vmatprep.subr.bf16.mxu1 %v9024_v29  ;;  %v9064_v29 = vld [vmem:[%s11898_s1 + $0x2c8] sm:$0xff]   ;;  %v9068_v37 = vld [vmem:[%s11898_s1 + $0x2d0] sm:$0xff]   ;;  %v126_v39 = vld [vmem:[%s11899_s0 + $0x378] sm:$0xff] }
  0x1f   :  { %v9089_v62 = vld [vmem:[%s11898_s1 + $0x238] sm:$0xff]   ;;  %v127_v17 = vld [vmem:[%s11899_s0 + $0x380] sm:$0xff] }
  0x20   :  { %8002 = vmatpush3.bf16.msra.mxu0 %v9025_v30  ;;  %v9065_v30 = vld [vmem:[%s11898_s1 + $0x208] sm:$0xff]   ;;  %v9090_v63 = vld [vmem:[%s11898_s1 + $0x2b8] sm:$0xff]   ;;  %v7348_v18 = vcombine.high %v91_v16, %v127_v17  ;;  %v7347_v19 = vcombine.low %v91_v16, %v127_v17  ;;  %v9139_v16 = vld [vmem:[%s11898_s1 + $0x460] sm:$0xff]  }
  0x21   :  { %8030 = vmatpush3.bf16.msra.mxu1 %v9026_v31  ;;  %8043 = vmatprep.subr.bf16.mxu0 %v9027_v40  ;;  %v9066_v31 = vld [vmem:[%s11898_s1 + $0x288] sm:$0xff]   ;;  %v9140_v17 = vld [vmem:[%s11898_s1 + $0x4e0] sm:$0xff]  }
  0x22   :  { %8071 = vmatprep.subr.bf16.mxu1 %v9028_v41  ;;  %v9069_v41 = vld [vmem:[%s11898_s1 + $0x210] sm:$0xff]  }
  0x23   :  { %5527 = vmatmul.mubr.bf16.vlgmr.msra.gmra.mrb[0].mxu0 %v7267_v35  ;;  %v7343_v35 = vcombine.low %v89_v32, %v125_v33  ;;  %v9107_v32 = vld [vmem:[%s11898_s1 + $0x360] sm:$0xff]  }
  0x24   :  { %5576 = vmatmul.mubr.bf16.vlgmr.msra.gmra.mrb[0].mxu1 %v7269_v38  ;;  %8044 = vmatpush3.bf16.msra.mxu0 %v9029_v42  ;;  %v90_v38 = vld [vmem:[%s11899_s0 + $0x258] sm:$0xff]  ;;  %v9108_v33 = vld [vmem:[%s11898_s1 + $0x3e0] sm:$0xff]  }
  0x25   :  { %8072 = vmatpush3.bf16.msra.mxu1 %v9030_v43  ;;  %8045 = vmatprep.subr.bf16.mxu0 %v9031_v44  ;;  %v7346_v40 = vcombine.high %v90_v38, %v126_v39  ;;  %v7345_v42 = vcombine.low %v90_v38, %v126_v39  ;;  %v9070_v43 = vld [vmem:[%s11898_s1 + $0x290] sm:$0xff]   ;;  %v9071_v44 = vld [vmem:[%s11898_s1 + $0x258] sm:$0xff]   ;;  %v9113_v38 = vld [vmem:[%s11898_s1 + $0x328] sm:$0xff]  }
  0x26   :  { %8073 = vmatprep.subr.bf16.mxu1 %v9032_v45  ;;  %5534 = vmatprep.mubr.bf16.mxu0 %v7340_v0  ;;  %v9072_v45 = vld [vmem:[%s11898_s1 + $0x2d8] sm:$0xff]   ;;  %v19_v0 = vld [vmem:[%s11899_s0 + $0x20] sm:$0xff]  ;;  %v9114_v39 = vld [vmem:[%s11898_s1 + $0x3a8] sm:$0xff]  }
  0x27   :  { %5583 = vmatprep.mubr.bf16.mxu1 %v7342_v6  ;;  %v7277_v6 = vcombine.low %v20_v4, %v56_v5 }
  0x28   :  { %8046 = vmatpush3.bf16.msra.mxu0 %v9033_v46  ;;  %v9073_v46 = vld [vmem:[%s11898_s1 + $0x218] sm:$0xff]  }
  0x29   :  { %8074 = vmatpush3.bf16.msra.mxu1 %v9034_v47  ;;  %8047 = vmatprep.subr.bf16.mxu0 %v9035_v48  ;;  %v9074_v47 = vld [vmem:[%s11898_s1 + $0x298] sm:$0xff]   ;;  %v9075_v48 = vld [vmem:[%s11898_s1 + $0x260] sm:$0xff]  }
  0x2a   :  { %8075 = vmatprep.subr.bf16.mxu1 %v9036_v49  ;;  %v9076_v49 = vld [vmem:[%s11898_s1 + $0x2e0] sm:$0xff]  }
  0x2b   :  { %5535 = vmatmul.mubr.bf16.gmra.mrb[4].mxu0 %v7339_v2 }
  0x2c   :  { %8048 = vmatpush3.bf16.msra.mxu0 %v9037_v50  ;;  %5584 = vmatmul.mubr.bf16.gmra.mrb[4].mxu1 %v7341_v7  ;;  %v9077_v50 = vld [vmem:[%s11898_s1 + $0x220] sm:$0xff]   ;;  %v7278_v7 = vcombine.high %v20_v4, %v56_v5  ;;  %v9131_v4 = vld [vmem:[%s11898_s1 + $0x450] sm:$0xff]  }
  0x2d   :  { %8076 = vmatpush3.bf16.msra.mxu1 %v9038_v51  ;;  %8049 = vmatprep.subr.bf16.mxu0 %v9039_v52  ;;  %v9078_v51 = vld [vmem:[%s11898_s1 + $0x2a0] sm:$0xff]   ;;  %v9079_v52 = vld [vmem:[%s11898_s1 + $0x268] sm:$0xff]   ;;  %v9132_v5 = vld [vmem:[%s11898_s1 + $0x4d0] sm:$0xff]  }
  0x2e   :  { %8077 = vmatprep.subr.bf16.mxu1 %v9040_v53  ;;  %5624 = vmatprep.mubr.bf16.mxu0 %v7272_v21  ;;  %v9080_v53 = vld [vmem:[%s11898_s1 + $0x2e8] sm:$0xff]   ;;  %v9100_v21 = vld [vmem:[%s11898_s1 + $0x3d0] sm:$0xff]  }
  0x2f   :  { %5673 = vmatprep.mubr.bf16.mxu1 %v7274_v23  ;;  %v128_v23 = vld [vmem:[%s11899_s0 + $0x388] sm:$0xff] }
  0x30   :  { %8050 = vmatpush3.bf16.msra.mxu0 %v9041_v54  ;;  %v9081_v54 = vld [vmem:[%s11898_s1 + $0x228] sm:$0xff]  }
  0x31   :  { %8078 = vmatpush3.bf16.msra.mxu1 %v9042_v55  ;;  %8051 = vmatprep.subr.bf16.mxu0 %v9043_v56  ;;  %v9082_v55 = vld [vmem:[%s11898_s1 + $0x2a8] sm:$0xff]   ;;  %v9083_v56 = vld [vmem:[%s11898_s1 + $0x270] sm:$0xff]  }
  0x32   :  { %8079 = vmatprep.subr.bf16.mxu1 %v9044_v57  ;;  %v9084_v57 = vld [vmem:[%s11898_s1 + $0x2f0] sm:$0xff]  }
  0x34   :  { %8052 = vmatpush3.bf16.msra.mxu0 %v9045_v58  ;;  %v9085_v58 = vld [vmem:[%s11898_s1 + $0x230] sm:$0xff]  }
  0x35   :  { %8080 = vmatpush3.bf16.msra.mxu1 %v9046_v59  ;;  %8053 = vmatprep.subr.bf16.mxu0 %v9047_v60  ;;  %v9086_v59 = vld [vmem:[%s11898_s1 + $0x2b0] sm:$0xff]   ;;  %v9087_v60 = vld [vmem:[%s11898_s1 + $0x278] sm:$0xff]  }
  0x36   :  { %8081 = vmatprep.subr.bf16.mxu1 %v9048_v61  ;;  %v9088_v61 = vld [vmem:[%s11898_s1 + $0x2f8] sm:$0xff]  }
  0x38   :  { %8054 = vmatpush3.bf16.msra.mxu0 %v9049_v1  ;;  %v55_v1 = vld [vmem:[%s11899_s0 + $0x140] sm:$0xff] }
  0x39   :  { %8082 = vmatpush3.bf16.msra.mxu1 %v9050_v3  ;;  %8055 = vmatprep.subr.bf16.mxu0 %v9051_v8  ;;  %v7275_v2 = vcombine.low %v19_v0, %v55_v1  ;;  %v7276_v3 = vcombine.high %v19_v0, %v55_v1  ;;  %v9091_v8 = vld [vmem:[%s11898_s1 + $0x340] sm:$0xff]   ;;  %v93_v0 = vld [vmem:[%s11899_s0 + $0x270] sm:$0xff] }
  0x3a   :  { %8083 = vmatprep.subr.bf16.mxu1 %v9052_v9  ;;  %v9092_v9 = vld [vmem:[%s11898_s1 + $0x3c0] sm:$0xff]   ;;  %v129_v1 = vld [vmem:[%s11899_s0 + $0x390] sm:$0xff] }
  0x3c   :  { %8056 = vmatpush3.bf16.msra.mxu0 %v9053_v10  ;;  %v9093_v10 = vld [vmem:[%s11898_s1 + $0x300] sm:$0xff]  }
  0x3d   :  { %8084 = vmatpush3.bf16.msra.mxu1 %v9054_v11  ;;  %8057 = vmatprep.subr.bf16.mxu0 %v9055_v12  ;;  %v9094_v11 = vld [vmem:[%s11898_s1 + $0x380] sm:$0xff]   ;;  %v9095_v12 = vld [vmem:[%s11898_s1 + $0x348] sm:$0xff]  }
  0x3e   :  { %8085 = vmatprep.subr.bf16.mxu1 %v9056_v13  ;;  %v9096_v13 = vld [vmem:[%s11898_s1 + $0x3c8] sm:$0xff]  }
  0x40   :  { %8058 = vmatpush3.bf16.msra.mxu0 %v9057_v14  ;;  %v9097_v14 = vld [vmem:[%s11898_s1 + $0x308] sm:$0xff]  }
  0x41   :  { %8086 = vmatpush3.bf16.msra.mxu1 %v9058_v15  ;;  %8099 = vmatprep.subr.bf16.mxu0 %v9059_v24  ;;  %v9098_v15 = vld [vmem:[%s11898_s1 + $0x388] sm:$0xff]  }
  0x42   :  { %8127 = vmatprep.subr.bf16.mxu1 %v9060_v25  ;;  %v9101_v25 = vld [vmem:[%s11898_s1 + $0x310] sm:$0xff]  }
  0x43   :  { %5625 = vmatmul.mubr.bf16.vlgmr.msra.gmra.mrb[8].mxu0 %v7271_v20  ;;  %v9099_v20 = vld [vmem:[%s11898_s1 + $0x350] sm:$0xff]  }
  0x44   :  { %5674 = vmatmul.mubr.bf16.vlgmr.msra.gmra.mrb[8].mxu1 %v7273_v22  ;;  %8100 = vmatpush3.bf16.msra.mxu0 %v9061_v26  ;;  %v92_v22 = vld [vmem:[%s11899_s0 + $0x268] sm:$0xff] }
  0x45   :  { %8128 = vmatpush3.bf16.msra.mxu1 %v9062_v27  ;;  %8101 = vmatprep.subr.bf16.mxu0 %v9063_v28  ;;  %v7350_v24 = vcombine.high %v92_v22, %v128_v23  ;;  %v7349_v26 = vcombine.low %v92_v22, %v128_v23  ;;  %v9102_v27 = vld [vmem:[%s11898_s1 + $0x390] sm:$0xff]   ;;  %v9103_v28 = vld [vmem:[%s11898_s1 + $0x358] sm:$0xff]   ;;  %v9145_v22 = vld [vmem:[%s11898_s1 + $0x428] sm:$0xff]  }
  0x46   :  { %8129 = vmatprep.subr.bf16.mxu1 %v9064_v29  ;;  %5632 = vmatprep.mubr.bf16.mxu0 %v7344_v34  ;;  %v9104_v29 = vld [vmem:[%s11898_s1 + $0x3d8] sm:$0xff]   ;;  %v9109_v34 = vld [vmem:[%s11898_s1 + $0x320] sm:$0xff]   ;;  %v9146_v23 = vld [vmem:[%s11898_s1 + $0x4a8] sm:$0xff]  }
  0x47   :  { %5681 = vmatprep.mubr.bf16.mxu1 %v7346_v40  ;;  %v9115_v40 = vld [vmem:[%s11898_s1 + $0x370] sm:$0xff]  }
  0x48   :  { %8102 = vmatpush3.bf16.msra.mxu0 %v9065_v30  ;;  %v9105_v30 = vld [vmem:[%s11898_s1 + $0x318] sm:$0xff]  }
  0x49   :  { %8130 = vmatpush3.bf16.msra.mxu1 %v9066_v31  ;;  %8103 = vmatprep.subr.bf16.mxu0 %v9067_v36  ;;  %v9106_v31 = vld [vmem:[%s11898_s1 + $0x398] sm:$0xff]   ;;  %v9111_v36 = vld [vmem:[%s11898_s1 + $0x368] sm:$0xff]  }
  0x4a   :  { %8131 = vmatprep.subr.bf16.mxu1 %v9068_v37  ;;  %v9112_v37 = vld [vmem:[%s11898_s1 + $0x3e8] sm:$0xff]  }
  0x4b   :  { %5633 = vmatmul.mubr.bf16.gmra.mrb[12].mxu0 %v7343_v35  ;;  %v9110_v35 = vld [vmem:[%s11898_s1 + $0x3a0] sm:$0xff]  }
  0x4c   :  { %8104 = vmatpush3.bf16.msra.mxu0 %v9069_v41  ;;  %5682 = vmatmul.mubr.bf16.gmra.mrb[12].mxu1 %v7345_v42  ;;  %v9116_v41 = vld [vmem:[%s11898_s1 + $0x3f0] sm:$0xff]  }
  0x4d   :  { %8132 = vmatpush3.bf16.msra.mxu1 %v9070_v43  ;;  %8105 = vmatprep.subr.bf16.mxu0 %v9071_v44  ;;  %v9117_v42 = vld [vmem:[%s11898_s1 + $0x330] sm:$0xff]   ;;  %v9119_v44 = vld [vmem:[%s11898_s1 + $0x378] sm:$0xff]  }
  0x4e   :  { %8133 = vmatprep.subr.bf16.mxu1 %v9072_v45  ;;  %5722 = vmatprep.mubr.bf16.mxu0 %v7276_v3  ;;  %v9118_v43 = vld [vmem:[%s11898_s1 + $0x3b0] sm:$0xff]   ;;  %v9120_v45 = vld [vmem:[%s11898_s1 + $0x3f8] sm:$0xff]   ;;  %v7351_v3 = vcombine.low %v93_v0, %v129_v1 }
  0x4f   :  { %5771 = vmatprep.mubr.bf16.mxu1 %v7278_v7  ;;  %v130_v7 = vld [vmem:[%s11899_s0 + $0x398] sm:$0xff] }
  0x50   :  { %8106 = vmatpush3.bf16.msra.mxu0 %v9073_v46  ;;  %v9121_v46 = vld [vmem:[%s11898_s1 + $0x338] sm:$0xff]  }
  0x51   :  { %8134 = vmatpush3.bf16.msra.mxu1 %v9074_v47  ;;  %8107 = vmatprep.subr.bf16.mxu0 %v9075_v48  ;;  %v9122_v47 = vld [vmem:[%s11898_s1 + $0x3b8] sm:$0xff]   ;;  %v21_v48 = vld [vmem:[%s11899_s0 + $0x30] sm:$0xff] }
  0x52   :  { %8135 = vmatprep.subr.bf16.mxu1 %v9076_v49  ;;  %v57_v49 = vld [vmem:[%s11899_s0 + $0x150] sm:$0xff] }
  0x54   :  { %8108 = vmatpush3.bf16.msra.mxu0 %v9077_v50  ;;  %v22_v50 = vld [vmem:[%s11899_s0 + $0x38] sm:$0xff] }
  0x55   :  { %8136 = vmatpush3.bf16.msra.mxu1 %v9078_v51  ;;  %8109 = vmatprep.subr.bf16.mxu0 %v9079_v52  ;;  %v7279_v51 = vcombine.low %v21_v48, %v57_v49  ;;  %v7280_v52 = vcombine.high %v21_v48, %v57_v49  ;;  %v95_v48 = vld [vmem:[%s11899_s0 + $0x280] sm:$0xff] }
  0x56   :  { %8137 = vmatprep.subr.bf16.mxu1 %v9080_v53  ;;  %v58_v53 = vld [vmem:[%s11899_s0 + $0x158] sm:$0xff]  ;;  %v131_v49 = vld [vmem:[%s11899_s0 + $0x3a0] sm:$0xff] }
  0x58   :  { %8110 = vmatpush3.bf16.msra.mxu0 %v9081_v54  ;;  %v7281_v54 = vcombine.low %v22_v50, %v58_v53 }
  0x59   :  { %8138 = vmatpush3.bf16.msra.mxu1 %v9082_v55  ;;  %8111 = vmatprep.subr.bf16.mxu0 %v9083_v56  ;;  %v7282_v55 = vcombine.high %v22_v50, %v58_v53  ;;  %v9123_v56 = vld [vmem:[%s11898_s1 + $0x440] sm:$0xff]   ;;  %v7356_v50 = vcombine.high %v95_v48, %v131_v49  ;;  %v9164_v53 = vld [vmem:[%s11898_s1 + $0x5d0] sm:$0xff]  }
  0x5a   :  { %8139 = vmatprep.subr.bf16.mxu1 %v9084_v57  ;;  %v9124_v57 = vld [vmem:[%s11898_s1 + $0x4c0] sm:$0xff]  }
  0x5c   :  { %8112 = vmatpush3.bf16.msra.mxu0 %v9085_v58  ;;  %v9125_v58 = vld [vmem:[%s11898_s1 + $0x400] sm:$0xff]  }
  0x5d   :  { %8140 = vmatpush3.bf16.msra.mxu1 %v9086_v59  ;;  %8113 = vmatprep.subr.bf16.mxu0 %v9087_v60  ;;  %v9126_v59 = vld [vmem:[%s11898_s1 + $0x480] sm:$0xff]   ;;  %v9127_v60 = vld [vmem:[%s11898_s1 + $0x448] sm:$0xff]  }
  0x5e   :  { %8141 = vmatprep.subr.bf16.mxu1 %v9088_v61  ;;  %v9128_v61 = vld [vmem:[%s11898_s1 + $0x4c8] sm:$0xff]  }
  0x60   :  { %8114 = vmatpush3.bf16.msra.mxu0 %v9089_v62  ;;  %v9129_v62 = vld [vmem:[%s11898_s1 + $0x408] sm:$0xff]  }
  0x61   :  { %8142 = vmatpush3.bf16.msra.mxu1 %v9090_v63  ;;  %8155 = vmatprep.subr.bf16.mxu0 %v9091_v8  ;;  %v9130_v63 = vld [vmem:[%s11898_s1 + $0x488] sm:$0xff]  }
  0x62   :  { %8183 = vmatprep.subr.bf16.mxu1 %v9092_v9  ;;  %v9133_v9 = vld [vmem:[%s11898_s1 + $0x410] sm:$0xff]  }
  0x63   :  { %5723 = vmatmul.mubr.bf16.vlgmr.msra.gmra.mrb[16].mxu0 %v7275_v2  ;;  %v7352_v2 = vcombine.high %v93_v0, %v129_v1  ;;  %v9171_v0 = vld [vmem:[%s11898_s1 + $0x560] sm:$0xff]  }
  0x64   :  { %5772 = vmatmul.mubr.bf16.vlgmr.msra.gmra.mrb[16].mxu1 %v7277_v6  ;;  %8156 = vmatpush3.bf16.msra.mxu0 %v9093_v10  ;;  %v94_v6 = vld [vmem:[%s11899_s0 + $0x278] sm:$0xff]  ;;  %v9172_v1 = vld [vmem:[%s11898_s1 + $0x5e0] sm:$0xff]  }
  0x65   :  { %8184 = vmatpush3.bf16.msra.mxu1 %v9094_v11  ;;  %8157 = vmatprep.subr.bf16.mxu0 %v9095_v12  ;;  %v7354_v8 = vcombine.high %v94_v6, %v130_v7  ;;  %v7353_v10 = vcombine.low %v94_v6, %v130_v7  ;;  %v9134_v11 = vld [vmem:[%s11898_s1 + $0x490] sm:$0xff]   ;;  %v9135_v12 = vld [vmem:[%s11898_s1 + $0x458] sm:$0xff]   ;;  %v9177_v6 = vld [vmem:[%s11898_s1 + $0x528] sm:$0xff]  }
  0x66   :  { %8185 = vmatprep.subr.bf16.mxu1 %v9096_v13  ;;  %5730 = vmatprep.mubr.bf16.mxu0 %v7348_v18  ;;  %v9136_v13 = vld [vmem:[%s11898_s1 + $0x4d8] sm:$0xff]   ;;  %v9141_v18 = vld [vmem:[%s11898_s1 + $0x420] sm:$0xff]   ;;  %v9178_v7 = vld [vmem:[%s11898_s1 + $0x5a8] sm:$0xff]  }
  0x67   :  { %5779 = vmatprep.mubr.bf16.mxu1 %v7350_v24  ;;  %v9147_v24 = vld [vmem:[%s11898_s1 + $0x470] sm:$0xff]  }
  0x68   :  { %8158 = vmatpush3.bf16.msra.mxu0 %v9097_v14  ;;  %v9137_v14 = vld [vmem:[%s11898_s1 + $0x418] sm:$0xff]  }
  0x69   :  { %8186 = vmatpush3.bf16.msra.mxu1 %v9098_v15  ;;  %8159 = vmatprep.subr.bf16.mxu0 %v9099_v20  ;;  %v9138_v15 = vld [vmem:[%s11898_s1 + $0x498] sm:$0xff]   ;;  %v9143_v20 = vld [vmem:[%s11898_s1 + $0x468] sm:$0xff]  }
  0x6a   :  { %8187 = vmatprep.subr.bf16.mxu1 %v9100_v21  ;;  %v9144_v21 = vld [vmem:[%s11898_s1 + $0x4e8] sm:$0xff]  }
  0x6b   :  { %5731 = vmatmul.mubr.bf16.gmra.mrb[20].mxu0 %v7347_v19  ;;  %v9142_v19 = vld [vmem:[%s11898_s1 + $0x4a0] sm:$0xff]  }
  0x6c   :  { %8160 = vmatpush3.bf16.msra.mxu0 %v9101_v25  ;;  %5780 = vmatmul.mubr.bf16.gmra.mrb[20].mxu1 %v7349_v26  ;;  %v9148_v25 = vld [vmem:[%s11898_s1 + $0x4f0] sm:$0xff]  }
  0x6d   :  { %8188 = vmatpush3.bf16.msra.mxu1 %v9102_v27  ;;  %8161 = vmatprep.subr.bf16.mxu0 %v9103_v28  ;;  %v9149_v26 = vld [vmem:[%s11898_s1 + $0x430] sm:$0xff]   ;;  %v9151_v28 = vld [vmem:[%s11898_s1 + $0x478] sm:$0xff]  }
  0x6e   :  { %8189 = vmatprep.subr.bf16.mxu1 %v9104_v29  ;;  %5820 = vmatprep.mubr.bf16.mxu0 %v7280_v52  ;;  %v9150_v27 = vld [vmem:[%s11898_s1 + $0x4b0] sm:$0xff]   ;;  %v9152_v29 = vld [vmem:[%s11898_s1 + $0x4f8] sm:$0xff]  }
  0x6f   :  { %5869 = vmatprep.mubr.bf16.mxu1 %v7282_v55  ;;  %v9163_v52 = vld [vmem:[%s11898_s1 + $0x550] sm:$0xff]   ;;  %v132_v55 = vld [vmem:[%s11899_s0 + $0x3a8] sm:$0xff] }
  0x70   :  { %8162 = vmatpush3.bf16.msra.mxu0 %v9105_v30  ;;  %v9153_v30 = vld [vmem:[%s11898_s1 + $0x438] sm:$0xff]  }
  0x71   :  { %8190 = vmatpush3.bf16.msra.mxu1 %v9106_v31  ;;  %8163 = vmatprep.subr.bf16.mxu0 %v9107_v32  ;;  %v9154_v31 = vld [vmem:[%s11898_s1 + $0x4b8] sm:$0xff]   ;;  %v23_v32 = vld [vmem:[%s11899_s0 + $0x40] sm:$0xff] }
  0x72   :  { %8191 = vmatprep.subr.bf16.mxu1 %v9108_v33  ;;  %v59_v33 = vld [vmem:[%s11899_s0 + $0x160] sm:$0xff] }
  0x74   :  { %8164 = vmatpush3.bf16.msra.mxu0 %v9109_v34  ;;  %v24_v34 = vld [vmem:[%s11899_s0 + $0x48] sm:$0xff] }
  0x75   :  { %8192 = vmatpush3.bf16.msra.mxu1 %v9110_v35  ;;  %8165 = vmatprep.subr.bf16.mxu0 %v9111_v36  ;;  %v60_v35 = vld [vmem:[%s11899_s0 + $0x168] sm:$0xff]  ;;  %v7283_v36 = vcombine.low %v23_v32, %v59_v33 }
  0x76   :  { %8193 = vmatprep.subr.bf16.mxu1 %v9112_v37  ;;  %v7284_v37 = vcombine.high %v23_v32, %v59_v33  ;;  %v97_v32 = vld [vmem:[%s11899_s0 + $0x290] sm:$0xff] }
  0x77   :  { %v133_v33 = vld [vmem:[%s11899_s0 + $0x3b0] sm:$0xff] }
  0x78   :  { %8166 = vmatpush3.bf16.msra.mxu0 %v9113_v38  ;;  %v7285_v38 = vcombine.low %v24_v34, %v60_v35 }
  0x79   :  { %8194 = vmatpush3.bf16.msra.mxu1 %v9114_v39  ;;  %8167 = vmatprep.subr.bf16.mxu0 %v9115_v40  ;;  %v7286_v39 = vcombine.high %v24_v34, %v60_v35  ;;  %v9155_v40 = vld [vmem:[%s11898_s1 + $0x540] sm:$0xff]   ;;  %v7360_v34 = vcombine.high %v97_v32, %v133_v33  ;;  %v7359_v35 = vcombine.low %v97_v32, %v133_v33 }
  0x7a   :  { %8195 = vmatprep.subr.bf16.mxu1 %v9116_v41  ;;  %v9156_v41 = vld [vmem:[%s11898_s1 + $0x5c0] sm:$0xff]  }
  0x7c   :  { %8168 = vmatpush3.bf16.msra.mxu0 %v9117_v42  ;;  %v9157_v42 = vld [vmem:[%s11898_s1 + $0x500] sm:$0xff]  }
  0x7d   :  { %8196 = vmatpush3.bf16.msra.mxu1 %v9118_v43  ;;  %8169 = vmatprep.subr.bf16.mxu0 %v9119_v44  ;;  %v9158_v43 = vld [vmem:[%s11898_s1 + $0x580] sm:$0xff]   ;;  %v9159_v44 = vld [vmem:[%s11898_s1 + $0x548] sm:$0xff]  }
  0x7e   :  { %8197 = vmatprep.subr.bf16.mxu1 %v9120_v45  ;;  %v9160_v45 = vld [vmem:[%s11898_s1 + $0x5c8] sm:$0xff]  }
  0x80   :  { %8170 = vmatpush3.bf16.msra.mxu0 %v9121_v46  ;;  %v9161_v46 = vld [vmem:[%s11898_s1 + $0x508] sm:$0xff]  }
  0x81   :  { %8198 = vmatpush3.bf16.msra.mxu1 %v9122_v47  ;;  %8211 = vmatprep.subr.bf16.mxu0 %v9123_v56  ;;  %v9162_v47 = vld [vmem:[%s11898_s1 + $0x588] sm:$0xff]  }
  0x82   :  { %8239 = vmatprep.subr.bf16.mxu1 %v9124_v57  ;;  %v9165_v57 = vld [vmem:[%s11898_s1 + $0x510] sm:$0xff]  }
  0x83   :  { %5821 = vmatmul.mubr.bf16.vlgmr.msra.gmra.mrb[24].mxu0 %v7279_v51  ;;  %v7355_v51 = vcombine.low %v95_v48, %v131_v49  ;;  %v9203_v48 = vld [vmem:[%s11898_s1 + $0x660] sm:$0xff]  }
  0x84   :  { %5870 = vmatmul.mubr.bf16.vlgmr.msra.gmra.mrb[24].mxu1 %v7281_v54  ;;  %8212 = vmatpush3.bf16.msra.mxu0 %v9125_v58  ;;  %v96_v54 = vld [vmem:[%s11899_s0 + $0x288] sm:$0xff]  ;;  %v9204_v49 = vld [vmem:[%s11898_s1 + $0x6e0] sm:$0xff]  }
  0x85   :  { %8240 = vmatpush3.bf16.msra.mxu1 %v9126_v59  ;;  %8213 = vmatprep.subr.bf16.mxu0 %v9127_v60  ;;  %v7358_v56 = vcombine.high %v96_v54, %v132_v55  ;;  %v7357_v58 = vcombine.low %v96_v54, %v132_v55  ;;  %v9166_v59 = vld [vmem:[%s11898_s1 + $0x590] sm:$0xff]   ;;  %v9167_v60 = vld [vmem:[%s11898_s1 + $0x558] sm:$0xff]   ;;  %v9209_v54 = vld [vmem:[%s11898_s1 + $0x628] sm:$0xff]  }
  0x86   :  { %8241 = vmatprep.subr.bf16.mxu1 %v9128_v61  ;;  %5828 = vmatprep.mubr.bf16.mxu0 %v7352_v2  ;;  %v9168_v61 = vld [vmem:[%s11898_s1 + $0x5d8] sm:$0xff]   ;;  %v9173_v2 = vld [vmem:[%s11898_s1 + $0x520] sm:$0xff]   ;;  %v9210_v55 = vld [vmem:[%s11898_s1 + $0x6a8] sm:$0xff]  }
  0x87   :  { %5877 = vmatprep.mubr.bf16.mxu1 %v7354_v8  ;;  %v9179_v8 = vld [vmem:[%s11898_s1 + $0x570] sm:$0xff]  }
  0x88   :  { %8214 = vmatpush3.bf16.msra.mxu0 %v9129_v62  ;;  %v9169_v62 = vld [vmem:[%s11898_s1 + $0x518] sm:$0xff]  }
  0x89   :  { %8242 = vmatpush3.bf16.msra.mxu1 %v9130_v63  ;;  %8215 = vmatprep.subr.bf16.mxu0 %v9131_v4  ;;  %v9170_v63 = vld [vmem:[%s11898_s1 + $0x598] sm:$0xff]   ;;  %v9175_v4 = vld [vmem:[%s11898_s1 + $0x568] sm:$0xff]  }
  0x8a   :  { %8243 = vmatprep.subr.bf16.mxu1 %v9132_v5  ;;  %v9176_v5 = vld [vmem:[%s11898_s1 + $0x5e8] sm:$0xff]  }
  0x8b   :  { %5829 = vmatmul.mubr.bf16.gmra.mrb[28].mxu0 %v7351_v3  ;;  %v9174_v3 = vld [vmem:[%s11898_s1 + $0x5a0] sm:$0xff]  }
  0x8c   :  { %8216 = vmatpush3.bf16.msra.mxu0 %v9133_v9  ;;  %5878 = vmatmul.mubr.bf16.gmra.mrb[28].mxu1 %v7353_v10  ;;  %v9180_v9 = vld [vmem:[%s11898_s1 + $0x5f0] sm:$0xff]  }
  0x8d   :  { %8244 = vmatpush3.bf16.msra.mxu1 %v9134_v11  ;;  %8217 = vmatprep.subr.bf16.mxu0 %v9135_v12  ;;  %v9181_v10 = vld [vmem:[%s11898_s1 + $0x530] sm:$0xff]   ;;  %v9183_v12 = vld [vmem:[%s11898_s1 + $0x578] sm:$0xff]  }
  0x8e   :  { %8245 = vmatprep.subr.bf16.mxu1 %v9136_v13  ;;  %5918 = vmatprep.mubr.bf16.mxu0 %v7284_v37  ;;  %v9182_v11 = vld [vmem:[%s11898_s1 + $0x5b0] sm:$0xff]   ;;  %v9184_v13 = vld [vmem:[%s11898_s1 + $0x5f8] sm:$0xff]  }
  0x8f   :  { %5967 = vmatprep.mubr.bf16.mxu1 %v7286_v39  ;;  %v9196_v37 = vld [vmem:[%s11898_s1 + $0x6d0] sm:$0xff]   ;;  %v134_v39 = vld [vmem:[%s11899_s0 + $0x3b8] sm:$0xff] }
  0x90   :  { %8218 = vmatpush3.bf16.msra.mxu0 %v9137_v14  ;;  %v9185_v14 = vld [vmem:[%s11898_s1 + $0x538] sm:$0xff]  }
  0x91   :  { %8246 = vmatpush3.bf16.msra.mxu1 %v9138_v15  ;;  %8219 = vmatprep.subr.bf16.mxu0 %v9139_v16  ;;  %v9186_v15 = vld [vmem:[%s11898_s1 + $0x5b8] sm:$0xff]   ;;  %v25_v16 = vld [vmem:[%s11899_s0 + $0x50] sm:$0xff] }
  0x92   :  { %8247 = vmatprep.subr.bf16.mxu1 %v9140_v17  ;;  %v61_v17 = vld [vmem:[%s11899_s0 + $0x170] sm:$0xff] }
  0x94   :  { %8220 = vmatpush3.bf16.msra.mxu0 %v9141_v18  ;;  %v7287_v18 = vcombine.low %v25_v16, %v61_v17 }
  0x95   :  { %8248 = vmatpush3.bf16.msra.mxu1 %v9142_v19  ;;  %8221 = vmatprep.subr.bf16.mxu0 %v9143_v20  ;;  %v7288_v19 = vcombine.high %v25_v16, %v61_v17  ;;  %v26_v20 = vld [vmem:[%s11899_s0 + $0x58] sm:$0xff]  ;;  %v9226_v17 = vld [vmem:[%s11898_s1 + $0x788] sm:$0xff]  }
  0x96   :  { %8249 = vmatprep.subr.bf16.mxu1 %v9144_v21  ;;  %v62_v21 = vld [vmem:[%s11899_s0 + $0x178] sm:$0xff] }
  0x98   :  { %8222 = vmatpush3.bf16.msra.mxu0 %v9145_v22  ;;  %v7289_v22 = vcombine.low %v26_v20, %v62_v21 }
  0x99   :  { %8250 = vmatpush3.bf16.msra.mxu1 %v9146_v23  ;;  %8223 = vmatprep.subr.bf16.mxu0 %v9147_v24  ;;  %v7290_v23 = vcombine.high %v26_v20, %v62_v21  ;;  %v9187_v24 = vld [vmem:[%s11898_s1 + $0x640] sm:$0xff]  }
  0x9a   :  { %8251 = vmatprep.subr.bf16.mxu1 %v9148_v25  ;;  %v9188_v25 = vld [vmem:[%s11898_s1 + $0x6c0] sm:$0xff]  }
  0x9c   :  { %8224 = vmatpush3.bf16.msra.mxu0 %v9149_v26  ;;  %v9189_v26 = vld [vmem:[%s11898_s1 + $0x600] sm:$0xff]  }
  0x9d   :  { %8252 = vmatpush3.bf16.msra.mxu1 %v9150_v27  ;;  %8225 = vmatprep.subr.bf16.mxu0 %v9151_v28  ;;  %v9190_v27 = vld [vmem:[%s11898_s1 + $0x680] sm:$0xff]   ;;  %v9191_v28 = vld [vmem:[%s11898_s1 + $0x648] sm:$0xff]  }
  0x9e   :  { %8253 = vmatprep.subr.bf16.mxu1 %v9152_v29  ;;  %v9192_v29 = vld [vmem:[%s11898_s1 + $0x6c8] sm:$0xff]  }
  0xa0   :  { %8226 = vmatpush3.bf16.msra.mxu0 %v9153_v30  ;;  %v9193_v30 = vld [vmem:[%s11898_s1 + $0x608] sm:$0xff]  }
  0xa1   :  { %8254 = vmatpush3.bf16.msra.mxu1 %v9154_v31  ;;  %8267 = vmatprep.subr.bf16.mxu0 %v9155_v40  ;;  %v9194_v31 = vld [vmem:[%s11898_s1 + $0x688] sm:$0xff]  }
  0xa2   :  { %8295 = vmatprep.subr.bf16.mxu1 %v9156_v41  ;;  %v9197_v41 = vld [vmem:[%s11898_s1 + $0x610] sm:$0xff]  }
  0xa3   :  { %5919 = vmatmul.mubr.bf16.vlgmr.msra.gmra.mrb[32].mxu0 %v7283_v36  ;;  %v9195_v36 = vld [vmem:[%s11898_s1 + $0x650] sm:$0xff]  }
  0xa4   :  { %5968 = vmatmul.mubr.bf16.vlgmr.msra.gmra.mrb[32].mxu1 %v7285_v38  ;;  %8268 = vmatpush3.bf16.msra.mxu0 %v9157_v42  ;;  %v98_v38 = vld [vmem:[%s11899_s0 + $0x298] sm:$0xff] }
  0xa5   :  { %8296 = vmatpush3.bf16.msra.mxu1 %v9158_v43  ;;  %8269 = vmatprep.subr.bf16.mxu0 %v9159_v44  ;;  %v7362_v40 = vcombine.high %v98_v38, %v134_v39  ;;  %v7361_v42 = vcombine.low %v98_v38, %v134_v39  ;;  %v9198_v43 = vld [vmem:[%s11898_s1 + $0x690] sm:$0xff]   ;;  %v9199_v44 = vld [vmem:[%s11898_s1 + $0x658] sm:$0xff]  }
  0xa6   :  { %8297 = vmatprep.subr.bf16.mxu1 %v9160_v45  ;;  %5926 = vmatprep.mubr.bf16.mxu0 %v7356_v50  ;;  %v9200_v45 = vld [vmem:[%s11898_s1 + $0x6d8] sm:$0xff]   ;;  %v9205_v50 = vld [vmem:[%s11898_s1 + $0x620] sm:$0xff]   ;;  %v9230_v38 = vld [vmem:[%s11898_s1 + $0x790] sm:$0xff]  }
  0xa7   :  { %5975 = vmatprep.mubr.bf16.mxu1 %v7358_v56  ;;  %v9211_v56 = vld [vmem:[%s11898_s1 + $0x670] sm:$0xff]  }
  0xa8   :  { %8270 = vmatpush3.bf16.msra.mxu0 %v9161_v46  ;;  %v9201_v46 = vld [vmem:[%s11898_s1 + $0x618] sm:$0xff]  }
  0xa9   :  { %8298 = vmatpush3.bf16.msra.mxu1 %v9162_v47  ;;  %8271 = vmatprep.subr.bf16.mxu0 %v9163_v52  ;;  %v9202_v47 = vld [vmem:[%s11898_s1 + $0x698] sm:$0xff]   ;;  %v9207_v52 = vld [vmem:[%s11898_s1 + $0x668] sm:$0xff]  }
  0xaa   :  { %8299 = vmatprep.subr.bf16.mxu1 %v9164_v53  ;;  %v9208_v53 = vld [vmem:[%s11898_s1 + $0x6e8] sm:$0xff]  }
  0xab   :  { %5927 = vmatmul.mubr.bf16.gmra.mrb[36].mxu0 %v7355_v51  ;;  %v9206_v51 = vld [vmem:[%s11898_s1 + $0x6a0] sm:$0xff]  }
  0xac   :  { %8272 = vmatpush3.bf16.msra.mxu0 %v9165_v57  ;;  %5976 = vmatmul.mubr.bf16.gmra.mrb[36].mxu1 %v7357_v58  ;;  %v9212_v57 = vld [vmem:[%s11898_s1 + $0x6f0] sm:$0xff]  }
  0xad   :  { %8300 = vmatpush3.bf16.msra.mxu1 %v9166_v59  ;;  %8273 = vmatprep.subr.bf16.mxu0 %v9167_v60  ;;  %v9213_v58 = vld [vmem:[%s11898_s1 + $0x630] sm:$0xff]   ;;  %v9215_v60 = vld [vmem:[%s11898_s1 + $0x678] sm:$0xff]  }
  0xae   :  { %8301 = vmatprep.subr.bf16.mxu1 %v9168_v61  ;;  %6016 = vmatprep.mubr.bf16.mxu0 %v7288_v19  ;;  %v9214_v59 = vld [vmem:[%s11898_s1 + $0x6b0] sm:$0xff]   ;;  %v9216_v61 = vld [vmem:[%s11898_s1 + $0x6f8] sm:$0xff]   ;;  %v135_v19 = vld [vmem:[%s11899_s0 + $0x3c0] sm:$0xff] }
  0xaf   :  { %6065 = vmatprep.mubr.bf16.mxu1 %v7290_v23 }
  0xb0   :  { %8274 = vmatpush3.bf16.msra.mxu0 %v9169_v62  ;;  %v9217_v62 = vld [vmem:[%s11898_s1 + $0x638] sm:$0xff]  }
  0xb1   :  { %8302 = vmatpush3.bf16.msra.mxu1 %v9170_v63  ;;  %8275 = vmatprep.subr.bf16.mxu0 %v9171_v0  ;;  %v9218_v63 = vld [vmem:[%s11898_s1 + $0x6b8] sm:$0xff]   ;;  %v27_v0 = vld [vmem:[%s11899_s0 + $0x60] sm:$0xff] }
  0xb2   :  { %8303 = vmatprep.subr.bf16.mxu1 %v9172_v1  ;;  %v63_v1 = vld [vmem:[%s11899_s0 + $0x180] sm:$0xff] }
  0xb4   :  { %8276 = vmatpush3.bf16.msra.mxu0 %v9173_v2  ;;  %v28_v2 = vld [vmem:[%s11899_s0 + $0x68] sm:$0xff] }
  0xb5   :  { %8304 = vmatpush3.bf16.msra.mxu1 %v9174_v3  ;;  %8277 = vmatprep.subr.bf16.mxu0 %v9175_v4  ;;  %v7291_v3 = vcombine.low %v27_v0, %v63_v1  ;;  %v7292_v4 = vcombine.high %v27_v0, %v63_v1  ;;  %v9248_v0 = vld [vmem:[%s11898_s1 + $0x7f8] sm:$0xff]  }
  0xb6   :  { %8305 = vmatprep.subr.bf16.mxu1 %v9176_v5  ;;  %v64_v5 = vld [vmem:[%s11899_s0 + $0x188] sm:$0xff] }
  0xb8   :  { %8278 = vmatpush3.bf16.msra.mxu0 %v9177_v6  ;;  %v7293_v6 = vcombine.low %v28_v2, %v64_v5 }
  0xb9   :  { %8306 = vmatpush3.bf16.msra.mxu1 %v9178_v7  ;;  %8279 = vmatprep.subr.bf16.mxu0 %v9179_v8  ;;  %v7294_v7 = vcombine.high %v28_v2, %v64_v5  ;;  %v9219_v8 = vld [vmem:[%s11898_s1 + $0x740] sm:$0xff]   ;;  %v9250_v5 = vld [vmem:[%s11898_s1 + $0x7b8] sm:$0xff]  }
  0xba   :  { %8307 = vmatprep.subr.bf16.mxu1 %v9180_v9  ;;  %v9220_v9 = vld [vmem:[%s11898_s1 + $0x7c0] sm:$0xff]  }
  0xbc   :  { %8280 = vmatpush3.bf16.msra.mxu0 %v9181_v10  ;;  %v9221_v10 = vld [vmem:[%s11898_s1 + $0x700] sm:$0xff]  }
  0xbd   :  { %8308 = vmatpush3.bf16.msra.mxu1 %v9182_v11  ;;  %8281 = vmatprep.subr.bf16.mxu0 %v9183_v12  ;;  %v9222_v11 = vld [vmem:[%s11898_s1 + $0x780] sm:$0xff]   ;;  %v9223_v12 = vld [vmem:[%s11898_s1 + $0x748] sm:$0xff]  }
  0xbe   :  { %8309 = vmatprep.subr.bf16.mxu1 %v9184_v13  ;;  %v9224_v13 = vld [vmem:[%s11898_s1 + $0x7c8] sm:$0xff]  }
  0xc0   :  { %8282 = vmatpush3.bf16.msra.mxu0 %v9185_v14 }
  0xc1   :  { %8310 = vmatpush3.bf16.msra.mxu1 %v9186_v15  ;;  %8323 = vmatprep.subr.bf16.mxu0 %v9187_v24  ;;  %v9225_v15 = vld [vmem:[%s11898_s1 + $0x708] sm:$0xff]   ;;  %v9227_v24 = vld [vmem:[%s11898_s1 + $0x750] sm:$0xff]  }
  0xc2   :  { %8351 = vmatprep.subr.bf16.mxu1 %v9188_v25 }
  0xc3   :  { %6017 = vmatmul.mubr.bf16.vlgmr.msra.gmra.mrb[40].mxu0 %v7287_v18  ;;  %v99_v18 = vld [vmem:[%s11899_s0 + $0x2a0] sm:$0xff] }
  0xc4   :  { %6066 = vmatmul.mubr.bf16.vlgmr.msra.gmra.mrb[40].mxu1 %v7289_v22  ;;  %8324 = vmatpush3.bf16.msra.mxu0 %v9189_v26  ;;  %v7364_v22 = vcombine.high %v99_v18, %v135_v19  ;;  %v7363_v23 = vcombine.low %v99_v18, %v135_v19 }
  0xc5   :  { %8352 = vmatpush3.bf16.msra.mxu1 %v9190_v27  ;;  %8325 = vmatprep.subr.bf16.mxu0 %v9191_v28  ;;  %v9228_v28 = vld [vmem:[%s11898_s1 + $0x7d0] sm:$0xff]  }
  0xc6   :  { %8353 = vmatprep.subr.bf16.mxu1 %v9192_v29  ;;  %6024 = vmatprep.mubr.bf16.mxu0 %v7360_v34 }
  0xc7   :  { %6073 = vmatprep.mubr.bf16.mxu1 %v7362_v40  ;;  %v9231_v40 = vld [vmem:[%s11898_s1 + $0x758] sm:$0xff]  }
  0xc8   :  { %8326 = vmatpush3.bf16.msra.mxu0 %v9193_v30  ;;  %v100_v30 = vld [vmem:[%s11899_s0 + $0x2a8] sm:$0xff] }
  0xc9   :  { %8354 = vmatpush3.bf16.msra.mxu1 %v9194_v31  ;;  %8327 = vmatprep.subr.bf16.mxu0 %v9195_v36  ;;  %v136_v31 = vld [vmem:[%s11899_s0 + $0x3c8] sm:$0xff] }
  0xca   :  { %8355 = vmatprep.subr.bf16.mxu1 %v9196_v37  ;;  %v7366_v34 = vcombine.high %v100_v30, %v136_v31  ;;  %v7365_v36 = vcombine.low %v100_v30, %v136_v31  ;;  %v9256_v30 = vld [vmem:[%s11898_s1 + $0x8c8] sm:$0xff]  }
  0xcb   :  { %6025 = vmatmul.mubr.bf16.gmra.mrb[44].mxu0 %v7359_v35  ;;  %v9229_v35 = vld [vmem:[%s11898_s1 + $0x710] sm:$0xff]  }
  0xcc   :  { %8328 = vmatpush3.bf16.msra.mxu0 %v9197_v41  ;;  %6074 = vmatmul.mubr.bf16.gmra.mrb[44].mxu1 %v7361_v42  ;;  %v9232_v41 = vld [vmem:[%s11898_s1 + $0x7d8] sm:$0xff]  }
  0xcd   :  { %8356 = vmatpush3.bf16.msra.mxu1 %v9198_v43  ;;  %8329 = vmatprep.subr.bf16.mxu0 %v9199_v44  ;;  %v9233_v42 = vld [vmem:[%s11898_s1 + $0x718] sm:$0xff]   ;;  %v9235_v44 = vld [vmem:[%s11898_s1 + $0x760] sm:$0xff]  }
  0xce   :  { %8357 = vmatprep.subr.bf16.mxu1 %v9200_v45  ;;  %6114 = vmatprep.mubr.bf16.mxu0 %v7292_v4  ;;  %v9234_v43 = vld [vmem:[%s11898_s1 + $0x798] sm:$0xff]   ;;  %v9236_v45 = vld [vmem:[%s11898_s1 + $0x7e0] sm:$0xff]  }
  0xcf   :  { %6163 = vmatprep.mubr.bf16.mxu1 %v7294_v7 }
  0xd0   :  { %8330 = vmatpush3.bf16.msra.mxu0 %v9201_v46  ;;  %v9237_v46 = vld [vmem:[%s11898_s1 + $0x720] sm:$0xff]  }
  0xd1   :  { %8358 = vmatpush3.bf16.msra.mxu1 %v9202_v47  ;;  %8331 = vmatprep.subr.bf16.mxu0 %v9203_v48  ;;  %v9238_v47 = vld [vmem:[%s11898_s1 + $0x7a0] sm:$0xff]  }
  0xd2   :  { %8359 = vmatprep.subr.bf16.mxu1 %v9204_v49  ;;  %v7266_v48 = vld [vmem:[%s11900_s2] ss:$0 sm:$0xff] }
  0xd4   :  { %8332 = vmatpush3.bf16.msra.mxu0 %v9205_v50  ;;  %v9239_v50 = vld [vmem:[%s11898_s1 + $0x768] sm:$0xff]  }
  0xd5   :  { %8360 = vmatpush3.bf16.msra.mxu1 %v9206_v51  ;;  %8333 = vmatprep.subr.bf16.mxu0 %v9207_v52  ;;  %v9240_v52 = vld [vmem:[%s11898_s1 + $0x7e8] sm:$0xff]  }
  0xd6   :  { %8361 = vmatprep.subr.bf16.mxu1 %v9208_v53 }
  0xd8   :  { %8334 = vmatpush3.bf16.msra.mxu0 %v9209_v54  ;;  %v9241_v54 = vld [vmem:[%s11898_s1 + $0x728] sm:$0xff]  }
  0xd9   :  { %8362 = vmatpush3.bf16.msra.mxu1 %v9210_v55  ;;  %8335 = vmatprep.subr.bf16.mxu0 %v9211_v56  ;;  %v9242_v56 = vld [vmem:[%s11898_s1 + $0x7a8] sm:$0xff]  }
  0xda   :  { %8363 = vmatprep.subr.bf16.mxu1 %v9212_v57  ;;  %v9243_v57 = vld [vmem:[%s11898_s1 + $0x770] sm:$0xff]  }
  0xdc   :  { %8336 = vmatpush3.bf16.msra.mxu0 %v9213_v58  ;;  %v9244_v58 = vld [vmem:[%s11898_s1 + $0x7f0] sm:$0xff]  }
  0xdd   :  { %8364 = vmatpush3.bf16.msra.mxu1 %v9214_v59  ;;  %8337 = vmatprep.subr.bf16.mxu0 %v9215_v60  ;;  %v9245_v59 = vld [vmem:[%s11898_s1 + $0x730] sm:$0xff]  }
  0xde   :  { %8365 = vmatprep.subr.bf16.mxu1 %v9216_v61  ;;  %v9246_v60 = vld [vmem:[%s11898_s1 + $0x7b0] sm:$0xff]  }
  0xe0   :  { %8338 = vmatpush3.bf16.msra.mxu0 %v9217_v62  ;;  %v9247_v62 = vld [vmem:[%s11898_s1 + $0x778] sm:$0xff]  }
  0xe1   :  { %8366 = vmatpush3.bf16.msra.mxu1 %v9218_v63  ;;  %8379 = vmatprep.subr.bf16.mxu0 %v9219_v8  ;;  %v29_v8 = vld [vmem:[%s11899_s0 + $0x70] sm:$0xff] }
  0xe2   :  { %8407 = vmatprep.subr.bf16.mxu1 %v9220_v9  ;;  %v65_v9 = vld [vmem:[%s11899_s0 + $0x190] sm:$0xff] }
  0xe3   :  { %6115 = vmatmul.mubr.bf16.vlgmr.msra.gmra.mrb[48].mxu0 %v7291_v3  ;;  %v9249_v3 = vld [vmem:[%s11898_s1 + $0x738] sm:$0xff]  }
  0xe4   :  { %6164 = vmatmul.mubr.bf16.vlgmr.msra.gmra.mrb[48].mxu1 %v7293_v6  ;;  %8380 = vmatpush3.bf16.msra.mxu0 %v9221_v10  ;;  %v30_v10 = vld [vmem:[%s11899_s0 + $0x78] sm:$0xff] }
  0xe5   :  { %8408 = vmatpush3.bf16.msra.mxu1 %v9222_v11  ;;  %8381 = vmatprep.subr.bf16.mxu0 %v9223_v12 }
  0xe6   :  { %8409 = vmatprep.subr.bf16.mxu1 %v9224_v13  ;;  %6122 = vmatprep.mubr.bf16.mxu0 %v7364_v22  ;;  %v7295_v13 = vcombine.low %v29_v8, %v65_v9 }
  0xe7   :  { %6171 = vmatprep.mubr.bf16.mxu1 %v7366_v34  ;;  %v9258_v34 = vld [vmem:[%s11898_s1 + $0x888] sm:$0xff]  }
  0xe8   :  { %8382 = vmatpush3.bf16.msra.mxu0 %v9225_v15  ;;  %v66_v15 = vld [vmem:[%s11899_s0 + $0x198] sm:$0xff] }
  0xe9   :  { %8410 = vmatpush3.bf16.msra.mxu1 %v9226_v17  ;;  %8383 = vmatprep.subr.bf16.mxu0 %v9227_v24  ;;  %v7297_v18 = vcombine.low %v30_v10, %v66_v15  ;;  %v7298_v19 = vcombine.high %v30_v10, %v66_v15 }
  0xea   :  { %8411 = vmatprep.subr.bf16.mxu1 %v9228_v28 }
  0xeb   :  { %6123 = vmatmul.mubr.bf16.gmra.mrb[52].mxu0 %v7363_v23  ;;  %v9252_v23 = vld [vmem:[%s11898_s1 + $0x8c0] sm:$0xff]  }
  0xec   :  { %8384 = vmatpush3.bf16.msra.mxu0 %v9229_v35  ;;  %6172 = vmatmul.mubr.bf16.gmra.mrb[52].mxu1 %v7365_v36  ;;  %v101_v35 = vld [vmem:[%s11899_s0 + $0x2b0] sm:$0xff] }
  0xed   :  { %8412 = vmatpush3.bf16.msra.mxu1 %v9230_v38  ;;  %8385 = vmatprep.subr.bf16.mxu0 %v9231_v40  ;;  %v137_v36 = vld [vmem:[%s11899_s0 + $0x3d0] sm:$0xff] }
  0xee   :  { %8413 = vmatprep.subr.bf16.mxu1 %v9232_v41  ;;  %6261 = vmatprep.mubr.bf16.mxu1 %v7298_v19  ;;  %v7367_v40 = vcombine.low %v101_v35, %v137_v36  ;;  %v9259_v41 = vld [vmem:[%s11898_s1 + $0x850] sm:$0xff]   ;;  %v9272_v19 = vld [vmem:[%s11898_s1 + $0x8e8] sm:$0xff]  }
  0xf0   :  { %8386 = vmatpush3.bf16.msra.mxu0 %v9233_v42 }
  0xf1   :  { %8414 = vmatpush3.bf16.msra.mxu1 %v9234_v43  ;;  %8387 = vmatprep.subr.bf16.mxu0 %v9235_v44 }
  0xf2   :  { %8415 = vmatprep.subr.bf16.mxu1 %v9236_v45  ;;  %v9260_v45 = vld [vmem:[%s11898_s1 + $0x8d0] sm:$0xff]  }
  0xf4   :  { %8388 = vmatpush3.bf16.msra.mxu0 %v9237_v46 }
  0xf5   :  { %8416 = vmatpush3.bf16.msra.mxu1 %v9238_v47  ;;  %8389 = vmatprep.subr.bf16.mxu0 %v9239_v50  ;;  %v102_v47 = vld [vmem:[%s11899_s0 + $0x2b8] sm:$0xff] }
  0xf6   :  { %v8003_v14 = vpop.f32.mrb[0].mxu0  ;;  %8417 = vmatprep.subr.bf16.mxu1 %v9240_v52 }
  0xf7   :  { %v8031_v16 = vpop.f32.mrb[0].mxu1  ;;  %v8004_v20 = vpop.f32.mrb[1].mxu0 }
  0xf8   :  { %v8032_v21 = vpop.f32.mrb[1].mxu1  ;;  %v8005_v25 = vadd.f32 %v8004_v20, %v8003_v14  ;;  %v8006_v27 = vpop.f32.mrb[2].mxu0  ;;  %8390 = vmatpush3.bf16.msra.mxu0 %v9241_v54  ;;  %v7296_v14 = vcombine.high %v29_v8, %v65_v9  ;;  %v9251_v20 = vld [vmem:[%s11898_s1 + $0x840] sm:$0xff]   ;;  %v9261_v54 = vld [vmem:[%s11898_s1 + $0x810] sm:$0xff]  }
  0xf9   :  { %v8033_v26 = vadd.f32 %v8032_v21, %v8031_v16  ;;  %v8034_v29 = vpop.f32.mrb[2].mxu1  ;;  %v8007_v32 = vpop.f32.mrb[3].mxu0  ;;  %8418 = vmatpush3.bf16.msra.mxu1 %v9242_v56  ;;  %8391 = vmatprep.subr.bf16.mxu0 %v9243_v57 }
  0xfa   :  { %v8035_v33 = vpop.f32.mrb[3].mxu1  ;;  %v8008_v37 = vadd.f32 %v8007_v32, %v8006_v27  ;;  %v5529_v49 = vadd.f32 %v8005_v25, %v7266_v48  ;;  %8419 = vmatprep.subr.bf16.mxu1 %v9244_v58  ;;  %6212 = vmatprep.mubr.bf16.mxu0 %v7296_v14  ;;  %v9254_v27 = vld [vmem:[%s11898_s1 + $0x880] sm:$0xff]   ;;  %v9257_v32 = vld [vmem:[%s11898_s1 + $0x808] sm:$0xff]   ;;  %v9262_v58 = vld [vmem:[%s11898_s1 + $0x890] sm:$0xff]  }
  0xfb   :  { %v8036_v39 = vadd.f32 %v8035_v33, %v8034_v29  ;;  %v9255_v29 = vld [vmem:[%s11898_s1 + $0x848] sm:$0xff]  }
  0xfc   :  { %v5532_v51 = vadd.f32 %v8008_v37, %v7266_v48  ;;  %v10500_v53 = vadd.f32 %v8033_v26, %v5529_v49  ;;  %8392 = vmatpush3.bf16.msra.mxu0 %v9245_v59  ;;  %v9253_v26 = vld [vmem:[%s11898_s1 + $0x800] sm:$0xff]  }
  0xfd   :  { %8420 = vmatpush3.bf16.msra.mxu1 %v9246_v60  ;;  %8393 = vmatprep.subr.bf16.mxu0 %v9247_v62  ;;  %v9264_v62 = vld [vmem:[%s11898_s1 + $0x8d8] sm:$0xff]  }
  0xfe   :  { %v10505_v55 = vadd.f32 %v8036_v39, %v5532_v51  ;;  %v8009_v61 = vpop.f32.mrb[4].mxu0  ;;  %8421 = vmatprep.subr.bf16.mxu1 %v9248_v0  ;;  %v7368_v39 = vcombine.high %v101_v35, %v137_v36  ;;  %v9265_v0 = vld [vmem:[%s11898_s1 + $0x818] sm:$0xff]   ;;  %v32_v35 = vld [vmem:[%s11899_s0 + $0x88] sm:$0xff] }
  0xff   :  { %v8010_v63 = vpop.f32.mrb[5].mxu0  ;;  %v8037_v4 = vpop.f32.mrb[4].mxu1  ;;  %v68_v36 = vld [vmem:[%s11899_s0 + $0x1a8] sm:$0xff] }
 0x100   :  { %v8011_v1 = vadd.f32 %v8010_v63, %v8009_v61  ;;  %v8012_v2 = vpop.f32.mrb[6].mxu0  ;;  %8394 = vmatpush3.bf16.msra.mxu0 %v9249_v3  ;;  %v8038_v12 = vpop.f32.mrb[5].mxu1 }
 0x101   :  { %v8013_v7 = vpop.f32.mrb[7].mxu0  ;;  %8422 = vmatpush3.bf16.msra.mxu1 %v9250_v5  ;;  %v8039_v16 = vadd.f32 %v8038_v12, %v8037_v4  ;;  %v8040_v17 = vpop.f32.mrb[6].mxu1  ;;  %8435 = vmatprep.subr.bf16.mxu0 %v9251_v20  ;;  %v9267_v5 = vld [vmem:[%s11898_s1 + $0x860] sm:$0xff]  }
 0x102   :  { %v5537_v6 = vadd.f32 %v8011_v1, %v7266_v48  ;;  %v8014_v11 = vadd.f32 %v8013_v7, %v8012_v2  ;;  %v8041_v22 = vpop.f32.mrb[7].mxu1  ;;  %8463 = vmatprep.subr.bf16.mxu1 %v9252_v23  ;;  %v9268_v7 = vld [vmem:[%s11898_s1 + $0x8e0] sm:$0xff]   ;;  %v9274_v23 = vld [vmem:[%s11898_s1 + $0x8a8] sm:$0xff]  }
 0x103   :  { %v8042_v25 = vadd.f32 %v8041_v22, %v8040_v17  ;;  %6213 = vmatmul.mubr.bf16.vlgmr.msra.gmra.mrb[56].mxu0 %v7295_v13  ;;  %v9270_v13 = vld [vmem:[%s11898_s1 + $0x8a0] sm:$0xff]   ;;  %v9271_v17 = vld [vmem:[%s11898_s1 + $0x868] sm:$0xff]  }
 0x104   :  { %v5540_v21 = vadd.f32 %v8014_v11, %v7266_v48  ;;  %v10552_v24 = vadd.f32 %v8039_v16, %v5537_v6  ;;  %6262 = vmatmul.mubr.bf16.vlgmr.msra.gmra.mrb[56].mxu1 %v7297_v18  ;;  %8436 = vmatpush3.bf16.msra.mxu0 %v9253_v26  ;;  %v138_v48 = vld [vmem:[%s11899_s0 + $0x3d8] sm:$0xff]  ;;  %v9269_v11 = vld [vmem:[%s11898_s1 + $0x820] sm:$0xff]   ;;  %v9273_v22 = vld [vmem:[%s11898_s1 + $0x828] sm:$0xff]  }
 0x105   :  { %8464 = vmatpush3.bf16.msra.mxu1 %v9254_v27  ;;  %8437 = vmatprep.subr.bf16.mxu0 %v9255_v29  ;;  %v7370_v52 = vcombine.high %v102_v47, %v138_v48  ;;  %v7369_v56 = vcombine.low %v102_v47, %v138_v48  ;;  %v9276_v26 = vld [vmem:[%s11898_s1 + $0x8f0] sm:$0xff]   ;;  %v9279_v29 = vld [vmem:[%s11898_s1 + $0x878] sm:$0xff]   ;;  %v9289_v48 = vld [vmem:[%s11898_s1 + $0x908] sm:$0xff]  }
 0x106   :  { %v10560_v28 = vadd.f32 %v8042_v25, %v5540_v21  ;;  %8465 = vmatprep.subr.bf16.mxu1 %v9256_v30  ;;  %6220 = vmatprep.mubr.bf16.mxu0 %v7368_v39  ;;  %v9275_v25 = vld [vmem:[%s11898_s1 + $0x870] sm:$0xff]   ;;  %v9280_v30 = vld [vmem:[%s11898_s1 + $0x8f8] sm:$0xff]   ;;  %v7301_v39 = vcombine.low %v32_v35, %v68_v36 }
 0x107   :  { %6269 = vmatprep.mubr.bf16.mxu1 %v7370_v52  ;;  %v9277_v27 = vld [vmem:[%s11898_s1 + $0x830] sm:$0xff]   ;;  %v103_v52 = vld [vmem:[%s11899_s0 + $0x2c0] sm:$0xff] }
 0x108   :  { %8438 = vmatpush3.bf16.msra.mxu0 %v9257_v32  ;;  %v9282_v32 = vld [vmem:[%s11898_s1 + $0x8b8] sm:$0xff]  }
 0x109   :  { %8466 = vmatpush3.bf16.msra.mxu1 %v9258_v34  ;;  %8439 = vmatprep.subr.bf16.mxu0 %v9259_v41  ;;  %v67_v34 = vld [vmem:[%s11899_s0 + $0x1a0] sm:$0xff] }
 0x10a   :  { %8467 = vmatprep.subr.bf16.mxu1 %v9260_v45  ;;  %v9283_v41 = vld [vmem:[%s11898_s1 + $0x940] sm:$0xff]   ;;  %v9287_v45 = vld [vmem:[%s11898_s1 + $0x948] sm:$0xff]  }
 0x10b   :  { %6221 = vmatmul.mubr.bf16.gmra.mrb[60].mxu0 %v7367_v40  ;;  %v7302_v40 = vcombine.high %v32_v35, %v68_v36  ;;  %v9304_v36 = vld [vmem:[%s11898_s1 + $0x9e8] sm:$0xff]  }
 0x10c   :  { %8440 = vmatpush3.bf16.msra.mxu0 %v9261_v54  ;;  %6270 = vmatmul.mubr.bf16.gmra.mrb[60].mxu1 %v7369_v56  ;;  %v139_v54 = vld [vmem:[%s11899_s0 + $0x3e0] sm:$0xff] }
 0x10d   :  { %8468 = vmatpush3.bf16.msra.mxu1 %v9262_v58  ;;  %6359 = vmatprep.mubr.bf16.mxu1 %v7302_v40  ;;  %v9306_v40 = vld [vmem:[%s11898_s1 + $0x9a8] sm:$0xff]  }
 0x10e   :  { %8469 = vmatprep.subr.bf16.mxu1 %v9264_v62 }
 0x116   :  { %v8059_v31 = vpop.f32.mrb[8].mxu0 }
 0x117   :  { %v8087_v33 = vpop.f32.mrb[8].mxu1  ;;  %v8060_v37 = vpop.f32.mrb[9].mxu0 }
 0x118   :  { %v8088_v38 = vpop.f32.mrb[9].mxu1  ;;  %v8061_v42 = vadd.f32 %v8060_v37, %v8059_v31  ;;  %v8062_v44 = vpop.f32.mrb[10].mxu0  ;;  %v9281_v31 = vld [vmem:[%s11898_s1 + $0x838] sm:$0xff]  }
 0x119   :  { %v8089_v43 = vadd.f32 %v8088_v38, %v8087_v33  ;;  %v8090_v46 = vpop.f32.mrb[10].mxu1  ;;  %v8063_v50 = vpop.f32.mrb[11].mxu0  ;;  %v31_v33 = vld [vmem:[%s11899_s0 + $0x80] sm:$0xff] }
 0x11a   :  { %v5627_v49 = vadd.f32 %v8061_v42, %v10500_v53  ;;  %v8091_v51 = vpop.f32.mrb[11].mxu1  ;;  %v8064_v57 = vadd.f32 %v8063_v50, %v8062_v44  ;;  %v9263_v53 = vld [vmem:[%s11898_s1 + $0x858] sm:$0xff]   ;;  %v7299_v37 = vcombine.low %v31_v33, %v67_v34  ;;  %v7300_v38 = vcombine.high %v31_v33, %v67_v34  ;;  %v9284_v42 = vld [vmem:[%s11898_s1 + $0x9c0] sm:$0xff]   ;;  %v9290_v50 = vld [vmem:[%s11898_s1 + $0x988] sm:$0xff]  }
 0x11b   :  { %v8092_v60 = vadd.f32 %v8091_v51, %v8090_v46  ;;  %8441 = vmatprep.subr.bf16.mxu0 %v9263_v53  ;;  %v9286_v44 = vld [vmem:[%s11898_s1 + $0x980] sm:$0xff]   ;;  %v9288_v46 = vld [vmem:[%s11898_s1 + $0x9c8] sm:$0xff]   ;;  %v7371_v53 = vcombine.low %v103_v52, %v139_v54 }
 0x11c   :  { %v10599_v59 = vadd.f32 %v8089_v43, %v5627_v49  ;;  %v5630_v61 = vadd.f32 %v8064_v57, %v10505_v55  ;;  %v9266_v55 = vld [vmem:[%s11898_s1 + $0x898] sm:$0xff]   ;;  %8442 = vmatpush3.bf16.msra.mxu0 %v9265_v0  ;;  %6310 = vmatprep.mubr.bf16.mxu0 %v7300_v38  ;;  %v9285_v43 = vld [vmem:[%s11898_s1 + $0x900] sm:$0xff]   ;;  %v9292_v0 = vld [vmem:[%s11898_s1 + $0x9d0] sm:$0xff]  }
 0x11d   :  { %8470 = vmatpush3.bf16.msra.mxu1 %v9266_v55  ;;  %8443 = vmatprep.subr.bf16.mxu0 %v9267_v5  ;;  %v140_v5 = vld [vmem:[%s11899_s0 + $0x3e8] sm:$0xff] }
 0x11e   :  { %v8065_v63 = vpop.f32.mrb[12].mxu0  ;;  %v10611_v1 = vadd.f32 %v8092_v60, %v5630_v61  ;;  %8471 = vmatprep.subr.bf16.mxu1 %v9268_v7  ;;  %v7372_v60 = vcombine.high %v103_v52, %v139_v54  ;;  %v9291_v61 = vld [vmem:[%s11898_s1 + $0x950] sm:$0xff]   ;;  %v34_v54 = vld [vmem:[%s11899_s0 + $0x98] sm:$0xff] }
 0x11f   :  { %v8066_v2 = vpop.f32.mrb[13].mxu0  ;;  %v8093_v9 = vpop.f32.mrb[12].mxu1 }
 0x120   :  { %v8067_v3 = vadd.f32 %v8066_v2, %v8065_v63  ;;  %v8068_v4 = vpop.f32.mrb[14].mxu0  ;;  %v8094_v12 = vpop.f32.mrb[13].mxu1  ;;  %8444 = vmatpush3.bf16.msra.mxu0 %v9269_v11  ;;  %v104_v2 = vld [vmem:[%s11899_s0 + $0x2c8] sm:$0xff] }
 0x121   :  { %v8069_v6 = vpop.f32.mrb[15].mxu0  ;;  %v8095_v15 = vadd.f32 %v8094_v12, %v8093_v9  ;;  %v8096_v16 = vpop.f32.mrb[14].mxu1  ;;  %8472 = vmatpush3.bf16.msra.mxu1 %v9270_v13  ;;  %8445 = vmatprep.subr.bf16.mxu0 %v9271_v17  ;;  %v9293_v9 = vld [vmem:[%s11898_s1 + $0x910] sm:$0xff]   ;;  %v9295_v13 = vld [vmem:[%s11898_s1 + $0x958] sm:$0xff]  }
 0x122   :  { %v5635_v8 = vadd.f32 %v8067_v3, %v10552_v24  ;;  %v8070_v10 = vadd.f32 %v8069_v6, %v8068_v4  ;;  %v8097_v18 = vpop.f32.mrb[15].mxu1  ;;  %8473 = vmatprep.subr.bf16.mxu1 %v9272_v19 }
 0x123   :  { %v8098_v21 = vadd.f32 %v8097_v18, %v8096_v16  ;;  %v9298_v18 = vld [vmem:[%s11898_s1 + $0x998] sm:$0xff]  }
 0x124   :  { %v5638_v14 = vadd.f32 %v8070_v10, %v10560_v28  ;;  %v10636_v20 = vadd.f32 %v8095_v15, %v5635_v8  ;;  %8446 = vmatpush3.bf16.msra.mxu0 %v9273_v22  ;;  %v9278_v28 = vld [vmem:[%s11898_s1 + $0x8b0] sm:$0xff]   ;;  %v7374_v8 = vcombine.high %v104_v2, %v140_v5  ;;  %v7373_v10 = vcombine.low %v104_v2, %v140_v5  ;;  %v9299_v22 = vld [vmem:[%s11898_s1 + $0x960] sm:$0xff]  }
 0x125   :  { %8474 = vmatpush3.bf16.msra.mxu1 %v9274_v23  ;;  %8447 = vmatprep.subr.bf16.mxu0 %v9275_v25  ;;  %v9300_v25 = vld [vmem:[%s11898_s1 + $0x9e0] sm:$0xff]   ;;  %v105_v5 = vld [vmem:[%s11899_s0 + $0x2d0] sm:$0xff] }
 0x126   :  { %v10644_v24 = vadd.f32 %v8098_v21, %v5638_v14  ;;  %8475 = vmatprep.subr.bf16.mxu1 %v9276_v26  ;;  %v9296_v14 = vld [vmem:[%s11898_s1 + $0x9d8] sm:$0xff]  }
 0x128   :  { %8448 = vmatpush3.bf16.msra.mxu0 %v9277_v27 }
 0x129   :  { %8476 = vmatpush3.bf16.msra.mxu1 %v9278_v28  ;;  %8449 = vmatprep.subr.bf16.mxu0 %v9279_v29  ;;  %v9301_v28 = vld [vmem:[%s11898_s1 + $0x920] sm:$0xff]  }
 0x12a   :  { %8477 = vmatprep.subr.bf16.mxu1 %v9280_v30 }
 0x12c   :  { %8450 = vmatpush3.bf16.msra.mxu0 %v9281_v31  ;;  %v9302_v31 = vld [vmem:[%s11898_s1 + $0x9a0] sm:$0xff]  }
 0x12d   :  { %8478 = vmatpush3.bf16.msra.mxu1 %v9282_v32  ;;  %8491 = vmatprep.subr.bf16.mxu0 %v9283_v41  ;;  %v9307_v41 = vld [vmem:[%s11898_s1 + $0x970] sm:$0xff]  }
 0x12e   :  { %8519 = vmatprep.subr.bf16.mxu1 %v9284_v42  ;;  %v9308_v42 = vld [vmem:[%s11898_s1 + $0x9f0] sm:$0xff]  }
 0x12f   :  { %6311 = vmatmul.mubr.bf16.vlgmr.msra.gmra.mrb[64].mxu0 %v7299_v37 }
 0x130   :  { %6360 = vmatmul.mubr.bf16.vlgmr.msra.gmra.mrb[64].mxu1 %v7301_v39  ;;  %8492 = vmatpush3.bf16.msra.mxu0 %v9285_v43  ;;  %v9305_v39 = vld [vmem:[%s11898_s1 + $0x928] sm:$0xff]   ;;  %v9309_v43 = vld [vmem:[%s11898_s1 + $0x930] sm:$0xff]  }
 0x131   :  { %8520 = vmatpush3.bf16.msra.mxu1 %v9286_v44  ;;  %8493 = vmatprep.subr.bf16.mxu0 %v9287_v45  ;;  %v9310_v44 = vld [vmem:[%s11898_s1 + $0x9b0] sm:$0xff]   ;;  %v9311_v45 = vld [vmem:[%s11898_s1 + $0x978] sm:$0xff]  }
 0x132   :  { %8521 = vmatprep.subr.bf16.mxu1 %v9288_v46  ;;  %6318 = vmatprep.mubr.bf16.mxu0 %v7372_v60  ;;  %v9312_v46 = vld [vmem:[%s11898_s1 + $0x9f8] sm:$0xff]   ;;  %v9315_v60 = vld [vmem:[%s11898_s1 + $0xa40] sm:$0xff]  }
 0x133   :  { %6367 = vmatprep.mubr.bf16.mxu1 %v7374_v8  ;;  %v141_v8 = vld [vmem:[%s11899_s0 + $0x3f0] sm:$0xff] }
 0x134   :  { %8494 = vmatpush3.bf16.msra.mxu0 %v9289_v48  ;;  %v9314_v48 = vld [vmem:[%s11898_s1 + $0x9b8] sm:$0xff]  }
 0x135   :  { %8522 = vmatpush3.bf16.msra.mxu1 %v9290_v50  ;;  %8495 = vmatprep.subr.bf16.mxu0 %v9291_v61  ;;  %v69_v50 = vld [vmem:[%s11899_s0 + $0x1b0] sm:$0xff]  ;;  %v9317_v61 = vld [vmem:[%s11898_s1 + $0xa00] sm:$0xff]  }
 0x136   :  { %v8115_v47 = vpop.f32.mrb[16].mxu0  ;;  %8523 = vmatprep.subr.bf16.mxu1 %v9292_v0  ;;  %v9320_v0 = vld [vmem:[%s11898_s1 + $0xac8] sm:$0xff]  }
 0x137   :  { %v8143_v49 = vpop.f32.mrb[16].mxu1  ;;  %v8116_v51 = vpop.f32.mrb[17].mxu0  ;;  %6319 = vmatmul.mubr.bf16.gmra.mrb[68].mxu0 %v7371_v53  ;;  %v9316_v53 = vld [vmem:[%s11898_s1 + $0xac0] sm:$0xff]  }
 0x138   :  { %v8117_v56 = vadd.f32 %v8116_v51, %v8115_v47  ;;  %v8144_v57 = vpop.f32.mrb[17].mxu1  ;;  %v8118_v58 = vpop.f32.mrb[18].mxu0  ;;  %8496 = vmatpush3.bf16.msra.mxu0 %v9293_v9  ;;  %6368 = vmatmul.mubr.bf16.gmra.mrb[68].mxu1 %v7373_v10  ;;  %v9313_v47 = vld [vmem:[%s11898_s1 + $0x938] sm:$0xff]  }
 0x139   :  { %v8145_v62 = vadd.f32 %v8144_v57, %v8143_v49  ;;  %v8146_v63 = vpop.f32.mrb[18].mxu1  ;;  %v8119_v3 = vpop.f32.mrb[19].mxu0  ;;  %8497 = vmatprep.subr.bf16.mxu0 %v9295_v13  ;;  %v33_v49 = vld [vmem:[%s11899_s0 + $0x90] sm:$0xff]  ;;  %v7375_v13 = vcombine.low %v105_v5, %v141_v8 }
 0x13a   :  { %v5725_v55 = vadd.f32 %v8117_v56, %v10599_v59  ;;  %v8147_v4 = vpop.f32.mrb[19].mxu1  ;;  %v8120_v6 = vadd.f32 %v8119_v3, %v8118_v58  ;;  %v9294_v59 = vld [vmem:[%s11898_s1 + $0x990] sm:$0xff]   ;;  %v7303_v51 = vcombine.low %v33_v49, %v69_v50  ;;  %v7304_v52 = vcombine.high %v33_v49, %v69_v50  ;;  %v70_v56 = vld [vmem:[%s11899_s0 + $0x1b8] sm:$0xff] }
 0x13b   :  { %v8148_v7 = vadd.f32 %v8147_v4, %v8146_v63  ;;  %8524 = vmatpush3.bf16.msra.mxu1 %v9294_v59  ;;  %v7305_v57 = vcombine.low %v34_v54, %v70_v56  ;;  %v7306_v58 = vcombine.high %v34_v54, %v70_v56  ;;  %v9319_v63 = vld [vmem:[%s11898_s1 + $0xa48] sm:$0xff]  }
 0x13c   :  { %v10728_v11 = vadd.f32 %v8145_v62, %v5725_v55  ;;  %v5728_v12 = vadd.f32 %v8120_v6, %v10611_v1  ;;  %v9297_v1 = vld [vmem:[%s11898_s1 + $0x918] sm:$0xff]   ;;  %8525 = vmatprep.subr.bf16.mxu1 %v9296_v14  ;;  %6408 = vmatprep.mubr.bf16.mxu0 %v7304_v52  ;;  %v9318_v62 = vld [vmem:[%s11898_s1 + $0xa80] sm:$0xff]   ;;  %v9321_v55 = vld [vmem:[%s11898_s1 + $0xa08] sm:$0xff]  }
 0x13d   :  { %8498 = vmatpush3.bf16.msra.mxu0 %v9297_v1  ;;  %6457 = vmatprep.mubr.bf16.mxu1 %v7306_v58  ;;  %v9322_v4 = vld [vmem:[%s11898_s1 + $0xa88] sm:$0xff]   ;;  %v9323_v14 = vld [vmem:[%s11898_s1 + $0xa50] sm:$0xff]  }
 0x13e   :  { %v10740_v15 = vadd.f32 %v8148_v7, %v5728_v12  ;;  %v8121_v16 = vpop.f32.mrb[20].mxu0  ;;  %8499 = vmatprep.subr.bf16.mxu0 %v9299_v22  ;;  %v7376_v12 = vcombine.high %v105_v5, %v141_v8  ;;  %v9324_v1 = vld [vmem:[%s11898_s1 + $0xad0] sm:$0xff]   ;;  %v9336_v52 = vld [vmem:[%s11898_s1 + $0xae8] sm:$0xff]  }
 0x13f   :  { %v8122_v17 = vpop.f32.mrb[21].mxu0  ;;  %v8149_v23 = vpop.f32.mrb[20].mxu1  ;;  %8526 = vmatpush3.bf16.msra.mxu1 %v9298_v18  ;;  %v142_v18 = vld [vmem:[%s11899_s0 + $0x3f8] sm:$0xff]  ;;  %v36_v5 = vld [vmem:[%s11899_s0 + $0xa8] sm:$0xff] }
 0x140   :  { %v8123_v19 = vadd.f32 %v8122_v17, %v8121_v16  ;;  %v8124_v21 = vpop.f32.mrb[22].mxu0  ;;  %v8150_v30 = vpop.f32.mrb[21].mxu1  ;;  %8527 = vmatprep.subr.bf16.mxu1 %v9300_v25  ;;  %v106_v17 = vld [vmem:[%s11899_s0 + $0x2d8] sm:$0xff]  ;;  %v9325_v25 = vld [vmem:[%s11898_s1 + $0xa10] sm:$0xff]   ;;  %v72_v8 = vld [vmem:[%s11899_s0 + $0x1c8] sm:$0xff] }
 0x141   :  { %v8125_v27 = vpop.f32.mrb[23].mxu0  ;;  %v8151_v32 = vadd.f32 %v8150_v30, %v8149_v23  ;;  %v8152_v33 = vpop.f32.mrb[22].mxu1  ;;  %8500 = vmatpush3.bf16.msra.mxu0 %v9301_v28  ;;  %v7378_v23 = vcombine.high %v106_v17, %v142_v18  ;;  %v9326_v28 = vld [vmem:[%s11898_s1 + $0xa90] sm:$0xff]   ;;  %v9327_v30 = vld [vmem:[%s11898_s1 + $0xa58] sm:$0xff]  }
 0x142   :  { %v5733_v26 = vadd.f32 %v8123_v19, %v10636_v20  ;;  %v8126_v29 = vadd.f32 %v8125_v27, %v8124_v21  ;;  %v9303_v20 = vld [vmem:[%s11898_s1 + $0x968] sm:$0xff]   ;;  %v8153_v35 = vpop.f32.mrb[23].mxu1 }
 0x143   :  { %8528 = vmatpush3.bf16.msra.mxu1 %v9302_v31  ;;  %v8154_v38 = vadd.f32 %v8153_v35, %v8152_v33  ;;  %8501 = vmatprep.subr.bf16.mxu0 %v9303_v20  ;;  %v9329_v20 = vld [vmem:[%s11898_s1 + $0xa18] sm:$0xff]  }
 0x144   :  { %v5736_v34 = vadd.f32 %v8126_v29, %v10644_v24  ;;  %v10768_v37 = vadd.f32 %v8151_v32, %v5733_v26  ;;  %8529 = vmatprep.subr.bf16.mxu1 %v9304_v36  ;;  %v7377_v26 = vcombine.low %v106_v17, %v142_v18  ;;  %v9328_v32 = vld [vmem:[%s11898_s1 + $0xad8] sm:$0xff]   ;;  %v9353_v18 = vld [vmem:[%s11898_s1 + $0xb08] sm:$0xff]  }
 0x145   :  { %8502 = vmatpush3.bf16.msra.mxu0 %v9305_v39  ;;  %v9331_v39 = vld [vmem:[%s11898_s1 + $0xa60] sm:$0xff]  }
 0x146   :  { %v10776_v24 = vadd.f32 %v8154_v38, %v5736_v34  ;;  %8503 = vmatprep.subr.bf16.mxu0 %v9307_v41  ;;  %v9332_v41 = vld [vmem:[%s11898_s1 + $0xae0] sm:$0xff]  }
 0x147   :  { %8530 = vmatpush3.bf16.msra.mxu1 %v9306_v40 }
 0x148   :  { %8531 = vmatprep.subr.bf16.mxu1 %v9308_v42 }
 0x149   :  { %8504 = vmatpush3.bf16.msra.mxu0 %v9309_v43 }
 0x14a   :  { %8505 = vmatprep.subr.bf16.mxu0 %v9311_v45  ;;  %v9333_v45 = vld [vmem:[%s11898_s1 + $0xa20] sm:$0xff]  }
 0x14b   :  { %8532 = vmatpush3.bf16.msra.mxu1 %v9310_v44 }
 0x14c   :  { %8533 = vmatprep.subr.bf16.mxu1 %v9312_v46 }
 0x14d   :  { %8506 = vmatpush3.bf16.msra.mxu0 %v9313_v47  ;;  %v9334_v47 = vld [vmem:[%s11898_s1 + $0xaa0] sm:$0xff]  }
 0x14e   :  { %8547 = vmatprep.subr.bf16.mxu0 %v9315_v60  ;;  %v9339_v60 = vld [vmem:[%s11898_s1 + $0xa70] sm:$0xff]  }
 0x14f   :  { %8534 = vmatpush3.bf16.msra.mxu1 %v9314_v48 }
 0x150   :  { %6409 = vmatmul.mubr.bf16.vlgmr.msra.gmra.mrb[72].mxu0 %v7303_v51  ;;  %8575 = vmatprep.subr.bf16.mxu1 %v9316_v53  ;;  %v9340_v53 = vld [vmem:[%s11898_s1 + $0xaf0] sm:$0xff]  }
 0x151   :  { %8548 = vmatpush3.bf16.msra.mxu0 %v9317_v61  ;;  %6416 = vmatprep.mubr.bf16.mxu0 %v7376_v12  ;;  %v9341_v61 = vld [vmem:[%s11898_s1 + $0xa30] sm:$0xff]   ;;  %v9348_v12 = vld [vmem:[%s11898_s1 + $0xbc0] sm:$0xff]  }
 0x152   :  { %6458 = vmatmul.mubr.bf16.vlgmr.msra.gmra.mrb[72].mxu1 %v7305_v57  ;;  %8549 = vmatprep.subr.bf16.mxu0 %v9319_v63  ;;  %v9338_v57 = vld [vmem:[%s11898_s1 + $0xaa8] sm:$0xff]   ;;  %v9343_v63 = vld [vmem:[%s11898_s1 + $0xa78] sm:$0xff]  }
 0x153   :  { %8576 = vmatpush3.bf16.msra.mxu1 %v9318_v62  ;;  %6465 = vmatprep.mubr.bf16.mxu1 %v7378_v23  ;;  %v9342_v62 = vld [vmem:[%s11898_s1 + $0xab0] sm:$0xff]   ;;  %v143_v23 = vld [vmem:[%s11899_s0 + $0x400] sm:$0xff] }
 0x154   :  { %8577 = vmatprep.subr.bf16.mxu1 %v9320_v0  ;;  %v9344_v0 = vld [vmem:[%s11898_s1 + $0xaf8] sm:$0xff]  }
 0x155   :  { %8550 = vmatpush3.bf16.msra.mxu0 %v9321_v55  ;;  %v9346_v55 = vld [vmem:[%s11898_s1 + $0xab8] sm:$0xff]  }
 0x156   :  { %v8171_v2 = vpop.f32.mrb[24].mxu0  ;;  %8551 = vmatprep.subr.bf16.mxu0 %v9323_v14  ;;  %v9350_v14 = vld [vmem:[%s11898_s1 + $0xb80] sm:$0xff]  }
 0x157   :  { %v8199_v3 = vpop.f32.mrb[24].mxu1  ;;  %v8172_v6 = vpop.f32.mrb[25].mxu0  ;;  %8578 = vmatpush3.bf16.msra.mxu1 %v9322_v4  ;;  %v71_v4 = vld [vmem:[%s11899_s0 + $0x1c0] sm:$0xff] }
 0x158   :  { %v8200_v7 = vpop.f32.mrb[25].mxu1  ;;  %v8173_v9 = vadd.f32 %v8172_v6, %v8171_v2  ;;  %v8174_v59 = vpop.f32.mrb[26].mxu0  ;;  %6417 = vmatmul.mubr.bf16.gmra.mrb[76].mxu0 %v7375_v13  ;;  %8579 = vmatprep.subr.bf16.mxu1 %v9324_v1  ;;  %v9345_v2 = vld [vmem:[%s11898_s1 + $0xa38] sm:$0xff]   ;;  %v9349_v13 = vld [vmem:[%s11898_s1 + $0xb00] sm:$0xff]   ;;  %v9352_v1 = vld [vmem:[%s11898_s1 + $0xbc8] sm:$0xff]  }
 0x159   :  { %v8201_v10 = vadd.f32 %v8200_v7, %v8199_v3  ;;  %v8202_v16 = vpop.f32.mrb[26].mxu1  ;;  %v8175_v21 = vpop.f32.mrb[27].mxu0  ;;  %8552 = vmatpush3.bf16.msra.mxu0 %v9325_v25  ;;  %v35_v3 = vld [vmem:[%s11899_s0 + $0xa0] sm:$0xff] }
 0x15a   :  { %v5823_v19 = vadd.f32 %v8173_v9, %v10728_v11  ;;  %v8203_v22 = vpop.f32.mrb[27].mxu1  ;;  %v8176_v27 = vadd.f32 %v8175_v21, %v8174_v59  ;;  %6466 = vmatmul.mubr.bf16.gmra.mrb[76].mxu1 %v7377_v26  ;;  %8553 = vmatprep.subr.bf16.mxu0 %v9327_v30  ;;  %v7307_v6 = vcombine.low %v35_v3, %v71_v4  ;;  %v9347_v59 = vld [vmem:[%s11898_s1 + $0xb40] sm:$0xff]   ;;  %v9354_v21 = vld [vmem:[%s11898_s1 + $0xb88] sm:$0xff]  }
 0x15b   :  { %v8204_v11 = vadd.f32 %v8203_v22, %v8202_v16  ;;  %8580 = vmatpush3.bf16.msra.mxu1 %v9326_v28  ;;  %v7308_v7 = vcombine.high %v35_v3, %v71_v4  ;;  %v7309_v9 = vcombine.low %v36_v5, %v72_v8  ;;  %v9351_v16 = vld [vmem:[%s11898_s1 + $0xb48] sm:$0xff]   ;;  %v107_v22 = vld [vmem:[%s11899_s0 + $0x2e0] sm:$0xff] }
 0x15c   :  { %v10863_v29 = vadd.f32 %v8201_v10, %v5823_v19  ;;  %v5826_v31 = vadd.f32 %v8176_v27, %v10740_v15  ;;  %8581 = vmatprep.subr.bf16.mxu1 %v9328_v32  ;;  %v9330_v15 = vld [vmem:[%s11898_s1 + $0xa98] sm:$0xff]   ;;  %v7310_v10 = vcombine.high %v36_v5, %v72_v8  ;;  %v7380_v27 = vcombine.high %v107_v22, %v143_v23 }
 0x15d   :  { %8554 = vmatpush3.bf16.msra.mxu0 %v9329_v20  ;;  %6506 = vmatprep.mubr.bf16.mxu0 %v7308_v7  ;;  %v7379_v28 = vcombine.low %v107_v22, %v143_v23  ;;  %v38_v22 = vld [vmem:[%s11899_s0 + $0xb8] sm:$0xff] }
 0x15e   :  { %v8177_v33 = vpop.f32.mrb[28].mxu0  ;;  %v10875_v34 = vadd.f32 %v8204_v11, %v5826_v31  ;;  %8555 = vmatprep.subr.bf16.mxu0 %v9331_v39  ;;  %6555 = vmatprep.mubr.bf16.mxu1 %v7310_v10  ;;  %v9355_v11 = vld [vmem:[%s11898_s1 + $0xb50] sm:$0xff]   ;;  %v74_v23 = vld [vmem:[%s11899_s0 + $0x1d8] sm:$0xff] }
 0x15f   :  { %v8178_v35 = vpop.f32.mrb[29].mxu0  ;;  %8582 = vmatpush3.bf16.msra.mxu1 %v9330_v15  ;;  %v8205_v43 = vpop.f32.mrb[28].mxu1  ;;  %v144_v15 = vld [vmem:[%s11899_s0 + $0x408] sm:$0xff] }
 0x160   :  { %v8179_v36 = vadd.f32 %v8178_v35, %v8177_v33  ;;  %v8180_v38 = vpop.f32.mrb[30].mxu0  ;;  %v8206_v46 = vpop.f32.mrb[29].mxu1  ;;  %8583 = vmatprep.subr.bf16.mxu1 %v9332_v41  ;;  %v9356_v33 = vld [vmem:[%s11898_s1 + $0xbd0] sm:$0xff]   ;;  %v108_v35 = vld [vmem:[%s11899_s0 + $0x2e8] sm:$0xff] }
 0x161   :  { %v8181_v40 = vpop.f32.mrb[31].mxu0  ;;  %v8207_v49 = vadd.f32 %v8206_v46, %v8205_v43  ;;  %v8208_v50 = vpop.f32.mrb[30].mxu1  ;;  %8556 = vmatpush3.bf16.msra.mxu0 %v9333_v45  ;;  %v9357_v41 = vld [vmem:[%s11898_s1 + $0xb10] sm:$0xff]  }
 0x162   :  { %v5831_v42 = vadd.f32 %v8179_v36, %v10768_v37  ;;  %v8182_v44 = vadd.f32 %v8181_v40, %v8180_v38  ;;  %v9335_v37 = vld [vmem:[%s11898_s1 + $0xa68] sm:$0xff]   ;;  %v8209_v51 = vpop.f32.mrb[31].mxu1  ;;  %v7382_v40 = vcombine.high %v108_v35, %v144_v15 }
 0x163   :  { %8584 = vmatpush3.bf16.msra.mxu1 %v9334_v47  ;;  %v8210_v56 = vadd.f32 %v8209_v51, %v8208_v50  ;;  %8557 = vmatprep.subr.bf16.mxu0 %v9335_v37  ;;  %v9361_v50 = vld [vmem:[%s11898_s1 + $0xb18] sm:$0xff]  }
 0x164   :  { %v5834_v48 = vadd.f32 %v8182_v44, %v10776_v24  ;;  %v10900_v54 = vadd.f32 %v8207_v49, %v5831_v42  ;;  %v9337_v24 = vld [vmem:[%s11898_s1 + $0xa28] sm:$0xff]   ;;  %8585 = vmatprep.subr.bf16.mxu1 %v9336_v52  ;;  %v7381_v42 = vcombine.low %v108_v35, %v144_v15  ;;  %v9358_v44 = vld [vmem:[%s11898_s1 + $0xb90] sm:$0xff]  }
 0x165   :  { %8558 = vmatpush3.bf16.msra.mxu0 %v9337_v24  ;;  %v9363_v24 = vld [vmem:[%s11898_s1 + $0xb60] sm:$0xff]   ;;  %v9385_v15 = vld [vmem:[%s11898_s1 + $0xc08] sm:$0xff]  }
 0x166   :  { %v10908_v58 = vadd.f32 %v8210_v56, %v5834_v48  ;;  %8559 = vmatprep.subr.bf16.mxu0 %v9339_v60  ;;  %v9360_v48 = vld [vmem:[%s11898_s1 + $0xbd8] sm:$0xff]   ;;  %v9364_v60 = vld [vmem:[%s11898_s1 + $0xbe0] sm:$0xff]  }
 0x167   :  { %8586 = vmatpush3.bf16.msra.mxu1 %v9338_v57 }
 0x168   :  { %8587 = vmatprep.subr.bf16.mxu1 %v9340_v53 }
 0x169   :  { %8560 = vmatpush3.bf16.msra.mxu0 %v9341_v61 }
 0x16a   :  { %8561 = vmatprep.subr.bf16.mxu0 %v9343_v63  ;;  %v9365_v63 = vld [vmem:[%s11898_s1 + $0xb20] sm:$0xff]  }
 0x16b   :  { %8588 = vmatpush3.bf16.msra.mxu1 %v9342_v62 }
 0x16c   :  { %8589 = vmatprep.subr.bf16.mxu1 %v9344_v0 }
 0x16d   :  { %8562 = vmatpush3.bf16.msra.mxu0 %v9345_v2  ;;  %v9366_v2 = vld [vmem:[%s11898_s1 + $0xba0] sm:$0xff]  }
 0x16e   :  { %8603 = vmatprep.subr.bf16.mxu0 %v9347_v59  ;;  %v9371_v59 = vld [vmem:[%s11898_s1 + $0xb70] sm:$0xff]  }
 0x16f   :  { %8590 = vmatpush3.bf16.msra.mxu1 %v9346_v55 }
 0x170   :  { %6507 = vmatmul.mubr.bf16.vlgmr.msra.gmra.mrb[80].mxu0 %v7307_v6  ;;  %8631 = vmatprep.subr.bf16.mxu1 %v9348_v12  ;;  %v9368_v6 = vld [vmem:[%s11898_s1 + $0xbe8] sm:$0xff]   ;;  %v9372_v12 = vld [vmem:[%s11898_s1 + $0xbf0] sm:$0xff]  }
 0x171   :  { %8604 = vmatpush3.bf16.msra.mxu0 %v9349_v13  ;;  %6514 = vmatprep.mubr.bf16.mxu0 %v7380_v27  ;;  %v9373_v13 = vld [vmem:[%s11898_s1 + $0xb30] sm:$0xff]   ;;  %v7313_v27 = vcombine.low %v38_v22, %v74_v23 }
 0x172   :  { %6556 = vmatmul.mubr.bf16.vlgmr.msra.gmra.mrb[80].mxu1 %v7309_v9  ;;  %8605 = vmatprep.subr.bf16.mxu0 %v9351_v16  ;;  %v9370_v9 = vld [vmem:[%s11898_s1 + $0xba8] sm:$0xff]   ;;  %v9375_v16 = vld [vmem:[%s11898_s1 + $0xb78] sm:$0xff]  }
 0x173   :  { %8632 = vmatpush3.bf16.msra.mxu1 %v9350_v14  ;;  %6563 = vmatprep.mubr.bf16.mxu1 %v7382_v40  ;;  %v9374_v14 = vld [vmem:[%s11898_s1 + $0xbb0] sm:$0xff]  }
 0x174   :  { %8633 = vmatprep.subr.bf16.mxu1 %v9352_v1  ;;  %v9376_v1 = vld [vmem:[%s11898_s1 + $0xbf8] sm:$0xff]   ;;  %v109_v40 = vld [vmem:[%s11899_s0 + $0x2f0] sm:$0xff] }
 0x175   :  { %8606 = vmatpush3.bf16.msra.mxu0 %v9353_v18  ;;  %v9378_v18 = vld [vmem:[%s11898_s1 + $0xbb8] sm:$0xff]  }
 0x176   :  { %v8227_v17 = vpop.f32.mrb[32].mxu0  ;;  %8607 = vmatprep.subr.bf16.mxu0 %v9355_v11  ;;  %v9379_v11 = vld [vmem:[%s11898_s1 + $0xc40] sm:$0xff]  }
 0x177   :  { %v8255_v19 = vpop.f32.mrb[32].mxu1  ;;  %v8228_v25 = vpop.f32.mrb[33].mxu0  ;;  %8634 = vmatpush3.bf16.msra.mxu1 %v9354_v21  ;;  %v73_v21 = vld [vmem:[%s11899_s0 + $0x1d0] sm:$0xff] }
 0x178   :  { %v8256_v26 = vpop.f32.mrb[33].mxu1  ;;  %v8229_v30 = vadd.f32 %v8228_v25, %v8227_v17  ;;  %v8230_v32 = vpop.f32.mrb[34].mxu0  ;;  %6515 = vmatmul.mubr.bf16.gmra.mrb[84].mxu0 %v7379_v28  ;;  %8635 = vmatprep.subr.bf16.mxu1 %v9356_v33  ;;  %v9377_v17 = vld [vmem:[%s11898_s1 + $0xb38] sm:$0xff]   ;;  %v7314_v28 = vcombine.high %v38_v22, %v74_v23  ;;  %v9383_v33 = vld [vmem:[%s11898_s1 + $0xc48] sm:$0xff]  }
 0x179   :  { %v8257_v31 = vadd.f32 %v8256_v26, %v8255_v19  ;;  %v8258_v20 = vpop.f32.mrb[34].mxu1  ;;  %v8231_v38 = vpop.f32.mrb[35].mxu0  ;;  %8608 = vmatpush3.bf16.msra.mxu0 %v9357_v41  ;;  %v37_v19 = vld [vmem:[%s11899_s0 + $0xb0] sm:$0xff]  ;;  %v9400_v23 = vld [vmem:[%s11898_s1 + $0xce8] sm:$0xff]  }
 0x17a   :  { %v5921_v36 = vadd.f32 %v8229_v30, %v10863_v29  ;;  %v8259_v39 = vpop.f32.mrb[35].mxu1  ;;  %v8232_v43 = vadd.f32 %v8231_v38, %v8230_v32  ;;  %v9359_v29 = vld [vmem:[%s11898_s1 + $0xb58] sm:$0xff]   ;;  %6564 = vmatmul.mubr.bf16.gmra.mrb[84].mxu1 %v7381_v42  ;;  %v7311_v25 = vcombine.low %v37_v19, %v73_v21  ;;  %v7312_v26 = vcombine.high %v37_v19, %v73_v21  ;;  %v9380_v30 = vld [vmem:[%s11898_s1 + $0xcc0] sm:$0xff]   ;;  %v9386_v38 = vld [vmem:[%s11898_s1 + $0xc88] sm:$0xff]  }
 0x17b   :  { %v8260_v46 = vadd.f32 %v8259_v39, %v8258_v20  ;;  %8636 = vmatpush3.bf16.msra.mxu1 %v9358_v44  ;;  %8609 = vmatprep.subr.bf16.mxu0 %v9359_v29  ;;  %v9382_v32 = vld [vmem:[%s11898_s1 + $0xc80] sm:$0xff]   ;;  %v9384_v20 = vld [vmem:[%s11898_s1 + $0xcc8] sm:$0xff]   ;;  %v145_v41 = vld [vmem:[%s11899_s0 + $0x410] sm:$0xff] }
 0x17c   :  { %v10995_v45 = vadd.f32 %v8257_v31, %v5921_v36  ;;  %v5924_v47 = vadd.f32 %v8232_v43, %v10875_v34  ;;  %8637 = vmatprep.subr.bf16.mxu1 %v9360_v48  ;;  %v9362_v34 = vld [vmem:[%s11898_s1 + $0xb98] sm:$0xff]   ;;  %6604 = vmatprep.mubr.bf16.mxu0 %v7312_v26  ;;  %v9381_v31 = vld [vmem:[%s11898_s1 + $0xc00] sm:$0xff]   ;;  %v7383_v29 = vcombine.low %v109_v40, %v145_v41 }
 0x17d   :  { %8610 = vmatpush3.bf16.msra.mxu0 %v9361_v50  ;;  %6653 = vmatprep.mubr.bf16.mxu1 %v7314_v28  ;;  %v9388_v50 = vld [vmem:[%s11898_s1 + $0xcd0] sm:$0xff]   ;;  %v9402_v28 = vld [vmem:[%s11898_s1 + $0xca8] sm:$0xff]  }
 0x17e   :  { %v8233_v49 = vpop.f32.mrb[36].mxu0  ;;  %v11007_v37 = vadd.f32 %v8260_v46, %v5924_v47  ;;  %8611 = vmatprep.subr.bf16.mxu0 %v9363_v24  ;;  %v7384_v46 = vcombine.high %v109_v40, %v145_v41  ;;  %v9387_v47 = vld [vmem:[%s11898_s1 + $0xc50] sm:$0xff]   ;;  %v146_v24 = vld [vmem:[%s11899_s0 + $0x418] sm:$0xff]  ;;  %v40_v41 = vld [vmem:[%s11899_s0 + $0xc8] sm:$0xff] }
 0x17f   :  { %v8234_v51 = vpop.f32.mrb[37].mxu0  ;;  %8638 = vmatpush3.bf16.msra.mxu1 %v9362_v34  ;;  %v8261_v61 = vpop.f32.mrb[36].mxu1 }
 0x180   :  { %v8235_v52 = vadd.f32 %v8234_v51, %v8233_v49  ;;  %v8236_v56 = vpop.f32.mrb[38].mxu0  ;;  %v8262_v0 = vpop.f32.mrb[37].mxu1  ;;  %8639 = vmatprep.subr.bf16.mxu1 %v9364_v60  ;;  %v110_v51 = vld [vmem:[%s11899_s0 + $0x2f8] sm:$0xff] }
 0x181   :  { %v8237_v57 = vpop.f32.mrb[39].mxu0  ;;  %v8263_v3 = vadd.f32 %v8262_v0, %v8261_v61  ;;  %v8264_v4 = vpop.f32.mrb[38].mxu1  ;;  %8612 = vmatpush3.bf16.msra.mxu0 %v9365_v63  ;;  %v9389_v61 = vld [vmem:[%s11898_s1 + $0xc10] sm:$0xff]  }
 0x182   :  { %v5929_v53 = vadd.f32 %v8235_v52, %v10900_v54  ;;  %v8238_v62 = vadd.f32 %v8237_v57, %v8236_v56  ;;  %v9367_v54 = vld [vmem:[%s11898_s1 + $0xb68] sm:$0xff]   ;;  %v8265_v5 = vpop.f32.mrb[39].mxu1 }
 0x183   :  { %8640 = vmatpush3.bf16.msra.mxu1 %v9366_v2  ;;  %v8266_v8 = vadd.f32 %v8265_v5, %v8264_v4  ;;  %8613 = vmatprep.subr.bf16.mxu0 %v9367_v54  ;;  %v9391_v2 = vld [vmem:[%s11898_s1 + $0xc58] sm:$0xff]  }
 0x184   :  { %v5932_v55 = vadd.f32 %v8238_v62, %v10908_v58  ;;  %v11032_v7 = vadd.f32 %v8263_v3, %v5929_v53  ;;  %v9369_v58 = vld [vmem:[%s11898_s1 + $0xb28] sm:$0xff]   ;;  %8641 = vmatprep.subr.bf16.mxu1 %v9368_v6  ;;  %v7386_v53 = vcombine.high %v110_v51, %v146_v24  ;;  %v7385_v62 = vcombine.low %v110_v51, %v146_v24  ;;  %v9394_v5 = vld [vmem:[%s11898_s1 + $0xc98] sm:$0xff]   ;;  %v111_v24 = vld [vmem:[%s11899_s0 + $0x300] sm:$0xff] }
 0x185   :  { %8614 = vmatpush3.bf16.msra.mxu0 %v9369_v58  ;;  %v9395_v58 = vld [vmem:[%s11898_s1 + $0xc60] sm:$0xff]  }
 0x186   :  { %v11040_v10 = vadd.f32 %v8266_v8, %v5932_v55  ;;  %8615 = vmatprep.subr.bf16.mxu0 %v9371_v59  ;;  %v9392_v55 = vld [vmem:[%s11898_s1 + $0xcd8] sm:$0xff]   ;;  %v9396_v59 = vld [vmem:[%s11898_s1 + $0xce0] sm:$0xff]  }
 0x187   :  { %8642 = vmatpush3.bf16.msra.mxu1 %v9370_v9 }
 0x188   :  { %8643 = vmatprep.subr.bf16.mxu1 %v9372_v12 }
 0x189   :  { %8616 = vmatpush3.bf16.msra.mxu0 %v9373_v13 }
 0x18a   :  { %8617 = vmatprep.subr.bf16.mxu0 %v9375_v16 }
 0x18b   :  { %8644 = vmatpush3.bf16.msra.mxu1 %v9374_v14  ;;  %v9397_v14 = vld [vmem:[%s11898_s1 + $0xc20] sm:$0xff]  }
 0x18c   :  { %8645 = vmatprep.subr.bf16.mxu1 %v9376_v1 }
 0x18d   :  { %8618 = vmatpush3.bf16.msra.mxu0 %v9377_v17  ;;  %v9398_v17 = vld [vmem:[%s11898_s1 + $0xca0] sm:$0xff]  }
 0x18e   :  { %8659 = vmatprep.subr.bf16.mxu0 %v9379_v11  ;;  %v9403_v11 = vld [vmem:[%s11898_s1 + $0xc70] sm:$0xff]  }
 0x18f   :  { %8646 = vmatpush3.bf16.msra.mxu1 %v9378_v18 }
 0x190   :  { %6605 = vmatmul.mubr.bf16.vlgmr.msra.gmra.mrb[88].mxu0 %v7311_v25  ;;  %8687 = vmatprep.subr.bf16.mxu1 %v9380_v30  ;;  %v9404_v30 = vld [vmem:[%s11898_s1 + $0xcf0] sm:$0xff]  }
 0x191   :  { %8660 = vmatpush3.bf16.msra.mxu0 %v9381_v31  ;;  %6612 = vmatprep.mubr.bf16.mxu0 %v7384_v46  ;;  %v9405_v31 = vld [vmem:[%s11898_s1 + $0xc30] sm:$0xff]   ;;  %v9411_v46 = vld [vmem:[%s11898_s1 + $0xd40] sm:$0xff]  }
 0x192   :  { %6654 = vmatmul.mubr.bf16.vlgmr.msra.gmra.mrb[88].mxu1 %v7313_v27  ;;  %8661 = vmatprep.subr.bf16.mxu0 %v9383_v33  ;;  %v9401_v27 = vld [vmem:[%s11898_s1 + $0xc28] sm:$0xff]   ;;  %v9407_v33 = vld [vmem:[%s11898_s1 + $0xc78] sm:$0xff]  }
 0x193   :  { %8688 = vmatpush3.bf16.msra.mxu1 %v9382_v32  ;;  %6661 = vmatprep.mubr.bf16.mxu1 %v7386_v53  ;;  %v9406_v32 = vld [vmem:[%s11898_s1 + $0xcb0] sm:$0xff]   ;;  %v147_v53 = vld [vmem:[%s11899_s0 + $0x420] sm:$0xff] }
 0x194   :  { %8689 = vmatprep.subr.bf16.mxu1 %v9384_v20  ;;  %v9408_v20 = vld [vmem:[%s11898_s1 + $0xcf8] sm:$0xff]  }
 0x195   :  { %8662 = vmatpush3.bf16.msra.mxu0 %v9385_v15  ;;  %v9410_v15 = vld [vmem:[%s11898_s1 + $0xcb8] sm:$0xff]  }
 0x196   :  { %v8283_v35 = vpop.f32.mrb[40].mxu0  ;;  %8663 = vmatprep.subr.bf16.mxu0 %v9387_v47  ;;  %v9413_v47 = vld [vmem:[%s11898_s1 + $0xd00] sm:$0xff]  }
 0x197   :  { %v8311_v36 = vpop.f32.mrb[40].mxu1  ;;  %v8284_v39 = vpop.f32.mrb[41].mxu0  ;;  %8690 = vmatpush3.bf16.msra.mxu1 %v9386_v38  ;;  %v75_v38 = vld [vmem:[%s11899_s0 + $0x1e0] sm:$0xff] }
 0x198   :  { %v8285_v42 = vadd.f32 %v8284_v39, %v8283_v35  ;;  %v8312_v43 = vpop.f32.mrb[41].mxu1  ;;  %v8286_v44 = vpop.f32.mrb[42].mxu0  ;;  %6613 = vmatmul.mubr.bf16.gmra.mrb[92].mxu0 %v7383_v29  ;;  %8691 = vmatprep.subr.bf16.mxu1 %v9388_v50  ;;  %v9409_v35 = vld [vmem:[%s11898_s1 + $0xc38] sm:$0xff]   ;;  %v9412_v29 = vld [vmem:[%s11898_s1 + $0xdc0] sm:$0xff]   ;;  %v9416_v50 = vld [vmem:[%s11898_s1 + $0xdc8] sm:$0xff]  }
 0x199   :  { %v8313_v48 = vadd.f32 %v8312_v43, %v8311_v36  ;;  %v8314_v49 = vpop.f32.mrb[42].mxu1  ;;  %v8287_v52 = vpop.f32.mrb[43].mxu0  ;;  %8664 = vmatpush3.bf16.msra.mxu0 %v9389_v61  ;;  %v39_v36 = vld [vmem:[%s11899_s0 + $0xc0] sm:$0xff] }
 0x19a   :  { %v6019_v34 = vadd.f32 %v8285_v42, %v10995_v45  ;;  %v8315_v56 = vpop.f32.mrb[43].mxu1  ;;  %v8288_v57 = vadd.f32 %v8287_v52, %v8286_v44  ;;  %v9390_v45 = vld [vmem:[%s11898_s1 + $0xc90] sm:$0xff]   ;;  %6662 = vmatmul.mubr.bf16.gmra.mrb[92].mxu1 %v7385_v62  ;;  %8665 = vmatprep.subr.bf16.mxu0 %v9391_v2  ;;  %v7315_v39 = vcombine.low %v39_v36, %v75_v38  ;;  %v76_v42 = vld [vmem:[%s11899_s0 + $0x1e8] sm:$0xff] }
 0x19b   :  { %v8316_v60 = vadd.f32 %v8315_v56, %v8314_v49  ;;  %8692 = vmatpush3.bf16.msra.mxu1 %v9390_v45  ;;  %v7316_v40 = vcombine.high %v39_v36, %v75_v38  ;;  %v7317_v43 = vcombine.low %v40_v41, %v76_v42  ;;  %v7318_v44 = vcombine.high %v40_v41, %v76_v42  ;;  %v9415_v49 = vld [vmem:[%s11898_s1 + $0xd48] sm:$0xff]  }
 0x19c   :  { %v11124_v63 = vadd.f32 %v8313_v48, %v6019_v34  ;;  %v6022_v0 = vadd.f32 %v8288_v57, %v11007_v37  ;;  %v9393_v37 = vld [vmem:[%s11898_s1 + $0xc18] sm:$0xff]   ;;  %8693 = vmatprep.subr.bf16.mxu1 %v9392_v55  ;;  %v9414_v48 = vld [vmem:[%s11898_s1 + $0xd80] sm:$0xff]   ;;  %v9417_v34 = vld [vmem:[%s11898_s1 + $0xd08] sm:$0xff]   ;;  %v7387_v2 = vcombine.low %v111_v24, %v147_v53 }
 0x19d   :  { %8666 = vmatpush3.bf16.msra.mxu0 %v9393_v37  ;;  %6702 = vmatprep.mubr.bf16.mxu0 %v7316_v40  ;;  %v9418_v56 = vld [vmem:[%s11898_s1 + $0xd88] sm:$0xff]   ;;  %v9419_v55 = vld [vmem:[%s11898_s1 + $0xd50] sm:$0xff]  }
 0x19e   :  { %v11136_v3 = vadd.f32 %v8316_v60, %v6022_v0  ;;  %v8289_v4 = vpop.f32.mrb[44].mxu0  ;;  %8667 = vmatprep.subr.bf16.mxu0 %v9395_v58  ;;  %6751 = vmatprep.mubr.bf16.mxu1 %v7318_v44  ;;  %v7388_v0 = vcombine.high %v111_v24, %v147_v53  ;;  %v9420_v37 = vld [vmem:[%s11898_s1 + $0xdd0] sm:$0xff]   ;;  %v9432_v40 = vld [vmem:[%s11898_s1 + $0xde8] sm:$0xff]   ;;  %v42_v24 = vld [vmem:[%s11899_s0 + $0xd8] sm:$0xff] }
 0x19f   :  { %v8290_v54 = vpop.f32.mrb[45].mxu0  ;;  %v8317_v9 = vpop.f32.mrb[44].mxu1  ;;  %8694 = vmatpush3.bf16.msra.mxu1 %v9394_v5  ;;  %v148_v5 = vld [vmem:[%s11899_s0 + $0x428] sm:$0xff]  ;;  %v78_v53 = vld [vmem:[%s11899_s0 + $0x1f8] sm:$0xff] }
 0x1a0   :  { %v8291_v6 = vadd.f32 %v8290_v54, %v8289_v4  ;;  %v8292_v8 = vpop.f32.mrb[46].mxu0  ;;  %v8318_v1 = vpop.f32.mrb[45].mxu1  ;;  %8695 = vmatprep.subr.bf16.mxu1 %v9396_v59  ;;  %v112_v54 = vld [vmem:[%s11899_s0 + $0x308] sm:$0xff]  ;;  %v9421_v59 = vld [vmem:[%s11898_s1 + $0xd10] sm:$0xff]  }
 0x1a1   :  { %v8293_v13 = vpop.f32.mrb[47].mxu0  ;;  %v8319_v18 = vadd.f32 %v8318_v1, %v8317_v9  ;;  %v8320_v19 = vpop.f32.mrb[46].mxu1  ;;  %8668 = vmatpush3.bf16.msra.mxu0 %v9397_v14  ;;  %v7390_v9 = vcombine.high %v112_v54, %v148_v5  ;;  %v9422_v14 = vld [vmem:[%s11898_s1 + $0xd90] sm:$0xff]   ;;  %v9423_v1 = vld [vmem:[%s11898_s1 + $0xd58] sm:$0xff]  }
 0x1a2   :  { %v6027_v12 = vadd.f32 %v8291_v6, %v11032_v7  ;;  %v8294_v16 = vadd.f32 %v8293_v13, %v8292_v8  ;;  %v9399_v7 = vld [vmem:[%s11898_s1 + $0xc68] sm:$0xff]   ;;  %v8321_v22 = vpop.f32.mrb[47].mxu1 }
 0x1a3   :  { %8696 = vmatpush3.bf16.msra.mxu1 %v9398_v17  ;;  %v8322_v26 = vadd.f32 %v8321_v22, %v8320_v19  ;;  %8669 = vmatprep.subr.bf16.mxu0 %v9399_v7  ;;  %v9425_v7 = vld [vmem:[%s11898_s1 + $0xd18] sm:$0xff]  }
 0x1a4   :  { %v6030_v21 = vadd.f32 %v8294_v16, %v11040_v10  ;;  %v11164_v25 = vadd.f32 %v8319_v18, %v6027_v12  ;;  %8697 = vmatprep.subr.bf16.mxu1 %v9400_v23  ;;  %v7389_v12 = vcombine.low %v112_v54, %v148_v5  ;;  %v9424_v18 = vld [vmem:[%s11898_s1 + $0xdd8] sm:$0xff]   ;;  %v9449_v5 = vld [vmem:[%s11898_s1 + $0xe08] sm:$0xff]  }
 0x1a5   :  { %8670 = vmatpush3.bf16.msra.mxu0 %v9401_v27  ;;  %v9427_v27 = vld [vmem:[%s11898_s1 + $0xd60] sm:$0xff]  }
 0x1a6   :  { %v11172_v10 = vadd.f32 %v8322_v26, %v6030_v21  ;;  %8671 = vmatprep.subr.bf16.mxu0 %v9403_v11  ;;  %v9428_v11 = vld [vmem:[%s11898_s1 + $0xde0] sm:$0xff]  }
 0x1a7   :  { %8698 = vmatpush3.bf16.msra.mxu1 %v9402_v28 }
 0x1a8   :  { %8699 = vmatprep.subr.bf16.mxu1 %v9404_v30 }
 0x1a9   :  { %8672 = vmatpush3.bf16.msra.mxu0 %v9405_v31 }
 0x1aa   :  { %8673 = vmatprep.subr.bf16.mxu0 %v9407_v33  ;;  %v9429_v33 = vld [vmem:[%s11898_s1 + $0xd20] sm:$0xff]  }
 0x1ab   :  { %8700 = vmatpush3.bf16.msra.mxu1 %v9406_v32 }
 0x1ac   :  { %8701 = vmatprep.subr.bf16.mxu1 %v9408_v20 }
 0x1ad   :  { %8674 = vmatpush3.bf16.msra.mxu0 %v9409_v35  ;;  %v9430_v35 = vld [vmem:[%s11898_s1 + $0xda0] sm:$0xff]  }
 0x1ae   :  { %8715 = vmatprep.subr.bf16.mxu0 %v9411_v46  ;;  %v9435_v46 = vld [vmem:[%s11898_s1 + $0xd70] sm:$0xff]  }
 0x1af   :  { %8702 = vmatpush3.bf16.msra.mxu1 %v9410_v15 }
 0x1b0   :  { %6703 = vmatmul.mubr.bf16.vlgmr.msra.gmra.mrb[96].mxu0 %v7315_v39  ;;  %8743 = vmatprep.subr.bf16.mxu1 %v9412_v29  ;;  %v9436_v29 = vld [vmem:[%s11898_s1 + $0xdf0] sm:$0xff]  }
 0x1b1   :  { %8716 = vmatpush3.bf16.msra.mxu0 %v9413_v47  ;;  %6710 = vmatprep.mubr.bf16.mxu0 %v7388_v0  ;;  %v9437_v47 = vld [vmem:[%s11898_s1 + $0xd30] sm:$0xff]   ;;  %v9444_v0 = vld [vmem:[%s11898_s1 + $0xec0] sm:$0xff]  }
 0x1b2   :  { %6752 = vmatmul.mubr.bf16.vlgmr.msra.gmra.mrb[96].mxu1 %v7317_v43  ;;  %8717 = vmatprep.subr.bf16.mxu0 %v9415_v49  ;;  %v9434_v43 = vld [vmem:[%s11898_s1 + $0xda8] sm:$0xff]   ;;  %v9439_v49 = vld [vmem:[%s11898_s1 + $0xd78] sm:$0xff]  }
 0x1b3   :  { %8744 = vmatpush3.bf16.msra.mxu1 %v9414_v48  ;;  %6759 = vmatprep.mubr.bf16.mxu1 %v7390_v9  ;;  %v9438_v48 = vld [vmem:[%s11898_s1 + $0xdb0] sm:$0xff]  }
 0x1b4   :  { %8745 = vmatprep.subr.bf16.mxu1 %v9416_v50  ;;  %v9440_v50 = vld [vmem:[%s11898_s1 + $0xdf8] sm:$0xff]   ;;  %v149_v9 = vld [vmem:[%s11899_s0 + $0x430] sm:$0xff] }
 0x1b5   :  { %8718 = vmatpush3.bf16.msra.mxu0 %v9417_v34  ;;  %v9442_v34 = vld [vmem:[%s11898_s1 + $0xdb8] sm:$0xff]  }
 0x1b6   :  { %v8339_v51 = vpop.f32.mrb[48].mxu0  ;;  %8719 = vmatprep.subr.bf16.mxu0 %v9419_v55  ;;  %v9446_v55 = vld [vmem:[%s11898_s1 + $0xe80] sm:$0xff]  }
 0x1b7   :  { %v8367_v52 = vpop.f32.mrb[48].mxu1  ;;  %v8340_v57 = vpop.f32.mrb[49].mxu0  ;;  %8746 = vmatpush3.bf16.msra.mxu1 %v9418_v56  ;;  %v77_v56 = vld [vmem:[%s11899_s0 + $0x1f0] sm:$0xff] }
 0x1b8   :  { %v8368_v60 = vpop.f32.mrb[49].mxu1  ;;  %v8341_v61 = vadd.f32 %v8340_v57, %v8339_v51  ;;  %v8342_v45 = vpop.f32.mrb[50].mxu0  ;;  %6711 = vmatmul.mubr.bf16.gmra.mrb[100].mxu0 %v7387_v2  ;;  %8747 = vmatprep.subr.bf16.mxu1 %v9420_v37  ;;  %v9441_v51 = vld [vmem:[%s11898_s1 + $0xd38] sm:$0xff]   ;;  %v9445_v2 = vld [vmem:[%s11898_s1 + $0xe00] sm:$0xff]   ;;  %v9448_v37 = vld [vmem:[%s11898_s1 + $0xec8] sm:$0xff]  }
 0x1b9   :  { %v8369_v62 = vadd.f32 %v8368_v60, %v8367_v52  ;;  %v8370_v4 = vpop.f32.mrb[50].mxu1  ;;  %v8343_v8 = vpop.f32.mrb[51].mxu0  ;;  %8720 = vmatpush3.bf16.msra.mxu0 %v9421_v59  ;;  %v41_v52 = vld [vmem:[%s11899_s0 + $0xd0] sm:$0xff] }
 0x1ba   :  { %v6117_v6 = vadd.f32 %v8341_v61, %v11124_v63  ;;  %v8371_v58 = vpop.f32.mrb[51].mxu1  ;;  %v8344_v13 = vadd.f32 %v8343_v8, %v8342_v45  ;;  %6760 = vmatmul.mubr.bf16.gmra.mrb[100].mxu1 %v7389_v12  ;;  %8721 = vmatprep.subr.bf16.mxu0 %v9423_v1  ;;  %v7319_v57 = vcombine.low %v41_v52, %v77_v56  ;;  %v9443_v45 = vld [vmem:[%s11898_s1 + $0xe40] sm:$0xff]   ;;  %v9450_v8 = vld [vmem:[%s11898_s1 + $0xe88] sm:$0xff]  }
 0x1bb   :  { %v8372_v63 = vadd.f32 %v8371_v58, %v8370_v4  ;;  %8748 = vmatpush3.bf16.msra.mxu1 %v9422_v14  ;;  %v7320_v60 = vcombine.high %v41_v52, %v77_v56  ;;  %v7321_v61 = vcombine.low %v42_v24, %v78_v53  ;;  %v9447_v4 = vld [vmem:[%s11898_s1 + $0xe48] sm:$0xff]   ;;  %v113_v58 = vld [vmem:[%s11899_s0 + $0x310] sm:$0xff] }
 0x1bc   :  { %v11259_v16 = vadd.f32 %v8369_v62, %v6117_v6  ;;  %v6120_v17 = vadd.f32 %v8344_v13, %v11136_v3  ;;  %8749 = vmatprep.subr.bf16.mxu1 %v9424_v18  ;;  %v9426_v3 = vld [vmem:[%s11898_s1 + $0xd98] sm:$0xff]   ;;  %v7322_v62 = vcombine.high %v42_v24, %v78_v53  ;;  %v7392_v13 = vcombine.high %v113_v58, %v149_v9 }
 0x1bd   :  { %8722 = vmatpush3.bf16.msra.mxu0 %v9425_v7  ;;  %6800 = vmatprep.mubr.bf16.mxu0 %v7320_v60  ;;  %v7391_v14 = vcombine.low %v113_v58, %v149_v9  ;;  %v44_v58 = vld [vmem:[%s11899_s0 + $0xe8] sm:$0xff] }
 0x1be   :  { %v8345_v19 = vpop.f32.mrb[52].mxu0  ;;  %v11271_v21 = vadd.f32 %v8372_v63, %v6120_v17  ;;  %8723 = vmatprep.subr.bf16.mxu0 %v9427_v27  ;;  %6849 = vmatprep.mubr.bf16.mxu1 %v7322_v62  ;;  %v9451_v63 = vld [vmem:[%s11898_s1 + $0xe50] sm:$0xff]   ;;  %v80_v9 = vld [vmem:[%s11899_s0 + $0x208] sm:$0xff] }
 0x1bf   :  { %v8346_v22 = vpop.f32.mrb[53].mxu0  ;;  %8750 = vmatpush3.bf16.msra.mxu1 %v9426_v3  ;;  %v8373_v31 = vpop.f32.mrb[52].mxu1  ;;  %v150_v3 = vld [vmem:[%s11899_s0 + $0x438] sm:$0xff] }
 0x1c0   :  { %v8347_v23 = vadd.f32 %v8346_v22, %v8345_v19  ;;  %v8348_v26 = vpop.f32.mrb[54].mxu0  ;;  %v8374_v20 = vpop.f32.mrb[53].mxu1  ;;  %8751 = vmatprep.subr.bf16.mxu1 %v9428_v11  ;;  %v9452_v19 = vld [vmem:[%s11898_s1 + $0xed0] sm:$0xff]   ;;  %v114_v22 = vld [vmem:[%s11899_s0 + $0x318] sm:$0xff] }
 0x1c1   :  { %v8349_v28 = vpop.f32.mrb[55].mxu0  ;;  %v8375_v36 = vadd.f32 %v8374_v20, %v8373_v31  ;;  %v8376_v38 = vpop.f32.mrb[54].mxu1  ;;  %8724 = vmatpush3.bf16.msra.mxu0 %v9429_v33  ;;  %v9453_v11 = vld [vmem:[%s11898_s1 + $0xe10] sm:$0xff]  }
 0x1c2   :  { %v6125_v30 = vadd.f32 %v8347_v23, %v11164_v25  ;;  %v8350_v32 = vadd.f32 %v8349_v28, %v8348_v26  ;;  %v9431_v25 = vld [vmem:[%s11898_s1 + $0xd68] sm:$0xff]   ;;  %v8377_v39 = vpop.f32.mrb[55].mxu1  ;;  %v7394_v28 = vcombine.high %v114_v22, %v150_v3 }
 0x1c3   :  { %8752 = vmatpush3.bf16.msra.mxu1 %v9430_v35  ;;  %v8378_v42 = vadd.f32 %v8377_v39, %v8376_v38  ;;  %8725 = vmatprep.subr.bf16.mxu0 %v9431_v25  ;;  %v9457_v38 = vld [vmem:[%s11898_s1 + $0xe18] sm:$0xff]  }
 0x1c4   :  { %v6128_v15 = vadd.f32 %v8350_v32, %v11172_v10  ;;  %v11296_v41 = vadd.f32 %v8375_v36, %v6125_v30  ;;  %v9433_v10 = vld [vmem:[%s11898_s1 + $0xd28] sm:$0xff]   ;;  %8753 = vmatprep.subr.bf16.mxu1 %v9432_v40  ;;  %v7393_v30 = vcombine.low %v114_v22, %v150_v3  ;;  %v9454_v32 = vld [vmem:[%s11898_s1 + $0xe90] sm:$0xff]  }
 0x1c5   :  { %8726 = vmatpush3.bf16.msra.mxu0 %v9433_v10  ;;  %v9459_v10 = vld [vmem:[%s11898_s1 + $0xe60] sm:$0xff]   ;;  %v9481_v22 = vld [vmem:[%s11898_s1 + $0xf08] sm:$0xff]  }
 0x1c6   :  { %v11304_v44 = vadd.f32 %v8378_v42, %v6128_v15  ;;  %8727 = vmatprep.subr.bf16.mxu0 %v9435_v46  ;;  %v9456_v15 = vld [vmem:[%s11898_s1 + $0xed8] sm:$0xff]   ;;  %v9460_v46 = vld [vmem:[%s11898_s1 + $0xee0] sm:$0xff]  }
 0x1c7   :  { %8754 = vmatpush3.bf16.msra.mxu1 %v9434_v43 }
 0x1c8   :  { %8755 = vmatprep.subr.bf16.mxu1 %v9436_v29 }
 0x1c9   :  { %8728 = vmatpush3.bf16.msra.mxu0 %v9437_v47 }
 0x1ca   :  { %8729 = vmatprep.subr.bf16.mxu0 %v9439_v49  ;;  %v9461_v49 = vld [vmem:[%s11898_s1 + $0xe20] sm:$0xff]  }
 0x1cb   :  { %8756 = vmatpush3.bf16.msra.mxu1 %v9438_v48 }
 0x1cc   :  { %8757 = vmatprep.subr.bf16.mxu1 %v9440_v50 }
 0x1cd   :  { %8730 = vmatpush3.bf16.msra.mxu0 %v9441_v51  ;;  %v9462_v51 = vld [vmem:[%s11898_s1 + $0xea0] sm:$0xff]  }
 0x1ce   :  { %8771 = vmatprep.subr.bf16.mxu0 %v9443_v45  ;;  %v9467_v45 = vld [vmem:[%s11898_s1 + $0xe70] sm:$0xff]  }
 0x1cf   :  { %8758 = vmatpush3.bf16.msra.mxu1 %v9442_v34 }
 0x1d0   :  { %6801 = vmatmul.mubr.bf16.vlgmr.msra.gmra.mrb[104].mxu0 %v7319_v57  ;;  %8799 = vmatprep.subr.bf16.mxu1 %v9444_v0  ;;  %v9464_v57 = vld [vmem:[%s11898_s1 + $0xee8] sm:$0xff]   ;;  %v9468_v0 = vld [vmem:[%s11898_s1 + $0xef0] sm:$0xff]  }
 0x1d1   :  { %8772 = vmatpush3.bf16.msra.mxu0 %v9445_v2  ;;  %6808 = vmatprep.mubr.bf16.mxu0 %v7392_v13  ;;  %v9469_v2 = vld [vmem:[%s11898_s1 + $0xe30] sm:$0xff]   ;;  %v7325_v13 = vcombine.low %v44_v58, %v80_v9 }
 0x1d2   :  { %6850 = vmatmul.mubr.bf16.vlgmr.msra.gmra.mrb[104].mxu1 %v7321_v61  ;;  %8773 = vmatprep.subr.bf16.mxu0 %v9447_v4  ;;  %v9466_v61 = vld [vmem:[%s11898_s1 + $0xea8] sm:$0xff]   ;;  %v9471_v4 = vld [vmem:[%s11898_s1 + $0xe78] sm:$0xff]  }
 0x1d3   :  { %8800 = vmatpush3.bf16.msra.mxu1 %v9446_v55  ;;  %6857 = vmatprep.mubr.bf16.mxu1 %v7394_v28  ;;  %v9470_v55 = vld [vmem:[%s11898_s1 + $0xeb0] sm:$0xff]   ;;  %v151_v28 = vld [vmem:[%s11899_s0 + $0x440] sm:$0xff] }
 0x1d4   :  { %8801 = vmatprep.subr.bf16.mxu1 %v9448_v37  ;;  %v9472_v37 = vld [vmem:[%s11898_s1 + $0xef8] sm:$0xff]  }
 0x1d5   :  { %8774 = vmatpush3.bf16.msra.mxu0 %v9449_v5  ;;  %v9474_v5 = vld [vmem:[%s11898_s1 + $0xeb8] sm:$0xff]  }
 0x1d6   :  { %v8395_v54 = vpop.f32.mrb[56].mxu0  ;;  %8775 = vmatprep.subr.bf16.mxu0 %v9451_v63  ;;  %v9475_v63 = vld [vmem:[%s11898_s1 + $0xf40] sm:$0xff]  }
 0x1d7   :  { %v8423_v6 = vpop.f32.mrb[56].mxu1  ;;  %v8396_v59 = vpop.f32.mrb[57].mxu0  ;;  %8802 = vmatpush3.bf16.msra.mxu1 %v9450_v8  ;;  %v79_v8 = vld [vmem:[%s11899_s0 + $0x200] sm:$0xff] }
 0x1d8   :  { %v8424_v12 = vpop.f32.mrb[57].mxu1  ;;  %v8397_v1 = vadd.f32 %v8396_v59, %v8395_v54  ;;  %v8398_v18 = vpop.f32.mrb[58].mxu0  ;;  %6809 = vmatmul.mubr.bf16.gmra.mrb[108].mxu0 %v7391_v14  ;;  %8803 = vmatprep.subr.bf16.mxu1 %v9452_v19  ;;  %v9473_v54 = vld [vmem:[%s11898_s1 + $0xe38] sm:$0xff]   ;;  %v7326_v14 = vcombine.high %v44_v58, %v80_v9  ;;  %v9479_v19 = vld [vmem:[%s11898_s1 + $0xf48] sm:$0xff]  }
 0x1d9   :  { %v8425_v17 = vadd.f32 %v8424_v12, %v8423_v6  ;;  %v8426_v7 = vpop.f32.mrb[58].mxu1  ;;  %v8399_v26 = vpop.f32.mrb[59].mxu0  ;;  %8776 = vmatpush3.bf16.msra.mxu0 %v9453_v11  ;;  %v43_v6 = vld [vmem:[%s11899_s0 + $0xe0] sm:$0xff]  ;;  %v9496_v9 = vld [vmem:[%s11898_s1 + $0xfe8] sm:$0xff]  }
 0x1da   :  { %v6215_v23 = vadd.f32 %v8397_v1, %v11259_v16  ;;  %v8427_v27 = vpop.f32.mrb[59].mxu1  ;;  %v8400_v31 = vadd.f32 %v8399_v26, %v8398_v18  ;;  %v9455_v16 = vld [vmem:[%s11898_s1 + $0xe58] sm:$0xff]   ;;  %6858 = vmatmul.mubr.bf16.gmra.mrb[108].mxu1 %v7393_v30  ;;  %v7323_v59 = vcombine.low %v43_v6, %v79_v8  ;;  %v7324_v12 = vcombine.high %v43_v6, %v79_v8  ;;  %v9476_v1 = vld [vmem:[%s11898_s1 + $0xfc0] sm:$0xff]  }
 0x1db   :  { %v8428_v20 = vadd.f32 %v8427_v27, %v8426_v7  ;;  %8804 = vmatpush3.bf16.msra.mxu1 %v9454_v32  ;;  %8777 = vmatprep.subr.bf16.mxu0 %v9455_v16  ;;  %v9478_v18 = vld [vmem:[%s11898_s1 + $0xf80] sm:$0xff]   ;;  %v9480_v7 = vld [vmem:[%s11898_s1 + $0xfc8] sm:$0xff]  }
 0x1dc   :  { %v11391_v33 = vadd.f32 %v8425_v17, %v6215_v23  ;;  %v6218_v35 = vadd.f32 %v8400_v31, %v11271_v21  ;;  %8805 = vmatprep.subr.bf16.mxu1 %v9456_v15  ;;  %v9458_v21 = vld [vmem:[%s11898_s1 + $0xe98] sm:$0xff]   ;;  %6898 = vmatprep.mubr.bf16.mxu0 %v7324_v12  ;;  %v9477_v17 = vld [vmem:[%s11898_s1 + $0xf00] sm:$0xff]   ;;  %v9482_v23 = vld [vmem:[%s11898_s1 + $0xf88] sm:$0xff]  }
 0x1dd   :  { %8778 = vmatpush3.bf16.msra.mxu0 %v9457_v38  ;;  %6947 = vmatprep.mubr.bf16.mxu1 %v7326_v14  ;;  %v115_v27 = vld [vmem:[%s11899_s0 + $0x320] sm:$0xff]  ;;  %v9484_v15 = vld [vmem:[%s11898_s1 + $0xfd0] sm:$0xff]  }
 0x1de   :  { %v8401_v36 = vpop.f32.mrb[60].mxu0  ;;  %v11403_v25 = vadd.f32 %v8428_v20, %v6218_v35  ;;  %8779 = vmatprep.subr.bf16.mxu0 %v9459_v10  ;;  %v7396_v31 = vcombine.high %v115_v27, %v151_v28  ;;  %v7395_v32 = vcombine.low %v115_v27, %v151_v28  ;;  %v9483_v20 = vld [vmem:[%s11898_s1 + $0xf50] sm:$0xff]  }
 0x1df   :  { %v8402_v39 = vpop.f32.mrb[61].mxu0  ;;  %8806 = vmatpush3.bf16.msra.mxu1 %v9458_v21  ;;  %v8429_v47 = vpop.f32.mrb[60].mxu1 }
 0x1e0   :  { %v8403_v40 = vadd.f32 %v8402_v39, %v8401_v36  ;;  %v8404_v42 = vpop.f32.mrb[62].mxu0  ;;  %v8430_v50 = vpop.f32.mrb[61].mxu1  ;;  %8807 = vmatprep.subr.bf16.mxu1 %v9460_v46  ;;  %v116_v36 = vld [vmem:[%s11899_s0 + $0x328] sm:$0xff] }
 0x1e1   :  { %v8405_v43 = vpop.f32.mrb[63].mxu0  ;;  %v8431_v52 = vadd.f32 %v8430_v50, %v8429_v47  ;;  %v8432_v56 = vpop.f32.mrb[62].mxu1  ;;  %8780 = vmatpush3.bf16.msra.mxu0 %v9461_v49  ;;  %v9486_v49 = vld [vmem:[%s11898_s1 + $0xf90] sm:$0xff]  }
 0x1e2   :  { %v6223_v29 = vadd.f32 %v8403_v40, %v11296_v41  ;;  %v8406_v48 = vadd.f32 %v8405_v43, %v8404_v42  ;;  %v9463_v41 = vld [vmem:[%s11898_s1 + $0xe68] sm:$0xff]   ;;  %v8433_v24 = vpop.f32.mrb[63].mxu1 }
 0x1e3   :  { %8808 = vmatpush3.bf16.msra.mxu1 %v9462_v51  ;;  %v8434_v53 = vadd.f32 %v8433_v24, %v8432_v56  ;;  %8781 = vmatprep.subr.bf16.mxu0 %v9463_v41  ;;  %v152_v40 = vld [vmem:[%s11899_s0 + $0x448] sm:$0xff]  ;;  %v9490_v24 = vld [vmem:[%s11898_s1 + $0xf98] sm:$0xff]  }
 0x1e4   :  { %v6226_v34 = vadd.f32 %v8406_v48, %v11304_v44  ;;  %v11428_v60 = vadd.f32 %v8431_v52, %v6223_v29  ;;  %v9465_v44 = vld [vmem:[%s11898_s1 + $0xe28] sm:$0xff]   ;;  %8809 = vmatprep.subr.bf16.mxu1 %v9464_v57  ;;  %v7398_v46 = vcombine.high %v116_v36, %v152_v40  ;;  %v9485_v29 = vld [vmem:[%s11898_s1 + $0xf10] sm:$0xff]   ;;  %v7397_v47 = vcombine.low %v116_v36, %v152_v40 }
 0x1e5   :  { %8782 = vmatpush3.bf16.msra.mxu0 %v9465_v44  ;;  %v9491_v44 = vld [vmem:[%s11898_s1 + $0xf60] sm:$0xff]   ;;  %v9511_v36 = vld [vmem:[%s11898_s1 + $0x1048] sm:$0xff]  }
 0x1e6   :  { %v11436_v62 = vadd.f32 %v8434_v53, %v6226_v34  ;;  %8783 = vmatprep.subr.bf16.mxu0 %v9467_v45  ;;  %v9488_v34 = vld [vmem:[%s11898_s1 + $0xfd8] sm:$0xff]   ;;  %v9492_v45 = vld [vmem:[%s11898_s1 + $0xfe0] sm:$0xff]  }
 0x1e7   :  { %8810 = vmatpush3.bf16.msra.mxu1 %v9466_v61 }
 0x1e8   :  { %8811 = vmatprep.subr.bf16.mxu1 %v9468_v0 }
 0x1e9   :  { %8784 = vmatpush3.bf16.msra.mxu0 %v9469_v2 }
 0x1ea   :  { %8785 = vmatprep.subr.bf16.mxu0 %v9471_v4  ;;  %v9493_v4 = vld [vmem:[%s11898_s1 + $0xf20] sm:$0xff]  }
 0x1eb   :  { %8812 = vmatpush3.bf16.msra.mxu1 %v9470_v55 }
 0x1ec   :  { %8813 = vmatprep.subr.bf16.mxu1 %v9472_v37 }
 0x1ed   :  { %8786 = vmatpush3.bf16.msra.mxu0 %v9473_v54  ;;  %v9494_v54 = vld [vmem:[%s11898_s1 + $0xfa0] sm:$0xff]  }
 0x1ee   :  { %8827 = vmatprep.subr.bf16.mxu0 %v9475_v63  ;;  %v9499_v63 = vld [vmem:[%s11898_s1 + $0xf70] sm:$0xff]  }
 0x1ef   :  { %8814 = vmatpush3.bf16.msra.mxu1 %v9474_v5 }
 0x1f0   :  { %6899 = vmatmul.mubr.bf16.vlgmr.msra.gmra.mrb[112].mxu0 %v7323_v59  ;;  %8855 = vmatprep.subr.bf16.mxu1 %v9476_v1  ;;  %v9500_v1 = vld [vmem:[%s11898_s1 + $0xff0] sm:$0xff]  }
 0x1f1   :  { %8828 = vmatpush3.bf16.msra.mxu0 %v9477_v17  ;;  %6906 = vmatprep.mubr.bf16.mxu0 %v7396_v31  ;;  %v9501_v17 = vld [vmem:[%s11898_s1 + $0xf30] sm:$0xff]  }
 0x1f2   :  { %6948 = vmatmul.mubr.bf16.vlgmr.msra.gmra.mrb[112].mxu1 %v7325_v13  ;;  %8829 = vmatprep.subr.bf16.mxu0 %v9479_v19  ;;  %v9498_v13 = vld [vmem:[%s11898_s1 + $0xfa8] sm:$0xff]   ;;  %v9503_v19 = vld [vmem:[%s11898_s1 + $0xf78] sm:$0xff]  }
 0x1f3   :  { %8856 = vmatpush3.bf16.msra.mxu1 %v9478_v18  ;;  %6955 = vmatprep.mubr.bf16.mxu1 %v7398_v46  ;;  %v9502_v18 = vld [vmem:[%s11898_s1 + $0xfb0] sm:$0xff]  }
 0x1f4   :  { %8857 = vmatprep.subr.bf16.mxu1 %v9480_v7  ;;  %v9504_v7 = vld [vmem:[%s11898_s1 + $0xff8] sm:$0xff]  }
 0x1f5   :  { %8830 = vmatpush3.bf16.msra.mxu0 %v9481_v22  ;;  %v9505_v22 = vld [vmem:[%s11898_s1 + $0xf38] sm:$0xff]  }
 0x1f6   :  { %8831 = vmatprep.subr.bf16.mxu0 %v9483_v20  ;;  %v9507_v20 = vld [vmem:[%s11898_s1 + $0x1040] sm:$0xff]  }
 0x1f7   :  { %8858 = vmatpush3.bf16.msra.mxu1 %v9482_v23  ;;  %v45_v23 = vld [vmem:[%s11899_s0 + $0xf0] sm:$0xff] }
 0x1f8   :  { %6907 = vmatmul.mubr.bf16.gmra.mrb[116].mxu0 %v7395_v32  ;;  %8859 = vmatprep.subr.bf16.mxu1 %v9484_v15  ;;  %v9510_v15 = vld [vmem:[%s11898_s1 + $0x1080] sm:$0xff]  }
 0x1f9   :  { %8832 = vmatpush3.bf16.msra.mxu0 %v9485_v29  ;;  %v153_v29 = vld [vmem:[%s11899_s0 + $0x450] sm:$0xff] }
 0x1fa   :  { %6956 = vmatmul.mubr.bf16.gmra.mrb[116].mxu1 %v7397_v47 }
 0x1fb   :  { %8860 = vmatpush3.bf16.msra.mxu1 %v9486_v49 }
 0x1fc   :  { %8861 = vmatprep.subr.bf16.mxu1 %v9488_v34  ;;  %v9515_v34 = vld [vmem:[%s11898_s1 + $0x1050] sm:$0xff]  }
 0x1ff   :  { %8862 = vmatpush3.bf16.msra.mxu1 %v9490_v24  ;;  %v154_v24 = vld [vmem:[%s11899_s0 + $0x458] sm:$0xff] }
 0x200   :  { %8863 = vmatprep.subr.bf16.mxu1 %v9492_v45  ;;  %v9517_v45 = vld [vmem:[%s11898_s1 + $0x1010] sm:$0xff]  }
 0x202   :  { %v8451_v3 = vpop.f32.mrb[64].mxu0 }
 0x203   :  { %v8479_v26 = vpop.f32.mrb[64].mxu1  ;;  %v8452_v11 = vpop.f32.mrb[65].mxu0  ;;  %8864 = vmatpush3.bf16.msra.mxu1 %v9494_v54 }
 0x204   :  { %v8480_v30 = vpop.f32.mrb[65].mxu1  ;;  %v8453_v16 = vadd.f32 %v8452_v11, %v8451_v3  ;;  %v8454_v35 = vpop.f32.mrb[66].mxu0  ;;  %8865 = vmatprep.subr.bf16.mxu1 %v9496_v9  ;;  %v9506_v3 = vld [vmem:[%s11898_s1 + $0xfb8] sm:$0xff]   ;;  %v9523_v9 = vld [vmem:[%s11898_s1 + $0x1060] sm:$0xff]  }
 0x205   :  { %v8481_v38 = vadd.f32 %v8480_v30, %v8479_v26  ;;  %v8482_v39 = vpop.f32.mrb[66].mxu1  ;;  %v8455_v21 = vpop.f32.mrb[67].mxu0  ;;  %v81_v26 = vld [vmem:[%s11899_s0 + $0x210] sm:$0xff]  ;;  %v46_v11 = vld [vmem:[%s11899_s0 + $0xf8] sm:$0xff] }
 0x206   :  { %v6313_v42 = vadd.f32 %v8453_v16, %v11391_v33  ;;  %v8456_v10 = vadd.f32 %v8455_v21, %v8454_v35  ;;  %v8483_v43 = vpop.f32.mrb[67].mxu1  ;;  %v9487_v33 = vld [vmem:[%s11898_s1 + $0xf58] sm:$0xff]   ;;  %v7327_v27 = vcombine.low %v45_v23, %v81_v26  ;;  %v7328_v28 = vcombine.high %v45_v23, %v81_v26  ;;  %v9508_v16 = vld [vmem:[%s11898_s1 + $0x10c0] sm:$0xff]   ;;  %v9513_v21 = vld [vmem:[%s11898_s1 + $0x1008] sm:$0xff]  }
 0x207   :  { %v8484_v48 = vadd.f32 %v8483_v43, %v8482_v39  ;;  %8833 = vmatprep.subr.bf16.mxu0 %v9487_v33  ;;  %8866 = vmatpush3.bf16.msra.mxu1 %v9498_v13  ;;  %v82_v30 = vld [vmem:[%s11899_s0 + $0x218] sm:$0xff]  ;;  %v9509_v35 = vld [vmem:[%s11898_s1 + $0x1000] sm:$0xff]  }
 0x208   :  { %v11523_v50 = vadd.f32 %v8481_v38, %v6313_v42  ;;  %v6316_v51 = vadd.f32 %v8456_v10, %v11403_v25  ;;  %v9489_v25 = vld [vmem:[%s11898_s1 + $0xf18] sm:$0xff]   ;;  %8867 = vmatprep.subr.bf16.mxu1 %v9500_v1  ;;  %v7329_v31 = vcombine.low %v46_v11, %v82_v30  ;;  %v7330_v32 = vcombine.high %v46_v11, %v82_v30  ;;  %v9512_v38 = vld [vmem:[%s11898_s1 + $0x10c8] sm:$0xff]   ;;  %v117_v10 = vld [vmem:[%s11899_s0 + $0x330] sm:$0xff] }
 0x209   :  { %8834 = vmatpush3.bf16.msra.mxu0 %v9489_v25  ;;  %6996 = vmatprep.mubr.bf16.mxu0 %v7328_v28  ;;  %v9514_v42 = vld [vmem:[%s11898_s1 + $0x1088] sm:$0xff]   ;;  %v7399_v33 = vcombine.low %v117_v10, %v153_v29  ;;  %v9516_v25 = vld [vmem:[%s11898_s1 + $0x10d0] sm:$0xff]   ;;  %v9524_v13 = vld [vmem:[%s11898_s1 + $0x10e0] sm:$0xff]  }
 0x20a   :  { %v11532_v52 = vadd.f32 %v8484_v48, %v6316_v51  ;;  %v8457_v56 = vpop.f32.mrb[68].mxu0  ;;  %8835 = vmatprep.subr.bf16.mxu0 %v9491_v44  ;;  %7045 = vmatprep.mubr.bf16.mxu1 %v7330_v32  ;;  %v7400_v51 = vcombine.high %v117_v10, %v153_v29  ;;  %v9525_v1 = vld [vmem:[%s11898_s1 + $0x1020] sm:$0xff]   ;;  %v9529_v11 = vld [vmem:[%s11898_s1 + $0x1028] sm:$0xff]  }
 0x20b   :  { %v8458_v41 = vpop.f32.mrb[69].mxu0  ;;  %v8485_v2 = vpop.f32.mrb[68].mxu1  ;;  %8868 = vmatpush3.bf16.msra.mxu1 %v9502_v18  ;;  %v9530_v32 = vld [vmem:[%s11898_s1 + $0x10a8] sm:$0xff]  }
 0x20c   :  { %v8459_v57 = vadd.f32 %v8458_v41, %v8457_v56  ;;  %v8460_v53 = vpop.f32.mrb[70].mxu0  ;;  %v8486_v37 = vpop.f32.mrb[69].mxu1  ;;  %8869 = vmatprep.subr.bf16.mxu1 %v9504_v7  ;;  %v118_v41 = vld [vmem:[%s11899_s0 + $0x338] sm:$0xff]  ;;  %v48_v10 = vld [vmem:[%s11899_s0 + $0x108] sm:$0xff] }
 0x20d   :  { %v8461_v61 = vpop.f32.mrb[71].mxu0  ;;  %v8487_v6 = vadd.f32 %v8486_v37, %v8485_v2  ;;  %v8488_v8 = vpop.f32.mrb[70].mxu1  ;;  %8836 = vmatpush3.bf16.msra.mxu0 %v9493_v4  ;;  %v9519_v37 = vld [vmem:[%s11898_s1 + $0x1058] sm:$0xff]   ;;  %v84_v29 = vld [vmem:[%s11899_s0 + $0x228] sm:$0xff] }
 0x20e   :  { %v6321_v0 = vadd.f32 %v8459_v57, %v11428_v60  ;;  %v8462_v55 = vadd.f32 %v8461_v61, %v8460_v53  ;;  %v9495_v60 = vld [vmem:[%s11898_s1 + $0xf68] sm:$0xff]   ;;  %v8489_v58 = vpop.f32.mrb[71].mxu1  ;;  %v7402_v61 = vcombine.high %v118_v41, %v154_v24 }
 0x20f   :  { %v8490_v12 = vadd.f32 %v8489_v58, %v8488_v8  ;;  %8837 = vmatprep.subr.bf16.mxu0 %v9495_v60  ;;  %8870 = vmatpush3.bf16.msra.mxu1 %v9506_v3  ;;  %v9522_v58 = vld [vmem:[%s11898_s1 + $0x1098] sm:$0xff]   ;;  %v9527_v3 = vld [vmem:[%s11898_s1 + $0x1068] sm:$0xff]  }
 0x210   :  { %v6324_v5 = vadd.f32 %v8462_v55, %v11436_v62  ;;  %v11560_v59 = vadd.f32 %v8487_v6, %v6321_v0  ;;  %v9497_v62 = vld [vmem:[%s11898_s1 + $0xf28] sm:$0xff]   ;;  %8911 = vmatprep.subr.bf16.mxu1 %v9508_v16  ;;  %v7401_v0 = vcombine.low %v118_v41, %v154_v24  ;;  %v9518_v55 = vld [vmem:[%s11898_s1 + $0x1090] sm:$0xff]   ;;  %v9521_v6 = vld [vmem:[%s11898_s1 + $0x1018] sm:$0xff]  }
 0x211   :  { %8838 = vmatpush3.bf16.msra.mxu0 %v9497_v62  ;;  %v9532_v16 = vld [vmem:[%s11898_s1 + $0x10f0] sm:$0xff]   ;;  %v9545_v24 = vld [vmem:[%s11898_s1 + $0x1108] sm:$0xff]  }
 0x212   :  { %v11568_v14 = vadd.f32 %v8490_v12, %v6324_v5  ;;  %8839 = vmatprep.subr.bf16.mxu0 %v9499_v63  ;;  %7046 = vmatmul.mubr.bf16.vlgmr.msra.gmra.mrb[120].mxu1 %v7329_v31  ;;  %v9520_v5 = vld [vmem:[%s11898_s1 + $0x10d8] sm:$0xff]  }
 0x213   :  { %8912 = vmatpush3.bf16.msra.mxu1 %v9510_v15  ;;  %7053 = vmatprep.mubr.bf16.mxu1 %v7402_v61  ;;  %v9534_v15 = vld [vmem:[%s11898_s1 + $0x10b0] sm:$0xff]   ;;  %v155_v61 = vld [vmem:[%s11899_s0 + $0x460] sm:$0xff] }
 0x214   :  { %8913 = vmatprep.subr.bf16.mxu1 %v9512_v38  ;;  %v9536_v38 = vld [vmem:[%s11898_s1 + $0x10f8] sm:$0xff]  }
 0x215   :  { %8840 = vmatpush3.bf16.msra.mxu0 %v9501_v17 }
 0x216   :  { %8841 = vmatprep.subr.bf16.mxu0 %v9503_v19  ;;  %v9526_v19 = vld [vmem:[%s11898_s1 + $0x10a0] sm:$0xff]  }
 0x217   :  { %8914 = vmatpush3.bf16.msra.mxu1 %v9514_v42  ;;  %v83_v42 = vld [vmem:[%s11899_s0 + $0x220] sm:$0xff] }
 0x218   :  { %8915 = vmatprep.subr.bf16.mxu1 %v9516_v25  ;;  %v9544_v25 = vld [vmem:[%s11898_s1 + $0x11c8] sm:$0xff]  }
 0x219   :  { %8842 = vmatpush3.bf16.msra.mxu0 %v9505_v22 }
 0x21a   :  { %8883 = vmatprep.subr.bf16.mxu0 %v9507_v20  ;;  %7054 = vmatmul.mubr.bf16.gmra.mrb[124].mxu1 %v7401_v0  ;;  %v9531_v20 = vld [vmem:[%s11898_s1 + $0x1070] sm:$0xff]  }
 0x21b   :  { %8916 = vmatpush3.bf16.msra.mxu1 %v9518_v55 }
 0x21c   :  { %6997 = vmatmul.mubr.bf16.vlgmr.msra.gmra.mrb[120].mxu0 %v7327_v27  ;;  %8917 = vmatprep.subr.bf16.mxu1 %v9520_v5 }
 0x21d   :  { %8884 = vmatpush3.bf16.msra.mxu0 %v9509_v35  ;;  %7004 = vmatprep.mubr.bf16.mxu0 %v7400_v51  ;;  %v9533_v35 = vld [vmem:[%s11898_s1 + $0x1030] sm:$0xff]   ;;  %v9540_v51 = vld [vmem:[%s11898_s1 + $0x11c0] sm:$0xff]  }
 0x21e   :  { %8885 = vmatprep.subr.bf16.mxu0 %v9511_v36  ;;  %v9535_v36 = vld [vmem:[%s11898_s1 + $0x1078] sm:$0xff]  }
 0x21f   :  { %8918 = vmatpush3.bf16.msra.mxu1 %v9522_v58  ;;  %v120_v58 = vld [vmem:[%s11899_s0 + $0x348] sm:$0xff] }
 0x220   :  { %8919 = vmatprep.subr.bf16.mxu1 %v9524_v13 }
 0x221   :  { %8886 = vmatpush3.bf16.msra.mxu0 %v9513_v21  ;;  %v9538_v21 = vld [vmem:[%s11898_s1 + $0x10b8] sm:$0xff]  }
 0x222   :  { %8887 = vmatprep.subr.bf16.mxu0 %v9515_v34  ;;  %v9542_v34 = vld [vmem:[%s11898_s1 + $0x1180] sm:$0xff]  }
 0x223   :  { %v8507_v39 = vpop.f32.mrb[72].mxu0  ;;  %8920 = vmatpush3.bf16.msra.mxu1 %v9526_v19 }
 0x224   :  { %v8508_v43 = vpop.f32.mrb[73].mxu0  ;;  %7005 = vmatmul.mubr.bf16.gmra.mrb[124].mxu0 %v7399_v33  ;;  %v9541_v33 = vld [vmem:[%s11898_s1 + $0x1100] sm:$0xff]  }
 0x225   :  { %v8535_v40 = vpop.f32.mrb[72].mxu1  ;;  %v8509_v47 = vadd.f32 %v8508_v43, %v8507_v39  ;;  %v8510_v49 = vpop.f32.mrb[74].mxu0  ;;  %8888 = vmatpush3.bf16.msra.mxu0 %v9517_v45  ;;  %v9537_v39 = vld [vmem:[%s11898_s1 + $0x1038] sm:$0xff]  }
 0x226   :  { %v8536_v46 = vpop.f32.mrb[73].mxu1  ;;  %v8511_v53 = vpop.f32.mrb[75].mxu0  ;;  %8889 = vmatprep.subr.bf16.mxu0 %v9519_v37 }
 0x227   :  { %v8537_v48 = vadd.f32 %v8536_v46, %v8535_v40  ;;  %v8538_v56 = vpop.f32.mrb[74].mxu1  ;;  %v6411_v57 = vadd.f32 %v8509_v47, %v11523_v50  ;;  %v8512_v2 = vadd.f32 %v8511_v53, %v8510_v49  ;;  %v47_v40 = vld [vmem:[%s11899_s0 + $0x100] sm:$0xff]  ;;  %v7333_v47 = vcombine.low %v48_v10, %v84_v29  ;;  %v9546_v53 = vld [vmem:[%s11898_s1 + $0x1188] sm:$0xff]  }
 0x228   :  { %v8539_v44 = vpop.f32.mrb[75].mxu1  ;;  %v7331_v43 = vcombine.low %v47_v40, %v83_v42  ;;  %v7332_v46 = vcombine.high %v47_v40, %v83_v42  ;;  %v9539_v49 = vld [vmem:[%s11898_s1 + $0x1140] sm:$0xff]  }
 0x229   :  { %v11655_v4 = vadd.f32 %v8537_v48, %v6411_v57  ;;  %v8540_v50 = vadd.f32 %v8539_v44, %v8538_v56  ;;  %v6414_v54 = vadd.f32 %v8512_v2, %v11532_v52  ;;  %8890 = vmatpush3.bf16.msra.mxu0 %v9521_v6  ;;  %v7334_v48 = vcombine.high %v48_v10, %v84_v29  ;;  %v9543_v56 = vld [vmem:[%s11898_s1 + $0x1148] sm:$0xff]   ;;  %v119_v44 = vld [vmem:[%s11899_s0 + $0x340] sm:$0xff]  ;;  %v9548_v6 = vld [vmem:[%s11898_s1 + $0x11d0] sm:$0xff]  }
 0x22a   :  { %8891 = vmatprep.subr.bf16.mxu0 %v9523_v9  ;;  %7094 = vmatprep.mubr.bf16.mxu0 %v7332_v46  ;;  %v7404_v2 = vcombine.high %v119_v44, %v155_v61  ;;  %v7403_v55 = vcombine.low %v119_v44, %v155_v61  ;;  %v50_v44 = vld [vmem:[%s11899_s0 + $0x118] sm:$0xff] }
 0x22b   :  { %v11667_v8 = vadd.f32 %v8540_v50, %v6414_v54  ;;  %v8513_v60 = vpop.f32.mrb[76].mxu0  ;;  %7143 = vmatprep.mubr.bf16.mxu1 %v7334_v48  ;;  %v9547_v50 = vld [vmem:[%s11898_s1 + $0x1150] sm:$0xff]   ;;  %v86_v61 = vld [vmem:[%s11899_s0 + $0x238] sm:$0xff] }
 0x22c   :  { %v8514_v52 = vpop.f32.mrb[77].mxu0 }
 0x22d   :  { %v8515_v12 = vadd.f32 %v8514_v52, %v8513_v60  ;;  %v8516_v62 = vpop.f32.mrb[78].mxu0  ;;  %v8541_v63 = vpop.f32.mrb[76].mxu1  ;;  %8892 = vmatpush3.bf16.msra.mxu0 %v9525_v1  ;;  %v156_v52 = vld [vmem:[%s11899_s0 + $0x468] sm:$0xff] }
 0x22e   :  { %v8517_v18 = vpop.f32.mrb[79].mxu0  ;;  %v8542_v22 = vpop.f32.mrb[77].mxu1  ;;  %8893 = vmatprep.subr.bf16.mxu0 %v9527_v3  ;;  %v7406_v13 = vcombine.high %v120_v58, %v156_v52  ;;  %v7405_v1 = vcombine.low %v120_v58, %v156_v52  ;;  %v9552_v3 = vld [vmem:[%s11898_s1 + $0x11d8] sm:$0xff]  }
 0x22f   :  { %v6419_v17 = vadd.f32 %v8515_v12, %v11560_v59  ;;  %v8518_v7 = vadd.f32 %v8517_v18, %v8516_v62  ;;  %v8543_v23 = vadd.f32 %v8542_v22, %v8541_v63  ;;  %v8544_v26 = vpop.f32.mrb[78].mxu1  ;;  %v9528_v59 = vld [vmem:[%s11898_s1 + $0x10e8] sm:$0xff]   ;;  %v9549_v63 = vld [vmem:[%s11898_s1 + $0x1110] sm:$0xff]  }
 0x230   :  { %v8545_v28 = vpop.f32.mrb[79].mxu1  ;;  %8921 = vmatprep.subr.bf16.mxu1 %v9528_v59  ;;  %v9550_v18 = vld [vmem:[%s11898_s1 + $0x1190] sm:$0xff]  }
 0x231   :  { %v6422_v27 = vadd.f32 %v8518_v7, %v11568_v14  ;;  %v11695_v30 = vadd.f32 %v8543_v23, %v6419_v17  ;;  %v8546_v31 = vadd.f32 %v8545_v28, %v8544_v26  ;;  %8894 = vmatpush3.bf16.msra.mxu0 %v9529_v11  ;;  %8922 = vmatpush3.bf16.msra.mxu1 %v9530_v32  ;;  %v9553_v26 = vld [vmem:[%s11898_s1 + $0x1118] sm:$0xff]  }
 0x232   :  { %8895 = vmatprep.subr.bf16.mxu0 %v9531_v20  ;;  %8923 = vmatprep.subr.bf16.mxu1 %v9532_v16  ;;  %v9556_v20 = vld [vmem:[%s11898_s1 + $0x11e0] sm:$0xff]  }
 0x233   :  { %v11703_v14 = vadd.f32 %v8546_v31, %v6422_v27  ;;  %v9555_v31 = vld [vmem:[%s11898_s1 + $0x1160] sm:$0xff]  }
 0x235   :  { %8896 = vmatpush3.bf16.msra.mxu0 %v9533_v35  ;;  %8924 = vmatpush3.bf16.msra.mxu1 %v9534_v15 }
 0x236   :  { %8897 = vmatprep.subr.bf16.mxu0 %v9535_v36  ;;  %8925 = vmatprep.subr.bf16.mxu1 %v9536_v38  ;;  %v9557_v36 = vld [vmem:[%s11898_s1 + $0x1120] sm:$0xff]  }
 0x239   :  { %8898 = vmatpush3.bf16.msra.mxu0 %v9537_v39  ;;  %8926 = vmatpush3.bf16.msra.mxu1 %v9538_v21  ;;  %v9558_v39 = vld [vmem:[%s11898_s1 + $0x11a0] sm:$0xff]  }
 0x23a   :  { %8939 = vmatprep.subr.bf16.mxu0 %v9539_v49  ;;  %8967 = vmatprep.subr.bf16.mxu1 %v9540_v51  ;;  %v9563_v49 = vld [vmem:[%s11898_s1 + $0x1170] sm:$0xff]  }
 0x23b   :  { %v9564_v51 = vld [vmem:[%s11898_s1 + $0x11f0] sm:$0xff]  }
 0x23c   :  { %7095 = vmatmul.mubr.bf16.vlgmr.msra.gmra.mrb[128].mxu0 %v7331_v43  ;;  %7144 = vmatmul.mubr.bf16.vlgmr.msra.gmra.mrb[128].mxu1 %v7333_v47  ;;  %v9560_v43 = vld [vmem:[%s11898_s1 + $0x11e8] sm:$0xff]  }
 0x23d   :  { %8940 = vmatpush3.bf16.msra.mxu0 %v9541_v33  ;;  %8968 = vmatpush3.bf16.msra.mxu1 %v9542_v34  ;;  %v9562_v47 = vld [vmem:[%s11898_s1 + $0x11a8] sm:$0xff]   ;;  %v9565_v33 = vld [vmem:[%s11898_s1 + $0x1130] sm:$0xff]  }
 0x23e   :  { %8941 = vmatprep.subr.bf16.mxu0 %v9543_v56  ;;  %8969 = vmatprep.subr.bf16.mxu1 %v9544_v25  ;;  %v9566_v34 = vld [vmem:[%s11898_s1 + $0x11b0] sm:$0xff]   ;;  %v9567_v56 = vld [vmem:[%s11898_s1 + $0x1178] sm:$0xff]  }
 0x23f   :  { %7102 = vmatprep.mubr.bf16.mxu0 %v7404_v2  ;;  %7151 = vmatprep.mubr.bf16.mxu1 %v7406_v13  ;;  %v9568_v25 = vld [vmem:[%s11898_s1 + $0x11f8] sm:$0xff]   ;;  %v7337_v2 = vcombine.low %v50_v44, %v86_v61 }
 0x241   :  { %8942 = vmatpush3.bf16.msra.mxu0 %v9545_v24  ;;  %8970 = vmatpush3.bf16.msra.mxu1 %v9546_v53  ;;  %v9570_v24 = vld [vmem:[%s11898_s1 + $0x11b8] sm:$0xff]   ;;  %v85_v53 = vld [vmem:[%s11899_s0 + $0x230] sm:$0xff] }
 0x242   :  { %8943 = vmatprep.subr.bf16.mxu0 %v9547_v50  ;;  %8971 = vmatprep.subr.bf16.mxu1 %v9548_v6  ;;  %v121_v50 = vld [vmem:[%s11899_s0 + $0x350] sm:$0xff]  ;;  %v158_v6 = vld [vmem:[%s11899_s0 + $0x478] sm:$0xff] }
 0x243   :  { %v8563_v41 = vpop.f32.mrb[80].mxu0 }
 0x244   :  { %v8564_v45 = vpop.f32.mrb[81].mxu0  ;;  %7103 = vmatmul.mubr.bf16.gmra.mrb[132].mxu0 %v7403_v55  ;;  %7152 = vmatmul.mubr.bf16.gmra.mrb[132].mxu1 %v7405_v1  ;;  %v7338_v55 = vcombine.high %v50_v44, %v86_v61 }
 0x245   :  { %v8591_v57 = vpop.f32.mrb[80].mxu1  ;;  %v8565_v37 = vadd.f32 %v8564_v45, %v8563_v41  ;;  %v8566_v5 = vpop.f32.mrb[82].mxu0  ;;  %8944 = vmatpush3.bf16.msra.mxu0 %v9549_v63  ;;  %8972 = vmatpush3.bf16.msra.mxu1 %v9550_v18  ;;  %v9569_v41 = vld [vmem:[%s11898_s1 + $0x1138] sm:$0xff]  }
 0x246   :  { %v8592_v0 = vpop.f32.mrb[81].mxu1  ;;  %v8567_v12 = vpop.f32.mrb[83].mxu0  ;;  %8973 = vmatprep.subr.bf16.mxu1 %v9552_v3  ;;  %7241 = vmatprep.mubr.bf16.mxu1 %v7338_v55 }
 0x247   :  { %v8593_v54 = vadd.f32 %v8592_v0, %v8591_v57  ;;  %v8594_v60 = vpop.f32.mrb[82].mxu1  ;;  %v6509_v9 = vadd.f32 %v8565_v37, %v11655_v4  ;;  %v8568_v17 = vadd.f32 %v8567_v12, %v8566_v5  ;;  %v9551_v4 = vld [vmem:[%s11898_s1 + $0x1158] sm:$0xff]   ;;  %v49_v57 = vld [vmem:[%s11899_s0 + $0x110] sm:$0xff] }
 0x248   :  { %v8595_v62 = vpop.f32.mrb[83].mxu1  ;;  %8945 = vmatprep.subr.bf16.mxu0 %v9551_v4  ;;  %v7335_v45 = vcombine.low %v49_v57, %v85_v53  ;;  %v7336_v0 = vcombine.high %v49_v57, %v85_v53  ;;  %v157_v37 = vld [vmem:[%s11899_s0 + $0x470] sm:$0xff] }
 0x249   :  { %v11787_v19 = vadd.f32 %v8593_v54, %v6509_v9  ;;  %v8596_v7 = vadd.f32 %v8595_v62, %v8594_v60  ;;  %v6512_v22 = vadd.f32 %v8568_v17, %v11667_v8  ;;  %v9554_v8 = vld [vmem:[%s11898_s1 + $0x1198] sm:$0xff]   ;;  %8946 = vmatpush3.bf16.msra.mxu0 %v9553_v26  ;;  %v7408_v5 = vcombine.high %v121_v50, %v157_v37 }
 0x24a   :  { %8974 = vmatpush3.bf16.msra.mxu1 %v9554_v8  ;;  %8947 = vmatprep.subr.bf16.mxu0 %v9555_v31  ;;  %v122_v54 = vld [vmem:[%s11899_s0 + $0x358] sm:$0xff]  ;;  %v7407_v9 = vcombine.low %v121_v50, %v157_v37 }
 0x24b   :  { %v8569_v23 = vpop.f32.mrb[84].mxu0  ;;  %v11799_v59 = vadd.f32 %v8596_v7, %v6512_v22  ;;  %8975 = vmatprep.subr.bf16.mxu1 %v9556_v20  ;;  %7192 = vmatprep.mubr.bf16.mxu0 %v7336_v0  ;;  %v7410_v60 = vcombine.high %v122_v54, %v158_v6  ;;  %v7409_v12 = vcombine.low %v122_v54, %v158_v6 }
 0x24c   :  { %v8570_v27 = vpop.f32.mrb[85].mxu0 }
 0x24d   :  { %v8571_v28 = vadd.f32 %v8570_v27, %v8569_v23  ;;  %v8572_v11 = vpop.f32.mrb[86].mxu0  ;;  %v8597_v35 = vpop.f32.mrb[84].mxu1  ;;  %8948 = vmatpush3.bf16.msra.mxu0 %v9557_v36 }
 0x24e   :  { %v8573_v32 = vpop.f32.mrb[87].mxu0  ;;  %v8598_v38 = vpop.f32.mrb[85].mxu1  ;;  %8976 = vmatpush3.bf16.msra.mxu1 %v9558_v39 }
 0x24f   :  { %v6517_v16 = vadd.f32 %v8571_v28, %v11695_v30  ;;  %v8574_v15 = vadd.f32 %v8573_v32, %v8572_v11  ;;  %v8599_v40 = vadd.f32 %v8598_v38, %v8597_v35  ;;  %v8600_v42 = vpop.f32.mrb[86].mxu1  ;;  %v9559_v30 = vld [vmem:[%s11898_s1 + $0x1168] sm:$0xff]   ;;  %8977 = vmatprep.subr.bf16.mxu1 %v9560_v43 }
 0x250   :  { %v8601_v10 = vpop.f32.mrb[87].mxu1  ;;  %8949 = vmatprep.subr.bf16.mxu0 %v9559_v30 }
 0x251   :  { %v6520_v21 = vadd.f32 %v8574_v15, %v11703_v14  ;;  %v11824_v46 = vadd.f32 %v8599_v40, %v6517_v16  ;;  %v8602_v29 = vadd.f32 %v8601_v10, %v8600_v42  ;;  %v9561_v14 = vld [vmem:[%s11898_s1 + $0x1128] sm:$0xff]  }
 0x252   :  { %8950 = vmatpush3.bf16.msra.mxu0 %v9561_v14  ;;  %8978 = vmatpush3.bf16.msra.mxu1 %v9562_v47 }
 0x253   :  { %v11832_v48 = vadd.f32 %v8602_v29, %v6520_v21  ;;  %8951 = vmatprep.subr.bf16.mxu0 %v9563_v49  ;;  %8979 = vmatprep.subr.bf16.mxu1 %v9564_v51 }
 0x256   :  { %8952 = vmatpush3.bf16.msra.mxu0 %v9565_v33  ;;  %8980 = vmatpush3.bf16.msra.mxu1 %v9566_v34 }
 0x257   :  { %8953 = vmatprep.subr.bf16.mxu0 %v9567_v56  ;;  %8981 = vmatprep.subr.bf16.mxu1 %v9568_v25 }
 0x25a   :  { %8954 = vmatpush3.bf16.msra.mxu0 %v9569_v41  ;;  %8982 = vmatpush3.bf16.msra.mxu1 %v9570_v24 }
 0x25d   :  { %7193 = vmatmul.mubr.bf16.vlgmr.msra.gmra.mrb[136].mxu0 %v7335_v45  ;;  %7242 = vmatmul.mubr.bf16.vlgmr.msra.gmra.mrb[136].mxu1 %v7337_v2 }
 0x25e   :  { %7200 = vmatprep.mubr.bf16.mxu0 %v7408_v5  ;;  %7249 = vmatprep.mubr.bf16.mxu1 %v7410_v60 }
 0x263   :  { %v8619_v58 = vpop.f32.mrb[88].mxu0 }
 0x264   :  { %v8620_v62 = vpop.f32.mrb[89].mxu0 }
 0x265   :  { %v8647_v52 = vpop.f32.mrb[88].mxu1  ;;  %v8621_v63 = vadd.f32 %v8620_v62, %v8619_v58  ;;  %v8622_v17 = vpop.f32.mrb[90].mxu0  ;;  %7201 = vmatmul.mubr.bf16.gmra.mrb[140].mxu0 %v7407_v9  ;;  %7250 = vmatmul.mubr.bf16.gmra.mrb[140].mxu1 %v7409_v12 }
 0x266   :  { %v8648_v13 = vpop.f32.mrb[89].mxu1  ;;  %v8623_v7 = vpop.f32.mrb[91].mxu0 }
 0x267   :  { %v8649_v1 = vadd.f32 %v8648_v13, %v8647_v52  ;;  %v8650_v18 = vpop.f32.mrb[90].mxu1  ;;  %v6607_v22 = vadd.f32 %v8621_v63, %v11787_v19  ;;  %v8624_v3 = vadd.f32 %v8623_v7, %v8622_v17 }
 0x268   :  { %v8651_v4 = vpop.f32.mrb[91].mxu1 }
 0x269   :  { %v8652_v23 = vadd.f32 %v8651_v4, %v8650_v18  ;;  %v6656_v26 = vadd.f32 %v8649_v1, %v6607_v22  ;;  %v6610_v27 = vadd.f32 %v8624_v3, %v11799_v59 }
 0x26b   :  { %v6659_v8 = vadd.f32 %v8652_v23, %v6610_v27  ;;  %v8625_v28 = vpop.f32.mrb[92].mxu0 }
 0x26c   :  { %v8626_v11 = vpop.f32.mrb[93].mxu0 }
 0x26d   :  { %v8627_v31 = vadd.f32 %v8626_v11, %v8625_v28  ;;  %v8628_v32 = vpop.f32.mrb[94].mxu0  ;;  %v8653_v35 = vpop.f32.mrb[92].mxu1 }
 0x26e   :  { %v8629_v20 = vpop.f32.mrb[95].mxu0  ;;  %v8654_v36 = vpop.f32.mrb[93].mxu1 }
 0x26f   :  { %v6615_v16 = vadd.f32 %v8627_v31, %v11824_v46  ;;  %v8630_v15 = vadd.f32 %v8629_v20, %v8628_v32  ;;  %v8655_v38 = vadd.f32 %v8654_v36, %v8653_v35  ;;  %v8656_v39 = vpop.f32.mrb[94].mxu1 }
 0x270   :  { %v8657_v21 = vpop.f32.mrb[95].mxu1 }
 0x271   :  { %v6618_v19 = vadd.f32 %v8630_v15, %v11832_v48  ;;  %v6664_v40 = vadd.f32 %v8655_v38, %v6615_v16  ;;  %v8658_v42 = vadd.f32 %v8657_v21, %v8656_v39 }
 0x273   :  { %v6667_v30 = vadd.f32 %v8658_v42, %v6618_v19 }
 0x283   :  { %v8675_v59 = vpop.f32.mrb[96].mxu0 }
 0x284   :  { %v8676_v43 = vpop.f32.mrb[97].mxu0 }
 0x285   :  { %v8703_v10 = vpop.f32.mrb[96].mxu1  ;;  %v8677_v29 = vadd.f32 %v8676_v43, %v8675_v59  ;;  %v8678_v47 = vpop.f32.mrb[98].mxu0 }
 0x286   :  { %v8704_v14 = vpop.f32.mrb[97].mxu1  ;;  %v8679_v46 = vpop.f32.mrb[99].mxu0 }
 0x287   :  { %v8705_v49 = vadd.f32 %v8704_v14, %v8703_v10  ;;  %v8706_v51 = vpop.f32.mrb[98].mxu1  ;;  %v6705_v33 = vadd.f32 %v8677_v29, %v6656_v26  ;;  %v8680_v34 = vadd.f32 %v8679_v46, %v8678_v47 }
 0x288   :  { %v8707_v56 = vpop.f32.mrb[99].mxu1 }
 0x289   :  { %v8708_v25 = vadd.f32 %v8707_v56, %v8706_v51  ;;  %v6754_v48 = vadd.f32 %v8705_v49, %v6705_v33  ;;  %v6708_v41 = vadd.f32 %v8680_v34, %v6659_v8 }
 0x28b   :  { %v6757_v24 = vadd.f32 %v8708_v25, %v6708_v41  ;;  %v8681_v57 = vpop.f32.mrb[100].mxu0 }
 0x28c   :  { %v8682_v53 = vpop.f32.mrb[101].mxu0 }
 0x28d   :  { %v8683_v44 = vadd.f32 %v8682_v53, %v8681_v57  ;;  %v8684_v61 = vpop.f32.mrb[102].mxu0  ;;  %v8709_v45 = vpop.f32.mrb[100].mxu1 }
 0x28e   :  { %v8685_v0 = vpop.f32.mrb[103].mxu0  ;;  %v8710_v50 = vpop.f32.mrb[101].mxu1 }
 0x28f   :  { %v6713_v2 = vadd.f32 %v8683_v44, %v6664_v40  ;;  %v8686_v55 = vadd.f32 %v8685_v0, %v8684_v61  ;;  %v8711_v37 = vadd.f32 %v8710_v50, %v8709_v45  ;;  %v8712_v54 = vpop.f32.mrb[102].mxu1 }
 0x290   :  { %v8713_v6 = vpop.f32.mrb[103].mxu1 }
 0x291   :  { %v6716_v5 = vadd.f32 %v8686_v55, %v6667_v30  ;;  %v6762_v60 = vadd.f32 %v8711_v37, %v6713_v2  ;;  %v8714_v58 = vadd.f32 %v8713_v6, %v8712_v54 }
 0x293   :  { %v6765_v52 = vadd.f32 %v8714_v58, %v6716_v5 }
 0x2a3   :  { %v8731_v9 = vpop.f32.mrb[104].mxu0 }
 0x2a4   :  { %v8732_v62 = vpop.f32.mrb[105].mxu0 }
 0x2a5   :  { %v8759_v12 = vpop.f32.mrb[104].mxu1  ;;  %v8733_v13 = vadd.f32 %v8732_v62, %v8731_v9  ;;  %v8734_v1 = vpop.f32.mrb[106].mxu0 }
 0x2a6   :  { %v8760_v63 = vpop.f32.mrb[105].mxu1  ;;  %v8735_v7 = vpop.f32.mrb[107].mxu0 }
 0x2a7   :  { %v8761_v17 = vadd.f32 %v8760_v63, %v8759_v12  ;;  %v8762_v18 = vpop.f32.mrb[106].mxu1  ;;  %v6803_v4 = vadd.f32 %v8733_v13, %v6754_v48  ;;  %v8736_v22 = vadd.f32 %v8735_v7, %v8734_v1 }
 0x2a8   :  { %v8763_v3 = vpop.f32.mrb[107].mxu1 }
 0x2a9   :  { %v8764_v23 = vadd.f32 %v8763_v3, %v8762_v18  ;;  %v6852_v26 = vadd.f32 %v8761_v17, %v6803_v4  ;;  %v6806_v27 = vadd.f32 %v8736_v22, %v6757_v24 }
 0x2ab   :  { %v6855_v8 = vadd.f32 %v8764_v23, %v6806_v27  ;;  %v8737_v28 = vpop.f32.mrb[108].mxu0 }
 0x2ac   :  { %v8738_v11 = vpop.f32.mrb[109].mxu0 }
 0x2ad   :  { %v8739_v31 = vadd.f32 %v8738_v11, %v8737_v28  ;;  %v8740_v32 = vpop.f32.mrb[110].mxu0  ;;  %v8765_v35 = vpop.f32.mrb[108].mxu1 }
 0x2ae   :  { %v8741_v20 = vpop.f32.mrb[111].mxu0  ;;  %v8766_v36 = vpop.f32.mrb[109].mxu1 }
 0x2af   :  { %v6811_v16 = vadd.f32 %v8739_v31, %v6762_v60  ;;  %v8742_v15 = vadd.f32 %v8741_v20, %v8740_v32  ;;  %v8767_v38 = vadd.f32 %v8766_v36, %v8765_v35  ;;  %v8768_v39 = vpop.f32.mrb[110].mxu1 }
 0x2b0   :  { %v8769_v21 = vpop.f32.mrb[111].mxu1 }
 0x2b1   :  { %v6814_v19 = vadd.f32 %v8742_v15, %v6765_v52  ;;  %v6860_v40 = vadd.f32 %v8767_v38, %v6811_v16  ;;  %v8770_v42 = vadd.f32 %v8769_v21, %v8768_v39 }
 0x2b3   :  { %v6863_v30 = vadd.f32 %v8770_v42, %v6814_v19 }
 0x2c3   :  { %v8787_v59 = vpop.f32.mrb[112].mxu0 }
 0x2c4   :  { %v8788_v43 = vpop.f32.mrb[113].mxu0 }
 0x2c5   :  { %v8815_v10 = vpop.f32.mrb[112].mxu1  ;;  %v8789_v14 = vadd.f32 %v8788_v43, %v8787_v59  ;;  %v8790_v49 = vpop.f32.mrb[114].mxu0 }
 0x2c6   :  { %v8816_v29 = vpop.f32.mrb[113].mxu1  ;;  %v8791_v46 = vpop.f32.mrb[115].mxu0 }
 0x2c7   :  { %v8817_v47 = vadd.f32 %v8816_v29, %v8815_v10  ;;  %v8818_v51 = vpop.f32.mrb[114].mxu1  ;;  %v6901_v34 = vadd.f32 %v8789_v14, %v6852_v26  ;;  %v8792_v56 = vadd.f32 %v8791_v46, %v8790_v49 }
 0x2c8   :  { %v8819_v33 = vpop.f32.mrb[115].mxu1 }
 0x2c9   :  { %v8820_v25 = vadd.f32 %v8819_v33, %v8818_v51  ;;  %v6950_v48 = vadd.f32 %v8817_v47, %v6901_v34  ;;  %v6904_v41 = vadd.f32 %v8792_v56, %v6855_v8 }
 0x2cb   :  { %v6953_v24 = vadd.f32 %v8820_v25, %v6904_v41  ;;  %v8793_v57 = vpop.f32.mrb[116].mxu0 }
 0x2cc   :  { %v8794_v53 = vpop.f32.mrb[117].mxu0 }
 0x2cd   :  { %v8795_v44 = vadd.f32 %v8794_v53, %v8793_v57  ;;  %v8796_v61 = vpop.f32.mrb[118].mxu0  ;;  %v8821_v2 = vpop.f32.mrb[116].mxu1 }
 0x2ce   :  { %v8797_v45 = vpop.f32.mrb[119].mxu0  ;;  %v8822_v50 = vpop.f32.mrb[117].mxu1 }
 0x2cf   :  { %v6909_v0 = vadd.f32 %v8795_v44, %v6860_v40  ;;  %v8798_v55 = vadd.f32 %v8797_v45, %v8796_v61  ;;  %v8823_v54 = vadd.f32 %v8822_v50, %v8821_v2  ;;  %v8824_v5 = vpop.f32.mrb[118].mxu1 }
 0x2d0   :  { %v8825_v6 = vpop.f32.mrb[119].mxu1 }
 0x2d1   :  { %v6912_v37 = vadd.f32 %v8798_v55, %v6863_v30  ;;  %v6958_v60 = vadd.f32 %v8823_v54, %v6909_v0  ;;  %v8826_v58 = vadd.f32 %v8825_v6, %v8824_v5 }
 0x2d3   :  { %v6961_v52 = vadd.f32 %v8826_v58, %v6912_v37 }
 0x2e5   :  { %v8871_v12 = vpop.f32.mrb[120].mxu1 }
 0x2e6   :  { %v8872_v63 = vpop.f32.mrb[121].mxu1 }
 0x2e7   :  { %v8873_v17 = vadd.f32 %v8872_v63, %v8871_v12  ;;  %v8874_v18 = vpop.f32.mrb[122].mxu1 }
 0x2e8   :  { %v8875_v3 = vpop.f32.mrb[123].mxu1 }
 0x2e9   :  { %v8876_v23 = vadd.f32 %v8875_v3, %v8874_v18 }
 0x2ed   :  { %v8877_v20 = vpop.f32.mrb[124].mxu1 }
 0x2ee   :  { %v8878_v36 = vpop.f32.mrb[125].mxu1 }
 0x2ef   :  { %v8843_v9 = vpop.f32.mrb[120].mxu0  ;;  %v8879_v19 = vadd.f32 %v8878_v36, %v8877_v20  ;;  %v8880_v38 = vpop.f32.mrb[126].mxu1 }
 0x2f0   :  { %v8844_v62 = vpop.f32.mrb[121].mxu0  ;;  %v8881_v21 = vpop.f32.mrb[127].mxu1 }
 0x2f1   :  { %v8845_v13 = vadd.f32 %v8844_v62, %v8843_v9  ;;  %v8846_v1 = vpop.f32.mrb[122].mxu0  ;;  %v8882_v42 = vadd.f32 %v8881_v21, %v8880_v38 }
 0x2f2   :  { %v8847_v7 = vpop.f32.mrb[123].mxu0 }
 0x2f3   :  { %v6999_v4 = vadd.f32 %v8845_v13, %v6950_v48  ;;  %v8848_v22 = vadd.f32 %v8847_v7, %v8846_v1 }
 0x2f5   :  { %v7048_v26 = vadd.f32 %v8873_v17, %v6999_v4  ;;  %v7002_v27 = vadd.f32 %v8848_v22, %v6953_v24 }
 0x2f7   :  { %v7051_v8 = vadd.f32 %v8876_v23, %v7002_v27  ;;  %v8849_v28 = vpop.f32.mrb[124].mxu0 }
 0x2f8   :  { %v8850_v11 = vpop.f32.mrb[125].mxu0 }
 0x2f9   :  { %v8851_v31 = vadd.f32 %v8850_v11, %v8849_v28  ;;  %v8852_v32 = vpop.f32.mrb[126].mxu0 }
 0x2fa   :  { %v8853_v16 = vpop.f32.mrb[127].mxu0 }
 0x2fb   :  { %v7007_v35 = vadd.f32 %v8851_v31, %v6958_v60  ;;  %v8854_v15 = vadd.f32 %v8853_v16, %v8852_v32 }
 0x2fd   :  { %v7010_v39 = vadd.f32 %v8854_v15, %v6961_v52  ;;  %v7056_v40 = vadd.f32 %v8879_v19, %v7007_v35 }
 0x2ff   :  { %v7059_v30 = vadd.f32 %v8882_v42, %v7010_v39 }
 0x30f   :  { %v8899_v59 = vpop.f32.mrb[128].mxu0  ;;  %v8927_v10 = vpop.f32.mrb[128].mxu1 }
 0x310   :  { %v8900_v43 = vpop.f32.mrb[129].mxu0  ;;  %v8928_v14 = vpop.f32.mrb[129].mxu1 }
 0x311   :  { %v8901_v29 = vadd.f32 %v8900_v43, %v8899_v59  ;;  %v8902_v47 = vpop.f32.mrb[130].mxu0  ;;  %v8929_v49 = vadd.f32 %v8928_v14, %v8927_v10  ;;  %v8930_v51 = vpop.f32.mrb[130].mxu1 }
 0x312   :  { %v8903_v46 = vpop.f32.mrb[131].mxu0  ;;  %v8931_v56 = vpop.f32.mrb[131].mxu1 }
 0x313   :  { %v7097_v33 = vadd.f32 %v8901_v29, %v7048_v26  ;;  %v8904_v34 = vadd.f32 %v8903_v46, %v8902_v47  ;;  %v8932_v25 = vadd.f32 %v8931_v56, %v8930_v51 }
 0x315   :  { %v7146_v48 = vadd.f32 %v8929_v49, %v7097_v33  ;;  %v7100_v41 = vadd.f32 %v8904_v34, %v7051_v8 }
 0x317   :  { %v7149_v24 = vadd.f32 %v8932_v25, %v7100_v41  ;;  %v8905_v57 = vpop.f32.mrb[132].mxu0  ;;  %v8933_v2 = vpop.f32.mrb[132].mxu1 }
 0x318   :  { %v8906_v53 = vpop.f32.mrb[133].mxu0  ;;  %v8934_v50 = vpop.f32.mrb[133].mxu1 }
 0x319   :  { %v8907_v44 = vadd.f32 %v8906_v53, %v8905_v57  ;;  %v8908_v61 = vpop.f32.mrb[134].mxu0  ;;  %v8935_v54 = vadd.f32 %v8934_v50, %v8933_v2  ;;  %v8936_v5 = vpop.f32.mrb[134].mxu1 }
 0x31a   :  { %v8909_v45 = vpop.f32.mrb[135].mxu0  ;;  %v8937_v6 = vpop.f32.mrb[135].mxu1 }
 0x31b   :  { %v7105_v0 = vadd.f32 %v8907_v44, %v7056_v40  ;;  %v8910_v55 = vadd.f32 %v8909_v45, %v8908_v61  ;;  %v8938_v58 = vadd.f32 %v8937_v6, %v8936_v5 }
 0x31d   :  { %v7108_v37 = vadd.f32 %v8910_v55, %v7059_v30  ;;  %v7154_v60 = vadd.f32 %v8935_v54, %v7105_v0 }
 0x31f   :  { %v7157_v52 = vadd.f32 %v8938_v58, %v7108_v37 }
 0x330   :  { %v8955_v9 = vpop.f32.mrb[136].mxu0  ;;  %v8983_v12 = vpop.f32.mrb[136].mxu1 }
 0x331   :  { %v8956_v62 = vpop.f32.mrb[137].mxu0  ;;  %v8984_v13 = vpop.f32.mrb[137].mxu1 }
 0x332   :  { %v8957_v63 = vadd.f32 %v8956_v62, %v8955_v9  ;;  %v8985_v1 = vadd.f32 %v8984_v13, %v8983_v12  ;;  %v8958_v17 = vpop.f32.mrb[138].mxu0  ;;  %v8986_v18 = vpop.f32.mrb[138].mxu1 }
 0x333   :  { %v8959_v7 = vpop.f32.mrb[139].mxu0  ;;  %v8987_v4 = vpop.f32.mrb[139].mxu1 }
 0x334   :  { %v7195_v22 = vadd.f32 %v8957_v63, %v7146_v48  ;;  %v8960_v3 = vadd.f32 %v8959_v7, %v8958_v17  ;;  %v8988_v23 = vadd.f32 %v8987_v4, %v8986_v18 }
 0x336   :  { %v7244_v26 = vadd.f32 %v8985_v1, %v7195_v22  ;;  %v7198_v27 = vadd.f32 %v8960_v3, %v7149_v24 }
 0x338   :  { %7258 = vst [vmem:[%s11901_s3] sm:$0xff] %v7244_v26  ;;  %v7247_v8 = vadd.f32 %v8988_v23, %v7198_v27  ;;  %v8961_v28 = vpop.f32.mrb[140].mxu0  ;;  %v8989_v11 = vpop.f32.mrb[140].mxu1 }
 0x339   :  { %v8962_v31 = vpop.f32.mrb[141].mxu0  ;;  %v8990_v32 = vpop.f32.mrb[141].mxu1 }
 0x33a   :  { %7259 = vst [vmem:[%s11901_s3 + $0x8] sm:$0xff] %v7247_v8  ;;  %v8963_v20 = vadd.f32 %v8962_v31, %v8961_v28  ;;  %v8991_v16 = vadd.f32 %v8990_v32, %v8989_v11  ;;  %v8964_v35 = vpop.f32.mrb[142].mxu0  ;;  %v8992_v15 = vpop.f32.mrb[142].mxu1 }
 0x33b   :  { %v8965_v36 = vpop.f32.mrb[143].mxu0  ;;  %v8993_v19 = vpop.f32.mrb[143].mxu1 }
 0x33c   :  { %v7203_v38 = vadd.f32 %v8963_v20, %v7154_v60  ;;  %v8966_v39 = vadd.f32 %v8965_v36, %v8964_v35  ;;  %v8994_v21 = vadd.f32 %v8993_v19, %v8992_v15 }
 0x33e   :  { %v7252_v40 = vadd.f32 %v8991_v16, %v7203_v38  ;;  %v7206_v42 = vadd.f32 %v8966_v39, %v7157_v52 }
 0x340   :  { %7260 = vst [vmem:[%s11901_s3 + $0x10] sm:$0xff] %v7252_v40  ;;  %v7255_v30 = vadd.f32 %v8994_v21, %v7206_v42 }
 0x342   :  { %7261 = vst [vmem:[%s11901_s3 + $0x18] sm:$0xff] %v7255_v30 }

// kernel: ssd_forward.8
= control target key start
LH: loop header
LB: loop body
LE: loop exit
PB: predicated region body
PF: predicated region fallthrough
CT: control target
= control target key end

     0   :  { %s5187_s1 = inlined_call_operand.vmem [shape: bf16[1,4608,128], index: 1, kind: input, shape index: {}]   ;;  %s5188_s0 = inlined_call_operand.vmem [shape: bf16[1,8,4608], index: 0, kind: input, shape index: {}]   ;;  %s5189_s2 = inlined_call_operand.vmem [shape: f32[1,1,128], index: 2, kind: input, shape index: {}]   ;;  %s5190_s3 = inlined_call_operand.vmem [shape: f32[1,8,128], index: 3, kind: output, shape index: {}]  }
   0x1   :  { %v3916_v0 = vld [vmem:[%s5187_s1 + $0x40] sm:$0xff]   ;;  %v3920_v4 = vld [vmem:[%s5187_s1 + $0x48] sm:$0xff]   ;;  %v3924_v8 = vld [vmem:[%s5187_s1 + $0x50] sm:$0xff]  }
   0x2   :  { %v3917_v1 = vld [vmem:[%s5187_s1 + $0xc0] sm:$0xff]   ;;  %3520 = vmatprep.subr.bf16.mxu0 %v3916_v0  ;;  %v3921_v5 = vld [vmem:[%s5187_s1 + $0xc8] sm:$0xff]   ;;  %v3925_v9 = vld [vmem:[%s5187_s1 + $0xd0] sm:$0xff]  }
   0x3   :  { %v3918_v2 = vld [vmem:[%s5187_s1] sm:$0xff]   ;;  %3542 = vmatprep.subr.bf16.mxu1 %v3917_v1  ;;  %v3922_v6 = vld [vmem:[%s5187_s1 + $0x8] sm:$0xff]   ;;  %v3926_v10 = vld [vmem:[%s5187_s1 + $0x10] sm:$0xff]  }
   0x4   :  { %v3919_v3 = vld [vmem:[%s5187_s1 + $0x80] sm:$0xff]   ;;  %3521 = vmatpush3.bf16.msra.mxu0 %v3918_v2  ;;  %v3923_v7 = vld [vmem:[%s5187_s1 + $0x88] sm:$0xff]   ;;  %v3927_v11 = vld [vmem:[%s5187_s1 + $0x90] sm:$0xff]  }
   0x5   :  { %3543 = vmatpush3.bf16.msra.mxu1 %v3919_v3  ;;  %3522 = vmatprep.subr.bf16.mxu0 %v3920_v4  ;;  %v3928_v12 = vld [vmem:[%s5187_s1 + $0x58] sm:$0xff]   ;;  %v3932_v16 = vld [vmem:[%s5187_s1 + $0x60] sm:$0xff]   ;;  %v3936_v20 = vld [vmem:[%s5187_s1 + $0x68] sm:$0xff]  }
   0x6   :  { %3544 = vmatprep.subr.bf16.mxu1 %v3921_v5  ;;  %v3929_v13 = vld [vmem:[%s5187_s1 + $0xd8] sm:$0xff]   ;;  %v3933_v17 = vld [vmem:[%s5187_s1 + $0xe0] sm:$0xff]   ;;  %v3937_v21 = vld [vmem:[%s5187_s1 + $0xe8] sm:$0xff]  }
   0x7   :  { %v3930_v14 = vld [vmem:[%s5187_s1 + $0x18] sm:$0xff]   ;;  %v3934_v18 = vld [vmem:[%s5187_s1 + $0x20] sm:$0xff]   ;;  %v3938_v22 = vld [vmem:[%s5187_s1 + $0x28] sm:$0xff]  }
   0x8   :  { %3523 = vmatpush3.bf16.msra.mxu0 %v3922_v6  ;;  %v3931_v15 = vld [vmem:[%s5187_s1 + $0x98] sm:$0xff]   ;;  %v3935_v19 = vld [vmem:[%s5187_s1 + $0xa0] sm:$0xff]   ;;  %v3939_v23 = vld [vmem:[%s5187_s1 + $0xa8] sm:$0xff]  }
   0x9   :  { %3545 = vmatpush3.bf16.msra.mxu1 %v3923_v7  ;;  %3524 = vmatprep.subr.bf16.mxu0 %v3924_v8  ;;  %v3940_v24 = vld [vmem:[%s5187_s1 + $0x70] sm:$0xff]   ;;  %v3944_v28 = vld [vmem:[%s5187_s1 + $0x78] sm:$0xff]   ;;  %v15_v32 = vld [vmem:[%s5188_s0] sm:$0xff] }
   0xa   :  { %3546 = vmatprep.subr.bf16.mxu1 %v3925_v9  ;;  %v3941_v25 = vld [vmem:[%s5187_s1 + $0xf0] sm:$0xff]   ;;  %v3945_v29 = vld [vmem:[%s5187_s1 + $0xf8] sm:$0xff]   ;;  %v16_v33 = vld [vmem:[%s5188_s0 + $0x8] sm:$0xff]  ;;  %v3196_v34 = vcombine.low %v15_v32, %v15_v32  ;;  %v3197_v35 = vcombine.high %v15_v32, %v15_v32 }
   0xb   :  { %v3942_v26 = vld [vmem:[%s5187_s1 + $0x30] sm:$0xff]   ;;  %v3946_v30 = vld [vmem:[%s5187_s1 + $0x38] sm:$0xff]   ;;  %v3198_v36 = vcombine.low %v16_v33, %v16_v33  ;;  %v3199_v37 = vcombine.high %v16_v33, %v16_v33  ;;  %v3952_v38 = vld [vmem:[%s5187_s1 + $0x140] sm:$0xff]  }
   0xc   :  { %3525 = vmatpush3.bf16.msra.mxu0 %v3926_v10  ;;  %v3943_v27 = vld [vmem:[%s5187_s1 + $0xb0] sm:$0xff]   ;;  %v3947_v31 = vld [vmem:[%s5187_s1 + $0xb8] sm:$0xff]   ;;  %v3953_v39 = vld [vmem:[%s5187_s1 + $0x1c0] sm:$0xff]   ;;  %2502 = vmatprep.mubr.bf16.mxu0 %v3197_v35 }
   0xd   :  { %3547 = vmatpush3.bf16.msra.mxu1 %v3927_v11  ;;  %3526 = vmatprep.subr.bf16.mxu0 %v3928_v12  ;;  %v3954_v40 = vld [vmem:[%s5187_s1 + $0x100] sm:$0xff]   ;;  %v3956_v42 = vld [vmem:[%s5187_s1 + $0x148] sm:$0xff]   ;;  %v3960_v46 = vld [vmem:[%s5187_s1 + $0x150] sm:$0xff]  }
   0xe   :  { %3548 = vmatprep.subr.bf16.mxu1 %v3929_v13  ;;  %2542 = vmatprep.mubr.bf16.mxu1 %v3199_v37  ;;  %v3955_v41 = vld [vmem:[%s5187_s1 + $0x180] sm:$0xff]   ;;  %v3957_v43 = vld [vmem:[%s5187_s1 + $0x1c8] sm:$0xff]   ;;  %v3961_v47 = vld [vmem:[%s5187_s1 + $0x1d0] sm:$0xff]  }
   0xf   :  { %v3958_v44 = vld [vmem:[%s5187_s1 + $0x108] sm:$0xff]   ;;  %v3962_v48 = vld [vmem:[%s5187_s1 + $0x110] sm:$0xff]   ;;  %v3964_v50 = vld [vmem:[%s5187_s1 + $0x158] sm:$0xff]  }
  0x10   :  { %3527 = vmatpush3.bf16.msra.mxu0 %v3930_v14  ;;  %v3959_v45 = vld [vmem:[%s5187_s1 + $0x188] sm:$0xff]   ;;  %v3963_v49 = vld [vmem:[%s5187_s1 + $0x190] sm:$0xff]   ;;  %v3965_v51 = vld [vmem:[%s5187_s1 + $0x1d8] sm:$0xff]  }
  0x11   :  { %3549 = vmatpush3.bf16.msra.mxu1 %v3931_v15  ;;  %3528 = vmatprep.subr.bf16.mxu0 %v3932_v16  ;;  %v3966_v52 = vld [vmem:[%s5187_s1 + $0x118] sm:$0xff]   ;;  %v3968_v54 = vld [vmem:[%s5187_s1 + $0x160] sm:$0xff]   ;;  %v3972_v58 = vld [vmem:[%s5187_s1 + $0x168] sm:$0xff]  }
  0x12   :  { %3550 = vmatprep.subr.bf16.mxu1 %v3933_v17  ;;  %v3967_v53 = vld [vmem:[%s5187_s1 + $0x198] sm:$0xff]   ;;  %v3969_v55 = vld [vmem:[%s5187_s1 + $0x1e0] sm:$0xff]   ;;  %v3973_v59 = vld [vmem:[%s5187_s1 + $0x1e8] sm:$0xff]  }
  0x13   :  { %v3970_v56 = vld [vmem:[%s5187_s1 + $0x120] sm:$0xff]   ;;  %v3974_v60 = vld [vmem:[%s5187_s1 + $0x128] sm:$0xff]   ;;  %v3976_v62 = vld [vmem:[%s5187_s1 + $0x170] sm:$0xff]  }
  0x14   :  { %3529 = vmatpush3.bf16.msra.mxu0 %v3934_v18  ;;  %v3971_v57 = vld [vmem:[%s5187_s1 + $0x1a0] sm:$0xff]   ;;  %v3975_v61 = vld [vmem:[%s5187_s1 + $0x1a8] sm:$0xff]   ;;  %v3977_v63 = vld [vmem:[%s5187_s1 + $0x1f0] sm:$0xff]  }
  0x15   :  { %3551 = vmatpush3.bf16.msra.mxu1 %v3935_v19  ;;  %3530 = vmatprep.subr.bf16.mxu0 %v3936_v20  ;;  %v3978_v0 = vld [vmem:[%s5187_s1 + $0x130] sm:$0xff]   ;;  %v3980_v2 = vld [vmem:[%s5187_s1 + $0x178] sm:$0xff]   ;;  %v3988_v12 = vld [vmem:[%s5187_s1 + $0x240] sm:$0xff]  }
  0x16   :  { %3552 = vmatprep.subr.bf16.mxu1 %v3937_v21  ;;  %v3979_v1 = vld [vmem:[%s5187_s1 + $0x1b0] sm:$0xff]   ;;  %v3981_v3 = vld [vmem:[%s5187_s1 + $0x1f8] sm:$0xff]   ;;  %v3989_v13 = vld [vmem:[%s5187_s1 + $0x2c0] sm:$0xff]  }
  0x17   :  { %v3982_v4 = vld [vmem:[%s5187_s1 + $0x138] sm:$0xff]   ;;  %v17_v6 = vld [vmem:[%s5188_s0 + $0x10] sm:$0xff]  ;;  %v3990_v14 = vld [vmem:[%s5187_s1 + $0x200] sm:$0xff]  }
  0x18   :  { %3531 = vmatpush3.bf16.msra.mxu0 %v3938_v22  ;;  %v3983_v5 = vld [vmem:[%s5187_s1 + $0x1b8] sm:$0xff]   ;;  %v3200_v7 = vcombine.low %v17_v6, %v17_v6  ;;  %v3201_v8 = vcombine.high %v17_v6, %v17_v6  ;;  %v3991_v15 = vld [vmem:[%s5187_s1 + $0x280] sm:$0xff]   ;;  %v3992_v16 = vld [vmem:[%s5187_s1 + $0x248] sm:$0xff]  }
  0x19   :  { %3553 = vmatpush3.bf16.msra.mxu1 %v3939_v23  ;;  %3532 = vmatprep.subr.bf16.mxu0 %v3940_v24  ;;  %v18_v9 = vld [vmem:[%s5188_s0 + $0x18] sm:$0xff]  ;;  %v3993_v17 = vld [vmem:[%s5187_s1 + $0x2c8] sm:$0xff]   ;;  %v3996_v20 = vld [vmem:[%s5187_s1 + $0x250] sm:$0xff]  }
  0x1a   :  { %3554 = vmatprep.subr.bf16.mxu1 %v3941_v25  ;;  %v3202_v10 = vcombine.low %v18_v9, %v18_v9  ;;  %v3203_v11 = vcombine.high %v18_v9, %v18_v9  ;;  %v3994_v18 = vld [vmem:[%s5187_s1 + $0x208] sm:$0xff]   ;;  %v3997_v21 = vld [vmem:[%s5187_s1 + $0x2d0] sm:$0xff]   ;;  %v4000_v24 = vld [vmem:[%s5187_s1 + $0x258] sm:$0xff]  }
  0x1b   :  { %v3995_v19 = vld [vmem:[%s5187_s1 + $0x288] sm:$0xff]   ;;  %v3998_v22 = vld [vmem:[%s5187_s1 + $0x210] sm:$0xff]   ;;  %v4001_v25 = vld [vmem:[%s5187_s1 + $0x2d8] sm:$0xff]  }
  0x1c   :  { %3533 = vmatpush3.bf16.msra.mxu0 %v3942_v26  ;;  %v3999_v23 = vld [vmem:[%s5187_s1 + $0x290] sm:$0xff]   ;;  %v4002_v26 = vld [vmem:[%s5187_s1 + $0x218] sm:$0xff]   ;;  %v4008_v32 = vld [vmem:[%s5187_s1 + $0x268] sm:$0xff]  }
  0x1d   :  { %3555 = vmatpush3.bf16.msra.mxu1 %v3943_v27  ;;  %3534 = vmatprep.subr.bf16.mxu0 %v3944_v28  ;;  %v4003_v27 = vld [vmem:[%s5187_s1 + $0x298] sm:$0xff]   ;;  %v4004_v28 = vld [vmem:[%s5187_s1 + $0x260] sm:$0xff]   ;;  %v4009_v33 = vld [vmem:[%s5187_s1 + $0x2e8] sm:$0xff]  }
  0x1e   :  { %3556 = vmatprep.subr.bf16.mxu1 %v3945_v29  ;;  %v4005_v29 = vld [vmem:[%s5187_s1 + $0x2e0] sm:$0xff]   ;;  %v4011_v35 = vld [vmem:[%s5187_s1 + $0x2a8] sm:$0xff]   ;;  %v4013_v37 = vld [vmem:[%s5187_s1 + $0x2f0] sm:$0xff]  }
  0x1f   :  { %v4044_v6 = vld [vmem:[%s5187_s1 + $0x368] sm:$0xff]  }
  0x20   :  { %3535 = vmatpush3.bf16.msra.mxu0 %v3946_v30  ;;  %v4006_v30 = vld [vmem:[%s5187_s1 + $0x220] sm:$0xff]   ;;  %v4047_v9 = vld [vmem:[%s5187_s1 + $0x3a8] sm:$0xff]  }
  0x21   :  { %3557 = vmatpush3.bf16.msra.mxu1 %v3947_v31  ;;  %3564 = vmatprep.subr.bf16.mxu0 %v3952_v38  ;;  %v4007_v31 = vld [vmem:[%s5187_s1 + $0x2a0] sm:$0xff]   ;;  %v4014_v38 = vld [vmem:[%s5187_s1 + $0x230] sm:$0xff]  }
  0x22   :  { %3586 = vmatprep.subr.bf16.mxu1 %v3953_v39  ;;  %v4015_v39 = vld [vmem:[%s5187_s1 + $0x2b0] sm:$0xff]  }
  0x23   :  { %2503 = vmatmul.mubr.bf16.vlgmr.msra.gmra.mrb[0].mxu0 %v3196_v34  ;;  %v4010_v34 = vld [vmem:[%s5187_s1 + $0x228] sm:$0xff]  }
  0x24   :  { %2543 = vmatmul.mubr.bf16.vlgmr.msra.gmra.mrb[0].mxu1 %v3198_v36  ;;  %3565 = vmatpush3.bf16.msra.mxu0 %v3954_v40  ;;  %v4012_v36 = vld [vmem:[%s5187_s1 + $0x270] sm:$0xff]   ;;  %v4016_v40 = vld [vmem:[%s5187_s1 + $0x278] sm:$0xff]  }
  0x25   :  { %3587 = vmatpush3.bf16.msra.mxu1 %v3955_v41  ;;  %3566 = vmatprep.subr.bf16.mxu0 %v3956_v42  ;;  %v4017_v41 = vld [vmem:[%s5187_s1 + $0x2f8] sm:$0xff]  }
  0x26   :  { %3588 = vmatprep.subr.bf16.mxu1 %v3957_v43  ;;  %2582 = vmatprep.mubr.bf16.mxu0 %v3201_v8  ;;  %v4018_v42 = vld [vmem:[%s5187_s1 + $0x238] sm:$0xff]   ;;  %v4046_v8 = vld [vmem:[%s5187_s1 + $0x328] sm:$0xff]  }
  0x27   :  { %2622 = vmatprep.mubr.bf16.mxu1 %v3203_v11  ;;  %v4019_v43 = vld [vmem:[%s5187_s1 + $0x2b8] sm:$0xff]   ;;  %v4049_v11 = vld [vmem:[%s5187_s1 + $0x3f0] sm:$0xff]  }
  0x28   :  { %3567 = vmatpush3.bf16.msra.mxu0 %v3958_v44  ;;  %v19_v44 = vld [vmem:[%s5188_s0 + $0x20] sm:$0xff] }
  0x29   :  { %3589 = vmatpush3.bf16.msra.mxu1 %v3959_v45  ;;  %3568 = vmatprep.subr.bf16.mxu0 %v3960_v46  ;;  %v20_v45 = vld [vmem:[%s5188_s0 + $0x28] sm:$0xff]  ;;  %v3204_v46 = vcombine.low %v19_v44, %v19_v44 }
  0x2a   :  { %3590 = vmatprep.subr.bf16.mxu1 %v3961_v47  ;;  %v3205_v47 = vcombine.high %v19_v44, %v19_v44  ;;  %v4080_v44 = vld [vmem:[%s5187_s1 + $0x468] sm:$0xff]  }
  0x2c   :  { %3569 = vmatpush3.bf16.msra.mxu0 %v3962_v48  ;;  %v3206_v48 = vcombine.low %v20_v45, %v20_v45 }
  0x2d   :  { %3591 = vmatpush3.bf16.msra.mxu1 %v3963_v49  ;;  %3570 = vmatprep.subr.bf16.mxu0 %v3964_v50  ;;  %v3207_v49 = vcombine.high %v20_v45, %v20_v45  ;;  %v4024_v50 = vld [vmem:[%s5187_s1 + $0x340] sm:$0xff]   ;;  %v4081_v45 = vld [vmem:[%s5187_s1 + $0x4e8] sm:$0xff]  }
  0x2e   :  { %3592 = vmatprep.subr.bf16.mxu1 %v3965_v51  ;;  %v4025_v51 = vld [vmem:[%s5187_s1 + $0x3c0] sm:$0xff]  }
  0x30   :  { %3571 = vmatpush3.bf16.msra.mxu0 %v3966_v52  ;;  %v4026_v52 = vld [vmem:[%s5187_s1 + $0x300] sm:$0xff]  }
  0x31   :  { %3593 = vmatpush3.bf16.msra.mxu1 %v3967_v53  ;;  %3572 = vmatprep.subr.bf16.mxu0 %v3968_v54  ;;  %v4027_v53 = vld [vmem:[%s5187_s1 + $0x380] sm:$0xff]   ;;  %v4028_v54 = vld [vmem:[%s5187_s1 + $0x348] sm:$0xff]  }
  0x32   :  { %3594 = vmatprep.subr.bf16.mxu1 %v3969_v55  ;;  %v4029_v55 = vld [vmem:[%s5187_s1 + $0x3c8] sm:$0xff]  }
  0x34   :  { %3573 = vmatpush3.bf16.msra.mxu0 %v3970_v56  ;;  %v4030_v56 = vld [vmem:[%s5187_s1 + $0x308] sm:$0xff]  }
  0x35   :  { %3595 = vmatpush3.bf16.msra.mxu1 %v3971_v57  ;;  %3574 = vmatprep.subr.bf16.mxu0 %v3972_v58  ;;  %v4031_v57 = vld [vmem:[%s5187_s1 + $0x388] sm:$0xff]   ;;  %v4032_v58 = vld [vmem:[%s5187_s1 + $0x350] sm:$0xff]  }
  0x36   :  { %3596 = vmatprep.subr.bf16.mxu1 %v3973_v59  ;;  %v4033_v59 = vld [vmem:[%s5187_s1 + $0x3d0] sm:$0xff]  }
  0x38   :  { %3575 = vmatpush3.bf16.msra.mxu0 %v3974_v60  ;;  %v4034_v60 = vld [vmem:[%s5187_s1 + $0x310] sm:$0xff]  }
  0x39   :  { %3597 = vmatpush3.bf16.msra.mxu1 %v3975_v61  ;;  %3576 = vmatprep.subr.bf16.mxu0 %v3976_v62  ;;  %v4035_v61 = vld [vmem:[%s5187_s1 + $0x390] sm:$0xff]   ;;  %v4036_v62 = vld [vmem:[%s5187_s1 + $0x358] sm:$0xff]  }
  0x3a   :  { %3598 = vmatprep.subr.bf16.mxu1 %v3977_v63  ;;  %v4037_v63 = vld [vmem:[%s5187_s1 + $0x3d8] sm:$0xff]  }
  0x3c   :  { %3577 = vmatpush3.bf16.msra.mxu0 %v3978_v0  ;;  %v4038_v0 = vld [vmem:[%s5187_s1 + $0x318] sm:$0xff]  }
  0x3d   :  { %3599 = vmatpush3.bf16.msra.mxu1 %v3979_v1  ;;  %3578 = vmatprep.subr.bf16.mxu0 %v3980_v2  ;;  %v4039_v1 = vld [vmem:[%s5187_s1 + $0x398] sm:$0xff]   ;;  %v4040_v2 = vld [vmem:[%s5187_s1 + $0x360] sm:$0xff]  }
  0x3e   :  { %3600 = vmatprep.subr.bf16.mxu1 %v3981_v3  ;;  %v4041_v3 = vld [vmem:[%s5187_s1 + $0x3e0] sm:$0xff]  }
  0x40   :  { %3579 = vmatpush3.bf16.msra.mxu0 %v3982_v4  ;;  %v4042_v4 = vld [vmem:[%s5187_s1 + $0x320] sm:$0xff]  }
  0x41   :  { %3601 = vmatpush3.bf16.msra.mxu1 %v3983_v5  ;;  %3608 = vmatprep.subr.bf16.mxu0 %v3988_v12  ;;  %v4043_v5 = vld [vmem:[%s5187_s1 + $0x3a0] sm:$0xff]   ;;  %v4050_v12 = vld [vmem:[%s5187_s1 + $0x330] sm:$0xff]  }
  0x42   :  { %3630 = vmatprep.subr.bf16.mxu1 %v3989_v13  ;;  %v4051_v13 = vld [vmem:[%s5187_s1 + $0x3b0] sm:$0xff]  }
  0x43   :  { %2583 = vmatmul.mubr.bf16.vlgmr.msra.gmra.mrb[4].mxu0 %v3200_v7  ;;  %v4045_v7 = vld [vmem:[%s5187_s1 + $0x3e8] sm:$0xff]  }
  0x44   :  { %2623 = vmatmul.mubr.bf16.vlgmr.msra.gmra.mrb[4].mxu1 %v3202_v10  ;;  %3609 = vmatpush3.bf16.msra.mxu0 %v3990_v14  ;;  %v4048_v10 = vld [vmem:[%s5187_s1 + $0x370] sm:$0xff]   ;;  %v4052_v14 = vld [vmem:[%s5187_s1 + $0x378] sm:$0xff]  }
  0x45   :  { %3631 = vmatpush3.bf16.msra.mxu1 %v3991_v15  ;;  %3610 = vmatprep.subr.bf16.mxu0 %v3992_v16  ;;  %v4053_v15 = vld [vmem:[%s5187_s1 + $0x3f8] sm:$0xff]  }
  0x46   :  { %3632 = vmatprep.subr.bf16.mxu1 %v3993_v17  ;;  %2662 = vmatprep.mubr.bf16.mxu0 %v3205_v47  ;;  %v4054_v16 = vld [vmem:[%s5187_s1 + $0x338] sm:$0xff]   ;;  %v4083_v47 = vld [vmem:[%s5187_s1 + $0x4a8] sm:$0xff]  }
  0x47   :  { %2702 = vmatprep.mubr.bf16.mxu1 %v3207_v49  ;;  %v4055_v17 = vld [vmem:[%s5187_s1 + $0x3b8] sm:$0xff]   ;;  %v4085_v49 = vld [vmem:[%s5187_s1 + $0x4f0] sm:$0xff]  }
  0x48   :  { %3611 = vmatpush3.bf16.msra.mxu0 %v3994_v18  ;;  %v21_v18 = vld [vmem:[%s5188_s0 + $0x30] sm:$0xff] }
  0x49   :  { %3633 = vmatpush3.bf16.msra.mxu1 %v3995_v19  ;;  %3612 = vmatprep.subr.bf16.mxu0 %v3996_v20  ;;  %v22_v19 = vld [vmem:[%s5188_s0 + $0x38] sm:$0xff]  ;;  %v3208_v20 = vcombine.low %v21_v18, %v21_v18 }
  0x4a   :  { %3634 = vmatprep.subr.bf16.mxu1 %v3997_v21  ;;  %v3209_v21 = vcombine.high %v21_v18, %v21_v18  ;;  %v4116_v18 = vld [vmem:[%s5187_s1 + $0x568] sm:$0xff]  }
  0x4c   :  { %3613 = vmatpush3.bf16.msra.mxu0 %v3998_v22  ;;  %v3210_v22 = vcombine.low %v22_v19, %v22_v19 }
  0x4d   :  { %3635 = vmatpush3.bf16.msra.mxu1 %v3999_v23  ;;  %3614 = vmatprep.subr.bf16.mxu0 %v4000_v24  ;;  %v4060_v23 = vld [vmem:[%s5187_s1 + $0x440] sm:$0xff]   ;;  %v3211_v24 = vcombine.high %v22_v19, %v22_v19  ;;  %v4117_v19 = vld [vmem:[%s5187_s1 + $0x5e8] sm:$0xff]  }
  0x4e   :  { %3636 = vmatprep.subr.bf16.mxu1 %v4001_v25  ;;  %v4061_v25 = vld [vmem:[%s5187_s1 + $0x4c0] sm:$0xff]  }
  0x50   :  { %3615 = vmatpush3.bf16.msra.mxu0 %v4002_v26  ;;  %v4062_v26 = vld [vmem:[%s5187_s1 + $0x400] sm:$0xff]  }
  0x51   :  { %3637 = vmatpush3.bf16.msra.mxu1 %v4003_v27  ;;  %3616 = vmatprep.subr.bf16.mxu0 %v4004_v28  ;;  %v4063_v27 = vld [vmem:[%s5187_s1 + $0x480] sm:$0xff]   ;;  %v4064_v28 = vld [vmem:[%s5187_s1 + $0x448] sm:$0xff]  }
  0x52   :  { %3638 = vmatprep.subr.bf16.mxu1 %v4005_v29  ;;  %v4065_v29 = vld [vmem:[%s5187_s1 + $0x4c8] sm:$0xff]  }
  0x54   :  { %3617 = vmatpush3.bf16.msra.mxu0 %v4006_v30  ;;  %v4066_v30 = vld [vmem:[%s5187_s1 + $0x408] sm:$0xff]  }
  0x55   :  { %3639 = vmatpush3.bf16.msra.mxu1 %v4007_v31  ;;  %3618 = vmatprep.subr.bf16.mxu0 %v4008_v32  ;;  %v4067_v31 = vld [vmem:[%s5187_s1 + $0x488] sm:$0xff]   ;;  %v4068_v32 = vld [vmem:[%s5187_s1 + $0x450] sm:$0xff]  }
  0x56   :  { %3640 = vmatprep.subr.bf16.mxu1 %v4009_v33  ;;  %v4069_v33 = vld [vmem:[%s5187_s1 + $0x4d0] sm:$0xff]  }
  0x58   :  { %3619 = vmatpush3.bf16.msra.mxu0 %v4010_v34  ;;  %v4070_v34 = vld [vmem:[%s5187_s1 + $0x410] sm:$0xff]  }
  0x59   :  { %3641 = vmatpush3.bf16.msra.mxu1 %v4011_v35  ;;  %3620 = vmatprep.subr.bf16.mxu0 %v4012_v36  ;;  %v4071_v35 = vld [vmem:[%s5187_s1 + $0x490] sm:$0xff]   ;;  %v4072_v36 = vld [vmem:[%s5187_s1 + $0x458] sm:$0xff]  }
  0x5a   :  { %3642 = vmatprep.subr.bf16.mxu1 %v4013_v37  ;;  %v4073_v37 = vld [vmem:[%s5187_s1 + $0x4d8] sm:$0xff]  }
  0x5c   :  { %3621 = vmatpush3.bf16.msra.mxu0 %v4014_v38  ;;  %v4074_v38 = vld [vmem:[%s5187_s1 + $0x418] sm:$0xff]  }
  0x5d   :  { %3643 = vmatpush3.bf16.msra.mxu1 %v4015_v39  ;;  %3622 = vmatprep.subr.bf16.mxu0 %v4016_v40  ;;  %v4075_v39 = vld [vmem:[%s5187_s1 + $0x498] sm:$0xff]   ;;  %v4076_v40 = vld [vmem:[%s5187_s1 + $0x460] sm:$0xff]  }
  0x5e   :  { %3644 = vmatprep.subr.bf16.mxu1 %v4017_v41  ;;  %v4077_v41 = vld [vmem:[%s5187_s1 + $0x4e0] sm:$0xff]  }
  0x60   :  { %3623 = vmatpush3.bf16.msra.mxu0 %v4018_v42  ;;  %v4078_v42 = vld [vmem:[%s5187_s1 + $0x420] sm:$0xff]  }
  0x61   :  { %3645 = vmatpush3.bf16.msra.mxu1 %v4019_v43  ;;  %3652 = vmatprep.subr.bf16.mxu0 %v4024_v50  ;;  %v4079_v43 = vld [vmem:[%s5187_s1 + $0x4a0] sm:$0xff]   ;;  %v4086_v50 = vld [vmem:[%s5187_s1 + $0x430] sm:$0xff]  }
  0x62   :  { %3674 = vmatprep.subr.bf16.mxu1 %v4025_v51  ;;  %v4087_v51 = vld [vmem:[%s5187_s1 + $0x4b0] sm:$0xff]  }
  0x63   :  { %2663 = vmatmul.mubr.bf16.vlgmr.msra.gmra.mrb[8].mxu0 %v3204_v46  ;;  %v4082_v46 = vld [vmem:[%s5187_s1 + $0x428] sm:$0xff]  }
  0x64   :  { %2703 = vmatmul.mubr.bf16.vlgmr.msra.gmra.mrb[8].mxu1 %v3206_v48  ;;  %3653 = vmatpush3.bf16.msra.mxu0 %v4026_v52  ;;  %v4084_v48 = vld [vmem:[%s5187_s1 + $0x470] sm:$0xff]   ;;  %v4088_v52 = vld [vmem:[%s5187_s1 + $0x478] sm:$0xff]  }
  0x65   :  { %3675 = vmatpush3.bf16.msra.mxu1 %v4027_v53  ;;  %3654 = vmatprep.subr.bf16.mxu0 %v4028_v54  ;;  %v4089_v53 = vld [vmem:[%s5187_s1 + $0x4f8] sm:$0xff]  }
  0x66   :  { %3676 = vmatprep.subr.bf16.mxu1 %v4029_v55  ;;  %2742 = vmatprep.mubr.bf16.mxu0 %v3209_v21  ;;  %v4090_v54 = vld [vmem:[%s5187_s1 + $0x438] sm:$0xff]   ;;  %v4119_v21 = vld [vmem:[%s5187_s1 + $0x5a8] sm:$0xff]  }
  0x67   :  { %2782 = vmatprep.mubr.bf16.mxu1 %v3211_v24  ;;  %v4091_v55 = vld [vmem:[%s5187_s1 + $0x4b8] sm:$0xff]   ;;  %v4122_v24 = vld [vmem:[%s5187_s1 + $0x530] sm:$0xff]  }
  0x68   :  { %3655 = vmatpush3.bf16.msra.mxu0 %v4030_v56  ;;  %v23_v56 = vld [vmem:[%s5188_s0 + $0x40] sm:$0xff] }
  0x69   :  { %3677 = vmatpush3.bf16.msra.mxu1 %v4031_v57  ;;  %3656 = vmatprep.subr.bf16.mxu0 %v4032_v58  ;;  %v3212_v57 = vcombine.low %v23_v56, %v23_v56  ;;  %v3213_v58 = vcombine.high %v23_v56, %v23_v56  ;;  %v4152_v56 = vld [vmem:[%s5187_s1 + $0x668] sm:$0xff]  }
  0x6a   :  { %3678 = vmatprep.subr.bf16.mxu1 %v4033_v59  ;;  %v24_v59 = vld [vmem:[%s5188_s0 + $0x48] sm:$0xff] }
  0x6c   :  { %3657 = vmatpush3.bf16.msra.mxu0 %v4034_v60  ;;  %v3214_v60 = vcombine.low %v24_v59, %v24_v59 }
  0x6d   :  { %3679 = vmatpush3.bf16.msra.mxu1 %v4035_v61  ;;  %3658 = vmatprep.subr.bf16.mxu0 %v4036_v62  ;;  %v3215_v61 = vcombine.high %v24_v59, %v24_v59  ;;  %v4096_v62 = vld [vmem:[%s5187_s1 + $0x540] sm:$0xff]   ;;  %v4155_v59 = vld [vmem:[%s5187_s1 + $0x6a8] sm:$0xff]  }
  0x6e   :  { %3680 = vmatprep.subr.bf16.mxu1 %v4037_v63  ;;  %v4097_v63 = vld [vmem:[%s5187_s1 + $0x5c0] sm:$0xff]  }
  0x70   :  { %3659 = vmatpush3.bf16.msra.mxu0 %v4038_v0  ;;  %v4098_v0 = vld [vmem:[%s5187_s1 + $0x500] sm:$0xff]  }
  0x71   :  { %3681 = vmatpush3.bf16.msra.mxu1 %v4039_v1  ;;  %3660 = vmatprep.subr.bf16.mxu0 %v4040_v2  ;;  %v4099_v1 = vld [vmem:[%s5187_s1 + $0x580] sm:$0xff]   ;;  %v4100_v2 = vld [vmem:[%s5187_s1 + $0x548] sm:$0xff]  }
  0x72   :  { %3682 = vmatprep.subr.bf16.mxu1 %v4041_v3  ;;  %v4101_v3 = vld [vmem:[%s5187_s1 + $0x5c8] sm:$0xff]  }
  0x74   :  { %3661 = vmatpush3.bf16.msra.mxu0 %v4042_v4  ;;  %v4102_v4 = vld [vmem:[%s5187_s1 + $0x508] sm:$0xff]  }
  0x75   :  { %3683 = vmatpush3.bf16.msra.mxu1 %v4043_v5  ;;  %3662 = vmatprep.subr.bf16.mxu0 %v4044_v6  ;;  %v4103_v5 = vld [vmem:[%s5187_s1 + $0x588] sm:$0xff]   ;;  %v4104_v6 = vld [vmem:[%s5187_s1 + $0x550] sm:$0xff]  }
  0x76   :  { %3684 = vmatprep.subr.bf16.mxu1 %v4045_v7  ;;  %v4105_v7 = vld [vmem:[%s5187_s1 + $0x5d0] sm:$0xff]  }
  0x78   :  { %3663 = vmatpush3.bf16.msra.mxu0 %v4046_v8  ;;  %v4106_v8 = vld [vmem:[%s5187_s1 + $0x510] sm:$0xff]  }
  0x79   :  { %3685 = vmatpush3.bf16.msra.mxu1 %v4047_v9  ;;  %3664 = vmatprep.subr.bf16.mxu0 %v4048_v10  ;;  %v4107_v9 = vld [vmem:[%s5187_s1 + $0x590] sm:$0xff]   ;;  %v4108_v10 = vld [vmem:[%s5187_s1 + $0x558] sm:$0xff]  }
  0x7a   :  { %3686 = vmatprep.subr.bf16.mxu1 %v4049_v11  ;;  %v4109_v11 = vld [vmem:[%s5187_s1 + $0x5d8] sm:$0xff]  }
  0x7c   :  { %3665 = vmatpush3.bf16.msra.mxu0 %v4050_v12  ;;  %v4110_v12 = vld [vmem:[%s5187_s1 + $0x518] sm:$0xff]  }
  0x7d   :  { %3687 = vmatpush3.bf16.msra.mxu1 %v4051_v13  ;;  %3666 = vmatprep.subr.bf16.mxu0 %v4052_v14  ;;  %v4111_v13 = vld [vmem:[%s5187_s1 + $0x598] sm:$0xff]   ;;  %v4112_v14 = vld [vmem:[%s5187_s1 + $0x560] sm:$0xff]  }
  0x7e   :  { %3688 = vmatprep.subr.bf16.mxu1 %v4053_v15  ;;  %v4113_v15 = vld [vmem:[%s5187_s1 + $0x5e0] sm:$0xff]  }
  0x80   :  { %3667 = vmatpush3.bf16.msra.mxu0 %v4054_v16  ;;  %v4114_v16 = vld [vmem:[%s5187_s1 + $0x520] sm:$0xff]  }
  0x81   :  { %3689 = vmatpush3.bf16.msra.mxu1 %v4055_v17  ;;  %3696 = vmatprep.subr.bf16.mxu0 %v4060_v23  ;;  %v4115_v17 = vld [vmem:[%s5187_s1 + $0x5a0] sm:$0xff]   ;;  %v4121_v23 = vld [vmem:[%s5187_s1 + $0x5f0] sm:$0xff]  }
  0x82   :  { %3718 = vmatprep.subr.bf16.mxu1 %v4061_v25  ;;  %v4123_v25 = vld [vmem:[%s5187_s1 + $0x5b0] sm:$0xff]  }
  0x83   :  { %2743 = vmatmul.mubr.bf16.vlgmr.msra.gmra.mrb[12].mxu0 %v3208_v20  ;;  %v4118_v20 = vld [vmem:[%s5187_s1 + $0x528] sm:$0xff]  }
  0x84   :  { %2783 = vmatmul.mubr.bf16.vlgmr.msra.gmra.mrb[12].mxu1 %v3210_v22  ;;  %3697 = vmatpush3.bf16.msra.mxu0 %v4062_v26  ;;  %v4120_v22 = vld [vmem:[%s5187_s1 + $0x570] sm:$0xff]   ;;  %v4124_v26 = vld [vmem:[%s5187_s1 + $0x578] sm:$0xff]  }
  0x85   :  { %3719 = vmatpush3.bf16.msra.mxu1 %v4063_v27  ;;  %3698 = vmatprep.subr.bf16.mxu0 %v4064_v28  ;;  %v4125_v27 = vld [vmem:[%s5187_s1 + $0x5f8] sm:$0xff]  }
  0x86   :  { %3720 = vmatprep.subr.bf16.mxu1 %v4065_v29  ;;  %2822 = vmatprep.mubr.bf16.mxu0 %v3213_v58  ;;  %v4126_v28 = vld [vmem:[%s5187_s1 + $0x538] sm:$0xff]   ;;  %v4154_v58 = vld [vmem:[%s5187_s1 + $0x628] sm:$0xff]  }
  0x87   :  { %2862 = vmatprep.mubr.bf16.mxu1 %v3215_v61  ;;  %v4127_v29 = vld [vmem:[%s5187_s1 + $0x5b8] sm:$0xff]   ;;  %v4157_v61 = vld [vmem:[%s5187_s1 + $0x6f0] sm:$0xff]  }
  0x88   :  { %3699 = vmatpush3.bf16.msra.mxu0 %v4066_v30  ;;  %v25_v30 = vld [vmem:[%s5188_s0 + $0x50] sm:$0xff] }
  0x89   :  { %3721 = vmatpush3.bf16.msra.mxu1 %v4067_v31  ;;  %3700 = vmatprep.subr.bf16.mxu0 %v4068_v32  ;;  %v26_v31 = vld [vmem:[%s5188_s0 + $0x58] sm:$0xff]  ;;  %v3216_v32 = vcombine.low %v25_v30, %v25_v30 }
  0x8a   :  { %3722 = vmatprep.subr.bf16.mxu1 %v4069_v33  ;;  %v3217_v33 = vcombine.high %v25_v30, %v25_v30  ;;  %v4187_v30 = vld [vmem:[%s5187_s1 + $0x7a0] sm:$0xff]  }
  0x8c   :  { %3701 = vmatpush3.bf16.msra.mxu0 %v4070_v34  ;;  %v3218_v34 = vcombine.low %v26_v31, %v26_v31 }
  0x8d   :  { %3723 = vmatpush3.bf16.msra.mxu1 %v4071_v35  ;;  %3702 = vmatprep.subr.bf16.mxu0 %v4072_v36  ;;  %v3219_v35 = vcombine.high %v26_v31, %v26_v31  ;;  %v4132_v36 = vld [vmem:[%s5187_s1 + $0x640] sm:$0xff]  }
  0x8e   :  { %3724 = vmatprep.subr.bf16.mxu1 %v4073_v37  ;;  %v4133_v37 = vld [vmem:[%s5187_s1 + $0x6c0] sm:$0xff]  }
  0x90   :  { %3703 = vmatpush3.bf16.msra.mxu0 %v4074_v38  ;;  %v4134_v38 = vld [vmem:[%s5187_s1 + $0x600] sm:$0xff]  }
  0x91   :  { %3725 = vmatpush3.bf16.msra.mxu1 %v4075_v39  ;;  %3704 = vmatprep.subr.bf16.mxu0 %v4076_v40  ;;  %v4135_v39 = vld [vmem:[%s5187_s1 + $0x680] sm:$0xff]   ;;  %v4136_v40 = vld [vmem:[%s5187_s1 + $0x648] sm:$0xff]  }
  0x92   :  { %3726 = vmatprep.subr.bf16.mxu1 %v4077_v41  ;;  %v4137_v41 = vld [vmem:[%s5187_s1 + $0x6c8] sm:$0xff]  }
  0x94   :  { %3705 = vmatpush3.bf16.msra.mxu0 %v4078_v42  ;;  %v4138_v42 = vld [vmem:[%s5187_s1 + $0x608] sm:$0xff]  }
  0x95   :  { %3727 = vmatpush3.bf16.msra.mxu1 %v4079_v43  ;;  %3706 = vmatprep.subr.bf16.mxu0 %v4080_v44  ;;  %v4139_v43 = vld [vmem:[%s5187_s1 + $0x688] sm:$0xff]   ;;  %v4140_v44 = vld [vmem:[%s5187_s1 + $0x650] sm:$0xff]  }
  0x96   :  { %3728 = vmatprep.subr.bf16.mxu1 %v4081_v45  ;;  %v4141_v45 = vld [vmem:[%s5187_s1 + $0x6d0] sm:$0xff]  }
  0x98   :  { %3707 = vmatpush3.bf16.msra.mxu0 %v4082_v46  ;;  %v4142_v46 = vld [vmem:[%s5187_s1 + $0x610] sm:$0xff]  }
  0x99   :  { %3729 = vmatpush3.bf16.msra.mxu1 %v4083_v47  ;;  %3708 = vmatprep.subr.bf16.mxu0 %v4084_v48  ;;  %v4143_v47 = vld [vmem:[%s5187_s1 + $0x690] sm:$0xff]   ;;  %v4144_v48 = vld [vmem:[%s5187_s1 + $0x658] sm:$0xff]  }
  0x9a   :  { %3730 = vmatprep.subr.bf16.mxu1 %v4085_v49  ;;  %v4145_v49 = vld [vmem:[%s5187_s1 + $0x6d8] sm:$0xff]  }
  0x9c   :  { %3709 = vmatpush3.bf16.msra.mxu0 %v4086_v50  ;;  %v4146_v50 = vld [vmem:[%s5187_s1 + $0x618] sm:$0xff]  }
  0x9d   :  { %3731 = vmatpush3.bf16.msra.mxu1 %v4087_v51  ;;  %3710 = vmatprep.subr.bf16.mxu0 %v4088_v52  ;;  %v4147_v51 = vld [vmem:[%s5187_s1 + $0x698] sm:$0xff]   ;;  %v4148_v52 = vld [vmem:[%s5187_s1 + $0x660] sm:$0xff]  }
  0x9e   :  { %3732 = vmatprep.subr.bf16.mxu1 %v4089_v53  ;;  %v4149_v53 = vld [vmem:[%s5187_s1 + $0x6e0] sm:$0xff]  }
  0xa0   :  { %3711 = vmatpush3.bf16.msra.mxu0 %v4090_v54  ;;  %v4150_v54 = vld [vmem:[%s5187_s1 + $0x620] sm:$0xff]  }
  0xa1   :  { %3733 = vmatpush3.bf16.msra.mxu1 %v4091_v55  ;;  %3740 = vmatprep.subr.bf16.mxu0 %v4096_v62  ;;  %v4151_v55 = vld [vmem:[%s5187_s1 + $0x6a0] sm:$0xff]   ;;  %v4158_v62 = vld [vmem:[%s5187_s1 + $0x630] sm:$0xff]  }
  0xa2   :  { %3762 = vmatprep.subr.bf16.mxu1 %v4097_v63  ;;  %v4159_v63 = vld [vmem:[%s5187_s1 + $0x6b0] sm:$0xff]  }
  0xa3   :  { %2823 = vmatmul.mubr.bf16.vlgmr.msra.gmra.mrb[16].mxu0 %v3212_v57  ;;  %v4153_v57 = vld [vmem:[%s5187_s1 + $0x6e8] sm:$0xff]  }
  0xa4   :  { %2863 = vmatmul.mubr.bf16.vlgmr.msra.gmra.mrb[16].mxu1 %v3214_v60  ;;  %3741 = vmatpush3.bf16.msra.mxu0 %v4098_v0  ;;  %v4156_v60 = vld [vmem:[%s5187_s1 + $0x670] sm:$0xff]   ;;  %v4160_v0 = vld [vmem:[%s5187_s1 + $0x678] sm:$0xff]  }
  0xa5   :  { %3763 = vmatpush3.bf16.msra.mxu1 %v4099_v1  ;;  %3742 = vmatprep.subr.bf16.mxu0 %v4100_v2  ;;  %v4161_v1 = vld [vmem:[%s5187_s1 + $0x6f8] sm:$0xff]  }
  0xa6   :  { %3764 = vmatprep.subr.bf16.mxu1 %v4101_v3  ;;  %2902 = vmatprep.mubr.bf16.mxu0 %v3217_v33  ;;  %v4162_v2 = vld [vmem:[%s5187_s1 + $0x638] sm:$0xff]  }
  0xa7   :  { %2942 = vmatprep.mubr.bf16.mxu1 %v3219_v35  ;;  %v4163_v3 = vld [vmem:[%s5187_s1 + $0x6b8] sm:$0xff]  }
  0xa8   :  { %3743 = vmatpush3.bf16.msra.mxu0 %v4102_v4  ;;  %v27_v4 = vld [vmem:[%s5188_s0 + $0x60] sm:$0xff] }
  0xa9   :  { %3765 = vmatpush3.bf16.msra.mxu1 %v4103_v5  ;;  %3744 = vmatprep.subr.bf16.mxu0 %v4104_v6  ;;  %v28_v5 = vld [vmem:[%s5188_s0 + $0x68] sm:$0xff]  ;;  %v3220_v6 = vcombine.low %v27_v4, %v27_v4 }
  0xaa   :  { %3766 = vmatprep.subr.bf16.mxu1 %v4105_v7  ;;  %v3221_v7 = vcombine.high %v27_v4, %v27_v4  ;;  %v4211_v4 = vld [vmem:[%s5187_s1 + $0x888] sm:$0xff]  }
  0xac   :  { %3745 = vmatpush3.bf16.msra.mxu0 %v4106_v8  ;;  %v3222_v8 = vcombine.low %v28_v5, %v28_v5 }
  0xad   :  { %3767 = vmatpush3.bf16.msra.mxu1 %v4107_v9  ;;  %3746 = vmatprep.subr.bf16.mxu0 %v4108_v10  ;;  %v4168_v9 = vld [vmem:[%s5187_s1 + $0x740] sm:$0xff]   ;;  %v3223_v10 = vcombine.high %v28_v5, %v28_v5  ;;  %v4212_v5 = vld [vmem:[%s5187_s1 + $0x850] sm:$0xff]  }
  0xae   :  { %3768 = vmatprep.subr.bf16.mxu1 %v4109_v11  ;;  %v4169_v11 = vld [vmem:[%s5187_s1 + $0x7c0] sm:$0xff]  }
  0xb0   :  { %3747 = vmatpush3.bf16.msra.mxu0 %v4110_v12  ;;  %v4170_v12 = vld [vmem:[%s5187_s1 + $0x700] sm:$0xff]  }
  0xb1   :  { %3769 = vmatpush3.bf16.msra.mxu1 %v4111_v13  ;;  %3748 = vmatprep.subr.bf16.mxu0 %v4112_v14  ;;  %v4171_v13 = vld [vmem:[%s5187_s1 + $0x780] sm:$0xff]   ;;  %v4172_v14 = vld [vmem:[%s5187_s1 + $0x748] sm:$0xff]  }
  0xb2   :  { %3770 = vmatprep.subr.bf16.mxu1 %v4113_v15  ;;  %v4173_v15 = vld [vmem:[%s5187_s1 + $0x7c8] sm:$0xff]  }
  0xb4   :  { %3749 = vmatpush3.bf16.msra.mxu0 %v4114_v16  ;;  %v4174_v16 = vld [vmem:[%s5187_s1 + $0x708] sm:$0xff]  }
  0xb5   :  { %3771 = vmatpush3.bf16.msra.mxu1 %v4115_v17  ;;  %3750 = vmatprep.subr.bf16.mxu0 %v4116_v18  ;;  %v4175_v17 = vld [vmem:[%s5187_s1 + $0x788] sm:$0xff]   ;;  %v4176_v18 = vld [vmem:[%s5187_s1 + $0x750] sm:$0xff]  }
  0xb6   :  { %3772 = vmatprep.subr.bf16.mxu1 %v4117_v19  ;;  %v4177_v19 = vld [vmem:[%s5187_s1 + $0x7d0] sm:$0xff]  }
  0xb8   :  { %3751 = vmatpush3.bf16.msra.mxu0 %v4118_v20  ;;  %v4178_v20 = vld [vmem:[%s5187_s1 + $0x710] sm:$0xff]  }
  0xb9   :  { %3773 = vmatpush3.bf16.msra.mxu1 %v4119_v21  ;;  %3752 = vmatprep.subr.bf16.mxu0 %v4120_v22  ;;  %v4179_v21 = vld [vmem:[%s5187_s1 + $0x790] sm:$0xff]   ;;  %v4180_v22 = vld [vmem:[%s5187_s1 + $0x758] sm:$0xff]  }
  0xba   :  { %3774 = vmatprep.subr.bf16.mxu1 %v4121_v23  ;;  %v4181_v23 = vld [vmem:[%s5187_s1 + $0x7d8] sm:$0xff]  }
  0xbc   :  { %3753 = vmatpush3.bf16.msra.mxu0 %v4122_v24  ;;  %v4182_v24 = vld [vmem:[%s5187_s1 + $0x718] sm:$0xff]  }
  0xbd   :  { %3775 = vmatpush3.bf16.msra.mxu1 %v4123_v25  ;;  %3754 = vmatprep.subr.bf16.mxu0 %v4124_v26  ;;  %v4183_v25 = vld [vmem:[%s5187_s1 + $0x798] sm:$0xff]   ;;  %v4184_v26 = vld [vmem:[%s5187_s1 + $0x760] sm:$0xff]  }
  0xbe   :  { %3776 = vmatprep.subr.bf16.mxu1 %v4125_v27  ;;  %v4185_v27 = vld [vmem:[%s5187_s1 + $0x7e0] sm:$0xff]  }
  0xc0   :  { %3755 = vmatpush3.bf16.msra.mxu0 %v4126_v28  ;;  %v4186_v28 = vld [vmem:[%s5187_s1 + $0x720] sm:$0xff]  }
  0xc1   :  { %3777 = vmatpush3.bf16.msra.mxu1 %v4127_v29  ;;  %3784 = vmatprep.subr.bf16.mxu0 %v4132_v36 }
  0xc2   :  { %3806 = vmatprep.subr.bf16.mxu1 %v4133_v37  ;;  %v4188_v37 = vld [vmem:[%s5187_s1 + $0x768] sm:$0xff]  }
  0xc3   :  { %2903 = vmatmul.mubr.bf16.vlgmr.msra.gmra.mrb[20].mxu0 %v3216_v32  ;;  %v3195_v32 = vld [vmem:[%s5189_s2] ss:$0 sm:$0xff] }
  0xc4   :  { %2943 = vmatmul.mubr.bf16.vlgmr.msra.gmra.mrb[20].mxu1 %v3218_v34  ;;  %3785 = vmatpush3.bf16.msra.mxu0 %v4134_v38 }
  0xc5   :  { %3807 = vmatpush3.bf16.msra.mxu1 %v4135_v39  ;;  %3786 = vmatprep.subr.bf16.mxu0 %v4136_v40  ;;  %v4189_v39 = vld [vmem:[%s5187_s1 + $0x7e8] sm:$0xff]  }
  0xc6   :  { %3808 = vmatprep.subr.bf16.mxu1 %v4137_v41  ;;  %2982 = vmatprep.mubr.bf16.mxu0 %v3221_v7  ;;  %v4214_v7 = vld [vmem:[%s5187_s1 + $0x810] sm:$0xff]  }
  0xc7   :  { %3022 = vmatprep.mubr.bf16.mxu1 %v3223_v10  ;;  %v4217_v10 = vld [vmem:[%s5187_s1 + $0x8d8] sm:$0xff]  }
  0xc8   :  { %3787 = vmatpush3.bf16.msra.mxu0 %v4138_v42  ;;  %v4190_v42 = vld [vmem:[%s5187_s1 + $0x728] sm:$0xff]  }
  0xc9   :  { %3809 = vmatpush3.bf16.msra.mxu1 %v4139_v43  ;;  %3788 = vmatprep.subr.bf16.mxu0 %v4140_v44  ;;  %v4191_v44 = vld [vmem:[%s5187_s1 + $0x7a8] sm:$0xff]  }
  0xca   :  { %3810 = vmatprep.subr.bf16.mxu1 %v4141_v45 }
  0xcc   :  { %3789 = vmatpush3.bf16.msra.mxu0 %v4142_v46 }
  0xcd   :  { %3811 = vmatpush3.bf16.msra.mxu1 %v4143_v47  ;;  %3790 = vmatprep.subr.bf16.mxu0 %v4144_v48  ;;  %v4192_v47 = vld [vmem:[%s5187_s1 + $0x770] sm:$0xff]  }
  0xce   :  { %3812 = vmatprep.subr.bf16.mxu1 %v4145_v49  ;;  %v4193_v48 = vld [vmem:[%s5187_s1 + $0x7f0] sm:$0xff]  }
  0xcf   :  { %v4194_v49 = vld [vmem:[%s5187_s1 + $0x730] sm:$0xff]  }
  0xd0   :  { %3791 = vmatpush3.bf16.msra.mxu0 %v4146_v50  ;;  %v4195_v50 = vld [vmem:[%s5187_s1 + $0x7b0] sm:$0xff]  }
  0xd1   :  { %3813 = vmatpush3.bf16.msra.mxu1 %v4147_v51  ;;  %3792 = vmatprep.subr.bf16.mxu0 %v4148_v52  ;;  %v4196_v51 = vld [vmem:[%s5187_s1 + $0x778] sm:$0xff]  }
  0xd2   :  { %3814 = vmatprep.subr.bf16.mxu1 %v4149_v53  ;;  %v4197_v52 = vld [vmem:[%s5187_s1 + $0x7f8] sm:$0xff]  }
  0xd3   :  { %v4198_v53 = vld [vmem:[%s5187_s1 + $0x738] sm:$0xff]  }
  0xd4   :  { %3793 = vmatpush3.bf16.msra.mxu0 %v4150_v54  ;;  %v4199_v54 = vld [vmem:[%s5187_s1 + $0x7b8] sm:$0xff]  }
  0xd5   :  { %3815 = vmatpush3.bf16.msra.mxu1 %v4151_v55  ;;  %3794 = vmatprep.subr.bf16.mxu0 %v4152_v56  ;;  %v29_v55 = vld [vmem:[%s5188_s0 + $0x70] sm:$0xff]  ;;  %v30_v56 = vld [vmem:[%s5188_s0 + $0x78] sm:$0xff] }
  0xd6   :  { %3816 = vmatprep.subr.bf16.mxu1 %v4153_v57  ;;  %v3224_v57 = vcombine.low %v29_v55, %v29_v55 }
  0xd8   :  { %3795 = vmatpush3.bf16.msra.mxu0 %v4154_v58  ;;  %v3225_v58 = vcombine.high %v29_v55, %v29_v55 }
  0xd9   :  { %3817 = vmatpush3.bf16.msra.mxu1 %v4155_v59  ;;  %3796 = vmatprep.subr.bf16.mxu0 %v4156_v60  ;;  %v3226_v59 = vcombine.low %v30_v56, %v30_v56  ;;  %v3227_v60 = vcombine.high %v30_v56, %v30_v56 }
  0xda   :  { %3818 = vmatprep.subr.bf16.mxu1 %v4157_v61  ;;  %v4204_v61 = vld [vmem:[%s5187_s1 + $0x840] sm:$0xff]  }
  0xdc   :  { %3797 = vmatpush3.bf16.msra.mxu0 %v4158_v62  ;;  %v4205_v62 = vld [vmem:[%s5187_s1 + $0x8c0] sm:$0xff]  }
  0xdd   :  { %3819 = vmatpush3.bf16.msra.mxu1 %v4159_v63  ;;  %3798 = vmatprep.subr.bf16.mxu0 %v4160_v0  ;;  %v4206_v63 = vld [vmem:[%s5187_s1 + $0x800] sm:$0xff]  }
  0xde   :  { %3820 = vmatprep.subr.bf16.mxu1 %v4161_v1  ;;  %v4207_v0 = vld [vmem:[%s5187_s1 + $0x880] sm:$0xff]   ;;  %v4208_v1 = vld [vmem:[%s5187_s1 + $0x848] sm:$0xff]  }
  0xe0   :  { %3799 = vmatpush3.bf16.msra.mxu0 %v4162_v2  ;;  %v4209_v2 = vld [vmem:[%s5187_s1 + $0x8c8] sm:$0xff]  }
  0xe1   :  { %3821 = vmatpush3.bf16.msra.mxu1 %v4163_v3  ;;  %3828 = vmatprep.subr.bf16.mxu0 %v4168_v9  ;;  %v4210_v3 = vld [vmem:[%s5187_s1 + $0x808] sm:$0xff]   ;;  %v4216_v9 = vld [vmem:[%s5187_s1 + $0x858] sm:$0xff]  }
  0xe2   :  { %3850 = vmatprep.subr.bf16.mxu1 %v4169_v11  ;;  %v4218_v11 = vld [vmem:[%s5187_s1 + $0x818] sm:$0xff]  }
  0xe3   :  { %2983 = vmatmul.mubr.bf16.vlgmr.msra.gmra.mrb[24].mxu0 %v3220_v6  ;;  %v4213_v6 = vld [vmem:[%s5187_s1 + $0x8d0] sm:$0xff]  }
  0xe4   :  { %3023 = vmatmul.mubr.bf16.vlgmr.msra.gmra.mrb[24].mxu1 %v3222_v8  ;;  %3829 = vmatpush3.bf16.msra.mxu0 %v4170_v12  ;;  %v4215_v8 = vld [vmem:[%s5187_s1 + $0x890] sm:$0xff]   ;;  %v4219_v12 = vld [vmem:[%s5187_s1 + $0x898] sm:$0xff]  }
  0xe5   :  { %3851 = vmatpush3.bf16.msra.mxu1 %v4171_v13  ;;  %3830 = vmatprep.subr.bf16.mxu0 %v4172_v14  ;;  %v4220_v13 = vld [vmem:[%s5187_s1 + $0x860] sm:$0xff]  }
  0xe6   :  { %3852 = vmatprep.subr.bf16.mxu1 %v4173_v15  ;;  %3062 = vmatprep.mubr.bf16.mxu0 %v3225_v58  ;;  %v4221_v14 = vld [vmem:[%s5187_s1 + $0x8e0] sm:$0xff]  }
  0xe7   :  { %3102 = vmatprep.mubr.bf16.mxu1 %v3227_v60  ;;  %v4222_v15 = vld [vmem:[%s5187_s1 + $0x820] sm:$0xff]  }
  0xe8   :  { %3831 = vmatpush3.bf16.msra.mxu0 %v4174_v16 }
  0xe9   :  { %3853 = vmatpush3.bf16.msra.mxu1 %v4175_v17  ;;  %3832 = vmatprep.subr.bf16.mxu0 %v4176_v18  ;;  %v4223_v17 = vld [vmem:[%s5187_s1 + $0x8a0] sm:$0xff]  }
  0xea   :  { %3854 = vmatprep.subr.bf16.mxu1 %v4177_v19 }
  0xec   :  { %3833 = vmatpush3.bf16.msra.mxu0 %v4178_v20 }
  0xed   :  { %3855 = vmatpush3.bf16.msra.mxu1 %v4179_v21  ;;  %3834 = vmatprep.subr.bf16.mxu0 %v4180_v22 }
  0xee   :  { %3856 = vmatprep.subr.bf16.mxu1 %v4181_v23  ;;  %v4224_v23 = vld [vmem:[%s5187_s1 + $0x868] sm:$0xff]  }
  0xf0   :  { %3835 = vmatpush3.bf16.msra.mxu0 %v4182_v24 }
  0xf1   :  { %3857 = vmatpush3.bf16.msra.mxu1 %v4183_v25  ;;  %3836 = vmatprep.subr.bf16.mxu0 %v4184_v26  ;;  %v4225_v25 = vld [vmem:[%s5187_s1 + $0x8e8] sm:$0xff]  }
  0xf2   :  { %3858 = vmatprep.subr.bf16.mxu1 %v4185_v27 }
  0xf4   :  { %3837 = vmatpush3.bf16.msra.mxu0 %v4186_v28  ;;  %v4226_v28 = vld [vmem:[%s5187_s1 + $0x828] sm:$0xff]  }
  0xf5   :  { %3859 = vmatpush3.bf16.msra.mxu1 %v4187_v30  ;;  %3838 = vmatprep.subr.bf16.mxu0 %v4188_v37  ;;  %v4227_v30 = vld [vmem:[%s5187_s1 + $0x8a8] sm:$0xff]   ;;  %v4232_v37 = vld [vmem:[%s5187_s1 + $0x878] sm:$0xff]  }
  0xf6   :  { %v3536_v29 = vpop.f32.mrb[0].mxu0  ;;  %3860 = vmatprep.subr.bf16.mxu1 %v4189_v39  ;;  %v4234_v39 = vld [vmem:[%s5187_s1 + $0x838] sm:$0xff]  }
  0xf7   :  { %v3558_v31 = vpop.f32.mrb[0].mxu1  ;;  %v3537_v33 = vpop.f32.mrb[1].mxu0 }
  0xf8   :  { %v3559_v34 = vpop.f32.mrb[1].mxu1  ;;  %v3538_v35 = vadd.f32 %v3537_v33, %v3536_v29  ;;  %v3539_v38 = vpop.f32.mrb[2].mxu0  ;;  %3839 = vmatpush3.bf16.msra.mxu0 %v4190_v42  ;;  %v4228_v33 = vld [vmem:[%s5187_s1 + $0x870] sm:$0xff]   ;;  %v32_v42 = vld [vmem:[%s5188_s0 + $0x88] sm:$0xff] }
  0xf9   :  { %v3560_v36 = vadd.f32 %v3559_v34, %v3558_v31  ;;  %v3561_v40 = vpop.f32.mrb[2].mxu1  ;;  %v3540_v43 = vpop.f32.mrb[3].mxu0  ;;  %3861 = vmatpush3.bf16.msra.mxu1 %v4191_v44  ;;  %3840 = vmatprep.subr.bf16.mxu0 %v4192_v47  ;;  %v4229_v34 = vld [vmem:[%s5187_s1 + $0x8f0] sm:$0xff]   ;;  %v4233_v38 = vld [vmem:[%s5187_s1 + $0x8f8] sm:$0xff]  }
  0xfa   :  { %v2505_v41 = vadd.f32 %v3538_v35, %v3195_v32  ;;  %v3562_v45 = vpop.f32.mrb[3].mxu1  ;;  %3862 = vmatprep.subr.bf16.mxu1 %v4193_v48  ;;  %v4230_v35 = vld [vmem:[%s5187_s1 + $0x830] sm:$0xff]   ;;  %v4235_v40 = vld [vmem:[%s5187_s1 + $0x8b8] sm:$0xff]  }
  0xfb   :  { %v3230_v45 = vcombine.low %v32_v42, %v32_v42 }
  0xfc   :  { %v5049_v46 = vadd.f32 %v3560_v36, %v2505_v41  ;;  %3841 = vmatpush3.bf16.msra.mxu0 %v4194_v49  ;;  %v4231_v36 = vld [vmem:[%s5187_s1 + $0x8b0] sm:$0xff]   ;;  %v31_v41 = vld [vmem:[%s5188_s0 + $0x80] sm:$0xff] }
  0xfd   :  { %3863 = vmatpush3.bf16.msra.mxu1 %v4195_v50  ;;  %3842 = vmatprep.subr.bf16.mxu0 %v4196_v51  ;;  %v3228_v43 = vcombine.low %v31_v41, %v31_v41  ;;  %v3229_v44 = vcombine.high %v31_v41, %v31_v41 }
  0xfe   :  { %3864 = vmatprep.subr.bf16.mxu1 %v4197_v52 }
 0x100   :  { %3843 = vmatpush3.bf16.msra.mxu0 %v4198_v53 }
 0x101   :  { %3865 = vmatpush3.bf16.msra.mxu1 %v4199_v54  ;;  %3872 = vmatprep.subr.bf16.mxu0 %v4204_v61 }
 0x102   :  { %3894 = vmatprep.subr.bf16.mxu1 %v4205_v62 }
 0x103   :  { %3063 = vmatmul.mubr.bf16.vlgmr.msra.gmra.mrb[28].mxu0 %v3224_v57 }
 0x104   :  { %3103 = vmatmul.mubr.bf16.vlgmr.msra.gmra.mrb[28].mxu1 %v3226_v59  ;;  %3873 = vmatpush3.bf16.msra.mxu0 %v4206_v63 }
 0x105   :  { %3895 = vmatpush3.bf16.msra.mxu1 %v4207_v0  ;;  %3874 = vmatprep.subr.bf16.mxu0 %v4208_v1 }
 0x106   :  { %3896 = vmatprep.subr.bf16.mxu1 %v4209_v2  ;;  %3142 = vmatprep.mubr.bf16.mxu0 %v3229_v44 }
 0x108   :  { %3875 = vmatpush3.bf16.msra.mxu0 %v4210_v3 }
 0x109   :  { %3897 = vmatpush3.bf16.msra.mxu1 %v4211_v4  ;;  %3876 = vmatprep.subr.bf16.mxu0 %v4212_v5 }
 0x10a   :  { %3898 = vmatprep.subr.bf16.mxu1 %v4213_v6 }
 0x10c   :  { %3877 = vmatpush3.bf16.msra.mxu0 %v4214_v7 }
 0x10d   :  { %3899 = vmatpush3.bf16.msra.mxu1 %v4215_v8  ;;  %3878 = vmatprep.subr.bf16.mxu0 %v4216_v9 }
 0x10e   :  { %3900 = vmatprep.subr.bf16.mxu1 %v4217_v10 }
 0x110   :  { %3879 = vmatpush3.bf16.msra.mxu0 %v4218_v11 }
 0x111   :  { %3901 = vmatpush3.bf16.msra.mxu1 %v4219_v12  ;;  %3880 = vmatprep.subr.bf16.mxu0 %v4220_v13 }
 0x112   :  { %3902 = vmatprep.subr.bf16.mxu1 %v4221_v14 }
 0x114   :  { %3881 = vmatpush3.bf16.msra.mxu0 %v4222_v15 }
 0x115   :  { %3903 = vmatpush3.bf16.msra.mxu1 %v4223_v17  ;;  %3882 = vmatprep.subr.bf16.mxu0 %v4224_v23 }
 0x116   :  { %v3580_v16 = vpop.f32.mrb[4].mxu0  ;;  %3904 = vmatprep.subr.bf16.mxu1 %v4225_v25 }
 0x117   :  { %v3602_v18 = vpop.f32.mrb[4].mxu1  ;;  %v3581_v19 = vpop.f32.mrb[5].mxu0 }
 0x118   :  { %v3603_v20 = vpop.f32.mrb[5].mxu1  ;;  %v3582_v21 = vadd.f32 %v3581_v19, %v3580_v16  ;;  %v3583_v24 = vpop.f32.mrb[6].mxu0  ;;  %3883 = vmatpush3.bf16.msra.mxu0 %v4226_v28 }
 0x119   :  { %v3604_v22 = vadd.f32 %v3603_v20, %v3602_v18  ;;  %v3605_v26 = vpop.f32.mrb[6].mxu1  ;;  %v3584_v29 = vpop.f32.mrb[7].mxu0  ;;  %3905 = vmatpush3.bf16.msra.mxu1 %v4227_v30  ;;  %3884 = vmatprep.subr.bf16.mxu0 %v4228_v33 }
 0x11a   :  { %v2585_v27 = vadd.f32 %v3582_v21, %v5049_v46  ;;  %v3606_v31 = vpop.f32.mrb[7].mxu1  ;;  %3906 = vmatprep.subr.bf16.mxu1 %v4229_v34  ;;  %v3231_v46 = vcombine.high %v32_v42, %v32_v42 }
 0x11c   :  { %v2625_v32 = vadd.f32 %v3604_v22, %v2585_v27  ;;  %3885 = vmatpush3.bf16.msra.mxu0 %v4230_v35  ;;  %3182 = vmatprep.mubr.bf16.mxu1 %v3231_v46 }
 0x11d   :  { %3907 = vmatpush3.bf16.msra.mxu1 %v4231_v36  ;;  %3886 = vmatprep.subr.bf16.mxu0 %v4232_v37 }
 0x11e   :  { %3908 = vmatprep.subr.bf16.mxu1 %v4233_v38 }
 0x120   :  { %3887 = vmatpush3.bf16.msra.mxu0 %v4234_v39 }
 0x121   :  { %3909 = vmatpush3.bf16.msra.mxu1 %v4235_v40 }
 0x123   :  { %3143 = vmatmul.mubr.bf16.vlgmr.msra.gmra.mrb[32].mxu0 %v3228_v43 }
 0x124   :  { %3183 = vmatmul.mubr.bf16.vlgmr.msra.gmra.mrb[32].mxu1 %v3230_v45 }
 0x136   :  { %v3624_v47 = vpop.f32.mrb[8].mxu0 }
 0x137   :  { %v3646_v48 = vpop.f32.mrb[8].mxu1  ;;  %v3625_v49 = vpop.f32.mrb[9].mxu0 }
 0x138   :  { %v3626_v50 = vadd.f32 %v3625_v49, %v3624_v47  ;;  %v3647_v51 = vpop.f32.mrb[9].mxu1  ;;  %v3627_v52 = vpop.f32.mrb[10].mxu0 }
 0x139   :  { %v3648_v53 = vadd.f32 %v3647_v51, %v3646_v48  ;;  %v3649_v54 = vpop.f32.mrb[10].mxu1  ;;  %v3628_v55 = vpop.f32.mrb[11].mxu0 }
 0x13a   :  { %v2665_v56 = vadd.f32 %v3626_v50, %v2625_v32  ;;  %v3650_v57 = vpop.f32.mrb[11].mxu1 }
 0x13c   :  { %v2705_v58 = vadd.f32 %v3648_v53, %v2665_v56 }
 0x156   :  { %v3668_v59 = vpop.f32.mrb[12].mxu0 }
 0x157   :  { %v3690_v60 = vpop.f32.mrb[12].mxu1  ;;  %v3669_v61 = vpop.f32.mrb[13].mxu0 }
 0x158   :  { %v3670_v62 = vadd.f32 %v3669_v61, %v3668_v59  ;;  %v3691_v63 = vpop.f32.mrb[13].mxu1  ;;  %v3671_v0 = vpop.f32.mrb[14].mxu0 }
 0x159   :  { %v3692_v1 = vadd.f32 %v3691_v63, %v3690_v60  ;;  %v3693_v2 = vpop.f32.mrb[14].mxu1  ;;  %v3672_v3 = vpop.f32.mrb[15].mxu0 }
 0x15a   :  { %v2745_v4 = vadd.f32 %v3670_v62, %v2705_v58  ;;  %v3694_v5 = vpop.f32.mrb[15].mxu1 }
 0x15c   :  { %v2785_v6 = vadd.f32 %v3692_v1, %v2745_v4 }
 0x176   :  { %v3712_v7 = vpop.f32.mrb[16].mxu0 }
 0x177   :  { %v3734_v8 = vpop.f32.mrb[16].mxu1  ;;  %v3713_v9 = vpop.f32.mrb[17].mxu0 }
 0x178   :  { %v3735_v10 = vpop.f32.mrb[17].mxu1  ;;  %v3714_v11 = vadd.f32 %v3713_v9, %v3712_v7  ;;  %v3715_v13 = vpop.f32.mrb[18].mxu0 }
 0x179   :  { %v3736_v12 = vadd.f32 %v3735_v10, %v3734_v8  ;;  %v3737_v14 = vpop.f32.mrb[18].mxu1  ;;  %v3716_v15 = vpop.f32.mrb[19].mxu0 }
 0x17a   :  { %v3738_v16 = vpop.f32.mrb[19].mxu1  ;;  %v2825_v17 = vadd.f32 %v3714_v11, %v2785_v6 }
 0x17c   :  { %v2865_v18 = vadd.f32 %v3736_v12, %v2825_v17 }
 0x196   :  { %v3756_v19 = vpop.f32.mrb[20].mxu0 }
 0x197   :  { %v3778_v20 = vpop.f32.mrb[20].mxu1  ;;  %v3757_v21 = vpop.f32.mrb[21].mxu0 }
 0x198   :  { %v3758_v22 = vadd.f32 %v3757_v21, %v3756_v19  ;;  %v3779_v23 = vpop.f32.mrb[21].mxu1  ;;  %v3759_v24 = vpop.f32.mrb[22].mxu0 }
 0x199   :  { %v3780_v25 = vadd.f32 %v3779_v23, %v3778_v20  ;;  %v3781_v26 = vpop.f32.mrb[22].mxu1  ;;  %v3760_v27 = vpop.f32.mrb[23].mxu0 }
 0x19a   :  { %v2905_v28 = vadd.f32 %v3758_v22, %v2865_v18  ;;  %v3782_v29 = vpop.f32.mrb[23].mxu1 }
 0x19c   :  { %v2945_v30 = vadd.f32 %v3780_v25, %v2905_v28 }
 0x1b6   :  { %v3800_v31 = vpop.f32.mrb[24].mxu0 }
 0x1b7   :  { %v3822_v32 = vpop.f32.mrb[24].mxu1  ;;  %v3801_v33 = vpop.f32.mrb[25].mxu0 }
 0x1b8   :  { %v3802_v34 = vadd.f32 %v3801_v33, %v3800_v31  ;;  %v3823_v35 = vpop.f32.mrb[25].mxu1  ;;  %v3803_v36 = vpop.f32.mrb[26].mxu0 }
 0x1b9   :  { %v3824_v37 = vadd.f32 %v3823_v35, %v3822_v32  ;;  %v3825_v38 = vpop.f32.mrb[26].mxu1  ;;  %v3804_v39 = vpop.f32.mrb[27].mxu0 }
 0x1ba   :  { %v2985_v40 = vadd.f32 %v3802_v34, %v2945_v30  ;;  %v3826_v41 = vpop.f32.mrb[27].mxu1 }
 0x1bc   :  { %v3025_v42 = vadd.f32 %v3824_v37, %v2985_v40 }
 0x1d6   :  { %v3844_v43 = vpop.f32.mrb[28].mxu0 }
 0x1d7   :  { %v3866_v44 = vpop.f32.mrb[28].mxu1  ;;  %v3845_v45 = vpop.f32.mrb[29].mxu0 }
 0x1d8   :  { %v3846_v46 = vadd.f32 %v3845_v45, %v3844_v43  ;;  %v3867_v47 = vpop.f32.mrb[29].mxu1  ;;  %v3847_v48 = vpop.f32.mrb[30].mxu0 }
 0x1d9   :  { %v3868_v49 = vadd.f32 %v3867_v47, %v3866_v44  ;;  %v3869_v50 = vpop.f32.mrb[30].mxu1  ;;  %v3848_v51 = vpop.f32.mrb[31].mxu0 }
 0x1da   :  { %v3065_v52 = vadd.f32 %v3846_v46, %v3025_v42  ;;  %v3870_v53 = vpop.f32.mrb[31].mxu1 }
 0x1dc   :  { %v3105_v54 = vadd.f32 %v3868_v49, %v3065_v52 }
 0x1f6   :  { %v3888_v55 = vpop.f32.mrb[32].mxu0 }
 0x1f7   :  { %v3910_v56 = vpop.f32.mrb[32].mxu1  ;;  %v3889_v57 = vpop.f32.mrb[33].mxu0 }
 0x1f8   :  { %v3890_v58 = vadd.f32 %v3889_v57, %v3888_v55  ;;  %v3911_v59 = vpop.f32.mrb[33].mxu1  ;;  %v3891_v60 = vpop.f32.mrb[34].mxu0 }
 0x1f9   :  { %v3912_v61 = vadd.f32 %v3911_v59, %v3910_v56  ;;  %v3913_v62 = vpop.f32.mrb[34].mxu1  ;;  %v3892_v63 = vpop.f32.mrb[35].mxu0 }
 0x1fa   :  { %v3145_v0 = vadd.f32 %v3890_v58, %v3105_v54  ;;  %v3914_v1 = vpop.f32.mrb[35].mxu1 }
 0x1fc   :  { %v3185_v2 = vadd.f32 %v3912_v61, %v3145_v0 }
 0x1fe   :  { %3190 = vst [vmem:[%s5190_s3] sm:$0xff] %v3185_v2 }

// kernel: ssd_forward.9
= control target key start
LH: loop header
LB: loop body
LE: loop exit
PB: predicated region body
PF: predicated region fallthrough
CT: control target
= control target key end

     0   :  { %s2534_s12 = smov 0   ;;  %s2536_s13 = smov 0   ;;  %s2736_s0 = inlined_call_operand.vmem [shape: bf16[3,8,2304], index: 0, kind: input, shape index: {}]   ;;  %s2737_s1 = inlined_call_operand.vmem [shape: bf16[3,2304,128], index: 1, kind: input, shape index: {}]   ;;  %s2738_s2 = inlined_call_operand.vmem [shape: f32[3,1,128], index: 2, kind: input, shape index: {}]   ;;  %s2739_s3 = inlined_call_operand.vmem [shape: f32[3,8,128], index: 3, kind: output, shape index: {}]  }
   0x1   :  { %s2538_s14 = smov 0  }
   0x2 LB: > { %s25_s15 = sadd.s32 1, %s2508_s13  ;;  %p1935_p0 = scmp.ge.s32.totalorder %s2512_s14, 1  ;;  %s2512_s14 = sphi %s2538_s14, %s13_s14   ;;  %s2508_s13 = sphi %s2536_s13, %s2741_s13   ;;  %s2504_s12 = sphi %s2534_s12, %s2740_s12  }
   0x3   : > { %p27_p1 = scmp.ge.s32.totalorder %s25_s15, 3  ;;  %p175_p2 = scmp.lt.s32.totalorder %s2512_s14, 4 }
   0x5   : > { %s2743_s15 = smov (%p27_p1, %s25_s15), 0  ;;  %p176_p3 = pnand %p1935_p0, %p175_p2 }
   0x6   : > { %p213_p4 = scmp.lt.s32.totalorder (!%p176_p3), %s2504_s12, 2 }
   0x7   : > { %179 = sbr.rel (%p176_p3) target bundleno = 397 (0x18d), region = 32 }
   0xe   : > { %s2745_s12 = smov (!%p213_p4, %s2504_s12), 2 }
   0xf   : > { %s2303_s16 = smul.u32 1152, %s2745_s12  ;;  %s229_s26 = scalar_lea.vmem %s2738_s2, %s2745_s12 }
  0x10   : > { %s2302_s20 = smul.u32 72, %s2745_s12  ;;  %s1938_s27 = sshll.u32 %s2745_s12, 3 }
  0x11   : > { %s2558_s19 = scalar_lea.vmem %s2737_s1, %s2303_s16  ;;  %s236_s30 = scalar_lea.vmem %s2739_s3, %s1938_s27 }
  0x12   : > { %v2328_v0 = vld [vmem:[%s2558_s19 + $0x40] sm:$0xff]   ;;  %v2332_v4 = vld [vmem:[%s2558_s19 + $0x48] sm:$0xff]   ;;  %v2336_v8 = vld [vmem:[%s2558_s19 + $0x50] sm:$0xff]   ;;  %s2593_s23 = scalar_lea.vmem %s2736_s0, %s2302_s20 }
  0x13   : > { %v2329_v1 = vld [vmem:[%s2558_s19] sm:$0xff]   ;;  %2104 = vmatprep.subr.bf16.mxu0 %v2328_v0  ;;  %v2333_v5 = vld [vmem:[%s2558_s19 + $0x8] sm:$0xff]   ;;  %v2337_v9 = vld [vmem:[%s2558_s19 + $0x10] sm:$0xff]  }
  0x14   : > { %v2330_v2 = vld [vmem:[%s2558_s19 + $0xc0] sm:$0xff]   ;;  %2105 = vmatpush3.bf16.msra.mxu0 %v2329_v1  ;;  %v2334_v6 = vld [vmem:[%s2558_s19 + $0xc8] sm:$0xff]   ;;  %v2338_v10 = vld [vmem:[%s2558_s19 + $0xd0] sm:$0xff]  }
  0x15   : > { %v2331_v3 = vld [vmem:[%s2558_s19 + $0x80] sm:$0xff]   ;;  %2126 = vmatprep.subr.bf16.mxu1 %v2330_v2  ;;  %2106 = vmatprep.subr.bf16.mxu0 %v2332_v4  ;;  %v2335_v7 = vld [vmem:[%s2558_s19 + $0x88] sm:$0xff]   ;;  %v2339_v11 = vld [vmem:[%s2558_s19 + $0x90] sm:$0xff]  }
  0x16   : > { %2127 = vmatpush3.bf16.msra.mxu1 %v2331_v3  ;;  %v2340_v12 = vld [vmem:[%s2558_s19 + $0x58] sm:$0xff]   ;;  %v2344_v16 = vld [vmem:[%s2558_s19 + $0x60] sm:$0xff]   ;;  %v2348_v20 = vld [vmem:[%s2558_s19 + $0x68] sm:$0xff]  }
  0x17   : > { %2128 = vmatprep.subr.bf16.mxu1 %v2334_v6  ;;  %v2341_v13 = vld [vmem:[%s2558_s19 + $0x18] sm:$0xff]   ;;  %v2345_v17 = vld [vmem:[%s2558_s19 + $0x20] sm:$0xff]   ;;  %v2349_v21 = vld [vmem:[%s2558_s19 + $0x28] sm:$0xff]  }
  0x18   : > { %2107 = vmatpush3.bf16.msra.mxu0 %v2333_v5  ;;  %v2342_v14 = vld [vmem:[%s2558_s19 + $0xd8] sm:$0xff]   ;;  %v2346_v18 = vld [vmem:[%s2558_s19 + $0xe0] sm:$0xff]   ;;  %v2350_v22 = vld [vmem:[%s2558_s19 + $0xe8] sm:$0xff]  }
  0x19   : > { %2108 = vmatprep.subr.bf16.mxu0 %v2336_v8  ;;  %v2343_v15 = vld [vmem:[%s2558_s19 + $0x98] sm:$0xff]   ;;  %v2347_v19 = vld [vmem:[%s2558_s19 + $0xa0] sm:$0xff]   ;;  %v2351_v23 = vld [vmem:[%s2558_s19 + $0xa8] sm:$0xff]  }
  0x1a   : > { %2129 = vmatpush3.bf16.msra.mxu1 %v2335_v7  ;;  %v2352_v24 = vld [vmem:[%s2558_s19 + $0x70] sm:$0xff]   ;;  %v2356_v28 = vld [vmem:[%s2558_s19 + $0x78] sm:$0xff]   ;;  %v238_v31 = vld [vmem:[%s2593_s23] sm:$0xff] }
  0x1b   : > { %2130 = vmatprep.subr.bf16.mxu1 %v2338_v10  ;;  %v2353_v25 = vld [vmem:[%s2558_s19 + $0x30] sm:$0xff]   ;;  %v2357_v29 = vld [vmem:[%s2558_s19 + $0x38] sm:$0xff]   ;;  %v1940_v32 = vcombine.low %v238_v31, %v238_v31  ;;  %v1941_v33 = vcombine.high %v238_v31, %v238_v31  ;;  %v2362_v35 = vld [vmem:[%s2558_s19 + $0x140] sm:$0xff]  }
  0x1c   : > { %2109 = vmatpush3.bf16.msra.mxu0 %v2337_v9  ;;  %v2354_v26 = vld [vmem:[%s2558_s19 + $0xf0] sm:$0xff]   ;;  %v2358_v30 = vld [vmem:[%s2558_s19 + $0xf8] sm:$0xff]   ;;  %v239_v36 = vld [vmem:[%s2593_s23 + $0x8] sm:$0xff] }
  0x1d   : > { %2110 = vmatprep.subr.bf16.mxu0 %v2340_v12  ;;  %v2355_v27 = vld [vmem:[%s2558_s19 + $0xb0] sm:$0xff]   ;;  %v2361_v34 = vld [vmem:[%s2558_s19 + $0xb8] sm:$0xff]   ;;  %1501 = vmatprep.mubr.bf16.mxu0 %v1941_v33  ;;  %v1942_v37 = vcombine.low %v239_v36, %v239_v36  ;;  %v1943_v38 = vcombine.high %v239_v36, %v239_v36  ;;  %v2365_v39 = vld [vmem:[%s2558_s19 + $0x100] sm:$0xff]  }
  0x1e   : > { %2131 = vmatpush3.bf16.msra.mxu1 %v2339_v11  ;;  %v2366_v40 = vld [vmem:[%s2558_s19 + $0x1c0] sm:$0xff]   ;;  %v2368_v42 = vld [vmem:[%s2558_s19 + $0x148] sm:$0xff]   ;;  %v2372_v46 = vld [vmem:[%s2558_s19 + $0x150] sm:$0xff]  }
  0x1f   : > { %2132 = vmatprep.subr.bf16.mxu1 %v2342_v14  ;;  %1541 = vmatprep.mubr.bf16.mxu1 %v1943_v38  ;;  %v2367_v41 = vld [vmem:[%s2558_s19 + $0x180] sm:$0xff]   ;;  %v2369_v43 = vld [vmem:[%s2558_s19 + $0x108] sm:$0xff]   ;;  %v2373_v47 = vld [vmem:[%s2558_s19 + $0x110] sm:$0xff]  }
  0x20   : > { %2111 = vmatpush3.bf16.msra.mxu0 %v2341_v13  ;;  %v2370_v44 = vld [vmem:[%s2558_s19 + $0x1c8] sm:$0xff]   ;;  %v2374_v48 = vld [vmem:[%s2558_s19 + $0x1d0] sm:$0xff]   ;;  %v2376_v50 = vld [vmem:[%s2558_s19 + $0x158] sm:$0xff]  }
  0x21   : > { %2112 = vmatprep.subr.bf16.mxu0 %v2344_v16  ;;  %v2371_v45 = vld [vmem:[%s2558_s19 + $0x188] sm:$0xff]   ;;  %v2375_v49 = vld [vmem:[%s2558_s19 + $0x190] sm:$0xff]   ;;  %v2377_v51 = vld [vmem:[%s2558_s19 + $0x118] sm:$0xff]  }
  0x22   : > { %2133 = vmatpush3.bf16.msra.mxu1 %v2343_v15  ;;  %v2378_v52 = vld [vmem:[%s2558_s19 + $0x1d8] sm:$0xff]   ;;  %v2380_v54 = vld [vmem:[%s2558_s19 + $0x160] sm:$0xff]   ;;  %v2384_v58 = vld [vmem:[%s2558_s19 + $0x168] sm:$0xff]  }
  0x23   : > { %2134 = vmatprep.subr.bf16.mxu1 %v2346_v18  ;;  %v2379_v53 = vld [vmem:[%s2558_s19 + $0x198] sm:$0xff]   ;;  %v2381_v55 = vld [vmem:[%s2558_s19 + $0x120] sm:$0xff]   ;;  %v2385_v59 = vld [vmem:[%s2558_s19 + $0x128] sm:$0xff]  }
  0x24   : > { %2113 = vmatpush3.bf16.msra.mxu0 %v2345_v17  ;;  %v2382_v56 = vld [vmem:[%s2558_s19 + $0x1e0] sm:$0xff]   ;;  %v2386_v60 = vld [vmem:[%s2558_s19 + $0x1e8] sm:$0xff]   ;;  %v2388_v62 = vld [vmem:[%s2558_s19 + $0x170] sm:$0xff]  }
  0x25   : > { %2114 = vmatprep.subr.bf16.mxu0 %v2348_v20  ;;  %v2383_v57 = vld [vmem:[%s2558_s19 + $0x1a0] sm:$0xff]   ;;  %v2387_v61 = vld [vmem:[%s2558_s19 + $0x1a8] sm:$0xff]   ;;  %v2389_v63 = vld [vmem:[%s2558_s19 + $0x130] sm:$0xff]  }
  0x26   : > { %2135 = vmatpush3.bf16.msra.mxu1 %v2347_v19  ;;  %v2390_v0 = vld [vmem:[%s2558_s19 + $0x1f0] sm:$0xff]   ;;  %v2392_v2 = vld [vmem:[%s2558_s19 + $0x178] sm:$0xff]   ;;  %v2398_v9 = vld [vmem:[%s2558_s19 + $0x240] sm:$0xff]  }
  0x27   : > { %2136 = vmatprep.subr.bf16.mxu1 %v2350_v22  ;;  %v2391_v1 = vld [vmem:[%s2558_s19 + $0x1b0] sm:$0xff]   ;;  %v2393_v3 = vld [vmem:[%s2558_s19 + $0x138] sm:$0xff]   ;;  %v2401_v13 = vld [vmem:[%s2558_s19 + $0x200] sm:$0xff]  }
  0x28   : > { %2115 = vmatpush3.bf16.msra.mxu0 %v2349_v21  ;;  %v2394_v4 = vld [vmem:[%s2558_s19 + $0x1f8] sm:$0xff]   ;;  %v240_v5 = vld [vmem:[%s2593_s23 + $0x10] sm:$0xff]  ;;  %v2402_v14 = vld [vmem:[%s2558_s19 + $0x2c0] sm:$0xff]  }
  0x29   : > { %2116 = vmatprep.subr.bf16.mxu0 %v2352_v24  ;;  %v1944_v6 = vcombine.low %v240_v5, %v240_v5  ;;  %v1945_v7 = vcombine.high %v240_v5, %v240_v5  ;;  %v2397_v8 = vld [vmem:[%s2558_s19 + $0x1b8] sm:$0xff]   ;;  %v2403_v15 = vld [vmem:[%s2558_s19 + $0x280] sm:$0xff]   ;;  %v2404_v16 = vld [vmem:[%s2558_s19 + $0x248] sm:$0xff]  }
  0x2a   : > { %2137 = vmatpush3.bf16.msra.mxu1 %v2351_v23  ;;  %v241_v10 = vld [vmem:[%s2593_s23 + $0x18] sm:$0xff]  ;;  %v2405_v17 = vld [vmem:[%s2558_s19 + $0x208] sm:$0xff]   ;;  %v2408_v20 = vld [vmem:[%s2558_s19 + $0x250] sm:$0xff]  }
  0x2b   : > { %2138 = vmatprep.subr.bf16.mxu1 %v2354_v26  ;;  %v1946_v11 = vcombine.low %v241_v10, %v241_v10  ;;  %v1947_v12 = vcombine.high %v241_v10, %v241_v10  ;;  %v2406_v18 = vld [vmem:[%s2558_s19 + $0x2c8] sm:$0xff]   ;;  %v2409_v21 = vld [vmem:[%s2558_s19 + $0x210] sm:$0xff]   ;;  %v2412_v24 = vld [vmem:[%s2558_s19 + $0x258] sm:$0xff]  }
  0x2c   : > { %2117 = vmatpush3.bf16.msra.mxu0 %v2353_v25  ;;  %v2407_v19 = vld [vmem:[%s2558_s19 + $0x288] sm:$0xff]   ;;  %v2410_v22 = vld [vmem:[%s2558_s19 + $0x2d0] sm:$0xff]   ;;  %v2413_v25 = vld [vmem:[%s2558_s19 + $0x218] sm:$0xff]  }
  0x2d   : > { %2118 = vmatprep.subr.bf16.mxu0 %v2356_v28  ;;  %v2411_v23 = vld [vmem:[%s2558_s19 + $0x290] sm:$0xff]   ;;  %v2414_v26 = vld [vmem:[%s2558_s19 + $0x2d8] sm:$0xff]   ;;  %v2416_v28 = vld [vmem:[%s2558_s19 + $0x260] sm:$0xff]  }
  0x2e   : > { %2139 = vmatpush3.bf16.msra.mxu1 %v2355_v27  ;;  %v2415_v27 = vld [vmem:[%s2558_s19 + $0x298] sm:$0xff]   ;;  %v2419_v31 = vld [vmem:[%s2558_s19 + $0x2a0] sm:$0xff]   ;;  %v2421_v33 = vld [vmem:[%s2558_s19 + $0x228] sm:$0xff]  }
  0x2f   : > { %2140 = vmatprep.subr.bf16.mxu1 %v2358_v30  ;;  %v2418_v30 = vld [vmem:[%s2558_s19 + $0x2e0] sm:$0xff]   ;;  %v2424_v36 = vld [vmem:[%s2558_s19 + $0x270] sm:$0xff]  }
  0x30   : > { %2119 = vmatpush3.bf16.msra.mxu0 %v2357_v29  ;;  %v2417_v29 = vld [vmem:[%s2558_s19 + $0x220] sm:$0xff]   ;;  %v2426_v38 = vld [vmem:[%s2558_s19 + $0x2f0] sm:$0xff]  }
  0x31   : > { %2148 = vmatprep.subr.bf16.mxu0 %v2362_v35  ;;  %v2423_v35 = vld [vmem:[%s2558_s19 + $0x2a8] sm:$0xff]   ;;  %v2455_v5 = vld [vmem:[%s2558_s19 + $0x3a0] sm:$0xff]   ;;  %v2460_v10 = vld [vmem:[%s2558_s19 + $0x370] sm:$0xff]  }
  0x32   : > { %2141 = vmatpush3.bf16.msra.mxu1 %v2361_v34  ;;  %v2422_v34 = vld [vmem:[%s2558_s19 + $0x2e8] sm:$0xff]  }
  0x33   : > { %1502 = vmatmul.mubr.bf16.vlgmr.msra.gmra.mrb[0].mxu0 %v1940_v32  ;;  %2170 = vmatprep.subr.bf16.mxu1 %v2366_v40  ;;  %v2420_v32 = vld [vmem:[%s2558_s19 + $0x268] sm:$0xff]   ;;  %v2428_v40 = vld [vmem:[%s2558_s19 + $0x278] sm:$0xff]  }
  0x34   : > { %2149 = vmatpush3.bf16.msra.mxu0 %v2365_v39  ;;  %1581 = vmatprep.mubr.bf16.mxu0 %v1945_v7  ;;  %v2427_v39 = vld [vmem:[%s2558_s19 + $0x2b0] sm:$0xff]   ;;  %v2457_v7 = vld [vmem:[%s2558_s19 + $0x328] sm:$0xff]  }
  0x35   : > { %1542 = vmatmul.mubr.bf16.vlgmr.msra.gmra.mrb[0].mxu1 %v1942_v37  ;;  %2150 = vmatprep.subr.bf16.mxu0 %v2368_v42  ;;  %v2425_v37 = vld [vmem:[%s2558_s19 + $0x230] sm:$0xff]   ;;  %v2430_v42 = vld [vmem:[%s2558_s19 + $0x2f8] sm:$0xff]  }
  0x36   : > { %2171 = vmatpush3.bf16.msra.mxu1 %v2367_v41  ;;  %1621 = vmatprep.mubr.bf16.mxu1 %v1947_v12  ;;  %v2429_v41 = vld [vmem:[%s2558_s19 + $0x238] sm:$0xff]   ;;  %v2462_v12 = vld [vmem:[%s2558_s19 + $0x3f0] sm:$0xff]  }
  0x37   : > { %2172 = vmatprep.subr.bf16.mxu1 %v2370_v44 }
  0x38   : > { %2151 = vmatpush3.bf16.msra.mxu0 %v2369_v43  ;;  %v242_v43 = vld [vmem:[%s2593_s23 + $0x20] sm:$0xff] }
  0x39   : > { %2152 = vmatprep.subr.bf16.mxu0 %v2372_v46  ;;  %v1948_v44 = vcombine.low %v242_v43, %v242_v43  ;;  %v2433_v46 = vld [vmem:[%s2558_s19 + $0x2b8] sm:$0xff]  }
  0x3a   : > { %2173 = vmatpush3.bf16.msra.mxu1 %v2371_v45  ;;  %v1949_v45 = vcombine.high %v242_v43, %v242_v43 }
  0x3b   : > { %2174 = vmatprep.subr.bf16.mxu1 %v2374_v48  ;;  %v243_v48 = vld [vmem:[%s2593_s23 + $0x28] sm:$0xff] }
  0x3c   : > { %2153 = vmatpush3.bf16.msra.mxu0 %v2373_v47  ;;  %v2434_v47 = vld [vmem:[%s2558_s19 + $0x340] sm:$0xff]  }
  0x3d   : > { %2154 = vmatprep.subr.bf16.mxu0 %v2376_v50  ;;  %v1951_v50 = vcombine.high %v243_v48, %v243_v48 }
  0x3e   : > { %2175 = vmatpush3.bf16.msra.mxu1 %v2375_v49  ;;  %v1950_v49 = vcombine.low %v243_v48, %v243_v48 }
  0x3f   : > { %2176 = vmatprep.subr.bf16.mxu1 %v2378_v52  ;;  %v2438_v52 = vld [vmem:[%s2558_s19 + $0x3c0] sm:$0xff]  }
  0x40   : > { %2155 = vmatpush3.bf16.msra.mxu0 %v2377_v51  ;;  %v2437_v51 = vld [vmem:[%s2558_s19 + $0x300] sm:$0xff]  }
  0x41   : > { %2156 = vmatprep.subr.bf16.mxu0 %v2380_v54  ;;  %v2440_v54 = vld [vmem:[%s2558_s19 + $0x348] sm:$0xff]  }
  0x42   : > { %2177 = vmatpush3.bf16.msra.mxu1 %v2379_v53  ;;  %v2439_v53 = vld [vmem:[%s2558_s19 + $0x380] sm:$0xff]  }
  0x43   : > { %2178 = vmatprep.subr.bf16.mxu1 %v2382_v56  ;;  %v2442_v56 = vld [vmem:[%s2558_s19 + $0x3c8] sm:$0xff]  }
  0x44   : > { %2157 = vmatpush3.bf16.msra.mxu0 %v2381_v55  ;;  %v2441_v55 = vld [vmem:[%s2558_s19 + $0x308] sm:$0xff]  }
  0x45   : > { %2158 = vmatprep.subr.bf16.mxu0 %v2384_v58  ;;  %v2444_v58 = vld [vmem:[%s2558_s19 + $0x350] sm:$0xff]  }
  0x46   : > { %2179 = vmatpush3.bf16.msra.mxu1 %v2383_v57  ;;  %v2443_v57 = vld [vmem:[%s2558_s19 + $0x388] sm:$0xff]  }
  0x47   : > { %2180 = vmatprep.subr.bf16.mxu1 %v2386_v60  ;;  %v2446_v60 = vld [vmem:[%s2558_s19 + $0x3d0] sm:$0xff]  }
  0x48   : > { %2159 = vmatpush3.bf16.msra.mxu0 %v2385_v59  ;;  %v2445_v59 = vld [vmem:[%s2558_s19 + $0x310] sm:$0xff]  }
  0x49   : > { %2160 = vmatprep.subr.bf16.mxu0 %v2388_v62  ;;  %v2448_v62 = vld [vmem:[%s2558_s19 + $0x358] sm:$0xff]  }
  0x4a   : > { %2181 = vmatpush3.bf16.msra.mxu1 %v2387_v61  ;;  %v2447_v61 = vld [vmem:[%s2558_s19 + $0x390] sm:$0xff]  }
  0x4b   : > { %2182 = vmatprep.subr.bf16.mxu1 %v2390_v0  ;;  %v2450_v0 = vld [vmem:[%s2558_s19 + $0x3d8] sm:$0xff]  }
  0x4c   : > { %2161 = vmatpush3.bf16.msra.mxu0 %v2389_v63  ;;  %v2449_v63 = vld [vmem:[%s2558_s19 + $0x318] sm:$0xff]  }
  0x4d   : > { %2162 = vmatprep.subr.bf16.mxu0 %v2392_v2  ;;  %v2452_v2 = vld [vmem:[%s2558_s19 + $0x360] sm:$0xff]  }
  0x4e   : > { %2183 = vmatpush3.bf16.msra.mxu1 %v2391_v1  ;;  %v2451_v1 = vld [vmem:[%s2558_s19 + $0x398] sm:$0xff]  }
  0x4f   : > { %2184 = vmatprep.subr.bf16.mxu1 %v2394_v4  ;;  %v2454_v4 = vld [vmem:[%s2558_s19 + $0x3e0] sm:$0xff]  }
  0x50   : > { %2163 = vmatpush3.bf16.msra.mxu0 %v2393_v3  ;;  %v2453_v3 = vld [vmem:[%s2558_s19 + $0x320] sm:$0xff]  }
  0x51   : > { %2192 = vmatprep.subr.bf16.mxu0 %v2398_v9  ;;  %v2459_v9 = vld [vmem:[%s2558_s19 + $0x3a8] sm:$0xff]  }
  0x52   : > { %2185 = vmatpush3.bf16.msra.mxu1 %v2397_v8  ;;  %v2458_v8 = vld [vmem:[%s2558_s19 + $0x3e8] sm:$0xff]  }
  0x53   : > { %1582 = vmatmul.mubr.bf16.vlgmr.msra.gmra.mrb[4].mxu0 %v1944_v6  ;;  %2214 = vmatprep.subr.bf16.mxu1 %v2402_v14  ;;  %v2456_v6 = vld [vmem:[%s2558_s19 + $0x368] sm:$0xff]   ;;  %v2464_v14 = vld [vmem:[%s2558_s19 + $0x378] sm:$0xff]  }
  0x54   : > { %2193 = vmatpush3.bf16.msra.mxu0 %v2401_v13  ;;  %1661 = vmatprep.mubr.bf16.mxu0 %v1949_v45  ;;  %v2463_v13 = vld [vmem:[%s2558_s19 + $0x3b0] sm:$0xff]  }
  0x55   : > { %1622 = vmatmul.mubr.bf16.vlgmr.msra.gmra.mrb[4].mxu1 %v1946_v11  ;;  %2194 = vmatprep.subr.bf16.mxu0 %v2404_v16  ;;  %v2461_v11 = vld [vmem:[%s2558_s19 + $0x330] sm:$0xff]   ;;  %v2466_v16 = vld [vmem:[%s2558_s19 + $0x3f8] sm:$0xff]  }
  0x56   : > { %2215 = vmatpush3.bf16.msra.mxu1 %v2403_v15  ;;  %1701 = vmatprep.mubr.bf16.mxu1 %v1951_v50  ;;  %v2465_v15 = vld [vmem:[%s2558_s19 + $0x338] sm:$0xff]  }
  0x57   : > { %2216 = vmatprep.subr.bf16.mxu1 %v2406_v18 }
  0x58   : > { %2195 = vmatpush3.bf16.msra.mxu0 %v2405_v17  ;;  %v244_v17 = vld [vmem:[%s2593_s23 + $0x30] sm:$0xff] }
  0x59   : > { %2196 = vmatprep.subr.bf16.mxu0 %v2408_v20  ;;  %v1952_v18 = vcombine.low %v244_v17, %v244_v17  ;;  %v2469_v20 = vld [vmem:[%s2558_s19 + $0x3b8] sm:$0xff]  }
  0x5a   : > { %2217 = vmatpush3.bf16.msra.mxu1 %v2407_v19  ;;  %v1953_v19 = vcombine.high %v244_v17, %v244_v17 }
  0x5b   : > { %2218 = vmatprep.subr.bf16.mxu1 %v2410_v22  ;;  %v245_v22 = vld [vmem:[%s2593_s23 + $0x38] sm:$0xff] }
  0x5c   : > { %2197 = vmatpush3.bf16.msra.mxu0 %v2409_v21  ;;  %v2470_v21 = vld [vmem:[%s2558_s19 + $0x440] sm:$0xff]  }
  0x5d   : > { %2198 = vmatprep.subr.bf16.mxu0 %v2412_v24  ;;  %v1955_v24 = vcombine.high %v245_v22, %v245_v22 }
  0x5e   : > { %2219 = vmatpush3.bf16.msra.mxu1 %v2411_v23  ;;  %v1954_v23 = vcombine.low %v245_v22, %v245_v22 }
  0x5f   : > { %2220 = vmatprep.subr.bf16.mxu1 %v2414_v26  ;;  %v2474_v26 = vld [vmem:[%s2558_s19 + $0x448] sm:$0xff]  }
  0x60   : > { %2199 = vmatpush3.bf16.msra.mxu0 %v2413_v25  ;;  %v2473_v25 = vld [vmem:[%s2558_s19 + $0x400] sm:$0xff]  }
  0x61   : > { %2200 = vmatprep.subr.bf16.mxu0 %v2416_v28  ;;  %v2476_v28 = vld [vmem:[%s2558_s19 + $0x450] sm:$0xff]  }
  0x62   : > { %2221 = vmatpush3.bf16.msra.mxu1 %v2415_v27  ;;  %v2475_v27 = vld [vmem:[%s2558_s19 + $0x408] sm:$0xff]  }
  0x63   : > { %2222 = vmatprep.subr.bf16.mxu1 %v2418_v30  ;;  %v2478_v30 = vld [vmem:[%s2558_s19 + $0x458] sm:$0xff]  }
  0x64   : > { %2201 = vmatpush3.bf16.msra.mxu0 %v2417_v29  ;;  %v2477_v29 = vld [vmem:[%s2558_s19 + $0x410] sm:$0xff]  }
  0x65   : > { %2202 = vmatprep.subr.bf16.mxu0 %v2420_v32  ;;  %v2480_v32 = vld [vmem:[%s2558_s19 + $0x460] sm:$0xff]  }
  0x66   : > { %2223 = vmatpush3.bf16.msra.mxu1 %v2419_v31  ;;  %v2479_v31 = vld [vmem:[%s2558_s19 + $0x418] sm:$0xff]  }
  0x67   : > { %2224 = vmatprep.subr.bf16.mxu1 %v2422_v34  ;;  %v246_v34 = vld [vmem:[%s2593_s23 + $0x40] sm:$0xff] }
  0x68   : > { %2203 = vmatpush3.bf16.msra.mxu0 %v2421_v33  ;;  %v2481_v33 = vld [vmem:[%s2558_s19 + $0x420] sm:$0xff]  }
  0x69   : > { %2204 = vmatprep.subr.bf16.mxu0 %v2424_v36  ;;  %v1957_v36 = vcombine.high %v246_v34, %v246_v34 }
  0x6a   : > { %2225 = vmatpush3.bf16.msra.mxu1 %v2423_v35  ;;  %v2482_v35 = vld [vmem:[%s2558_s19 + $0x468] sm:$0xff]  }
  0x6b   : > { %2226 = vmatprep.subr.bf16.mxu1 %v2426_v38  ;;  %v2484_v38 = vld [vmem:[%s2558_s19 + $0x470] sm:$0xff]  }
  0x6c   : > { %2205 = vmatpush3.bf16.msra.mxu0 %v2425_v37  ;;  %v2483_v37 = vld [vmem:[%s2558_s19 + $0x428] sm:$0xff]  }
  0x6d   : > { %2206 = vmatprep.subr.bf16.mxu0 %v2428_v40  ;;  %v2486_v40 = vld [vmem:[%s2558_s19 + $0x478] sm:$0xff]  }
  0x6e   : > { %2227 = vmatpush3.bf16.msra.mxu1 %v2427_v39  ;;  %v2485_v39 = vld [vmem:[%s2558_s19 + $0x430] sm:$0xff]  }
  0x6f   : > { %2228 = vmatprep.subr.bf16.mxu1 %v2430_v42  ;;  %v1956_v42 = vcombine.low %v246_v34, %v246_v34 }
  0x70   : > { %2207 = vmatpush3.bf16.msra.mxu0 %v2429_v41  ;;  %v2487_v41 = vld [vmem:[%s2558_s19 + $0x438] sm:$0xff]  }
  0x71   : > { %2236 = vmatprep.subr.bf16.mxu0 %v2434_v47 }
  0x72   : > { %2229 = vmatpush3.bf16.msra.mxu1 %v2433_v46 }
  0x73   : > { %1662 = vmatmul.mubr.bf16.vlgmr.msra.gmra.mrb[8].mxu0 %v1948_v44  ;;  %2258 = vmatprep.subr.bf16.mxu1 %v2438_v52  ;;  %v1939_v44 = vld [vmem:[%s229_s26] ss:$0 sm:$0xff] }
  0x74   : > { %2237 = vmatpush3.bf16.msra.mxu0 %v2437_v51  ;;  %1741 = vmatprep.mubr.bf16.mxu0 %v1953_v19 }
  0x75   : > { %1702 = vmatmul.mubr.bf16.vlgmr.msra.gmra.mrb[8].mxu1 %v1950_v49  ;;  %2238 = vmatprep.subr.bf16.mxu0 %v2440_v54 }
  0x76   : > { %2259 = vmatpush3.bf16.msra.mxu1 %v2439_v53  ;;  %1781 = vmatprep.mubr.bf16.mxu1 %v1955_v24 }
  0x77   : > { %2260 = vmatprep.subr.bf16.mxu1 %v2442_v56 }
  0x78   : > { %2239 = vmatpush3.bf16.msra.mxu0 %v2441_v55 }
  0x79   : > { %2240 = vmatprep.subr.bf16.mxu0 %v2444_v58 }
  0x7a   : > { %2261 = vmatpush3.bf16.msra.mxu1 %v2443_v57 }
  0x7b   : > { %2262 = vmatprep.subr.bf16.mxu1 %v2446_v60 }
  0x7c   : > { %2241 = vmatpush3.bf16.msra.mxu0 %v2445_v59 }
  0x7d   : > { %2242 = vmatprep.subr.bf16.mxu0 %v2448_v62 }
  0x7e   : > { %2263 = vmatpush3.bf16.msra.mxu1 %v2447_v61 }
  0x7f   : > { %2264 = vmatprep.subr.bf16.mxu1 %v2450_v0 }
  0x80   : > { %2243 = vmatpush3.bf16.msra.mxu0 %v2449_v63 }
  0x81   : > { %2244 = vmatprep.subr.bf16.mxu0 %v2452_v2 }
  0x82   : > { %2265 = vmatpush3.bf16.msra.mxu1 %v2451_v1 }
  0x83   : > { %2266 = vmatprep.subr.bf16.mxu1 %v2454_v4 }
  0x84   : > { %2245 = vmatpush3.bf16.msra.mxu0 %v2453_v3 }
  0x85   : > { %2246 = vmatprep.subr.bf16.mxu0 %v2456_v6 }
  0x86   : > { %2267 = vmatpush3.bf16.msra.mxu1 %v2455_v5 }
  0x87   : > { %2268 = vmatprep.subr.bf16.mxu1 %v2458_v8 }
  0x88   : > { %2247 = vmatpush3.bf16.msra.mxu0 %v2457_v7 }
  0x89   : > { %2248 = vmatprep.subr.bf16.mxu0 %v2460_v10 }
  0x8a   : > { %2269 = vmatpush3.bf16.msra.mxu1 %v2459_v9 }
  0x8b   : > { %2270 = vmatprep.subr.bf16.mxu1 %v2462_v12 }
  0x8c   : > { %2249 = vmatpush3.bf16.msra.mxu0 %v2461_v11 }
  0x8d   : > { %2250 = vmatprep.subr.bf16.mxu0 %v2464_v14 }
  0x8e   : > { %2271 = vmatpush3.bf16.msra.mxu1 %v2463_v13 }
  0x8f   : > { %2272 = vmatprep.subr.bf16.mxu1 %v2466_v16 }
  0x90   : > { %2251 = vmatpush3.bf16.msra.mxu0 %v2465_v15 }
  0x91   : > { %2280 = vmatprep.subr.bf16.mxu0 %v2470_v21 }
  0x92   : > { %2273 = vmatpush3.bf16.msra.mxu1 %v2469_v20 }
  0x93   : > { %1742 = vmatmul.mubr.bf16.vlgmr.msra.gmra.mrb[12].mxu0 %v1952_v18 }
  0x94   : > { %2281 = vmatpush3.bf16.msra.mxu0 %v2473_v25  ;;  %1821 = vmatprep.mubr.bf16.mxu0 %v1957_v36 }
  0x95   : > { %1782 = vmatmul.mubr.bf16.vlgmr.msra.gmra.mrb[12].mxu1 %v1954_v23  ;;  %2282 = vmatprep.subr.bf16.mxu0 %v2474_v26 }
  0x98   : > { %2283 = vmatpush3.bf16.msra.mxu0 %v2475_v27 }
  0x99   : > { %2284 = vmatprep.subr.bf16.mxu0 %v2476_v28 }
  0x9c   : > { %2285 = vmatpush3.bf16.msra.mxu0 %v2477_v29 }
  0x9d   : > { %2286 = vmatprep.subr.bf16.mxu0 %v2478_v30 }
  0xa0   : > { %2287 = vmatpush3.bf16.msra.mxu0 %v2479_v31 }
  0xa1   : > { %2288 = vmatprep.subr.bf16.mxu0 %v2480_v32 }
  0xa4   : > { %2289 = vmatpush3.bf16.msra.mxu0 %v2481_v33 }
  0xa5   : > { %2290 = vmatprep.subr.bf16.mxu0 %v2482_v35 }
  0xa8   : > { %2291 = vmatpush3.bf16.msra.mxu0 %v2483_v37 }
  0xa9   : > { %2292 = vmatprep.subr.bf16.mxu0 %v2484_v38 }
  0xac   : > { %2293 = vmatpush3.bf16.msra.mxu0 %v2485_v39 }
  0xad   : > { %2294 = vmatprep.subr.bf16.mxu0 %v2486_v40 }
  0xb0   : > { %2295 = vmatpush3.bf16.msra.mxu0 %v2487_v41 }
  0xb3   : > { %1822 = vmatmul.mubr.bf16.vlgmr.msra.gmra.mrb[16].mxu0 %v1956_v42 }
 0x106   : > { %v2120_v43 = vpop.f32.mrb[0].mxu0 }
 0x107   : > { %v2121_v45 = vpop.f32.mrb[1].mxu0 }
 0x108   : > { %v2122_v46 = vadd.f32 %v2121_v45, %v2120_v43  ;;  %v2123_v47 = vpop.f32.mrb[2].mxu0  ;;  %v2142_v48 = vpop.f32.mrb[0].mxu1 }
 0x109   : > { %v2124_v49 = vpop.f32.mrb[3].mxu0  ;;  %v2143_v50 = vpop.f32.mrb[1].mxu1 }
 0x10a   : > { %v1504_v51 = vadd.f32 %v2122_v46, %v1939_v44  ;;  %v2144_v52 = vadd.f32 %v2143_v50, %v2142_v48  ;;  %v2145_v53 = vpop.f32.mrb[2].mxu1 }
 0x10b   : > { %v2146_v54 = vpop.f32.mrb[3].mxu1 }
 0x10c   : > { %v1544_v55 = vadd.f32 %v2144_v52, %v1504_v51 }
 0x126   : > { %v2164_v56 = vpop.f32.mrb[4].mxu0 }
 0x127   : > { %v2165_v57 = vpop.f32.mrb[5].mxu0 }
 0x128   : > { %v2166_v58 = vadd.f32 %v2165_v57, %v2164_v56  ;;  %v2167_v59 = vpop.f32.mrb[6].mxu0  ;;  %v2186_v60 = vpop.f32.mrb[4].mxu1 }
 0x129   : > { %v2168_v61 = vpop.f32.mrb[7].mxu0  ;;  %v2187_v63 = vpop.f32.mrb[5].mxu1 }
 0x12a   : > { %v1584_v62 = vadd.f32 %v2166_v58, %v1544_v55  ;;  %v2188_v0 = vadd.f32 %v2187_v63, %v2186_v60  ;;  %v2189_v1 = vpop.f32.mrb[6].mxu1 }
 0x12b   : > { %v2190_v2 = vpop.f32.mrb[7].mxu1 }
 0x12c   : > { %v1624_v3 = vadd.f32 %v2188_v0, %v1584_v62 }
 0x146   : > { %v2208_v4 = vpop.f32.mrb[8].mxu0 }
 0x147   : > { %v2209_v5 = vpop.f32.mrb[9].mxu0 }
 0x148   : > { %v2210_v6 = vadd.f32 %v2209_v5, %v2208_v4  ;;  %v2211_v7 = vpop.f32.mrb[10].mxu0  ;;  %v2230_v8 = vpop.f32.mrb[8].mxu1 }
 0x149   : > { %v2212_v9 = vpop.f32.mrb[11].mxu0  ;;  %v2231_v10 = vpop.f32.mrb[9].mxu1 }
 0x14a   : > { %v1664_v11 = vadd.f32 %v2210_v6, %v1624_v3  ;;  %v2232_v12 = vadd.f32 %v2231_v10, %v2230_v8  ;;  %v2233_v13 = vpop.f32.mrb[10].mxu1 }
 0x14b   : > { %v2234_v14 = vpop.f32.mrb[11].mxu1 }
 0x14c   : > { %v1704_v15 = vadd.f32 %v2232_v12, %v1664_v11 }
 0x166   : > { %v2252_v16 = vpop.f32.mrb[12].mxu0 }
 0x167   : > { %v2253_v17 = vpop.f32.mrb[13].mxu0 }
 0x168   : > { %v2254_v18 = vadd.f32 %v2253_v17, %v2252_v16  ;;  %v2255_v19 = vpop.f32.mrb[14].mxu0  ;;  %v2274_v20 = vpop.f32.mrb[12].mxu1 }
 0x169   : > { %v2256_v21 = vpop.f32.mrb[15].mxu0  ;;  %v2275_v22 = vpop.f32.mrb[13].mxu1 }
 0x16a   : > { %v1744_v23 = vadd.f32 %v2254_v18, %v1704_v15  ;;  %v2276_v24 = vadd.f32 %v2275_v22, %v2274_v20  ;;  %v2277_v25 = vpop.f32.mrb[14].mxu1 }
 0x16b   : > { %v2278_v26 = vpop.f32.mrb[15].mxu1 }
 0x16c   : > { %v1784_v27 = vadd.f32 %v2276_v24, %v1744_v23 }
 0x186   : > { %v2296_v28 = vpop.f32.mrb[16].mxu0 }
 0x187   : > { %v2297_v29 = vpop.f32.mrb[17].mxu0 }
 0x188   : > { %v2298_v30 = vadd.f32 %v2297_v29, %v2296_v28  ;;  %v2299_v31 = vpop.f32.mrb[18].mxu0 }
 0x189   : > { %v2300_v32 = vpop.f32.mrb[19].mxu0 }
 0x18a   : > { %v1824_v33 = vadd.f32 %v2298_v30, %v1784_v27 }
 0x18c   : > { %1829 = vst [vmem:[%s236_s30] sm:$0xff] %v1824_v33 }
 0x18d PF: > { %s13_s14 = sadd.s32 1, %s2512_s14   ;;  %s2740_s12 = smov %s2508_s13 }
 0x18e   : > { %p10_p5 = scmp.ge.s32.totalorder %s13_s14, 5   ;;  %s2741_s13 = smov %s2743_s15 }
 0x190   :  { %12 = sbr.rel (!%p10_p5) target bundleno = 2 (0x2), region = 68 }

</bundles_post_ra>
